<compile_context>
chip_gen: v5e
topology: v5e:2x2
jax: 0.10.0
libtpu: 0.0.40
codegen_flags: <defaults>
</compile_context>

<pallas_src>
import math

import jax
import jax.numpy as jnp
from jax.experimental import pallas as pl
from jax.experimental.pallas import tpu as pltpu

EPS = 1e-5          # InstanceNorm1d default eps (affine=False, no running stats)
D_MODEL = 512       # d_model == l_in_channels == key_channels == value_channels
V_IN = 900          # v_in_channels (hard-coded in the module) == H*W of fq1
TEXT_DIM = 768      # raw text feature dim fed to text_proj1


def _instance_norm_axis1(x):
    # PyTorch InstanceNorm1d(D) on a (B, D, L) tensor normalizes each (b, d) over L.
    # In our channel-last (B, L, D) layout that is a per-lane reduction over axis=1.
    # Biased variance, no affine (PyTorch defaults), all f32.
    mean = jnp.mean(x, axis=1, keepdims=True)
    var = jnp.mean((x - mean) ** 2, axis=1, keepdims=True)
    return (x - mean) * jax.lax.rsqrt(var + EPS)


def query_generation_kernel(
    fq1_ref,       # (B, C, HW)   f32   visual features (channel rows, HW lanes)
    text_ref,      # (B, Lt, 768) f32   text features, channel-last
    mask_col_ref,  # (B*Lt, 1)    f32   pad mask column (1 = keep)
    mask_row_ref,  # (B, 1, Lt)   f32   pad mask row (attention bias source)
    pos2_ref,      # (C, HW)      f32   2-D sin/cos positional encoding (transposed)
    pos1_ref,      # (Lt, 512)    f32   1-D sin/cos positional encoding
    wt_ref,        # (768, 512)   bf16  text_proj1 Linear(768,512)
    wq_ref,        # (HW, 512)    bf16  query_proj Conv1d(900,512,k=1)
    wkv_ref,       # (512, 1024)  bf16  fused key|value Conv1d(512,512,k=1) weights
    ww_ref,        # (512, 512)   bf16  W Conv1d(512,512,k=1)
    b3_ref,        # (3, 512)     f32   packed [bt; bq; bw]
    bkv_ref,       # (1, 1024)    f32   fused key|value bias
    o_ref,         # (B, C, 512)  f32   per-batch channel-last output
):
    f32 = jnp.float32
    bf16 = jnp.bfloat16
    B, C, HW = fq1_ref.shape
    _, Lt, Dt = text_ref.shape
    D = wt_ref.shape[1]

    b3 = b3_ref[...]
    bt, bq, bw = b3[0:1, :], b3[1:2, :], b3[2:3, :]

    # ---- text_proj1: Linear(768->512) + ReLU, then + 1-D positional encoding ------
    t = jnp.dot(text_ref[...].reshape(B * Lt, Dt).astype(bf16), wt_ref[...],
                preferred_element_type=f32) + bt
    t = jnp.maximum(t, 0.0)
    l_t = t.reshape(B, Lt, D) + pos1_ref[...]                       # (B, Lt, 512)

    # ---- fused key/value projections (1x1 conv == matmul), masked by pad mask -----
    kv = jnp.dot(l_t.reshape(B * Lt, D).astype(bf16), wkv_ref[...],
                 preferred_element_type=f32) + bkv_ref[...]
    kv = kv * mask_col_ref[...]                                     # (B*Lt, 1024)
    key3 = kv[:, :D].reshape(B, Lt, D)
    val3 = kv[:, D:].reshape(B, Lt, D)

    # ---- query projection (1x1 conv over HW=900) + InstanceNorm1d(512) ------------
    vis = fq1_ref[...] + pos2_ref[...]                              # (B, C, HW)
    q = jnp.dot(vis.reshape(B * C, HW).astype(bf16), wq_ref[...],
                preferred_element_type=f32) + bq                    # (B*C, 512)
    q3 = _instance_norm_axis1(q.reshape(B, C, D))

    # ---- attention: softmax(q @ key^T * dk^-0.5 + mask_bias) @ value (all f32) ----
    att = jnp.einsum("bcd,bld->bcl", q3, key3, preferred_element_type=f32)
    att = att * (D ** -0.5)
    att = att + (10000.0 * mask_row_ref[...] - 10000.0)             # (B, 1, Lt) bias
    att = att - jnp.max(att, axis=-1, keepdims=True)
    att = jnp.exp(att)
    att = att * pl.reciprocal(jnp.sum(att, axis=-1, keepdims=True), approx=True)
    out3 = jnp.einsum("bcl,bld->bcd", att, val3, preferred_element_type=f32)

    # ---- W: Conv1d(512->512) + InstanceNorm1d(512) --------------------------------
    out = jnp.dot(out3.reshape(B * C, D).astype(bf16), ww_ref[...],
                  preferred_element_type=f32) + bw
    out3 = _instance_norm_axis1(out.reshape(B, C, D))

    o_ref[...] = out3.astype(o_ref.dtype)


# ----------------------------- positional encodings ---------------------------------
def pos1d(d_model, length):
    """(length, d_model); pe[:,0::2]=sin, pe[:,1::2]=cos — matches Query_Generation.pos1d."""
    assert d_model % 2 == 0
    pos = jnp.arange(length, dtype=jnp.float32)[:, None]
    div = jnp.exp(jnp.arange(0, d_model, 2, dtype=jnp.float32) * (-math.log(10000.0) / d_model))
    ang = pos * div                                                 # (L, d/2)
    return jnp.stack([jnp.sin(ang), jnp.cos(ang)], axis=-1).reshape(length, d_model)


def pos2d_t(d_model, height, width):
    """(d_model, height*width) == transpose of Query_Generation.pos2d's (H*W, 1, d_model)."""
    assert d_model % 4 == 0
    dm = d_model // 2
    div = jnp.exp(jnp.arange(0, dm, 2, dtype=jnp.float32) * (-math.log(10000.0) / dm))
    ang_w = jnp.arange(width, dtype=jnp.float32)[:, None] * div     # (W, dm/2)
    ang_h = jnp.arange(height, dtype=jnp.float32)[:, None] * div    # (H, dm/2)
    first = jnp.stack([jnp.sin(ang_w), jnp.cos(ang_w)], axis=-1).reshape(width, dm)
    first = jnp.broadcast_to(first[None], (height, width, dm))
    second = jnp.stack([jnp.sin(ang_h), jnp.cos(ang_h)], axis=-1).reshape(height, dm)
    second = jnp.broadcast_to(second[:, None], (height, width, dm))
    pe = jnp.concatenate([first, second], axis=-1)                  # (H, W, d_model)
    return pe.reshape(height * width, d_model).T                    # (d_model, H*W)


# --------------------------------- forward wrapper ----------------------------------
@jax.jit
def query_generation_forward(fq1, text, pad_mask, pos1, pos2, params):
    """Query_Generation.forward.

    fq1:      (B, C, H, W)  visual feature map; H*W must equal 900 (v_in_channels)
    text:     (B, 768, Lt)  raw text features
    pad_mask: (B, Lt, 1)    1.0 for valid tokens, 0.0 for padding
    pos1:     (Lt, 512)     precomputed 1-D positional encoding
    pos2:     (C, H*W)      precomputed (transposed) 2-D positional encoding
    returns   (C, B, 512)   == fgq
    """
    B, C, H, W = fq1.shape
    HW = H * W
    Lt = text.shape[2]
    f32 = jnp.float32

    fq1_flat = fq1.reshape(B, C, HW).astype(f32)              # module's reshape(B, C, -1)
    text_t = jnp.transpose(text, (0, 2, 1)).astype(f32)       # module's text.permute(0,2,1)
    mask_col = pad_mask.astype(f32).reshape(B * Lt, 1)        # per-token keep column
    mask_row = jnp.transpose(pad_mask.astype(f32), (0, 2, 1)) # (B, 1, Lt) attention bias src

    args = (
        fq1_flat, text_t, mask_col, mask_row,
        pos2.astype(f32), pos1.astype(f32),
        params["wt"], params["wq"], params["wkv"], params["ww"],
        params["b3"], params["bkv"],
    )

    def fullspec(shape):
        zeros = (0,) * len(shape)
        return pl.BlockSpec(shape, lambda i, z=zeros: z)

    out = pl.pallas_call(
        query_generation_kernel,
        out_shape=jax.ShapeDtypeStruct((B, C, D_MODEL), f32),
        grid=(1,),                                            # batch folded into matmul M axis
        in_specs=[fullspec(a.shape) for a in args],
        out_specs=fullspec((B, C, D_MODEL)),
        compiler_params=pltpu.CompilerParams(
            dimension_semantics=("arbitrary",),
            vmem_limit_bytes=24 * 1024 * 1024,                # bf16 weights fit with headroom
        ),
    )(*args)

    # Kernel output is channel-last (B, C, 512); fgq = out.permute(2, 0, 1) in torch
    # coordinates reduces to this tiny batch/length swap.
    return jnp.transpose(out, (1, 0, 2))                      # (C, B, 512)


if __name__ == "__main__":
    # Shapes implied by the module: H*W = 900 (v_in_channels), text feature dim 768,
    # d_model = 512 (hard-coded l_in/key/value channels).  Keep B / C / Lt small.
    B, C, H, W = 2, 8, 30, 30
    Lt = 16
    assert H * W == V_IN

    key = jax.random.PRNGKey(0)
    ks = jax.random.split(key, 12)

    fq1 = jax.random.normal(ks[0], (B, C, H, W), dtype=jnp.float32)
    text = jax.random.normal(ks[1], (B, TEXT_DIM, Lt), dtype=jnp.float32)
    # pad mask: batch 0 fully valid, batch 1 half-padded
    valid = jnp.array([Lt, Lt // 2])
    pad_mask = (jnp.arange(Lt)[None, :] < valid[:, None]).astype(jnp.float32)[..., None]  # (B, Lt, 1)

    def rnd(k, shape, scale):
        return scale * jax.random.normal(k, shape, dtype=jnp.float32)

    # Weights stored pre-transposed (in_dim, out_dim) so every projection is a
    # channel-last matmul.  (torch Linear: W.T ; torch Conv1d(k=1): W[:, :, 0].T)
    wt = rnd(ks[2], (TEXT_DIM, D_MODEL), TEXT_DIM ** -0.5); bt = rnd(ks[3], (1, D_MODEL), 0.02)
    wq = rnd(ks[4], (V_IN, D_MODEL), V_IN ** -0.5);         bq = rnd(ks[5], (1, D_MODEL), 0.02)
    wk = rnd(ks[6], (D_MODEL, D_MODEL), D_MODEL ** -0.5);   bk = rnd(ks[7], (1, D_MODEL), 0.02)
    wv = rnd(ks[8], (D_MODEL, D_MODEL), D_MODEL ** -0.5);   bv = rnd(ks[9], (1, D_MODEL), 0.02)
    ww = rnd(ks[10], (D_MODEL, D_MODEL), D_MODEL ** -0.5);  bw = rnd(ks[11], (1, D_MODEL), 0.02)

    # Pack for the kernel: bf16 MXU weights (K/V fused), f32 biases (packed), f32 elsewhere.
    params = dict(
        wt=wt.astype(jnp.bfloat16),
        wq=wq.astype(jnp.bfloat16),
        wkv=jnp.concatenate([wk, wv], axis=1).astype(jnp.bfloat16),   # (512, 1024)
        ww=ww.astype(jnp.bfloat16),
        b3=jnp.concatenate([bt, bq, bw], axis=0),                     # (3, 512)
        bkv=jnp.concatenate([bk, bv], axis=1),                        # (1, 1024)
    )

    # Positional-encoding tables built once, outside jit (constants across calls).
    pos1 = pos1d(D_MODEL, Lt)        # (Lt, 512)
    pos2 = pos2d_t(C, H, W)          # (C, HW)

    fgq = query_generation_forward(fq1, text, pad_mask, pos1, pos2, params)
    jax.block_until_ready(fgq)
    assert fgq.shape == (C, B, D_MODEL), fgq.shape
    assert bool(jnp.all(jnp.isfinite(fgq)))
    print("KERNEL_OK")
</pallas_src>

<mosaic_0001>
module attributes {stable_mosaic.version = 11 : i64} {
  func.func @query_generation_kernel(%arg0: i32, %arg1: memref<2x8x900xf32, #tpu.memory_space<vmem>>, %arg2: memref<2x16x768xf32, #tpu.memory_space<vmem>>, %arg3: memref<32x1xf32, #tpu.memory_space<vmem>>, %arg4: memref<2x1x16xf32, #tpu.memory_space<vmem>>, %arg5: memref<8x900xf32, #tpu.memory_space<vmem>>, %arg6: memref<16x512xf32, #tpu.memory_space<vmem>>, %arg7: memref<768x512xbf16, #tpu.memory_space<vmem>>, %arg8: memref<900x512xbf16, #tpu.memory_space<vmem>>, %arg9: memref<512x1024xbf16, #tpu.memory_space<vmem>>, %arg10: memref<512x512xbf16, #tpu.memory_space<vmem>>, %arg11: memref<3x512xf32, #tpu.memory_space<vmem>>, %arg12: memref<1x1024xf32, #tpu.memory_space<vmem>>, %arg13: memref<2x8x512xf32, #tpu.memory_space<vmem>>) attributes {dimension_semantics = [#tpu.dimension_semantics<arbitrary>], iteration_bounds = array<i64: 1>, scalar_prefetch = 0 : i64, scratch_operands = 0 : i64, tpu.core_type = #tpu.core_type<tc>, window_params = [{pipeline_mode = #tpu.pipeline_mode<synchronous>, transform_indices = @transform_0, window_bounds = array<i64: 2, 8, 900>}, {pipeline_mode = #tpu.pipeline_mode<synchronous>, transform_indices = @transform_1, window_bounds = array<i64: 2, 16, 768>}, {pipeline_mode = #tpu.pipeline_mode<synchronous>, transform_indices = @transform_2, window_bounds = array<i64: 32, 1>}, {pipeline_mode = #tpu.pipeline_mode<synchronous>, transform_indices = @transform_3, window_bounds = array<i64: 2, 1, 16>}, {pipeline_mode = #tpu.pipeline_mode<synchronous>, transform_indices = @transform_4, window_bounds = array<i64: 8, 900>}, {pipeline_mode = #tpu.pipeline_mode<synchronous>, transform_indices = @transform_5, window_bounds = array<i64: 16, 512>}, {pipeline_mode = #tpu.pipeline_mode<synchronous>, transform_indices = @transform_6, window_bounds = array<i64: 768, 512>}, {pipeline_mode = #tpu.pipeline_mode<synchronous>, transform_indices = @transform_7, window_bounds = array<i64: 900, 512>}, {pipeline_mode = #tpu.pipeline_mode<synchronous>, transform_indices = @transform_8, window_bounds = array<i64: 512, 1024>}, {pipeline_mode = #tpu.pipeline_mode<synchronous>, transform_indices = @transform_9, window_bounds = array<i64: 512, 512>}, {pipeline_mode = #tpu.pipeline_mode<synchronous>, transform_indices = @transform_10, window_bounds = array<i64: 3, 512>}, {pipeline_mode = #tpu.pipeline_mode<synchronous>, transform_indices = @transform_11, window_bounds = array<i64: 1, 1024>}, {pipeline_mode = #tpu.pipeline_mode<synchronous>, transform_indices = @transform_12, window_bounds = array<i64: 2, 8, 512>}]} {
    %c0 = arith.constant 0 : index
    %c0_0 = arith.constant 0 : index
    %0 = vector.load %arg11[%c0, %c0_0] : memref<3x512xf32, #tpu.memory_space<vmem>>, vector<3x512xf32>
    %1 = vector.extract_strided_slice %0 {offsets = [0, 0], sizes = [1, 512], strides = [1, 1]} : vector<3x512xf32> to vector<1x512xf32>
    %2 = vector.extract_strided_slice %0 {offsets = [1, 0], sizes = [1, 512], strides = [1, 1]} : vector<3x512xf32> to vector<1x512xf32>
    %3 = vector.extract_strided_slice %0 {offsets = [2, 0], sizes = [1, 512], strides = [1, 1]} : vector<3x512xf32> to vector<1x512xf32>
    %c0_1 = arith.constant 0 : index
    %c0_2 = arith.constant 0 : index
    %c0_3 = arith.constant 0 : index
    %4 = vector.load %arg2[%c0_1, %c0_2, %c0_3] : memref<2x16x768xf32, #tpu.memory_space<vmem>>, vector<2x16x768xf32>
    %5 = vector.shape_cast %4 : vector<2x16x768xf32> to vector<32x768xf32>
    %6 = arith.truncf %5 : vector<32x768xf32> to vector<32x768xbf16>
    %c0_4 = arith.constant 0 : index
    %c0_5 = arith.constant 0 : index
    %7 = vector.load %arg7[%c0_4, %c0_5] : memref<768x512xbf16, #tpu.memory_space<vmem>>, vector<768x512xbf16>
    %cst = arith.constant dense<0.000000e+00> : vector<32x512xf32>
    %8 = tpu.matmul %6, %7, %cst {dimension_numbers = #tpu.dot_dimension_numbers<[1], [0], [0], [1], [0, 0, 1, 1], [], []>} : vector<32x768xbf16>, vector<768x512xbf16>, vector<32x512xf32> -> vector<32x512xf32>
    %9 = vector.broadcast %1 : vector<1x512xf32> to vector<32x512xf32>
    %10 = arith.addf %8, %9 : vector<32x512xf32>
    %cst_6 = arith.constant 0.000000e+00 : f32
    %11 = vector.broadcast %cst_6 : f32 to vector<32x512xf32>
    %12 = arith.maximumf %10, %11 : vector<32x512xf32>
    %13 = vector.shape_cast %12 : vector<32x512xf32> to vector<2x16x512xf32>
    %c0_7 = arith.constant 0 : index
    %c0_8 = arith.constant 0 : index
    %14 = vector.load %arg6[%c0_7, %c0_8] : memref<16x512xf32, #tpu.memory_space<vmem>>, vector<16x512xf32>
    %15 = vector.shape_cast %14 : vector<16x512xf32> to vector<1x16x512xf32>
    %16 = vector.broadcast %15 : vector<1x16x512xf32> to vector<2x16x512xf32>
    %17 = arith.addf %13, %16 : vector<2x16x512xf32>
    %18 = vector.shape_cast %17 : vector<2x16x512xf32> to vector<32x512xf32>
    %19 = arith.truncf %18 : vector<32x512xf32> to vector<32x512xbf16>
    %c0_9 = arith.constant 0 : index
    %c0_10 = arith.constant 0 : index
    %20 = vector.load %arg9[%c0_9, %c0_10] : memref<512x1024xbf16, #tpu.memory_space<vmem>>, vector<512x1024xbf16>
    %cst_11 = arith.constant dense<0.000000e+00> : vector<32x1024xf32>
    %21 = tpu.matmul %19, %20, %cst_11 {dimension_numbers = #tpu.dot_dimension_numbers<[1], [0], [0], [1], [0, 0, 1, 1], [], []>} : vector<32x512xbf16>, vector<512x1024xbf16>, vector<32x1024xf32> -> vector<32x1024xf32>
    %c0_12 = arith.constant 0 : index
    %c0_13 = arith.constant 0 : index
    %22 = vector.load %arg12[%c0_12, %c0_13] : memref<1x1024xf32, #tpu.memory_space<vmem>>, vector<1x1024xf32>
    %23 = vector.broadcast %22 : vector<1x1024xf32> to vector<32x1024xf32>
    %24 = arith.addf %21, %23 : vector<32x1024xf32>
    %c0_14 = arith.constant 0 : index
    %c0_15 = arith.constant 0 : index
    %25 = vector.load %arg3[%c0_14, %c0_15] : memref<32x1xf32, #tpu.memory_space<vmem>>, vector<32x1xf32>
    %26 = vector.broadcast %25 : vector<32x1xf32> to vector<32x1024xf32>
    %27 = arith.mulf %24, %26 : vector<32x1024xf32>
    %28 = vector.extract_strided_slice %27 {offsets = [0, 0], sizes = [32, 512], strides = [1, 1]} : vector<32x1024xf32> to vector<32x512xf32>
    %29 = vector.shape_cast %28 : vector<32x512xf32> to vector<2x16x512xf32>
    %30 = vector.extract_strided_slice %27 {offsets = [0, 512], sizes = [32, 512], strides = [1, 1]} : vector<32x1024xf32> to vector<32x512xf32>
    %31 = vector.shape_cast %30 : vector<32x512xf32> to vector<2x16x512xf32>
    %c0_16 = arith.constant 0 : index
    %c0_17 = arith.constant 0 : index
    %c0_18 = arith.constant 0 : index
    %32 = vector.load %arg1[%c0_16, %c0_17, %c0_18] : memref<2x8x900xf32, #tpu.memory_space<vmem>>, vector<2x8x900xf32>
    %c0_19 = arith.constant 0 : index
    %c0_20 = arith.constant 0 : index
    %33 = vector.load %arg5[%c0_19, %c0_20] : memref<8x900xf32, #tpu.memory_space<vmem>>, vector<8x900xf32>
    %34 = vector.shape_cast %33 : vector<8x900xf32> to vector<1x8x900xf32>
    %35 = vector.broadcast %34 : vector<1x8x900xf32> to vector<2x8x900xf32>
    %36 = arith.addf %32, %35 : vector<2x8x900xf32>
    %37 = vector.shape_cast %36 : vector<2x8x900xf32> to vector<16x900xf32>
    %38 = arith.truncf %37 : vector<16x900xf32> to vector<16x900xbf16>
    %c0_21 = arith.constant 0 : index
    %c0_22 = arith.constant 0 : index
    %39 = vector.load %arg8[%c0_21, %c0_22] : memref<900x512xbf16, #tpu.memory_space<vmem>>, vector<900x512xbf16>
    %cst_23 = arith.constant dense<0.000000e+00> : vector<16x512xf32>
    %40 = tpu.matmul %38, %39, %cst_23 {dimension_numbers = #tpu.dot_dimension_numbers<[1], [0], [0], [1], [0, 0, 1, 1], [], []>} : vector<16x900xbf16>, vector<900x512xbf16>, vector<16x512xf32> -> vector<16x512xf32>
    %41 = vector.broadcast %2 : vector<1x512xf32> to vector<16x512xf32>
    %42 = arith.addf %40, %41 : vector<16x512xf32>
    %43 = vector.shape_cast %42 : vector<16x512xf32> to vector<2x8x512xf32>
    %cst_24 = arith.constant dense<0.000000e+00> : vector<2x512xf32>
    %44 = vector.multi_reduction <add>, %43, %cst_24 [1] : vector<2x8x512xf32> to vector<2x512xf32>
    %45 = vector.shape_cast %44 : vector<2x512xf32> to vector<2x1x512xf32>
    %cst_25 = arith.constant 8.000000e+00 : f32
    %46 = vector.broadcast %cst_25 : f32 to vector<2x1x512xf32>
    %47 = arith.divf %45, %46 : vector<2x1x512xf32>
    %48 = vector.broadcast %47 : vector<2x1x512xf32> to vector<2x8x512xf32>
    %49 = arith.subf %43, %48 : vector<2x8x512xf32>
    %50 = arith.mulf %49, %49 : vector<2x8x512xf32>
    %cst_26 = arith.constant dense<0.000000e+00> : vector<2x512xf32>
    %51 = vector.multi_reduction <add>, %50, %cst_26 [1] : vector<2x8x512xf32> to vector<2x512xf32>
    %52 = vector.shape_cast %51 : vector<2x512xf32> to vector<2x1x512xf32>
    %cst_27 = arith.constant 8.000000e+00 : f32
    %53 = vector.broadcast %cst_27 : f32 to vector<2x1x512xf32>
    %54 = arith.divf %52, %53 : vector<2x1x512xf32>
    %55 = vector.broadcast %47 : vector<2x1x512xf32> to vector<2x8x512xf32>
    %56 = arith.subf %43, %55 : vector<2x8x512xf32>
    %cst_28 = arith.constant 9.99999974E-6 : f32
    %57 = vector.broadcast %cst_28 : f32 to vector<2x1x512xf32>
    %58 = arith.addf %54, %57 : vector<2x1x512xf32>
    %59 = math.rsqrt %58 : vector<2x1x512xf32>
    %60 = vector.broadcast %59 : vector<2x1x512xf32> to vector<2x8x512xf32>
    %61 = arith.mulf %56, %60 : vector<2x8x512xf32>
    "tpu.trace_start"() <{level = 10 : i32, message = "bcd,bld->bcl"}> : () -> ()
    %cst_29 = arith.constant dense<0.000000e+00> : vector<2x8x16xf32>
    %62 = tpu.matmul %61, %29, %cst_29 {dimension_numbers = #tpu.dot_dimension_numbers<[2], [2], [1], [1], [0, 0, 0, 1, 1, 1], [0], [0]>} : vector<2x8x512xf32>, vector<2x16x512xf32>, vector<2x8x16xf32> -> vector<2x8x16xf32>
    "tpu.trace_stop"() : () -> ()
    %cst_30 = arith.constant 0.0441941731 : f32
    %63 = vector.broadcast %cst_30 : f32 to vector<2x8x16xf32>
    %64 = arith.mulf %62, %63 : vector<2x8x16xf32>
    %c0_31 = arith.constant 0 : index
    %c0_32 = arith.constant 0 : index
    %c0_33 = arith.constant 0 : index
    %65 = vector.load %arg4[%c0_31, %c0_32, %c0_33] : memref<2x1x16xf32, #tpu.memory_space<vmem>>, vector<2x1x16xf32>
    %cst_34 = arith.constant 1.000000e+04 : f32
    %66 = vector.broadcast %cst_34 : f32 to vector<2x1x16xf32>
    %67 = arith.mulf %66, %65 : vector<2x1x16xf32>
    %cst_35 = arith.constant 1.000000e+04 : f32
    %68 = vector.broadcast %cst_35 : f32 to vector<2x1x16xf32>
    %69 = arith.subf %67, %68 : vector<2x1x16xf32>
    %70 = vector.broadcast %69 : vector<2x1x16xf32> to vector<2x8x16xf32>
    %71 = arith.addf %64, %70 : vector<2x8x16xf32>
    %cst_36 = arith.constant dense<0xFF800000> : vector<2x8xf32>
    %72 = vector.multi_reduction <maximumf>, %71, %cst_36 [2] : vector<2x8x16xf32> to vector<2x8xf32>
    %73 = vector.shape_cast %72 : vector<2x8xf32> to vector<2x8x1xf32>
    %74 = vector.broadcast %73 : vector<2x8x1xf32> to vector<2x8x16xf32>
    %75 = arith.subf %71, %74 : vector<2x8x16xf32>
    %76 = math.exp %75 : vector<2x8x16xf32>
    %cst_37 = arith.constant dense<0.000000e+00> : vector<2x8xf32>
    %77 = vector.multi_reduction <add>, %76, %cst_37 [2] : vector<2x8x16xf32> to vector<2x8xf32>
    %78 = vector.shape_cast %77 : vector<2x8xf32> to vector<2x8x1xf32>
    %79 = tpu.reciprocal %78 {approx = true} : vector<2x8x1xf32> -> vector<2x8x1xf32>
    %80 = vector.broadcast %79 : vector<2x8x1xf32> to vector<2x8x16xf32>
    %81 = arith.mulf %76, %80 : vector<2x8x16xf32>
    "tpu.trace_start"() <{level = 10 : i32, message = "bcl,bld->bcd"}> : () -> ()
    %cst_38 = arith.constant dense<0.000000e+00> : vector<2x8x512xf32>
    %82 = tpu.matmul %81, %31, %cst_38 {dimension_numbers = #tpu.dot_dimension_numbers<[2], [1], [1], [2], [0, 0, 0, 1, 1, 2], [0], [0]>} : vector<2x8x16xf32>, vector<2x16x512xf32>, vector<2x8x512xf32> -> vector<2x8x512xf32>
    "tpu.trace_stop"() : () -> ()
    %83 = vector.shape_cast %82 : vector<2x8x512xf32> to vector<16x512xf32>
    %84 = arith.truncf %83 : vector<16x512xf32> to vector<16x512xbf16>
    %c0_39 = arith.constant 0 : index
    %c0_40 = arith.constant 0 : index
    %85 = vector.load %arg10[%c0_39, %c0_40] : memref<512x512xbf16, #tpu.memory_space<vmem>>, vector<512x512xbf16>
    %cst_41 = arith.constant dense<0.000000e+00> : vector<16x512xf32>
    %86 = tpu.matmul %84, %85, %cst_41 {dimension_numbers = #tpu.dot_dimension_numbers<[1], [0], [0], [1], [0, 0, 1, 1], [], []>} : vector<16x512xbf16>, vector<512x512xbf16>, vector<16x512xf32> -> vector<16x512xf32>
    %87 = vector.broadcast %3 : vector<1x512xf32> to vector<16x512xf32>
    %88 = arith.addf %86, %87 : vector<16x512xf32>
    %89 = vector.shape_cast %88 : vector<16x512xf32> to vector<2x8x512xf32>
    %cst_42 = arith.constant dense<0.000000e+00> : vector<2x512xf32>
    %90 = vector.multi_reduction <add>, %89, %cst_42 [1] : vector<2x8x512xf32> to vector<2x512xf32>
    %91 = vector.shape_cast %90 : vector<2x512xf32> to vector<2x1x512xf32>
    %cst_43 = arith.constant 8.000000e+00 : f32
    %92 = vector.broadcast %cst_43 : f32 to vector<2x1x512xf32>
    %93 = arith.divf %91, %92 : vector<2x1x512xf32>
    %94 = vector.broadcast %93 : vector<2x1x512xf32> to vector<2x8x512xf32>
    %95 = arith.subf %89, %94 : vector<2x8x512xf32>
    %96 = arith.mulf %95, %95 : vector<2x8x512xf32>
    %cst_44 = arith.constant dense<0.000000e+00> : vector<2x512xf32>
    %97 = vector.multi_reduction <add>, %96, %cst_44 [1] : vector<2x8x512xf32> to vector<2x512xf32>
    %98 = vector.shape_cast %97 : vector<2x512xf32> to vector<2x1x512xf32>
    %cst_45 = arith.constant 8.000000e+00 : f32
    %99 = vector.broadcast %cst_45 : f32 to vector<2x1x512xf32>
    %100 = arith.divf %98, %99 : vector<2x1x512xf32>
    %101 = vector.broadcast %93 : vector<2x1x512xf32> to vector<2x8x512xf32>
    %102 = arith.subf %89, %101 : vector<2x8x512xf32>
    %cst_46 = arith.constant 9.99999974E-6 : f32
    %103 = vector.broadcast %cst_46 : f32 to vector<2x1x512xf32>
    %104 = arith.addf %100, %103 : vector<2x1x512xf32>
    %105 = math.rsqrt %104 : vector<2x1x512xf32>
    %106 = vector.broadcast %105 : vector<2x1x512xf32> to vector<2x8x512xf32>
    %107 = arith.mulf %102, %106 : vector<2x8x512xf32>
    %c0_47 = arith.constant 0 : index
    %c0_48 = arith.constant 0 : index
    %c0_49 = arith.constant 0 : index
    %108 = vector.load %arg13[%c0_47, %c0_48, %c0_49] : memref<2x8x512xf32, #tpu.memory_space<vmem>>, vector<2x8x512xf32>
    tpu.vector_store %arg13[%c0_47, %c0_48, %c0_49], %107 {strides = array<i32>} : memref<2x8x512xf32, #tpu.memory_space<vmem>>, vector<2x8x512xf32>,
    return
  }
  func.func @transform_0(%arg0: i32) -> (i32, i32, i32) {
    %c0_i32 = arith.constant 0 : i32
    %c0_i32_0 = arith.constant 0 : i32
    %c0_i32_1 = arith.constant 0 : i32
    %c0_i32_2 = arith.constant 0 : i32
    return %c0_i32, %c0_i32_0, %c0_i32_1 : i32, i32, i32
  }
  func.func @transform_1(%arg0: i32) -> (i32, i32, i32) {
    %c0_i32 = arith.constant 0 : i32
    %c0_i32_0 = arith.constant 0 : i32
    %c0_i32_1 = arith.constant 0 : i32
    %c0_i32_2 = arith.constant 0 : i32
    return %c0_i32, %c0_i32_0, %c0_i32_1 : i32, i32, i32
  }
  func.func @transform_2(%arg0: i32) -> (i32, i32) {
    %c0_i32 = arith.constant 0 : i32
    %c0_i32_0 = arith.constant 0 : i32
    %c0_i32_1 = arith.constant 0 : i32
    return %c0_i32, %c0_i32_0 : i32, i32
  }
  func.func @transform_3(%arg0: i32) -> (i32, i32, i32) {
    %c0_i32 = arith.constant 0 : i32
    %c0_i32_0 = arith.constant 0 : i32
    %c0_i32_1 = arith.constant 0 : i32
    %c0_i32_2 = arith.constant 0 : i32
    return %c0_i32, %c0_i32_0, %c0_i32_1 : i32, i32, i32
  }
  func.func @transform_4(%arg0: i32) -> (i32, i32) {
    %c0_i32 = arith.constant 0 : i32
    %c0_i32_0 = arith.constant 0 : i32
    %c0_i32_1 = arith.constant 0 : i32
    return %c0_i32, %c0_i32_0 : i32, i32
  }
  func.func @transform_5(%arg0: i32) -> (i32, i32) {
    %c0_i32 = arith.constant 0 : i32
    %c0_i32_0 = arith.constant 0 : i32
    %c0_i32_1 = arith.constant 0 : i32
    return %c0_i32, %c0_i32_0 : i32, i32
  }
  func.func @transform_6(%arg0: i32) -> (i32, i32) {
    %c0_i32 = arith.constant 0 : i32
    %c0_i32_0 = arith.constant 0 : i32
    %c0_i32_1 = arith.constant 0 : i32
    return %c0_i32, %c0_i32_0 : i32, i32
  }
  func.func @transform_7(%arg0: i32) -> (i32, i32) {
    %c0_i32 = arith.constant 0 : i32
    %c0_i32_0 = arith.constant 0 : i32
    %c0_i32_1 = arith.constant 0 : i32
    return %c0_i32, %c0_i32_0 : i32, i32
  }
  func.func @transform_8(%arg0: i32) -> (i32, i32) {
    %c0_i32 = arith.constant 0 : i32
    %c0_i32_0 = arith.constant 0 : i32
    %c0_i32_1 = arith.constant 0 : i32
    return %c0_i32, %c0_i32_0 : i32, i32
  }
  func.func @transform_9(%arg0: i32) -> (i32, i32) {
    %c0_i32 = arith.constant 0 : i32
    %c0_i32_0 = arith.constant 0 : i32
    %c0_i32_1 = arith.constant 0 : i32
    return %c0_i32, %c0_i32_0 : i32, i32
  }
  func.func @transform_10(%arg0: i32) -> (i32, i32) {
    %c0_i32 = arith.constant 0 : i32
    %c0_i32_0 = arith.constant 0 : i32
    %c0_i32_1 = arith.constant 0 : i32
    return %c0_i32, %c0_i32_0 : i32, i32
  }
  func.func @transform_11(%arg0: i32) -> (i32, i32) {
    %c0_i32 = arith.constant 0 : i32
    %c0_i32_0 = arith.constant 0 : i32
    %c0_i32_1 = arith.constant 0 : i32
    return %c0_i32, %c0_i32_0 : i32, i32
  }
  func.func @transform_12(%arg0: i32) -> (i32, i32, i32) {
    %c0_i32 = arith.constant 0 : i32
    %c0_i32_0 = arith.constant 0 : i32
    %c0_i32_1 = arith.constant 0 : i32
    %c0_i32_2 = arith.constant 0 : i32
    return %c0_i32, %c0_i32_0, %c0_i32_1 : i32, i32, i32
  }
}

</mosaic_0001>

<bundles_post_ra>
// kernel: query_generation_forward.1
= control target key start
LH: loop header
LB: loop body
LE: loop exit
PB: predicated region body
PF: predicated region fallthrough
CT: control target
= control target key end

     0   :  { %17 = vsyncpa [#allocation3], 0  ;;  %s14415_s0 = inlined_call_operand.vmem [shape: f32[2,8,900], index: 0, kind: input, shape index: {}]   ;;  %s14416_s1 = inlined_call_operand.hbm [shape: f32[2,16,768], index: 1, kind: input, shape index: {}]   ;;  %s14417_s2 = inlined_call_operand.vmem [shape: f32[32,1], index: 2, kind: input, shape index: {}]   ;;  %s14418_s3 = inlined_call_operand.vmem [shape: f32[2,1,16], index: 3, kind: input, shape index: {}]   ;;  %s14419_s4 = inlined_call_operand.vmem [shape: f32[8,900], index: 4, kind: input, shape index: {}]   ;;  %s14420_s5 = inlined_call_operand.hbm [shape: f32[16,512], index: 5, kind: input, shape index: {}]   ;;  %s14421_s6 = inlined_call_operand.vmem [shape: bf16[768,512], index: 6, kind: input, shape index: {}]   ;;  %s14422_s7 = inlined_call_operand.hbm [shape: bf16[900,512], index: 7, kind: input, shape index: {}]   ;;  %s14423_s8 = inlined_call_operand.hbm [shape: bf16[512,1024], index: 8, kind: input, shape index: {}]   ;;  %s14424_s9 = inlined_call_operand.hbm [shape: bf16[512,512], index: 9, kind: input, shape index: {}]   ;;  %s14425_s10 = inlined_call_operand.vmem [shape: f32[3,512], index: 10, kind: input, shape index: {}]   ;;  %s14426_s11 = inlined_call_operand.vmem [shape: f32[1,1024], index: 11, kind: input, shape index: {}]   ;;  %s14427_s12 = inlined_call_operand.vmem [shape: f32[2,8,512], index: 12, kind: output, shape index: {}]  }
   0x1   :  { %18 = vsyncpa [#allocation5], 0  ;;  %s45_s23 = sshll.u32 %s14420_s5, 4  ;;  %s46_s23 = int_to_ptr.hbm [resolvable:$true] %s45_s23 }
   0x2   :  { %19 = vsyncpa [#allocation8], 0  ;;  %s11973_s24 = smov [#allocation4]   ;;  %s73_s28 = sshll.u32 %s14423_s8, 4  ;;  %s74_s28 = int_to_ptr.hbm [resolvable:$true] %s73_s28 }
   0x3   :  { %s47_s25 = sshll.u32 %s11973_s24, 4  ;;  %s11974_s29 = smov 512   ;;  %s48_s25 = int_to_ptr.vmem [resolvable:$true] %s47_s25 }
   0x4   :  { %s11975_s30 = smov 32   ;;  %s11976_s13 = smov [#allocation7]  }
   0x5   :  { %53 = dma.hbm_to_vmem [thread:$0]  %s46_s23, 1024, %s48_s25, [#allocation5], %s11974_s29, %s11974_s29, %s11975_s30  }
   0x6   :  { %s75_s14 = sshll.u32 %s11976_s13, 4  ;;  %s26_s17 = sshll.u32 %s14416_s1, 4  ;;  %s76_s14 = int_to_ptr.vmem [resolvable:$true] %s75_s14  ;;  %s27_s17 = int_to_ptr.hbm [resolvable:$true] %s26_s17 }
   0x7   :  { %81 = dma.hbm_to_vmem [thread:$0]  %s74_s28, 32768, %s76_s14, [#allocation8], %s11974_s29, %s11974_s29, %s11975_s30  }
   0x8   :  { %s11977_s5 = smov [#allocation2]   ;;  %s60_s8 = sshll.u32 %s14422_s7, 4  ;;  %s61_s8 = int_to_ptr.hbm [resolvable:$true] %s60_s8 }
   0x9   :  { %s28_s18 = sshll.u32 %s11977_s5, 4  ;;  %s11978_s21 = smov 768   ;;  %s29_s18 = int_to_ptr.vmem [resolvable:$true] %s28_s18 }
   0xa   :  { %s11979_s22 = smov 48   ;;  %s11980_s23 = smov [#allocation6]  }
   0xb   :  { %34 = dma.hbm_to_vmem [thread:$0]  %s27_s17, 3072, %s29_s18, [#allocation3], %s11978_s21, %s11978_s21, %s11979_s22  }
   0xc   :  { %s62_s24 = sshll.u32 %s11980_s23, 4  ;;  %s11981_s25 = smov 256   ;;  %s63_s24 = int_to_ptr.vmem [resolvable:$true] %s62_s24 }
   0xd   :  { %s11982_s26 = smov 16   ;;  %s86_s28 = sshll.u32 %s14424_s9, 4  ;;  %s87_s28 = int_to_ptr.hbm [resolvable:$true] %s86_s28 }
   0xe   :  { %68 = dma.hbm_to_vmem [thread:$0]  %s61_s8, 28928, %s63_s24, [#allocation5], %s11981_s25, %s11981_s25, %s11982_s26  }
   0xf   :  { %s11983_s29 = smov [#allocation9]  }
  0x10   :  { %s88_s30 = sshll.u32 %s11983_s29, 4  ;;  %s89_s30 = int_to_ptr.vmem [resolvable:$true] %s88_s30 }
  0x11   :  { %94 = dma.hbm_to_vmem [thread:$0]  %s87_s28, 16384, %s89_s30, [#allocation8], %s11981_s25, %s11981_s25, %s11982_s26  }
  0x12   :  { %11967 = dma.done.wait [#allocation3], 3072  }
  0x13   :  { %11968 = vsyncadd [#allocation3], 4294964224 }
  0x14   :  { %11969 = dma.done.wait [#allocation5], 29952  }
  0x15   :  { %11970 = vsyncadd [#allocation5], 4294937344 }
  0x16   :  { %11971 = dma.done.wait [#allocation8], 49152  }
  0x17   :  { %11972 = vsyncadd [#allocation8], 4294918144  ;;  %v7884_v0 = vld [vmem:[%s14421_s6 + $0xe0] sm:$0xf]  ;;  %v11014_v1 = vld [vmem:[%s14421_s6 + $0xec] sm:$0xf0] }
  0x18   :  { %v8012_v2 = vld [vmem:[%s14421_s6 + $0x1e0] sm:$0xf]  ;;  %v7885_v3 = vor.u32 %v11014_v1, %v7884_v0  ;;  %v11046_v4 = vld [vmem:[%s14421_s6 + $0x1ec] sm:$0xf0]  ;;  %vm5466_vm0 = vcmask 1041408   ;;  %vm5462_vm1 = vcmask 31744  }
  0x19   :  { %v8140_v5 = vld [vmem:[%s14421_s6 + $0x2e0] sm:$0xf]  ;;  %v11078_v6 = vld [vmem:[%s14421_s6 + $0x2ec] sm:$0xf0]  ;;  %v8013_v7 = vor.u32 %v11046_v4, %v8012_v2 }
  0x1a   :  { %v8141_v8 = vor.u32 %v11078_v6, %v8140_v5  ;;  %v8268_v9 = vld [vmem:[%s14421_s6 + $0x3e0] sm:$0xf]  ;;  %v11110_v10 = vld [vmem:[%s14421_s6 + $0x3ec] sm:$0xf0]  ;;  %1324 = vmatpush.bf16.msra.mxu0 %v7885_v3 }
  0x1b   :  { %v7868_v11 = vld [vmem:[%s14421_s6 + $0xc0] sm:$0xf]  ;;  %v8269_v12 = vor.u32 %v11110_v10, %v8268_v9  ;;  %v11010_v13 = vld [vmem:[%s14421_s6 + $0xcc] sm:$0xf0]  ;;  %1343 = vmatpush.bf16.msra.mxu1 %v8013_v7 }
  0x1c   :  { %v7996_v14 = vld [vmem:[%s14421_s6 + $0x1c0] sm:$0xf]  ;;  %v11042_v15 = vld [vmem:[%s14421_s6 + $0x1cc] sm:$0xf0]  ;;  %1362 = vmatpush.bf16.msra.mxu2 %v8141_v8  ;;  %v7869_v16 = vor.u32 %v11010_v13, %v7868_v11 }
  0x1d   :  { %v7997_v17 = vor.u32 %v11042_v15, %v7996_v14  ;;  %v8124_v18 = vld [vmem:[%s14421_s6 + $0x2c0] sm:$0xf]  ;;  %v11074_v19 = vld [vmem:[%s14421_s6 + $0x2cc] sm:$0xf0]  ;;  %1381 = vmatpush.bf16.msra.mxu3 %v8269_v12 }
  0x1e   :  { %v8252_v20 = vld [vmem:[%s14421_s6 + $0x3c0] sm:$0xf]  ;;  %v8125_v21 = vor.u32 %v11074_v19, %v8124_v18  ;;  %v11106_v22 = vld [vmem:[%s14421_s6 + $0x3cc] sm:$0xf0]  ;;  %1325 = vmatpush.bf16.msra.mxu0 %v7869_v16 }
  0x1f   :  { %v7852_v23 = vld [vmem:[%s14421_s6 + $0xa0] sm:$0xf]  ;;  %v11006_v24 = vld [vmem:[%s14421_s6 + $0xac] sm:$0xf0]  ;;  %v8253_v25 = vor.u32 %v11106_v22, %v8252_v20  ;;  %1344 = vmatpush.bf16.msra.mxu1 %v7997_v17 }
  0x20   :  { %v7980_v26 = vld [vmem:[%s14421_s6 + $0x1a0] sm:$0xf]  ;;  %v11038_v27 = vld [vmem:[%s14421_s6 + $0x1ac] sm:$0xf0]  ;;  %v7853_v29 = vor.u32 %v11006_v24, %v7852_v23  ;;  %1363 = vmatpush.bf16.msra.mxu2 %v8125_v21 }
  0x21   :  { %v8108_v28 = vld [vmem:[%s14421_s6 + $0x2a0] sm:$0xf]  ;;  %v11070_v30 = vld [vmem:[%s14421_s6 + $0x2ac] sm:$0xf0]  ;;  %v7981_v33 = vor.u32 %v11038_v27, %v7980_v26  ;;  %1382 = vmatpush.bf16.msra.mxu3 %v8253_v25 }
  0x22   :  { %v8236_v31 = vld [vmem:[%s14421_s6 + $0x3a0] sm:$0xf]  ;;  %v11102_v32 = vld [vmem:[%s14421_s6 + $0x3ac] sm:$0xf0]  ;;  %v8109_v34 = vor.u32 %v11070_v30, %v8108_v28  ;;  %1326 = vmatpush.bf16.msra.mxu0 %v7853_v29  ;;  %v123_v30 = vld [vmem:[#allocation2 + $0x8] sm:$0xff] }
  0x23   :  { %v7836_v35 = vld [vmem:[%s14421_s6 + $0x80] sm:$0xf]  ;;  %v11002_v36 = vld [vmem:[%s14421_s6 + $0x8c] sm:$0xf0]  ;;  %v8237_v38 = vor.u32 %v11102_v32, %v8236_v31  ;;  %1345 = vmatpush.bf16.msra.mxu1 %v7981_v33  ;;  %v129_v31 = vld [vmem:[#allocation2 + $0x38] sm:$0xff] }
  0x24   :  { %v7964_v37 = vld [vmem:[%s14421_s6 + $0x180] sm:$0xf]  ;;  %v11034_v39 = vld [vmem:[%s14421_s6 + $0x18c] sm:$0xf0]  ;;  %v7837_v44 = vor.u32 %v11002_v36, %v7836_v35  ;;  %1364 = vmatpush.bf16.msra.mxu2 %v8109_v34 }
  0x25   :  { %v8092_v40 = vld [vmem:[%s14421_s6 + $0x280] sm:$0xf]  ;;  %v11066_v41 = vld [vmem:[%s14421_s6 + $0x28c] sm:$0xf0]  ;;  %v7965_v45 = vor.u32 %v11034_v39, %v7964_v37  ;;  %1383 = vmatpush.bf16.msra.mxu3 %v8237_v38 }
  0x26   :  { %v8220_v42 = vld [vmem:[%s14421_s6 + $0x380] sm:$0xf]  ;;  %v11098_v43 = vld [vmem:[%s14421_s6 + $0x38c] sm:$0xf0]  ;;  %v8093_v46 = vor.u32 %v11066_v41, %v8092_v40  ;;  %1327 = vmatpush.bf16.msra.mxu0 %v7837_v44  ;;  %v125_v41 = vld [vmem:[#allocation2 + $0x18] sm:$0xff] }
  0x27   :  { %v7820_v47 = vld [vmem:[%s14421_s6 + $0x60] sm:$0xf]  ;;  %v10998_v48 = vld [vmem:[%s14421_s6 + $0x6c] sm:$0xf0]  ;;  %v8221_v50 = vor.u32 %v11098_v43, %v8220_v42  ;;  %1346 = vmatpush.bf16.msra.mxu1 %v7965_v45  ;;  %v131_v42 = vld [vmem:[#allocation2 + $0x48] sm:$0xff] }
  0x28   :  { %v7948_v49 = vld [vmem:[%s14421_s6 + $0x160] sm:$0xf]  ;;  %v11030_v51 = vld [vmem:[%s14421_s6 + $0x16c] sm:$0xf0]  ;;  %v7821_v56 = vor.u32 %v10998_v48, %v7820_v47  ;;  %1365 = vmatpush.bf16.msra.mxu2 %v8093_v46  ;;  %v11012_v45 = vld [vmem:[%s14421_s6 + $0xe4] sm:$0xf] }
  0x29   :  { %v8076_v52 = vld [vmem:[%s14421_s6 + $0x260] sm:$0xf]  ;;  %v11062_v53 = vld [vmem:[%s14421_s6 + $0x26c] sm:$0xf0]  ;;  %v7949_v57 = vor.u32 %v11030_v51, %v7948_v49  ;;  %1384 = vmatpush.bf16.msra.mxu3 %v8221_v50  ;;  %v7886_v46 = vld [vmem:[%s14421_s6 + $0xf0] sm:$0xf0] }
  0x2a   :  { %v8204_v54 = vld [vmem:[%s14421_s6 + $0x360] sm:$0xf]  ;;  %v11094_v55 = vld [vmem:[%s14421_s6 + $0x36c] sm:$0xf0]  ;;  %v8077_v58 = vor.u32 %v11062_v53, %v8076_v52  ;;  %1328 = vmatpush.bf16.msra.mxu0 %v7821_v56  ;;  %v11044_v47 = vld [vmem:[%s14421_s6 + $0x1e4] sm:$0xf]  ;;  %v12290_v53 = vpack.c.bf16 %v129_v31, %v123_v30 }
  0x2b   :  { %v7804_v59 = vld [vmem:[%s14421_s6 + $0x40] sm:$0xf]  ;;  %v10994_v60 = vld [vmem:[%s14421_s6 + $0x4c] sm:$0xf0]  ;;  %v8205_v62 = vor.u32 %v11094_v55, %v8204_v54  ;;  %1347 = vmatpush.bf16.msra.mxu1 %v7949_v57  ;;  %v8014_v50 = vld [vmem:[%s14421_s6 + $0x1f0] sm:$0xf0]  ;;  %v12300_v57 = vpack.c.bf16 %v131_v42, %v125_v41 }
  0x2c   :  { %v7932_v61 = vld [vmem:[%s14421_s6 + $0x140] sm:$0xf]  ;;  %v11026_v63 = vld [vmem:[%s14421_s6 + $0x14c] sm:$0xf0]  ;;  %v7805_v4 = vor.u32 %v10994_v60, %v7804_v59  ;;  %1366 = vmatpush.bf16.msra.mxu2 %v8077_v58  ;;  %v7889_v58 = vor.u32 %v11012_v45, %v7886_v46  ;;  %v8017_v59 = vor.u32 %v11044_v47, %v8014_v50  ;;  %v10996_v41 = vld [vmem:[%s14421_s6 + $0x64] sm:$0xf] }
  0x2d   :  { %v8060_v0 = vld [vmem:[%s14421_s6 + $0x240] sm:$0xf]  ;;  %v11058_v1 = vld [vmem:[%s14421_s6 + $0x24c] sm:$0xf0]  ;;  %v7933_v5 = vor.u32 %v11026_v63, %v7932_v61  ;;  %1385 = vmatpush.bf16.msra.mxu3 %v8205_v62  ;;  %v11008_v61 = vld [vmem:[%s14421_s6 + $0xc4] sm:$0xf] }
  0x2e   :  { %v8188_v2 = vld [vmem:[%s14421_s6 + $0x340] sm:$0xf]  ;;  %v11090_v3 = vld [vmem:[%s14421_s6 + $0x34c] sm:$0xf0]  ;;  %v8061_v6 = vor.u32 %v11058_v1, %v8060_v0  ;;  %1329 = vmatpush.bf16.msra.mxu0 %v7805_v4  ;;  %v7870_v62 = vld [vmem:[%s14421_s6 + $0xd0] sm:$0xf0] }
  0x2f   :  { %v7788_v7 = vld [vmem:[%s14421_s6 + $0x20] sm:$0xf]  ;;  %v10990_v8 = vld [vmem:[%s14421_s6 + $0x2c] sm:$0xf0]  ;;  %v8189_v10 = vor.u32 %v11090_v3, %v8188_v2  ;;  %1348 = vmatpush.bf16.msra.mxu1 %v7933_v5  ;;  %v11040_v63 = vld [vmem:[%s14421_s6 + $0x1c4] sm:$0xf] }
  0x30   :  { %v7916_v9 = vld [vmem:[%s14421_s6 + $0x120] sm:$0xf]  ;;  %v11022_v11 = vld [vmem:[%s14421_s6 + $0x12c] sm:$0xf0]  ;;  %v7789_v17 = vor.u32 %v10990_v8, %v7788_v7  ;;  %1367 = vmatpush.bf16.msra.mxu2 %v8061_v6  ;;  %v7998_v1 = vld [vmem:[%s14421_s6 + $0x1d0] sm:$0xf0]  ;;  %v7873_v6 = vor.u32 %v11008_v61, %v7870_v62 }
  0x31   :  { %v8044_v12 = vld [vmem:[%s14421_s6 + $0x220] sm:$0xf]  ;;  %v11054_v13 = vld [vmem:[%s14421_s6 + $0x22c] sm:$0xf0]  ;;  %v7917_v21 = vor.u32 %v11022_v11, %v7916_v9  ;;  %1386 = vmatpush.bf16.msra.mxu3 %v8189_v10  ;;  %v8001_v7 = vor.u32 %v11040_v63, %v7998_v1  ;;  %v11004_v9 = vld [vmem:[%s14421_s6 + $0xa4] sm:$0xf] }
  0x32   :  { %v8172_v14 = vld [vmem:[%s14421_s6 + $0x320] sm:$0xf]  ;;  %v11086_v15 = vld [vmem:[%s14421_s6 + $0x32c] sm:$0xf0]  ;;  %v8045_v22 = vor.u32 %v11054_v13, %v8044_v12  ;;  %1330 = vmatpush.bf16.msra.mxu0 %v7789_v17  ;;  %v7854_v10 = vld [vmem:[%s14421_s6 + $0xb0] sm:$0xf0] }
  0x33   :  { %v7772_v16 = vld [vmem:[%s14421_s6] sm:$0xf]  ;;  %v10986_v18 = vld [vmem:[%s14421_s6 + $0xc] sm:$0xf0]  ;;  %v8173_v26 = vor.u32 %v11086_v15, %v8172_v14  ;;  %1349 = vmatpush.bf16.msra.mxu1 %v7917_v21  ;;  %v11036_v11 = vld [vmem:[%s14421_s6 + $0x1a4] sm:$0xf] }
  0x34   :  { %v7900_v19 = vld [vmem:[%s14421_s6 + $0x100] sm:$0xf]  ;;  %v11018_v20 = vld [vmem:[%s14421_s6 + $0x10c] sm:$0xf0]  ;;  %v7773_v34 = vor.u32 %v10986_v18, %v7772_v16  ;;  %1368 = vmatpush.bf16.msra.mxu2 %v8045_v22  ;;  %v7982_v13 = vld [vmem:[%s14421_s6 + $0x1b0] sm:$0xf0]  ;;  %v7857_v18 = vor.u32 %v11004_v9, %v7854_v10 }
  0x35   :  { %v8028_v23 = vld [vmem:[%s14421_s6 + $0x200] sm:$0xf]  ;;  %v11050_v24 = vld [vmem:[%s14421_s6 + $0x20c] sm:$0xf0]  ;;  %v7901_v38 = vor.u32 %v11018_v20, %v7900_v19  ;;  %1387 = vmatpush.bf16.msra.mxu3 %v8173_v26  ;;  %v11000_v19 = vld [vmem:[%s14421_s6 + $0x84] sm:$0xf]  ;;  %v7985_v22 = vor.u32 %v11036_v11, %v7982_v13 }
  0x36   :  { %v8156_v25 = vld [vmem:[%s14421_s6 + $0x300] sm:$0xf]  ;;  %v11082_v27 = vld [vmem:[%s14421_s6 + $0x30c] sm:$0xf0]  ;;  %v8029_v39 = vor.u32 %v11050_v24, %v8028_v23  ;;  %1331 = vmatpush.bf16.msra.mxu0 %v7773_v34  ;;  %v7838_v20 = vld [vmem:[%s14421_s6 + $0x90] sm:$0xf0] }
  0x37   :  { %v122_v28 = vld [vmem:[#allocation2] sm:$0xff]  ;;  %v128_v29 = vld [vmem:[#allocation2 + $0x30] sm:$0xff]  ;;  %v8157_v43 = vor.u32 %v11082_v27, %v8156_v25  ;;  %1350 = vmatpush.bf16.msra.mxu1 %v7901_v38  ;;  %v143_v38 = vld [vmem:[#allocation2 + $0xa8] sm:$0xff] }
  0x38   :  { %v8396_v32 = vld [vmem:[%s14421_s6 + $0x4e0] sm:$0xf]  ;;  %v11142_v33 = vld [vmem:[%s14421_s6 + $0x4ec] sm:$0xf0]  ;;  %v12279_v48 = vpack.c.bf16 %v128_v29, %v122_v28  ;;  %1369 = vmatpush.bf16.msra.mxu2 %v8029_v39  ;;  %v11032_v21 = vld [vmem:[%s14421_s6 + $0x184] sm:$0xf] }
  0x39   :  { %v124_v35 = vld [vmem:[#allocation2 + $0x10] sm:$0xff]  ;;  %v8524_v36 = vld [vmem:[%s14421_s6 + $0x5e0] sm:$0xf]  ;;  %v8397_v44 = vor.u32 %v11142_v33, %v8396_v32  ;;  %1388 = vmatpush.bf16.msra.mxu3 %v8157_v43  ;;  %v135_v28 = vld [vmem:[#allocation2 + $0x68] sm:$0xff] }
  0x3a   :  { %v11174_v37 = vld [vmem:[%s14421_s6 + $0x5ec] sm:$0xf0]  ;;  %v130_v40 = vld [vmem:[#allocation2 + $0x40] sm:$0xff]  ;;  %1332 = vmatmul.bf16.vlgmr.msra.gmra.mxu0 %v12279_v48  ;;  %1351 = vmatmul.bf16.vlgmr.msra.gmra.mxu1 %v12290_v53  ;;  %v7966_v24 = vld [vmem:[%s14421_s6 + $0x190] sm:$0xf0] }
  0x3b   :  { %v8525_v49 = vor.u32 %v11174_v37, %v8524_v36  ;;  %v8380_v51 = vld [vmem:[%s14421_s6 + $0x4c0] sm:$0xf]  ;;  %v11138_v52 = vld [vmem:[%s14421_s6 + $0x4cc] sm:$0xf0]  ;;  %v12292_v54 = vpack.c.bf16 %v130_v40, %v124_v35  ;;  %1400 = vmatpush.bf16.msrb.mxu0 %v8397_v44  ;;  %v141_v29 = vld [vmem:[#allocation2 + $0x98] sm:$0xff]  ;;  %v7841_v35 = vor.u32 %v11000_v19, %v7838_v20  ;;  %v7969_v39 = vor.u32 %v11032_v21, %v7966_v24 }
  0x3c   :  { %v8508_v55 = vld [vmem:[%s14421_s6 + $0x5c0] sm:$0xf]  ;;  %v11170_v56 = vld [vmem:[%s14421_s6 + $0x5cc] sm:$0xf0]  ;;  %v8381_v60 = vor.u32 %v11138_v52, %v8380_v51  ;;  %1389 = vmatmul.bf16.vlgmr.msra.gmra.mxu3 %v12300_v57  ;;  %1438 = vmatpush.bf16.msrb.mxu2 %v7889_v58  ;;  %v137_v37 = vld [vmem:[#allocation2 + $0x78] sm:$0xff]  ;;  %v12398_v50 = vpack.c.bf16 %v141_v29, %v135_v28 }
  0x3d   :  { %1419 = vmatpush.bf16.msrb.mxu1 %v8525_v49  ;;  %v8509_v0 = vor.u32 %v11170_v56, %v8508_v55  ;;  %v8364_v2 = vld [vmem:[%s14421_s6 + $0x4a0] sm:$0xf]  ;;  %v11134_v3 = vld [vmem:[%s14421_s6 + $0x4ac] sm:$0xf0]  ;;  %1370 = vmatmul.bf16.vlgmr.msra.gmra.mxu2 %v12292_v54  ;;  %v7822_v42 = vld [vmem:[%s14421_s6 + $0x70] sm:$0xf0]  ;;  %v12408_v56 = vpack.c.bf16 %v143_v38, %v137_v37 }
  0x3e   :  { %v8492_v4 = vld [vmem:[%s14421_s6 + $0x5a0] sm:$0xf]  ;;  %v11166_v5 = vld [vmem:[%s14421_s6 + $0x5ac] sm:$0xf0]  ;;  %1457 = vmatpush.bf16.msrb.mxu3 %v8017_v59  ;;  %v8365_v8 = vor.u32 %v11134_v3, %v8364_v2  ;;  %v11028_v43 = vld [vmem:[%s14421_s6 + $0x164] sm:$0xf]  ;;  %v7825_v58 = vor.u32 %v10996_v41, %v7822_v42 }
  0x3f   :  { %1401 = vmatpush.bf16.msrb.mxu0 %v8381_v60  ;;  %v8493_v12 = vor.u32 %v11166_v5, %v8492_v4  ;;  %v8348_v14 = vld [vmem:[%s14421_s6 + $0x480] sm:$0xf]  ;;  %v11130_v15 = vld [vmem:[%s14421_s6 + $0x48c] sm:$0xf0]  ;;  %v7950_v46 = vld [vmem:[%s14421_s6 + $0x170] sm:$0xf0] }
  0x40   :  { %v8476_v16 = vld [vmem:[%s14421_s6 + $0x580] sm:$0xf]  ;;  %v11162_v17 = vld [vmem:[%s14421_s6 + $0x58c] sm:$0xf0]  ;;  %1439 = vmatpush.bf16.msrb.mxu2 %v7873_v6  ;;  %v8349_v23 = vor.u32 %v11130_v15, %v8348_v14  ;;  %v7953_v59 = vor.u32 %v11028_v43, %v7950_v46  ;;  %v10992_v61 = vld [vmem:[%s14421_s6 + $0x44] sm:$0xf] }
  0x41   :  { %1420 = vmatpush.bf16.msrb.mxu1 %v8509_v0  ;;  %v134_v25 = vld [vmem:[#allocation2 + $0x60] sm:$0xff]  ;;  %v140_v26 = vld [vmem:[#allocation2 + $0x90] sm:$0xff]  ;;  %v8477_v27 = vor.u32 %v11162_v17, %v8476_v16 }
  0x42   :  { %1458 = vmatpush.bf16.msrb.mxu3 %v8001_v7  ;;  %v8332_v30 = vld [vmem:[%s14421_s6 + $0x460] sm:$0xf]  ;;  %v11126_v31 = vld [vmem:[%s14421_s6 + $0x46c] sm:$0xf0]  ;;  %v12387_v44 = vpack.c.bf16 %v140_v26, %v134_v25  ;;  %v7806_v62 = vld [vmem:[%s14421_s6 + $0x50] sm:$0xf0] }
  0x43   :  { %1402 = vmatpush.bf16.msrb.mxu0 %v8365_v8  ;;  %v136_v32 = vld [vmem:[#allocation2 + $0x70] sm:$0xff]  ;;  %v8460_v33 = vld [vmem:[%s14421_s6 + $0x560] sm:$0xf]  ;;  %v8333_v40 = vor.u32 %v11126_v31, %v8332_v30  ;;  %v11024_v63 = vld [vmem:[%s14421_s6 + $0x144] sm:$0xf]  ;;  %v7809_v6 = vor.u32 %v10992_v61, %v7806_v62 }
  0x44   :  { %v11158_v34 = vld [vmem:[%s14421_s6 + $0x56c] sm:$0xf0]  ;;  %1440 = vmatpush.bf16.msrb.mxu2 %v7857_v18  ;;  %v142_v36 = vld [vmem:[#allocation2 + $0xa0] sm:$0xff]  ;;  %v7934_v1 = vld [vmem:[%s14421_s6 + $0x150] sm:$0xf0] }
  0x45   :  { %1421 = vmatpush.bf16.msrb.mxu1 %v8493_v12  ;;  %v8461_v45 = vor.u32 %v11158_v34, %v8460_v33  ;;  %v8316_v47 = vld [vmem:[%s14421_s6 + $0x440] sm:$0xf]  ;;  %v11122_v49 = vld [vmem:[%s14421_s6 + $0x44c] sm:$0xf0]  ;;  %v12400_v51 = vpack.c.bf16 %v142_v36, %v136_v32  ;;  %v10988_v7 = vld [vmem:[%s14421_s6 + $0x24] sm:$0xf]  ;;  %v7937_v8 = vor.u32 %v11024_v63, %v7934_v1 }
  0x46   :  { %1459 = vmatpush.bf16.msrb.mxu3 %v7985_v22  ;;  %v8444_v52 = vld [vmem:[%s14421_s6 + $0x540] sm:$0xf]  ;;  %v11154_v55 = vld [vmem:[%s14421_s6 + $0x54c] sm:$0xf0]  ;;  %v8317_v60 = vor.u32 %v11122_v49, %v8316_v47  ;;  %v7790_v10 = vld [vmem:[%s14421_s6 + $0x30] sm:$0xf0] }
  0x47   :  { %1403 = vmatpush.bf16.msrb.mxu0 %v8349_v23  ;;  %v8445_v0 = vor.u32 %v11154_v55, %v8444_v52  ;;  %v8300_v2 = vld [vmem:[%s14421_s6 + $0x420] sm:$0xf]  ;;  %v11118_v3 = vld [vmem:[%s14421_s6 + $0x42c] sm:$0xf0]  ;;  %v11020_v11 = vld [vmem:[%s14421_s6 + $0x124] sm:$0xf]  ;;  %v7793_v20 = vor.u32 %v10988_v7, %v7790_v10 }
  0x48   :  { %1441 = vmatpush.bf16.msrb.mxu2 %v7841_v35  ;;  %v8428_v4 = vld [vmem:[%s14421_s6 + $0x520] sm:$0xf]  ;;  %v11150_v5 = vld [vmem:[%s14421_s6 + $0x52c] sm:$0xf0]  ;;  %v8301_v9 = vor.u32 %v11118_v3, %v8300_v2  ;;  %v7918_v12 = vld [vmem:[%s14421_s6 + $0x130] sm:$0xf0] }
  0x49   :  { %1422 = vmatpush.bf16.msrb.mxu1 %v8477_v27  ;;  %v8429_v13 = vor.u32 %v11150_v5, %v8428_v4  ;;  %v8284_v14 = vld [vmem:[%s14421_s6 + $0x400] sm:$0xf]  ;;  %v11114_v15 = vld [vmem:[%s14421_s6 + $0x40c] sm:$0xf0]  ;;  %v11076_v18 = vld [vmem:[%s14421_s6 + $0x2e4] sm:$0xf]  ;;  %v7921_v24 = vor.u32 %v11020_v11, %v7918_v12 }
  0x4a   :  { %1460 = vmatpush.bf16.msrb.mxu3 %v7969_v39  ;;  %1337 = vmatmul.bf16.gmra.mxu0 %v12387_v44  ;;  %v8412_v16 = vld [vmem:[%s14421_s6 + $0x500] sm:$0xf]  ;;  %v11146_v17 = vld [vmem:[%s14421_s6 + $0x50c] sm:$0xf0]  ;;  %v8142_v19 = vld [vmem:[%s14421_s6 + $0x2f0] sm:$0xf0]  ;;  %v8285_v25 = vor.u32 %v11114_v15, %v8284_v14 }
  0x4b   :  { %1404 = vmatpush.bf16.msrb.mxu0 %v8333_v40  ;;  %1356 = vmatmul.bf16.gmra.mxu1 %v12398_v50  ;;  %v10984_v21 = vld [vmem:[%s14421_s6 + $0x4] sm:$0xf]  ;;  %v8270_v23 = vld [vmem:[%s14421_s6 + $0x3f0] sm:$0xf0]  ;;  %v8413_v29 = vor.u32 %v11146_v17, %v8412_v16  ;;  %v8145_v31 = vor.u32 %v11076_v18, %v8142_v19  ;;  %v127_v39 = vld [vmem:[#allocation2 + $0x28] sm:$0xff] }
  0x4c   :  { %1394 = vmatmul.bf16.gmra.mxu3 %v12408_v56  ;;  %1442 = vmatpush.bf16.msrb.mxu2 %v7825_v58  ;;  %v11108_v22 = vld [vmem:[%s14421_s6 + $0x3e4] sm:$0xf]  ;;  %v7774_v26 = vld [vmem:[%s14421_s6 + $0x10] sm:$0xf0]  ;;  %v133_v40 = vld [vmem:[#allocation2 + $0x58] sm:$0xff] }
  0x4d   :  { %1423 = vmatpush.bf16.msrb.mxu1 %v8461_v45  ;;  %1375 = vmatmul.bf16.gmra.mxu2 %v12400_v51  ;;  %v11016_v27 = vld [vmem:[%s14421_s6 + $0x104] sm:$0xf]  ;;  %v7902_v28 = vld [vmem:[%s14421_s6 + $0x110] sm:$0xf0]  ;;  %v8273_v35 = vor.u32 %v11108_v22, %v8270_v23  ;;  %v7777_v38 = vor.u32 %v10984_v21, %v7774_v26 }
  0x4e   :  { %1461 = vmatpush.bf16.msrb.mxu3 %v7953_v59  ;;  %v126_v30 = vld [vmem:[#allocation2 + $0x20] sm:$0xff]  ;;  %v8398_v33 = vld [vmem:[%s14421_s6 + $0x4f0] sm:$0xf0]  ;;  %v7905_v41 = vor.u32 %v11016_v27, %v7902_v28  ;;  %v12518_v59 = vpack.c.bf16 %v133_v40, %v127_v39 }
  0x4f   :  { %1405 = vmatpush.bf16.msrb.mxu0 %v8317_v60  ;;  %v11140_v32 = vld [vmem:[%s14421_s6 + $0x4e4] sm:$0xf]  ;;  %v132_v34 = vld [vmem:[#allocation2 + $0x50] sm:$0xff] }
  0x50   :  { %1443 = vmatpush.bf16.msrb.mxu2 %v7809_v6  ;;  %v11172_v36 = vld [vmem:[%s14421_s6 + $0x5e4] sm:$0xf]  ;;  %v8526_v37 = vld [vmem:[%s14421_s6 + $0x5f0] sm:$0xf0]  ;;  %v8401_v42 = vor.u32 %v11140_v32, %v8398_v33  ;;  %v12507_v47 = vpack.c.bf16 %v132_v34, %v126_v30 }
  0x51   :  { %1424 = vmatpush.bf16.msrb.mxu1 %v8445_v0  ;;  %v11072_v43 = vld [vmem:[%s14421_s6 + $0x2c4] sm:$0xf]  ;;  %v8126_v45 = vld [vmem:[%s14421_s6 + $0x2d0] sm:$0xf0]  ;;  %v8529_v49 = vor.u32 %v11172_v36, %v8526_v37  ;;  %v139_v36 = vld [vmem:[#allocation2 + $0x88] sm:$0xff] }
  0x52   :  { %1462 = vmatpush.bf16.msrb.mxu3 %v7937_v8  ;;  %v11104_v46 = vld [vmem:[%s14421_s6 + $0x3c4] sm:$0xf]  ;;  %v8254_v52 = vld [vmem:[%s14421_s6 + $0x3d0] sm:$0xf0]  ;;  %v8129_v62 = vor.u32 %v11072_v43, %v8126_v45  ;;  %v145_v37 = vld [vmem:[#allocation2 + $0xb8] sm:$0xff] }
  0x53   :  { %1406 = vmatpush.bf16.msrb.mxu0 %v8301_v9  ;;  %v11136_v55 = vld [vmem:[%s14421_s6 + $0x4c4] sm:$0xf]  ;;  %v8382_v58 = vld [vmem:[%s14421_s6 + $0x4d0] sm:$0xf0]  ;;  %v8257_v63 = vor.u32 %v11104_v46, %v8254_v52 }
  0x54   :  { %1444 = vmatpush.bf16.msrb.mxu2 %v7793_v20  ;;  %v11168_v60 = vld [vmem:[%s14421_s6 + $0x5c4] sm:$0xf]  ;;  %v8510_v61 = vld [vmem:[%s14421_s6 + $0x5d0] sm:$0xf0]  ;;  %v8385_v0 = vor.u32 %v11136_v55, %v8382_v58  ;;  %v12622_v58 = vpack.c.bf16 %v145_v37, %v139_v36 }
  0x55   :  { %1425 = vmatpush.bf16.msrb.mxu1 %v8429_v13  ;;  %v11068_v1 = vld [vmem:[%s14421_s6 + $0x2a4] sm:$0xf]  ;;  %v8110_v2 = vld [vmem:[%s14421_s6 + $0x2b0] sm:$0xf0]  ;;  %v8513_v4 = vor.u32 %v11168_v60, %v8510_v61 }
  0x56   :  { %1463 = vmatpush.bf16.msrb.mxu3 %v7921_v24  ;;  %v11100_v3 = vld [vmem:[%s14421_s6 + $0x3a4] sm:$0xf]  ;;  %v8238_v5 = vld [vmem:[%s14421_s6 + $0x3b0] sm:$0xf0]  ;;  %v8113_v10 = vor.u32 %v11068_v1, %v8110_v2 }
  0x57   :  { %1407 = vmatpush.bf16.msrb.mxu0 %v8285_v25  ;;  %v11132_v6 = vld [vmem:[%s14421_s6 + $0x4a4] sm:$0xf]  ;;  %v8366_v7 = vld [vmem:[%s14421_s6 + $0x4b0] sm:$0xf0]  ;;  %v8241_v11 = vor.u32 %v11100_v3, %v8238_v5 }
  0x58   :  { %1445 = vmatpush.bf16.msrb.mxu2 %v7777_v38  ;;  %v11164_v8 = vld [vmem:[%s14421_s6 + $0x5a4] sm:$0xf]  ;;  %v8494_v9 = vld [vmem:[%s14421_s6 + $0x5b0] sm:$0xf0]  ;;  %v8369_v12 = vor.u32 %v11132_v6, %v8366_v7 }
  0x59   :  { %1426 = vmatpush.bf16.msrb.mxu1 %v8413_v29  ;;  %v11064_v13 = vld [vmem:[%s14421_s6 + $0x284] sm:$0xf]  ;;  %v8094_v14 = vld [vmem:[%s14421_s6 + $0x290] sm:$0xf0]  ;;  %v8497_v16 = vor.u32 %v11164_v8, %v8494_v9 }
  0x5a   :  { %1464 = vmatpush.bf16.msrb.mxu3 %v7905_v41  ;;  %1408 = vmatmul.bf16.vlgmr.msrb.gmra.mxu0 %v12507_v47  ;;  %v11096_v15 = vld [vmem:[%s14421_s6 + $0x384] sm:$0xf]  ;;  %v8222_v17 = vld [vmem:[%s14421_s6 + $0x390] sm:$0xf0]  ;;  %v8097_v22 = vor.u32 %v11064_v13, %v8094_v14 }
  0x5b   :  { %1476 = vmatpush.bf16.msra.mxu0 %v8145_v31  ;;  %v11128_v18 = vld [vmem:[%s14421_s6 + $0x484] sm:$0xf]  ;;  %v8350_v19 = vld [vmem:[%s14421_s6 + $0x490] sm:$0xf0]  ;;  %v8225_v23 = vor.u32 %v11096_v15, %v8222_v17 }
  0x5c   :  { %1514 = vmatpush.bf16.msra.mxu2 %v8401_v42  ;;  %1427 = vmatmul.bf16.vlgmr.msrb.gmra.mxu1 %v12518_v59  ;;  %v11160_v20 = vld [vmem:[%s14421_s6 + $0x584] sm:$0xf]  ;;  %v8478_v21 = vld [vmem:[%s14421_s6 + $0x590] sm:$0xf0]  ;;  %v8353_v24 = vor.u32 %v11128_v18, %v8350_v19 }
  0x5d   :  { %1495 = vmatpush.bf16.msra.mxu1 %v8273_v35  ;;  %1446 = vmatmul.bf16.vlgmr.msrb.gmra.mxu2 %v12279_v48  ;;  %v138_v25 = vld [vmem:[#allocation2 + $0x80] sm:$0xff]  ;;  %v8078_v27 = vld [vmem:[%s14421_s6 + $0x270] sm:$0xf0]  ;;  %v8481_v29 = vor.u32 %v11160_v20, %v8478_v21 }
  0x5e   :  { %1533 = vmatpush.bf16.msra.mxu3 %v8529_v49  ;;  %v11060_v26 = vld [vmem:[%s14421_s6 + $0x264] sm:$0xf]  ;;  %v8206_v30 = vld [vmem:[%s14421_s6 + $0x370] sm:$0xf0] }
  0x5f   :  { %1465 = vmatmul.bf16.vlgmr.msrb.gmra.mxu3 %v12290_v53  ;;  %1477 = vmatpush.bf16.msra.mxu0 %v8129_v62  ;;  %v11092_v28 = vld [vmem:[%s14421_s6 + $0x364] sm:$0xf]  ;;  %v8334_v32 = vld [vmem:[%s14421_s6 + $0x470] sm:$0xf0]  ;;  %v8081_v38 = vor.u32 %v11060_v26, %v8078_v27  ;;  %v11047_v26 = vld [vmem:[%s14421_s6 + $0x1f4] sm:$0xf0] }
  0x60   :  { %1515 = vmatpush.bf16.msra.mxu2 %v8385_v0  ;;  %v11124_v31 = vld [vmem:[%s14421_s6 + $0x464] sm:$0xf]  ;;  %v144_v33 = vld [vmem:[#allocation2 + $0xb0] sm:$0xff]  ;;  %v8209_v39 = vor.u32 %v11092_v28, %v8206_v30  ;;  %v8148_v27 = vld [vmem:[%s14421_s6 + $0x2e8] sm:$0xf] }
  0x61   :  { %1496 = vmatpush.bf16.msra.mxu1 %v8257_v63  ;;  %v11156_v34 = vld [vmem:[%s14421_s6 + $0x564] sm:$0xf]  ;;  %v8462_v35 = vld [vmem:[%s14421_s6 + $0x570] sm:$0xf0]  ;;  %v8337_v40 = vor.u32 %v11124_v31, %v8334_v32  ;;  %v12611_v45 = vpack.c.bf16 %v144_v33, %v138_v25  ;;  %v11079_v28 = vld [vmem:[%s14421_s6 + $0x2f4] sm:$0xf0] }
  0x62   :  { %1534 = vmatpush.bf16.msra.mxu3 %v8513_v4  ;;  %v11056_v41 = vld [vmem:[%s14421_s6 + $0x244] sm:$0xf]  ;;  %v8062_v42 = vld [vmem:[%s14421_s6 + $0x250] sm:$0xf0]  ;;  %v8465_v46 = vor.u32 %v11156_v34, %v8462_v35  ;;  %v8276_v31 = vld [vmem:[%s14421_s6 + $0x3e8] sm:$0xf]  ;;  %v8149_v36 = vor.u32 %v11079_v28, %v8148_v27 }
  0x63   :  { %1478 = vmatpush.bf16.msra.mxu0 %v8113_v10  ;;  %v11088_v43 = vld [vmem:[%s14421_s6 + $0x344] sm:$0xf]  ;;  %v8190_v49 = vld [vmem:[%s14421_s6 + $0x350] sm:$0xf0]  ;;  %v8065_v62 = vor.u32 %v11056_v41, %v8062_v42  ;;  %v11111_v32 = vld [vmem:[%s14421_s6 + $0x3f4] sm:$0xf0] }
  0x64   :  { %1516 = vmatpush.bf16.msra.mxu2 %v8369_v12  ;;  %v11120_v52 = vld [vmem:[%s14421_s6 + $0x444] sm:$0xf]  ;;  %v8318_v55 = vld [vmem:[%s14421_s6 + $0x450] sm:$0xf0]  ;;  %v8193_v63 = vor.u32 %v11088_v43, %v8190_v49  ;;  %v8277_v37 = vor.u32 %v11111_v32, %v8276_v31  ;;  %v11043_v41 = vld [vmem:[%s14421_s6 + $0x1d4] sm:$0xf0] }
  0x65   :  { %1497 = vmatpush.bf16.msra.mxu1 %v8241_v11  ;;  %v11152_v60 = vld [vmem:[%s14421_s6 + $0x544] sm:$0xf]  ;;  %v8446_v61 = vld [vmem:[%s14421_s6 + $0x550] sm:$0xf0]  ;;  %v8321_v0 = vor.u32 %v11120_v52, %v8318_v55  ;;  %v8132_v42 = vld [vmem:[%s14421_s6 + $0x2c8] sm:$0xf] }
  0x66   :  { %1535 = vmatpush.bf16.msra.mxu3 %v8497_v16  ;;  %v11052_v1 = vld [vmem:[%s14421_s6 + $0x224] sm:$0xf]  ;;  %v8046_v2 = vld [vmem:[%s14421_s6 + $0x230] sm:$0xf0]  ;;  %v8449_v4 = vor.u32 %v11152_v60, %v8446_v61  ;;  %v11075_v43 = vld [vmem:[%s14421_s6 + $0x2d4] sm:$0xf0] }
  0x67   :  { %1479 = vmatpush.bf16.msra.mxu0 %v8097_v22  ;;  %v11084_v3 = vld [vmem:[%s14421_s6 + $0x324] sm:$0xf]  ;;  %v8174_v5 = vld [vmem:[%s14421_s6 + $0x330] sm:$0xf0]  ;;  %v8049_v10 = vor.u32 %v11052_v1, %v8046_v2  ;;  %v7892_v22 = vld [vmem:[%s14421_s6 + $0xe8] sm:$0xf]  ;;  %v8133_v60 = vor.u32 %v11075_v43, %v8132_v42 }
  0x68   :  { %1517 = vmatpush.bf16.msra.mxu2 %v8353_v24  ;;  %v11116_v6 = vld [vmem:[%s14421_s6 + $0x424] sm:$0xf]  ;;  %v8302_v7 = vld [vmem:[%s14421_s6 + $0x430] sm:$0xf0]  ;;  %v8177_v13 = vor.u32 %v11084_v3, %v8174_v5  ;;  %v8020_v24 = vld [vmem:[%s14421_s6 + $0x1e8] sm:$0xf] }
  0x69   :  { %1498 = vmatpush.bf16.msra.mxu1 %v8225_v23  ;;  %v11148_v8 = vld [vmem:[%s14421_s6 + $0x524] sm:$0xf]  ;;  %v8430_v9 = vld [vmem:[%s14421_s6 + $0x530] sm:$0xf0]  ;;  %v8305_v14 = vor.u32 %v11116_v6, %v8302_v7  ;;  %v11015_v23 = vld [vmem:[%s14421_s6 + $0xf4] sm:$0xf0]  ;;  %v8021_v35 = vor.u32 %v11047_v26, %v8020_v24 }
  0x6a   :  { %1536 = vmatpush.bf16.msra.mxu3 %v8481_v29  ;;  %1413 = vmatmul.bf16.gmra.mxu0 %v12611_v45  ;;  %v11048_v11 = vld [vmem:[%s14421_s6 + $0x204] sm:$0xf]  ;;  %v8030_v12 = vld [vmem:[%s14421_s6 + $0x210] sm:$0xf0]  ;;  %v8433_v18 = vor.u32 %v11148_v8, %v8430_v9  ;;  %v7893_v34 = vor.u32 %v11015_v23, %v7892_v22  ;;  %v11107_v49 = vld [vmem:[%s14421_s6 + $0x3d4] sm:$0xf0] }
  0x6b   :  { %1480 = vmatpush.bf16.msra.mxu0 %v8081_v38  ;;  %v11080_v15 = vld [vmem:[%s14421_s6 + $0x304] sm:$0xf]  ;;  %v8158_v16 = vld [vmem:[%s14421_s6 + $0x310] sm:$0xf0]  ;;  %v8033_v25 = vor.u32 %v11048_v11, %v8030_v12  ;;  %v7876_v38 = vld [vmem:[%s14421_s6 + $0xc8] sm:$0xf] }
  0x6c   :  { %1518 = vmatpush.bf16.msra.mxu2 %v8337_v40  ;;  %1432 = vmatmul.bf16.gmra.mxu1 %v12622_v58  ;;  %v11112_v17 = vld [vmem:[%s14421_s6 + $0x404] sm:$0xf]  ;;  %v8286_v19 = vld [vmem:[%s14421_s6 + $0x410] sm:$0xf0]  ;;  %v8161_v29 = vor.u32 %v11080_v15, %v8158_v16  ;;  %v8004_v40 = vld [vmem:[%s14421_s6 + $0x1c8] sm:$0xf] }
  0x6d   :  { %1499 = vmatpush.bf16.msra.mxu1 %v8209_v39  ;;  %1451 = vmatmul.bf16.gmra.mxu2 %v12387_v44  ;;  %v11144_v20 = vld [vmem:[%s14421_s6 + $0x504] sm:$0xf]  ;;  %v8414_v21 = vld [vmem:[%s14421_s6 + $0x510] sm:$0xf0]  ;;  %v8289_v30 = vor.u32 %v11112_v17, %v8286_v19  ;;  %v11011_v39 = vld [vmem:[%s14421_s6 + $0xd4] sm:$0xf0]  ;;  %v8005_v55 = vor.u32 %v11043_v41, %v8004_v40 }
  0x6e   :  { %1537 = vmatpush.bf16.msra.mxu3 %v8465_v46  ;;  %v8417_v33 = vor.u32 %v11144_v20, %v8414_v21  ;;  %v8260_v46 = vld [vmem:[%s14421_s6 + $0x3c8] sm:$0xf]  ;;  %v7877_v52 = vor.u32 %v11011_v39, %v7876_v38  ;;  %v11039_v1 = vld [vmem:[%s14421_s6 + $0x1b4] sm:$0xf0] }
  0x6f   :  { %1470 = vmatmul.bf16.gmra.mxu3 %v12398_v50  ;;  %1481 = vmatpush.bf16.msra.mxu0 %v8065_v62  ;;  %v7860_v61 = vld [vmem:[%s14421_s6 + $0xa8] sm:$0xf]  ;;  %v11007_v62 = vld [vmem:[%s14421_s6 + $0xb4] sm:$0xf0] }
  0x70   :  { %1519 = vmatpush.bf16.msra.mxu2 %v8321_v0  ;;  %v8261_v0 = vor.u32 %v11107_v49, %v8260_v46  ;;  %v8116_v2 = vld [vmem:[%s14421_s6 + $0x2a8] sm:$0xf]  ;;  %v11071_v3 = vld [vmem:[%s14421_s6 + $0x2b4] sm:$0xf0]  ;;  %v7861_v6 = vor.u32 %v11007_v62, %v7860_v61 }
  0x71   :  { %1500 = vmatpush.bf16.msra.mxu1 %v8193_v63  ;;  %v7988_v63 = vld [vmem:[%s14421_s6 + $0x1a8] sm:$0xf]  ;;  %v11103_v5 = vld [vmem:[%s14421_s6 + $0x3b4] sm:$0xf0]  ;;  %v8117_v8 = vor.u32 %v11071_v3, %v8116_v2 }
  0x72   :  { %1538 = vmatpush.bf16.msra.mxu3 %v8449_v4  ;;  %v8244_v4 = vld [vmem:[%s14421_s6 + $0x3a8] sm:$0xf]  ;;  %v7989_v7 = vor.u32 %v11039_v1, %v7988_v63  ;;  %v11067_v15 = vld [vmem:[%s14421_s6 + $0x294] sm:$0xf0] }
  0x73   :  { %1482 = vmatpush.bf16.msra.mxu0 %v8049_v10  ;;  %v7844_v9 = vld [vmem:[%s14421_s6 + $0x88] sm:$0xf]  ;;  %v11003_v10 = vld [vmem:[%s14421_s6 + $0x94] sm:$0xf0]  ;;  %v8245_v12 = vor.u32 %v11103_v5, %v8244_v4 }
  0x74   :  { %1520 = vmatpush.bf16.msra.mxu2 %v8305_v14  ;;  %v7972_v11 = vld [vmem:[%s14421_s6 + $0x188] sm:$0xf]  ;;  %v11099_v17 = vld [vmem:[%s14421_s6 + $0x394] sm:$0xf0] }
  0x75   :  { %1501 = vmatpush.bf16.msra.mxu1 %v8177_v13  ;;  %v11035_v13 = vld [vmem:[%s14421_s6 + $0x194] sm:$0xf0]  ;;  %v8100_v14 = vld [vmem:[%s14421_s6 + $0x288] sm:$0xf] }
  0x76   :  { %1539 = vmatpush.bf16.msra.mxu3 %v8433_v18  ;;  %v8228_v16 = vld [vmem:[%s14421_s6 + $0x388] sm:$0xf]  ;;  %v7845_v18 = vor.u32 %v11003_v10, %v7844_v9  ;;  %v7973_v19 = vor.u32 %v11035_v13, %v7972_v11  ;;  %v8101_v20 = vor.u32 %v11067_v15, %v8100_v14  ;;  %v10999_v22 = vld [vmem:[%s14421_s6 + $0x74] sm:$0xf0] }
  0x77   :  { %1483 = vmatpush.bf16.msra.mxu0 %v8033_v25  ;;  %v7828_v21 = vld [vmem:[%s14421_s6 + $0x68] sm:$0xf]  ;;  %v8229_v24 = vor.u32 %v11099_v17, %v8228_v16  ;;  %v11031_v25 = vld [vmem:[%s14421_s6 + $0x174] sm:$0xf0] }
  0x78   :  { %1521 = vmatpush.bf16.msra.mxu2 %v8289_v30  ;;  %v7956_v23 = vld [vmem:[%s14421_s6 + $0x168] sm:$0xf]  ;;  %v11063_v27 = vld [vmem:[%s14421_s6 + $0x274] sm:$0xf0]  ;;  %v7829_v30 = vor.u32 %v10999_v22, %v7828_v21 }
  0x79   :  { %1502 = vmatpush.bf16.msra.mxu1 %v8161_v29  ;;  %v8084_v26 = vld [vmem:[%s14421_s6 + $0x268] sm:$0xf]  ;;  %v11095_v29 = vld [vmem:[%s14421_s6 + $0x374] sm:$0xf0]  ;;  %v7957_v31 = vor.u32 %v11031_v25, %v7956_v23  ;;  %v11045_v23 = vld [vmem:[%s14421_s6 + $0x1ec] sm:$0xf] }
  0x7a   :  { %1540 = vmatpush.bf16.msra.mxu3 %v8417_v33  ;;  %1484 = vmatmul.bf16.vlgmr.msra.gmra.mxu0 %v12292_v54  ;;  %v8212_v28 = vld [vmem:[%s14421_s6 + $0x368] sm:$0xf]  ;;  %v8085_v32 = vor.u32 %v11063_v27, %v8084_v26  ;;  %v11059_v39 = vld [vmem:[%s14421_s6 + $0x254] sm:$0xf0] }
  0x7b   :  { %1552 = vmatpush.bf16.msrb.mxu0 %v7893_v34  ;;  %v7812_v33 = vld [vmem:[%s14421_s6 + $0x48] sm:$0xf]  ;;  %v10995_v34 = vld [vmem:[%s14421_s6 + $0x54] sm:$0xf0] }
  0x7c   :  { %1590 = vmatpush.bf16.msrb.mxu2 %v8149_v36  ;;  %1503 = vmatmul.bf16.vlgmr.msra.gmra.mxu1 %v12300_v57  ;;  %v8213_v36 = vor.u32 %v11095_v29, %v8212_v28  ;;  %v8068_v38 = vld [vmem:[%s14421_s6 + $0x248] sm:$0xf]  ;;  %v11091_v41 = vld [vmem:[%s14421_s6 + $0x354] sm:$0xf0]  ;;  %v7813_v42 = vor.u32 %v10995_v34, %v7812_v33  ;;  %v11009_v34 = vld [vmem:[%s14421_s6 + $0xcc] sm:$0xf] }
  0x7d   :  { %1571 = vmatpush.bf16.msrb.mxu1 %v8021_v35  ;;  %1522 = vmatmul.bf16.vlgmr.msra.gmra.mxu2 %v12507_v47  ;;  %v7940_v35 = vld [vmem:[%s14421_s6 + $0x148] sm:$0xf]  ;;  %v8069_v46 = vor.u32 %v11059_v39, %v8068_v38  ;;  %v11023_v61 = vld [vmem:[%s14421_s6 + $0x134] sm:$0xf0] }
  0x7e   :  { %1609 = vmatpush.bf16.msrb.mxu3 %v8277_v37  ;;  %v11027_v37 = vld [vmem:[%s14421_s6 + $0x154] sm:$0xf0]  ;;  %v8196_v40 = vld [vmem:[%s14421_s6 + $0x348] sm:$0xf] }
  0x7f   :  { %1541 = vmatmul.bf16.vlgmr.msra.gmra.mxu3 %v12518_v59  ;;  %1553 = vmatpush.bf16.msrb.mxu0 %v7877_v52  ;;  %v7941_v43 = vor.u32 %v11027_v37, %v7940_v35  ;;  %v7796_v49 = vld [vmem:[%s14421_s6 + $0x28] sm:$0xf]  ;;  %v10991_v52 = vld [vmem:[%s14421_s6 + $0x34] sm:$0xf0]  ;;  %v7878_v35 = vld [vmem:[%s14421_s6 + $0xd8] sm:$0xf0] }
  0x80   :  { %1591 = vmatpush.bf16.msrb.mxu2 %v8133_v60  ;;  %v8197_v60 = vor.u32 %v11091_v41, %v8196_v40  ;;  %v8052_v62 = vld [vmem:[%s14421_s6 + $0x228] sm:$0xf]  ;;  %v11055_v63 = vld [vmem:[%s14421_s6 + $0x234] sm:$0xf0]  ;;  %v7797_v2 = vor.u32 %v10991_v52, %v7796_v49  ;;  %v8006_v37 = vld [vmem:[%s14421_s6 + $0x1d8] sm:$0xf0]  ;;  %v7881_v40 = vor.u32 %v11009_v34, %v7878_v35 }
  0x81   :  { %1572 = vmatpush.bf16.msrb.mxu1 %v8005_v55  ;;  %v7924_v55 = vld [vmem:[%s14421_s6 + $0x128] sm:$0xf]  ;;  %v11087_v1 = vld [vmem:[%s14421_s6 + $0x334] sm:$0xf0]  ;;  %v11005_v52 = vld [vmem:[%s14421_s6 + $0xac] sm:$0xf] }
  0x82   :  { %1610 = vmatpush.bf16.msrb.mxu3 %v8261_v0  ;;  %v8180_v0 = vld [vmem:[%s14421_s6 + $0x328] sm:$0xf]  ;;  %v10987_v4 = vld [vmem:[%s14421_s6 + $0x14] sm:$0xf0]  ;;  %v7925_v5 = vor.u32 %v11023_v61, %v7924_v55  ;;  %v7862_v55 = vld [vmem:[%s14421_s6 + $0xb8] sm:$0xf0] }
  0x83   :  { %1554 = vmatpush.bf16.msrb.mxu0 %v7861_v6  ;;  %v7780_v3 = vld [vmem:[%s14421_s6 + $0x8] sm:$0xf]  ;;  %v8053_v6 = vor.u32 %v11055_v63, %v8052_v62  ;;  %v8181_v10 = vor.u32 %v11087_v1, %v8180_v0  ;;  %v11051_v11 = vld [vmem:[%s14421_s6 + $0x214] sm:$0xf0]  ;;  %v7990_v61 = vld [vmem:[%s14421_s6 + $0x1b8] sm:$0xf0]  ;;  %v7865_v0 = vor.u32 %v11005_v52, %v7862_v55 }
  0x84   :  { %1592 = vmatpush.bf16.msrb.mxu2 %v8117_v8  ;;  %v11019_v8 = vld [vmem:[%s14421_s6 + $0x114] sm:$0xf0]  ;;  %v8036_v9 = vld [vmem:[%s14421_s6 + $0x208] sm:$0xf]  ;;  %v7781_v17 = vor.u32 %v10987_v4, %v7780_v3 }
  0x85   :  { %1573 = vmatpush.bf16.msrb.mxu1 %v7989_v7  ;;  %v7908_v7 = vld [vmem:[%s14421_s6 + $0x108] sm:$0xf]  ;;  %v11083_v13 = vld [vmem:[%s14421_s6 + $0x314] sm:$0xf0]  ;;  %v8037_v22 = vor.u32 %v11051_v11, %v8036_v9  ;;  %v7974_v9 = vld [vmem:[%s14421_s6 + $0x198] sm:$0xf0] }
  0x86   :  { %1611 = vmatpush.bf16.msrb.mxu3 %v8245_v12  ;;  %v8164_v12 = vld [vmem:[%s14421_s6 + $0x308] sm:$0xf]  ;;  %v11143_v15 = vld [vmem:[%s14421_s6 + $0x4f4] sm:$0xf0]  ;;  %v7909_v21 = vor.u32 %v11019_v8, %v7908_v7  ;;  %v7846_v7 = vld [vmem:[%s14421_s6 + $0x98] sm:$0xf0] }
  0x87   :  { %1555 = vmatpush.bf16.msrb.mxu0 %v7845_v18  ;;  %v8404_v14 = vld [vmem:[%s14421_s6 + $0x4e8] sm:$0xf]  ;;  %v11175_v18 = vld [vmem:[%s14421_s6 + $0x5f4] sm:$0xf0]  ;;  %v8165_v25 = vor.u32 %v11083_v13, %v8164_v12  ;;  %v11033_v8 = vld [vmem:[%s14421_s6 + $0x18c] sm:$0xf] }
  0x88   :  { %1593 = vmatpush.bf16.msrb.mxu2 %v8101_v20  ;;  %v8532_v16 = vld [vmem:[%s14421_s6 + $0x5e8] sm:$0xf]  ;;  %v7894_v20 = vld [vmem:[%s14421_s6 + $0xf8] sm:$0xf0]  ;;  %v8405_v26 = vor.u32 %v11143_v15, %v8404_v14  ;;  %v11171_v33 = vld [vmem:[%s14421_s6 + $0x5d4] sm:$0xf0] }
  0x89   :  { %1574 = vmatpush.bf16.msrb.mxu1 %v7973_v19  ;;  %v11013_v19 = vld [vmem:[%s14421_s6 + $0xec] sm:$0xf]  ;;  %v8533_v27 = vor.u32 %v11175_v18, %v8532_v16  ;;  %v8372_v41 = vld [vmem:[%s14421_s6 + $0x4a8] sm:$0xf]  ;;  %v11167_v49 = vld [vmem:[%s14421_s6 + $0x5b4] sm:$0xf0]  ;;  %v7977_v16 = vor.u32 %v11033_v8, %v7974_v9 }
  0x8a   :  { %1612 = vmatpush.bf16.msrb.mxu3 %v8229_v24  ;;  %1489 = vmatmul.bf16.gmra.mxu0 %v12400_v51  ;;  %v8022_v24 = vld [vmem:[%s14421_s6 + $0x1f8] sm:$0xf0]  ;;  %v7897_v28 = vor.u32 %v11013_v19, %v7894_v20  ;;  %v8356_v1 = vld [vmem:[%s14421_s6 + $0x488] sm:$0xf]  ;;  %v11127_v14 = vld [vmem:[%s14421_s6 + $0x474] sm:$0xf0] }
  0x8b   :  { %1556 = vmatpush.bf16.msrb.mxu0 %v7829_v30  ;;  %v8025_v29 = vor.u32 %v11045_v23, %v8022_v24  ;;  %v8388_v30 = vld [vmem:[%s14421_s6 + $0x4c8] sm:$0xf]  ;;  %v10997_v18 = vld [vmem:[%s14421_s6 + $0x6c] sm:$0xf]  ;;  %v7830_v19 = vld [vmem:[%s14421_s6 + $0x78] sm:$0xf0] }
  0x8c   :  { %1594 = vmatpush.bf16.msrb.mxu2 %v8085_v32  ;;  %1508 = vmatmul.bf16.gmra.mxu1 %v12408_v56  ;;  %v8516_v32 = vld [vmem:[%s14421_s6 + $0x5c8] sm:$0xf]  ;;  %v11029_v20 = vld [vmem:[%s14421_s6 + $0x16c] sm:$0xf]  ;;  %v7833_v24 = vor.u32 %v10997_v18, %v7830_v19 }
  0x8d   :  { %1575 = vmatpush.bf16.msrb.mxu1 %v7957_v31  ;;  %1527 = vmatmul.bf16.gmra.mxu2 %v12611_v45  ;;  %v11139_v31 = vld [vmem:[%s14421_s6 + $0x4d4] sm:$0xf0]  ;;  %v8517_v39 = vor.u32 %v11171_v33, %v8516_v32  ;;  %v8484_v3 = vld [vmem:[%s14421_s6 + $0x588] sm:$0xf]  ;;  %v11025_v32 = vld [vmem:[%s14421_s6 + $0x14c] sm:$0xf] }
  0x8e   :  { %1613 = vmatpush.bf16.msrb.mxu3 %v8213_v36  ;;  %v11041_v36 = vld [vmem:[%s14421_s6 + $0x1cc] sm:$0xf]  ;;  %v8389_v38 = vor.u32 %v11139_v31, %v8388_v30  ;;  %v8340_v13 = vld [vmem:[%s14421_s6 + $0x468] sm:$0xf]  ;;  %v7814_v31 = vld [vmem:[%s14421_s6 + $0x58] sm:$0xf0] }
  0x8f   :  { %1546 = vmatmul.bf16.gmra.mxu3 %v12622_v58  ;;  %1557 = vmatpush.bf16.msrb.mxu0 %v7813_v42  ;;  %v11135_v42 = vld [vmem:[%s14421_s6 + $0x4b4] sm:$0xf0]  ;;  %v8468_v15 = vld [vmem:[%s14421_s6 + $0x568] sm:$0xf]  ;;  %v10993_v30 = vld [vmem:[%s14421_s6 + $0x4c] sm:$0xf] }
  0x90   :  { %1595 = vmatpush.bf16.msrb.mxu2 %v8069_v46  ;;  %v8009_v46 = vor.u32 %v11041_v36, %v8006_v37  ;;  %v8373_v62 = vor.u32 %v11135_v42, %v8372_v41  ;;  %v7942_v33 = vld [vmem:[%s14421_s6 + $0x158] sm:$0xf0]  ;;  %v7817_v36 = vor.u32 %v10993_v30, %v7814_v31  ;;  %v8308_v37 = vld [vmem:[%s14421_s6 + $0x428] sm:$0xf]  ;;  %v11151_v41 = vld [vmem:[%s14421_s6 + $0x534] sm:$0xf0] }
  0x91   :  { %1576 = vmatpush.bf16.msrb.mxu1 %v7941_v43  ;;  %v8500_v43 = vld [vmem:[%s14421_s6 + $0x5a8] sm:$0xf]  ;;  %v10989_v42 = vld [vmem:[%s14421_s6 + $0x2c] sm:$0xf]  ;;  %v8518_v30 = vld [vmem:[%s14421_s6 + $0x5d8] sm:$0xf0] }
  0x92   :  { %1614 = vmatpush.bf16.msrb.mxu3 %v8197_v60  ;;  %v11037_v60 = vld [vmem:[%s14421_s6 + $0x1ac] sm:$0xf]  ;;  %v8501_v63 = vor.u32 %v11167_v49, %v8500_v43  ;;  %v7798_v43 = vld [vmem:[%s14421_s6 + $0x38] sm:$0xf0]  ;;  %v8292_v55 = vld [vmem:[%s14421_s6 + $0x408] sm:$0xf] }
  0x93   :  { %1558 = vmatpush.bf16.msrb.mxu0 %v7797_v2  ;;  %v11131_v2 = vld [vmem:[%s14421_s6 + $0x494] sm:$0xf0]  ;;  %v7993_v4 = vor.u32 %v11037_v60, %v7990_v61  ;;  %v7926_v49 = vld [vmem:[%s14421_s6 + $0x138] sm:$0xf0]  ;;  %v11109_v8 = vld [vmem:[%s14421_s6 + $0x3ec] sm:$0xf] }
  0x94   :  { %1596 = vmatpush.bf16.msrb.mxu2 %v8053_v6  ;;  %v11001_v6 = vld [vmem:[%s14421_s6 + $0x8c] sm:$0xf]  ;;  %v11115_v60 = vld [vmem:[%s14421_s6 + $0x414] sm:$0xf0] }
  0x95   :  { %1577 = vmatpush.bf16.msrb.mxu1 %v7925_v5  ;;  %v11163_v5 = vld [vmem:[%s14421_s6 + $0x594] sm:$0xf0]  ;;  %v7849_v12 = vor.u32 %v11001_v6, %v7846_v7  ;;  %v11077_v6 = vld [vmem:[%s14421_s6 + $0x2ec] sm:$0xf]  ;;  %v8150_v7 = vld [vmem:[%s14421_s6 + $0x2f8] sm:$0xf0]  ;;  %v8293_v9 = vor.u32 %v11115_v60, %v8292_v55 }
  0x96   :  { %1615 = vmatpush.bf16.msrb.mxu3 %v8181_v10  ;;  %v8357_v10 = vor.u32 %v11131_v2, %v8356_v1  ;;  %v8485_v11 = vor.u32 %v11163_v5, %v8484_v3  ;;  %v10985_v1 = vld [vmem:[%s14421_s6 + $0xc] sm:$0xf]  ;;  %v7782_v3 = vld [vmem:[%s14421_s6 + $0x18] sm:$0xf0]  ;;  %v8153_v18 = vor.u32 %v11077_v6, %v8150_v7 }
  0x97   :  { %1559 = vmatpush.bf16.msrb.mxu0 %v7781_v17  ;;  %v11159_v17 = vld [vmem:[%s14421_s6 + $0x574] sm:$0xf0]  ;;  %v7910_v5 = vld [vmem:[%s14421_s6 + $0x118] sm:$0xf0]  ;;  %v11097_v60 = vld [vmem:[%s14421_s6 + $0x38c] sm:$0xf] }
  0x98   :  { %1597 = vmatpush.bf16.msrb.mxu2 %v8037_v22  ;;  %v8341_v22 = vor.u32 %v11127_v14, %v8340_v13  ;;  %v8469_v23 = vor.u32 %v11159_v17, %v8468_v15  ;;  %v7785_v14 = vor.u32 %v10985_v1, %v7782_v3  ;;  %v11173_v15 = vld [vmem:[%s14421_s6 + $0x5ec] sm:$0xf]  ;;  %v8102_v55 = vld [vmem:[%s14421_s6 + $0x298] sm:$0xf0] }
  0x99   :  { %1578 = vmatpush.bf16.msrb.mxu1 %v7909_v21  ;;  %v7958_v21 = vld [vmem:[%s14421_s6 + $0x178] sm:$0xf0]  ;;  %v11161_v3 = vld [vmem:[%s14421_s6 + $0x58c] sm:$0xf] }
  0x9a   :  { %1616 = vmatpush.bf16.msrb.mxu3 %v8165_v25  ;;  %1560 = vmatmul.bf16.vlgmr.msrb.gmra.mxu0 %v12279_v48  ;;  %v8324_v25 = vld [vmem:[%s14421_s6 + $0x448] sm:$0xf] }
  0x9b   :  { %1628 = vmatpush.bf16.msra.mxu0 %v8405_v26  ;;  %v11123_v26 = vld [vmem:[%s14421_s6 + $0x454] sm:$0xf0] }
  0x9c   :  { %1666 = vmatpush.bf16.msra.mxu2 %v7897_v28  ;;  %1579 = vmatmul.bf16.vlgmr.msrb.gmra.mxu1 %v12290_v53  ;;  %v7961_v28 = vor.u32 %v11029_v20, %v7958_v21  ;;  %v8325_v34 = vor.u32 %v11123_v26, %v8324_v25  ;;  %v8262_v25 = vld [vmem:[%s14421_s6 + $0x3d8] sm:$0xf0]  ;;  %v11137_v26 = vld [vmem:[%s14421_s6 + $0x4cc] sm:$0xf] }
  0x9d   :  { %1647 = vmatpush.bf16.msra.mxu1 %v8533_v27  ;;  %1598 = vmatmul.bf16.vlgmr.msrb.gmra.mxu2 %v12292_v54  ;;  %v8452_v27 = vld [vmem:[%s14421_s6 + $0x548] sm:$0xf] }
  0x9e   :  { %1685 = vmatpush.bf16.msra.mxu3 %v8025_v29  ;;  %v11155_v29 = vld [vmem:[%s14421_s6 + $0x554] sm:$0xf0] }
  0x9f   :  { %1617 = vmatmul.bf16.vlgmr.msrb.gmra.mxu3 %v12300_v57  ;;  %1629 = vmatpush.bf16.msra.mxu0 %v8389_v38  ;;  %v8453_v35 = vor.u32 %v11155_v29, %v8452_v27  ;;  %v11119_v38 = vld [vmem:[%s14421_s6 + $0x434] sm:$0xf0]  ;;  %v8390_v27 = vld [vmem:[%s14421_s6 + $0x4d8] sm:$0xf0]  ;;  %v11169_v29 = vld [vmem:[%s14421_s6 + $0x5cc] sm:$0xf] }
  0xa0   :  { %1667 = vmatpush.bf16.msra.mxu2 %v7881_v40  ;;  %v7945_v40 = vor.u32 %v11025_v32, %v7942_v33  ;;  %v8309_v52 = vor.u32 %v11119_v38, %v8308_v37  ;;  %v11101_v37 = vld [vmem:[%s14421_s6 + $0x3ac] sm:$0xf]  ;;  %v8521_v38 = vor.u32 %v11169_v29, %v8518_v30  ;;  %v8326_v29 = vld [vmem:[%s14421_s6 + $0x458] sm:$0xf0] }
  0xa1   :  { %1648 = vmatpush.bf16.msra.mxu1 %v8517_v39  ;;  %v8436_v39 = vld [vmem:[%s14421_s6 + $0x528] sm:$0xf] }
  0xa2   :  { %1686 = vmatpush.bf16.msra.mxu3 %v8009_v46  ;;  %v11021_v46 = vld [vmem:[%s14421_s6 + $0x12c] sm:$0xf]  ;;  %v8437_v61 = vor.u32 %v11151_v41, %v8436_v39  ;;  %v8246_v39 = vld [vmem:[%s14421_s6 + $0x3b8] sm:$0xf0] }
  0xa3   :  { %1630 = vmatpush.bf16.msra.mxu0 %v8373_v62  ;;  %v7801_v62 = vor.u32 %v10989_v42, %v7798_v43  ;;  %v7929_v2 = vor.u32 %v11021_v46, %v7926_v49  ;;  %v8374_v41 = vld [vmem:[%s14421_s6 + $0x4b8] sm:$0xf0]  ;;  %v11165_v42 = vld [vmem:[%s14421_s6 + $0x5ac] sm:$0xf]  ;;  %v8249_v49 = vor.u32 %v11101_v37, %v8246_v39 }
  0xa4   :  { %1668 = vmatpush.bf16.msra.mxu2 %v7865_v0  ;;  %v11147_v0 = vld [vmem:[%s14421_s6 + $0x514] sm:$0xf0]  ;;  %v8502_v43 = vld [vmem:[%s14421_s6 + $0x5b8] sm:$0xf0]  ;;  %v11053_v39 = vld [vmem:[%s14421_s6 + $0x22c] sm:$0xf] }
  0xa5   :  { %1649 = vmatpush.bf16.msra.mxu1 %v8501_v63  ;;  %v8420_v63 = vld [vmem:[%s14421_s6 + $0x508] sm:$0xf] }
  0xa6   :  { %1687 = vmatpush.bf16.msra.mxu3 %v7993_v4  ;;  %v11017_v4 = vld [vmem:[%s14421_s6 + $0x10c] sm:$0xf]  ;;  %v8421_v13 = vor.u32 %v11147_v0, %v8420_v63  ;;  %v8358_v0 = vld [vmem:[%s14421_s6 + $0x498] sm:$0xf0] }
  0xa7   :  { %1631 = vmatpush.bf16.msra.mxu0 %v8357_v10  ;;  %v8278_v10 = vld [vmem:[%s14421_s6 + $0x3f8] sm:$0xf0]  ;;  %v7913_v17 = vor.u32 %v11017_v4, %v7910_v5  ;;  %v11129_v63 = vld [vmem:[%s14421_s6 + $0x48c] sm:$0xf] }
  0xa8   :  { %1669 = vmatpush.bf16.msra.mxu2 %v7849_v12  ;;  %v8406_v12 = vld [vmem:[%s14421_s6 + $0x4f8] sm:$0xf0]  ;;  %v8281_v19 = vor.u32 %v11109_v8, %v8278_v10  ;;  %v8361_v8 = vor.u32 %v11129_v63, %v8358_v0  ;;  %v11081_v63 = vld [vmem:[%s14421_s6 + $0x30c] sm:$0xf] }
  0xa9   :  { %1650 = vmatpush.bf16.msra.mxu1 %v8485_v11  ;;  %v11141_v11 = vld [vmem:[%s14421_s6 + $0x4ec] sm:$0xf]  ;;  %v8486_v4 = vld [vmem:[%s14421_s6 + $0x598] sm:$0xf0] }
  0xaa   :  { %1688 = vmatpush.bf16.msra.mxu3 %v7977_v16  ;;  %1565 = vmatmul.bf16.gmra.mxu0 %v12387_v44  ;;  %v8534_v16 = vld [vmem:[%s14421_s6 + $0x5f8] sm:$0xf0]  ;;  %v8409_v20 = vor.u32 %v11141_v11, %v8406_v12  ;;  %v11093_v11 = vld [vmem:[%s14421_s6 + $0x36c] sm:$0xf]  ;;  %v8489_v12 = vor.u32 %v11161_v3, %v8486_v4 }
  0xab   :  { %1632 = vmatpush.bf16.msra.mxu0 %v8341_v22  ;;  %v8537_v21 = vor.u32 %v11173_v15, %v8534_v16  ;;  %v11073_v22 = vld [vmem:[%s14421_s6 + $0x2cc] sm:$0xf]  ;;  %v8086_v10 = vld [vmem:[%s14421_s6 + $0x278] sm:$0xf0] }
  0xac   :  { %1670 = vmatpush.bf16.msra.mxu2 %v7833_v24  ;;  %1584 = vmatmul.bf16.gmra.mxu1 %v12398_v50  ;;  %v11105_v24 = vld [vmem:[%s14421_s6 + $0x3cc] sm:$0xf]  ;;  %v8342_v15 = vld [vmem:[%s14421_s6 + $0x478] sm:$0xf0] }
  0xad   :  { %1651 = vmatpush.bf16.msra.mxu1 %v8469_v23  ;;  %1603 = vmatmul.bf16.gmra.mxu2 %v12400_v51  ;;  %v8134_v23 = vld [vmem:[%s14421_s6 + $0x2d8] sm:$0xf0]  ;;  %v8265_v33 = vor.u32 %v11105_v24, %v8262_v25  ;;  %v11157_v16 = vld [vmem:[%s14421_s6 + $0x56c] sm:$0xf] }
  0xae   :  { %1689 = vmatpush.bf16.msra.mxu3 %v7961_v28  ;;  %v8137_v32 = vor.u32 %v11073_v22, %v8134_v23  ;;  %v8070_v22 = vld [vmem:[%s14421_s6 + $0x258] sm:$0xf0]  ;;  %v11089_v23 = vld [vmem:[%s14421_s6 + $0x34c] sm:$0xf] }
  0xaf   :  { %1622 = vmatmul.bf16.gmra.mxu3 %v12408_v56  ;;  %1633 = vmatpush.bf16.msra.mxu0 %v8325_v34  ;;  %v8393_v34 = vor.u32 %v11137_v26, %v8390_v27  ;;  %v8198_v26 = vld [vmem:[%s14421_s6 + $0x358] sm:$0xf0]  ;;  %v11121_v27 = vld [vmem:[%s14421_s6 + $0x44c] sm:$0xf] }
  0xb0   :  { %1671 = vmatpush.bf16.msra.mxu2 %v7817_v36  ;;  %v8118_v36 = vld [vmem:[%s14421_s6 + $0x2b8] sm:$0xf0]  ;;  %v8201_v37 = vor.u32 %v11089_v23, %v8198_v26  ;;  %v11113_v4 = vld [vmem:[%s14421_s6 + $0x40c] sm:$0xf]  ;;  %v11228_v26 = vld [vmem:[#allocation7 + $0x19c] sm:$0xf0] }
  0xb1   :  { %1652 = vmatpush.bf16.msra.mxu1 %v8453_v35  ;;  %v11069_v35 = vld [vmem:[%s14421_s6 + $0x2ac] sm:$0xf] }
  0xb2   :  { %1690 = vmatpush.bf16.msra.mxu3 %v7945_v40  ;;  %v11133_v40 = vld [vmem:[%s14421_s6 + $0x4ac] sm:$0xf]  ;;  %v8121_v46 = vor.u32 %v11069_v35, %v8118_v36 }
  0xb3   :  { %1634 = vmatpush.bf16.msra.mxu0 %v8309_v52  ;;  %v8377_v52 = vor.u32 %v11133_v40, %v8374_v41  ;;  %v8054_v40 = vld [vmem:[%s14421_s6 + $0x238] sm:$0xf0]  ;;  %v11085_v41 = vld [vmem:[%s14421_s6 + $0x32c] sm:$0xf] }
  0xb4   :  { %1672 = vmatpush.bf16.msra.mxu2 %v7801_v62  ;;  %v8230_v62 = vld [vmem:[%s14421_s6 + $0x398] sm:$0xf0] }
  0xb5   :  { %1653 = vmatpush.bf16.msra.mxu1 %v8437_v61  ;;  %v8233_v7 = vor.u32 %v11097_v60, %v8230_v62  ;;  %v11049_v60 = vld [vmem:[%s14421_s6 + $0x20c] sm:$0xf]  ;;  %v8038_v62 = vld [vmem:[%s14421_s6 + $0x218] sm:$0xf0] }
  0xb6   :  { %1691 = vmatpush.bf16.msra.mxu3 %v7929_v2 }
  0xb7   :  { %1635 = vmatpush.bf16.msra.mxu0 %v8293_v9  ;;  %v13124_v28 = vpop.f32.mrf.mxu0  ;;  %v13132_v31 = vpop.f32.mrf.mxu1  ;;  %v11061_v9 = vld [vmem:[%s14421_s6 + $0x26c] sm:$0xf] }
  0xb8   :  { %1673 = vmatpush.bf16.msra.mxu2 %v7785_v14  ;;  %v11125_v14 = vld [vmem:[%s14421_s6 + $0x46c] sm:$0xf] }
  0xb9   :  { %1654 = vmatpush.bf16.msra.mxu1 %v8421_v13  ;;  %v8214_v13 = vld [vmem:[%s14421_s6 + $0x378] sm:$0xf0] }
  0xba   :  { %1692 = vmatpush.bf16.msra.mxu3 %v7913_v17  ;;  %1636 = vmatmul.bf16.vlgmr.msra.gmra.mxu0 %v12507_v47  ;;  %v8470_v17 = vld [vmem:[%s14421_s6 + $0x578] sm:$0xf0] }
  0xbb   :  { %1704 = vmatpush.bf16.msrb.mxu0 %v8153_v18  ;;  %v8089_v18 = vor.u32 %v11061_v9, %v8086_v10  ;;  %v8473_v25 = vor.u32 %v11157_v16, %v8470_v17  ;;  %v8422_v10 = vld [vmem:[%s14421_s6 + $0x518] sm:$0xf0]  ;;  %v11300_v16 = vld [vmem:[#allocation7 + $0x3dc] sm:$0xf0]  ;;  %v13313_v17 = vld [vmem:[%s14425_s10] sm:$0x77] }
  0xbc   :  { %1742 = vmatpush.bf16.msrb.mxu2 %v8409_v20  ;;  %1655 = vmatmul.bf16.vlgmr.msra.gmra.mxu1 %v12518_v59  ;;  %v8345_v20 = vor.u32 %v11125_v14, %v8342_v15  ;;  %v8041_v14 = vor.u32 %v11049_v60, %v8038_v62  ;;  %v9020_v15 = vld [vmem:[#allocation7 + $0x3c0] sm:$0xf]  ;;  %v352_v23 = vperm.slane %v13313_v17, 0 }
  0xbd   :  { %1723 = vmatpush.bf16.msrb.mxu1 %v8281_v19  ;;  %1674 = vmatmul.bf16.vlgmr.msra.gmra.mxu2 %v12279_v48  ;;  %v11065_v48 = vld [vmem:[%s14421_s6 + $0x28c] sm:$0xf]  ;;  %v8217_v19 = vor.u32 %v11093_v11, %v8214_v13  ;;  %v8764_v11 = vld [vmem:[#allocation7 + $0x1c0] sm:$0xf] }
  0xbe   :  { %1761 = vmatpush.bf16.msrb.mxu3 %v8537_v21  ;;  %v8105_v6 = vor.u32 %v11065_v48, %v8102_v55  ;;  %v11057_v21 = vld [vmem:[%s14421_s6 + $0x24c] sm:$0xf]  ;;  %v8438_v48 = vld [vmem:[%s14421_s6 + $0x538] sm:$0xf0]  ;;  %v8057_v55 = vor.u32 %v11053_v39, %v8054_v40  ;;  %v8700_v40 = vld [vmem:[#allocation7 + $0x140] sm:$0xf] }
  0xbf   :  { %1693 = vmatmul.bf16.vlgmr.msra.gmra.mxu3 %v12290_v53  ;;  %1705 = vmatpush.bf16.msrb.mxu0 %v8137_v32  ;;  %v8505_v53 = vor.u32 %v11165_v42, %v8502_v43  ;;  %v13182_v1 = vpop.f32.mrf.mxu3  ;;  %v13184_v2 = vpop.f32.mrf.mxu0  ;;  %v8073_v36 = vor.u32 %v11057_v21, %v8070_v22  ;;  %v8182_v43 = vld [vmem:[%s14421_s6 + $0x338] sm:$0xf0]  ;;  %v9021_v22 = vor.u32 %v11300_v16, %v9020_v15  ;;  %v11212_v60 = vld [vmem:[#allocation7 + $0x11c] sm:$0xf0] }
  0xc0   :  { %1743 = vmatpush.bf16.msrb.mxu2 %v8393_v34  ;;  %v13171_v61 = vpop.f32.mrf.mxu2  ;;  %v13192_v5 = vpop.f32.mrf.mxu1  ;;  %v8454_v34 = vld [vmem:[%s14421_s6 + $0x558] sm:$0xf0]  ;;  %v11196_v15 = vld [vmem:[#allocation7 + $0x9c] sm:$0xf0] }
  0xc1   :  { %1724 = vmatpush.bf16.msrb.mxu1 %v8265_v33  ;;  %v11153_v33 = vld [vmem:[%s14421_s6 + $0x54c] sm:$0xf] }
  0xc2   :  { %1762 = vmatpush.bf16.msrb.mxu3 %v8521_v38  ;;  %v8329_v38 = vor.u32 %v11121_v27, %v8326_v29  ;;  %v8457_v42 = vor.u32 %v11153_v33, %v8454_v34  ;;  %v8988_v29 = vld [vmem:[#allocation7 + $0x380] sm:$0xf] }
  0xc3   :  { %1706 = vmatpush.bf16.msrb.mxu0 %v8121_v46  ;;  %v11117_v46 = vld [vmem:[%s14421_s6 + $0x42c] sm:$0xf]  ;;  %v11292_v33 = vld [vmem:[#allocation7 + $0x39c] sm:$0xf0] }
  0xc4   :  { %1744 = vmatpush.bf16.msrb.mxu2 %v8377_v52  ;;  %v11149_v52 = vld [vmem:[%s14421_s6 + $0x52c] sm:$0xf] }
  0xc5   :  { %1725 = vmatpush.bf16.msrb.mxu1 %v8249_v49  ;;  %v8310_v49 = vld [vmem:[%s14421_s6 + $0x438] sm:$0xf0]  ;;  %v8441_v3 = vor.u32 %v11149_v52, %v8438_v48 }
  0xc6   :  { %1763 = vmatpush.bf16.msrb.mxu3 %v8505_v53  ;;  %v8185_v53 = vor.u32 %v11085_v41, %v8182_v43  ;;  %v11220_v41 = vld [vmem:[#allocation7 + $0x15c] sm:$0xf0] }
  0xc7   :  { %1707 = vmatpush.bf16.msrb.mxu0 %v8105_v6  ;;  %v13238_v30 = vpop.f32.mrf.mxu3  ;;  %v13240_v32 = vpop.f32.mrf.mxu0  ;;  %v8294_v6 = vld [vmem:[%s14421_s6 + $0x418] sm:$0xf0]  ;;  %v8956_v43 = vld [vmem:[#allocation7 + $0x340] sm:$0xf]  ;;  %v8701_v48 = vor.u32 %v11220_v41, %v8700_v40  ;;  %v353_v41 = vperm.slane %v13313_v17, 4 }
  0xc8   :  { %1745 = vmatpush.bf16.msrb.mxu2 %v8361_v8  ;;  %v13227_v24 = vpop.f32.mrf.mxu2  ;;  %v13248_v35 = vpop.f32.mrf.mxu1 }
  0xc9   :  { %1726 = vmatpush.bf16.msrb.mxu1 %v8233_v7  ;;  %v11145_v7 = vld [vmem:[%s14421_s6 + $0x50c] sm:$0xf] }
  0xca   :  { %1764 = vmatpush.bf16.msrb.mxu3 %v8489_v12  ;;  %1641 = vmatmul.bf16.gmra.mxu0 %v12611_v45  ;;  %v11236_v12 = vld [vmem:[#allocation7 + $0x1dc] sm:$0xf0] }
  0xcb   :  { %1708 = vmatpush.bf16.msrb.mxu0 %v8089_v18  ;;  %v8765_v21 = vor.u32 %v11236_v12, %v8764_v11 }
  0xcc   :  { %1746 = vmatpush.bf16.msrb.mxu2 %v8345_v20  ;;  %1660 = vmatmul.bf16.gmra.mxu1 %v12622_v58  ;;  %v8425_v20 = vor.u32 %v11145_v7, %v8422_v10  ;;  %v8892_v7 = vld [vmem:[#allocation7 + $0x2c0] sm:$0xf] }
  0xcd   :  { %1727 = vmatpush.bf16.msrb.mxu1 %v8217_v19  ;;  %1679 = vmatmul.bf16.gmra.mxu2 %v12387_v44  ;;  %v8313_v44 = vor.u32 %v11117_v46, %v8310_v49  ;;  %v8297_v19 = vor.u32 %v11113_v4, %v8294_v6  ;;  %v11284_v46 = vld [vmem:[#allocation7 + $0x35c] sm:$0xf0] }
  0xce   :  { %1765 = vmatpush.bf16.msrb.mxu3 %v8473_v25  ;;  %v8732_v25 = vld [vmem:[#allocation7 + $0x180] sm:$0xf] }
  0xcf   :  { %1698 = vmatmul.bf16.gmra.mxu3 %v12398_v50  ;;  %1709 = vmatpush.bf16.msrb.mxu0 %v8073_v36  ;;  %v8166_v50 = vld [vmem:[%s14421_s6 + $0x318] sm:$0xf0]  ;;  %v13301_v8 = vpop.f32.mrf.mxu3  ;;  %v13303_v9 = vpop.f32.mrf.mxu0  ;;  %v8733_v39 = vor.u32 %v11228_v26, %v8732_v25  ;;  %v11268_v10 = vld [vmem:[#allocation7 + $0x2dc] sm:$0xf0] }
  0xd0   :  { %1747 = vmatpush.bf16.msrb.mxu2 %v8329_v38  ;;  %v13290_v0 = vpop.f32.mrf.mxu2  ;;  %v13308_v13 = vpop.f32.mrf.mxu1  ;;  %v8169_v18 = vor.u32 %v11081_v63, %v8166_v50  ;;  %v8636_v50 = vld [vmem:[#allocation7 + $0xc0] sm:$0xf] }
  0xd1   :  { %1728 = vmatpush.bf16.msrb.mxu1 %v8201_v37  ;;  %v13320_v37 = vperm.slane %v352_v23, 0  ;;  %v8572_v25 = vld [vmem:[#allocation7 + $0x40] sm:$0xf] }
  0xd2   :  { %1766 = vmatpush.bf16.msrb.mxu3 %v8457_v42  ;;  %v8989_v42 = vor.u32 %v11292_v33, %v8988_v29  ;;  %v11188_v26 = vld [vmem:[#allocation7 + $0x5c] sm:$0xf0] }
  0xd3   :  { %1710 = vmatpush.bf16.msrb.mxu0 %v8057_v55  ;;  %v1334_v49 = vadd.f32 %v13124_v28, %v13320_v37  ;;  %v1336_v52 = vadd.f32 %v13184_v2, %v13320_v37  ;;  %v8668_v55 = vld [vmem:[#allocation7 + $0x100] sm:$0xf]  ;;  %v1339_v40 = vadd.f32 %v13240_v32, %v13320_v37 }
  0xd4   :  { %1748 = vmatpush.bf16.msrb.mxu2 %v8313_v44  ;;  %v8924_v44 = vld [vmem:[#allocation7 + $0x300] sm:$0xf] }
  0xd5   :  { %1729 = vmatpush.bf16.msrb.mxu1 %v8185_v53  ;;  %v1353_v28 = vadd.f32 %v13132_v31, %v1334_v49  ;;  %v1355_v63 = vadd.f32 %v13192_v5, %v1336_v52  ;;  %v8893_v31 = vor.u32 %v11268_v10, %v8892_v7  ;;  %v8828_v33 = vld [vmem:[#allocation7 + $0x240] sm:$0xf] }
  0xd6   :  { %1767 = vmatpush.bf16.msrb.mxu3 %v8441_v3  ;;  %v11204_v3 = vld [vmem:[#allocation7 + $0xdc] sm:$0xf0] }
  0xd7   :  { %1711 = vmatpush.bf16.msrb.mxu0 %v8041_v14  ;;  %v13318_v34 = vpop.f32.mrf.mxu3  ;;  %v1409_v36 = vpop.f32.mrf.mxu0  ;;  %v1374_v6 = vadd.f32 %v13227_v24, %v1355_v63  ;;  %v1372_v11 = vadd.f32 %v13171_v61, %v1353_v28  ;;  %v8637_v12 = vor.u32 %v11204_v3, %v8636_v50  ;;  %v8604_v14 = vld [vmem:[#allocation7 + $0x80] sm:$0xf]  ;;  %v11224_v50 = vld [vmem:[#allocation7 + $0x184] sm:$0xf] }
  0xd8   :  { %1749 = vmatpush.bf16.msrb.mxu2 %v8297_v19  ;;  %v13316_v27 = vpop.f32.mrf.mxu2  ;;  %v11260_v19 = vld [vmem:[#allocation7 + $0x29c] sm:$0xf0]  ;;  %v8605_v23 = vor.u32 %v11196_v15, %v8604_v14  ;;  %v8734_v3 = vld [vmem:[#allocation7 + $0x1a0] sm:$0xf0] }
  0xd9   :  { %1730 = vmatpush.bf16.msrb.mxu1 %v8169_v18  ;;  %v13322_v38 = vpop.f32.mrf.mxu1  ;;  %v1393_v5 = vadd.f32 %v13238_v30, %v1374_v6  ;;  %v8860_v18 = vld [vmem:[#allocation7 + $0x280] sm:$0xf]  ;;  %v1391_v24 = vadd.f32 %v13182_v1, %v1372_v11  ;;  %v1341_v1 = vadd.f32 %v13303_v9, %v13320_v37  ;;  %v11296_v37 = vld [vmem:[#allocation7 + $0x3c4] sm:$0xf] }
  0xda   :  { %1768 = vmatpush.bf16.msrb.mxu3 %v8425_v20  ;;  %1712 = vmatmul.bf16.vlgmr.msrb.gmra.mxu0 %v12292_v54  ;;  %v8957_v54 = vor.u32 %v11284_v46, %v8956_v43  ;;  %v8861_v29 = vor.u32 %v11260_v19, %v8860_v18  ;;  %v11180_v43 = vld [vmem:[#allocation7 + $0x1c] sm:$0xf0]  ;;  %v11232_v46 = vld [vmem:[#allocation7 + $0x1c4] sm:$0xf] }
  0xdb   :  { %3382 = vmatpush.bf16.msra.mxu0 %v8765_v21  ;;  %v1410_v30 = vadd.f32 %v1409_v36, %v1391_v24  ;;  %v8573_v36 = vor.u32 %v11188_v26, %v8572_v25  ;;  %v8796_v52 = vld [vmem:[#allocation7 + $0x200] sm:$0xf]  ;;  %v8990_v6 = vld [vmem:[#allocation7 + $0x3a0] sm:$0xf0] }
  0xdc   :  { %1731 = vmatmul.bf16.vlgmr.msrb.gmra.mxu1 %v12300_v57  ;;  %v11276_v57 = vld [vmem:[#allocation7 + $0x31c] sm:$0xf0]  ;;  %v11280_v24 = vld [vmem:[#allocation7 + $0x344] sm:$0xf] }
  0xdd   :  { %3401 = vmatpush.bf16.msra.mxu1 %v9021_v22  ;;  %1750 = vmatmul.bf16.vlgmr.msrb.gmra.mxu2 %v12507_v47  ;;  %v8925_v4 = vor.u32 %v11276_v57, %v8924_v44  ;;  %v1429_v32 = vadd.f32 %v13322_v38, %v1410_v30  ;;  %v13368_v38 = vld [vmem:[#allocation4 + $0x20] sm:$0xff] }
  0xdf   :  { %1769 = vmatmul.bf16.vlgmr.msrb.gmra.mxu3 %v12518_v59  ;;  %3383 = vmatpush.bf16.msra.mxu0 %v8733_v39  ;;  %v1411_v47 = vpop.f32.mrf.mxu0  ;;  %v8669_v59 = vor.u32 %v11212_v60, %v8668_v55  ;;  %v11252_v39 = vld [vmem:[#allocation7 + $0x25c] sm:$0xf0]  ;;  %v9022_v55 = vld [vmem:[#allocation7 + $0x3e0] sm:$0xf0]  ;;  %v1360_v60 = vadd.f32 %v13308_v13, %v1341_v1 }
  0xe0   :  { %v13332_v53 = vpop.f32.mrf.mxu2  ;;  %v1412_v22 = vadd.f32 %v1411_v47, %v1393_v5  ;;  %v8829_v49 = vor.u32 %v11252_v39, %v8828_v33  ;;  %v13366_v47 = vperm.slane %v353_v41, 0  ;;  %v11288_v13 = vld [vmem:[#allocation7 + $0x384] sm:$0xf] }
  0xe1   :  { %3402 = vmatpush.bf16.msra.mxu1 %v8989_v42  ;;  %v1430_v2 = vpop.f32.mrf.mxu1  ;;  %v8702_v5 = vld [vmem:[#allocation7 + $0x160] sm:$0xf0]  ;;  %v8993_v18 = vor.u32 %v11288_v13, %v8990_v6 }
  0xe2   :  { %v13334_v62 = vpop.f32.mrf.mxu3  ;;  %v1431_v42 = vadd.f32 %v1430_v2, %v1412_v22  ;;  %v1379_v2 = vadd.f32 %v13316_v27, %v1360_v60  ;;  %v1448_v11 = vadd.f32 %v13332_v53, %v13366_v47  ;;  %v8958_v22 = vld [vmem:[#allocation7 + $0x360] sm:$0xf0] }
  0xe3   :  { %3384 = vmatpush.bf16.msra.mxu0 %v8701_v48  ;;  %v11244_v48 = vld [vmem:[#allocation7 + $0x21c] sm:$0xf0]  ;;  %v11208_v33 = vld [vmem:[#allocation7 + $0x104] sm:$0xf] }
  0xe4   :  { %v8797_v63 = vor.u32 %v11244_v48, %v8796_v52  ;;  %v1398_v27 = vadd.f32 %v13318_v34, %v1379_v2  ;;  %v1467_v34 = vadd.f32 %v13334_v62, %v1448_v11  ;;  %v8670_v39 = vld [vmem:[#allocation7 + $0x120] sm:$0xf0] }
  0xe5   :  { %3403 = vmatpush.bf16.msra.mxu1 %v8957_v54  ;;  %v1784_v54 = vmax.f32 %v1431_v42, 0.0  ;;  %v11272_v41 = vld [vmem:[#allocation7 + $0x304] sm:$0xf] }
  0xe6   :  { %v8926_v42 = vld [vmem:[#allocation7 + $0x320] sm:$0xf0] }
  0xe7   :  { %3385 = vmatpush.bf16.msra.mxu0 %v8669_v59  ;;  %v13345_v21 = vpop.f32.mrf.mxu0  ;;  %v1780_v59 = vmax.f32 %v1429_v32, 0.0  ;;  %v1808_v10 = vadd.f32 %v13368_v38, %v1784_v54  ;;  %v8862_v2 = vld [vmem:[#allocation7 + $0x2a0] sm:$0xf0] }
  0xe8   :  { %v13341_v16 = vpop.f32.mrf.mxu2 }
  0xe9   :  { %3404 = vmatpush.bf16.msra.mxu1 %v8925_v4  ;;  %v13348_v61 = vpop.f32.mrf.mxu1  ;;  %v9025_v4 = vor.u32 %v11296_v37, %v9022_v55  ;;  %v1450_v1 = vadd.f32 %v13341_v16, %v13366_v47  ;;  %v8894_v16 = vld [vmem:[#allocation7 + $0x2e0] sm:$0xf0] }
  0xea   :  { %v13343_v20 = vpop.f32.mrf.mxu3  ;;  %1717 = vmatmul.bf16.gmra.mxu0 %v12400_v51  ;;  %v8540_v51 = vld [vmem:[#allocation7] sm:$0xf] }
  0xeb   :  { %3386 = vmatpush.bf16.msra.mxu0 %v8637_v12  ;;  %v8541_v57 = vor.u32 %v11180_v43, %v8540_v51  ;;  %v8737_v12 = vor.u32 %v11224_v50, %v8734_v3  ;;  %v8673_v51 = vor.u32 %v11208_v33, %v8670_v39  ;;  %v1469_v32 = vadd.f32 %v13343_v20, %v1450_v1  ;;  %v8772_v33 = vld [vmem:[#allocation7 + $0x1c8] sm:$0xf]  ;;  %v11240_v1 = vld [vmem:[#allocation7 + $0x204] sm:$0xf] }
  0xec   :  { %1736 = vmatmul.bf16.gmra.mxu1 %v12408_v56  ;;  %v11237_v39 = vld [vmem:[#allocation7 + $0x1e4] sm:$0xf0] }
  0xed   :  { %3405 = vmatpush.bf16.msra.mxu1 %v8893_v31  ;;  %1755 = vmatmul.bf16.gmra.mxu2 %v12611_v45  ;;  %v8766_v45 = vld [vmem:[#allocation7 + $0x1e0] sm:$0xf0] }
  0xee   :  { %v8769_v28 = vor.u32 %v11232_v46, %v8766_v45  ;;  %v11216_v31 = vld [vmem:[#allocation7 + $0x144] sm:$0xf] }
  0xef   :  { %1774 = vmatmul.bf16.gmra.mxu3 %v12622_v58  ;;  %3387 = vmatpush.bf16.msra.mxu0 %v8605_v23  ;;  %v1416_v17 = vpop.f32.mrf.mxu0  ;;  %v1358_v58 = vadd.f32 %v13248_v35, %v1339_v40  ;;  %v13371_v35 = vld [vmem:[#allocation4] sm:$0xff]  ;;  %v8961_v40 = vor.u32 %v11280_v24, %v8958_v22  ;;  %v11200_v46 = vld [vmem:[#allocation7 + $0xc4] sm:$0xf] }
  0xf0   :  { %v13360_v56 = vpop.f32.mrf.mxu2  ;;  %v1804_v14 = vadd.f32 %v13371_v35, %v1780_v59  ;;  %v1417_v25 = vadd.f32 %v1416_v17, %v1398_v27  ;;  %v11264_v17 = vld [vmem:[#allocation7 + $0x2c4] sm:$0xf] }
  0xf1   :  { %3406 = vmatpush.bf16.msra.mxu1 %v8861_v29  ;;  %v1435_v44 = vpop.f32.mrf.mxu1  ;;  %v1377_v7 = vadd.f32 %v13290_v0, %v1358_v58  ;;  %v8705_v29 = vor.u32 %v11216_v31, %v8702_v5  ;;  %v1453_v59 = vadd.f32 %v13360_v56, %v13366_v47  ;;  %v8830_v5 = vld [vmem:[#allocation7 + $0x260] sm:$0xf0]  ;;  %v13399_v56 = vld [vmem:[#allocation4 + $0x8] sm:$0xff] }
  0xf2   :  { %v13362_v9 = vpop.f32.mrf.mxu3  ;;  %v13384_v23 = vpack.c.bf16 %v1808_v10, %v1804_v14  ;;  %v8574_v10 = vld [vmem:[#allocation7 + $0x60] sm:$0xf0] }
  0xf3   :  { %3388 = vmatpush.bf16.msra.mxu0 %v8573_v36  ;;  %v1396_v53 = vadd.f32 %v13301_v8, %v1377_v7  ;;  %v1436_v36 = vadd.f32 %v1435_v44, %v1417_v25  ;;  %v11184_v7 = vld [vmem:[#allocation7 + $0x44] sm:$0xf] }
  0xf4   :  { %v11176_v22 = vld [vmem:[#allocation7 + $0x4] sm:$0xf] }
  0xf5   :  { %3407 = vmatpush.bf16.msra.mxu1 %v8829_v49  ;;  %v1415_v30 = vadd.f32 %v13345_v21, %v1396_v53  ;;  %v8638_v21 = vld [vmem:[#allocation7 + $0xe0] sm:$0xf0]  ;;  %v8929_v49 = vor.u32 %v11272_v41, %v8926_v42  ;;  %v1792_v37 = vmax.f32 %v1436_v36, 0.0  ;;  %v9244_v36 = vld [vmem:[#allocation7 + $0x580] sm:$0xf] }
  0xf6   :  { %v8641_v54 = vor.u32 %v11200_v46, %v8638_v21 }
  0xf7   :  { %3389 = vmatpush.bf16.msra.mxu0 %v8541_v57  ;;  %v1485_v19 = vpop.f32.mrf.mxu0  ;;  %v1434_v62 = vadd.f32 %v13348_v61, %v1415_v30  ;;  %v11192_v61 = vld [vmem:[#allocation7 + $0x84] sm:$0xf]  ;;  %v1816_v20 = vadd.f32 %v13368_v38, %v1792_v37  ;;  %v9276_v38 = vld [vmem:[#allocation7 + $0x5c0] sm:$0xf] }
  0xf8   :  { %v13379_v15 = vpop.f32.mrf.mxu2  ;;  %v1486_v8 = vadd.f32 %v1485_v19, %v1467_v34  ;;  %v8606_v57 = vld [vmem:[#allocation7 + $0xa0] sm:$0xf0]  ;;  %v13402_v34 = vld [vmem:[#allocation4 + $0x28] sm:$0xff] }
  0xf9   :  { %3408 = vmatpush.bf16.msra.mxu1 %v8797_v63  ;;  %v1504_v26 = vpop.f32.mrf.mxu1  ;;  %v1788_v44 = vmax.f32 %v1434_v62, 0.0  ;;  %v11256_v63 = vld [vmem:[#allocation7 + $0x284] sm:$0xf]  ;;  %v1455_v41 = vadd.f32 %v13379_v15, %v13366_v47  ;;  %v9028_v62 = vld [vmem:[#allocation7 + $0x3c8] sm:$0xf] }
  0xfa   :  { %v13381_v0 = vpop.f32.mrf.mxu3  ;;  %3390 = vmatmul.bf16.vlgmr.msra.gmra.mxu0 %v13384_v23  ;;  %v1505_v45 = vadd.f32 %v1504_v26, %v1486_v8  ;;  %v8865_v11 = vor.u32 %v11256_v63, %v8862_v2  ;;  %v8542_v30 = vld [vmem:[#allocation7 + $0x20] sm:$0xf0] }
  0xfb   :  { %3458 = vmatpush.bf16.msrb.mxu0 %v8769_v28  ;;  %v8897_v28 = vor.u32 %v11264_v17, %v8894_v16  ;;  %v1812_v13 = vadd.f32 %v13371_v35, %v1788_v44  ;;  %v1472_v35 = vadd.f32 %v13362_v9, %v1453_v59  ;;  %v8798_v8 = vld [vmem:[#allocation7 + $0x220] sm:$0xf0]  ;;  %v1474_v47 = vadd.f32 %v13381_v0, %v1455_v41  ;;  %v11348_v44 = vld [vmem:[#allocation7 + $0x55c] sm:$0xf0]  ;;  %v8708_v59 = vld [vmem:[#allocation7 + $0x148] sm:$0xf] }
  0xfc   :  { %v8801_v17 = vor.u32 %v11240_v1, %v8798_v8 }
  0xfd   :  { %3477 = vmatpush.bf16.msrb.mxu1 %v9025_v4  ;;  %v8609_v4 = vor.u32 %v11192_v61, %v8606_v57  ;;  %v13397_v19 = vpack.c.bf16 %v1816_v20, %v1812_v13  ;;  %v8996_v57 = vld [vmem:[#allocation7 + $0x388] sm:$0xf] }
  0xfe   :  { %v11221_v13 = vld [vmem:[#allocation7 + $0x164] sm:$0xf0] }
  0xff   :  { %3459 = vmatpush.bf16.msrb.mxu0 %v8737_v12  ;;  %v1487_v48 = vpop.f32.mrf.mxu0  ;;  %v11248_v12 = vld [vmem:[#allocation7 + $0x244] sm:$0xf] }
 0x100   :  { %v1523_v43 = vpop.f32.mrf.mxu2  ;;  %v1488_v60 = vadd.f32 %v1487_v48, %v1469_v32  ;;  %v8545_v32 = vor.u32 %v11176_v22, %v8542_v30  ;;  %v8740_v48 = vld [vmem:[#allocation7 + $0x188] sm:$0xf]  ;;  %v9148_v22 = vld [vmem:[#allocation7 + $0x4c0] sm:$0xf] }
 0x101   :  { %3478 = vmatpush.bf16.msrb.mxu1 %v8993_v18  ;;  %v1506_v55 = vpop.f32.mrf.mxu1  ;;  %v1524_v58 = vadd.f32 %v1523_v43, %v1505_v45  ;;  %v11364_v18 = vld [vmem:[#allocation7 + $0x5dc] sm:$0xf0]  ;;  %v11301_v43 = vld [vmem:[#allocation7 + $0x3e4] sm:$0xf0] }
 0x102   :  { %v1542_v52 = vpop.f32.mrf.mxu3  ;;  %v1507_v3 = vadd.f32 %v1506_v55, %v1488_v60  ;;  %v9277_v53 = vor.u32 %v11364_v18, %v9276_v38  ;;  %v9029_v60 = vor.u32 %v11301_v43, %v9028_v62  ;;  %v8709_v38 = vor.u32 %v11221_v13, %v8708_v59  ;;  %v8676_v18 = vld [vmem:[#allocation7 + $0x108] sm:$0xf] }
 0x103   :  { %3460 = vmatpush.bf16.msrb.mxu0 %v8705_v29  ;;  %v1543_v50 = vadd.f32 %v1542_v52, %v1524_v58  ;;  %v8577_v29 = vor.u32 %v11184_v7, %v8574_v10  ;;  %v8773_v52 = vor.u32 %v11237_v39, %v8772_v33  ;;  %v11229_v58 = vld [vmem:[#allocation7 + $0x1a4] sm:$0xf0] }
 0x104   :  { %3420 = vmatpush.bf16.msra.mxu2 %v9277_v53  ;;  %v8741_v0 = vor.u32 %v11229_v58, %v8740_v48  ;;  %v11285_v7 = vld [vmem:[#allocation7 + $0x364] sm:$0xf0]  ;;  %v11332_v53 = vld [vmem:[#allocation7 + $0x4dc] sm:$0xf0] }
 0x105   :  { %3479 = vmatpush.bf16.msrb.mxu1 %v8961_v40  ;;  %v1781_v25 = vmax.f32 %v1543_v50, 0.0  ;;  %v8833_v40 = vor.u32 %v11248_v12, %v8830_v5  ;;  %v9149_v30 = vor.u32 %v11332_v53, %v9148_v22  ;;  %v11269_v62 = vld [vmem:[#allocation7 + $0x2e4] sm:$0xf0]  ;;  %v11352_v22 = vld [vmem:[#allocation7 + $0x584] sm:$0xf] }
 0x106   :  { %v8868_v58 = vld [vmem:[#allocation7 + $0x288] sm:$0xf]  ;;  %v9246_v53 = vld [vmem:[#allocation7 + $0x5a0] sm:$0xf0] }
 0x107   :  { %3461 = vmatpush.bf16.msrb.mxu0 %v8673_v51  ;;  %v1490_v31 = vpop.f32.mrf.mxu0  ;;  %v11356_v51 = vld [vmem:[#allocation7 + $0x59c] sm:$0xf0]  ;;  %v1805_v21 = vadd.f32 %v13399_v56, %v1781_v25  ;;  %v11213_v25 = vld [vmem:[#allocation7 + $0x124] sm:$0xf0] }
 0x108   :  { %v1525_v6 = vpop.f32.mrf.mxu2  ;;  %v1491_v9 = vadd.f32 %v1490_v31, %v1472_v35  ;;  %v9245_v46 = vor.u32 %v11356_v51, %v9244_v36  ;;  %v8677_v8 = vor.u32 %v11213_v25, %v8676_v18  ;;  %v11205_v36 = vld [vmem:[#allocation7 + $0xe4] sm:$0xf0]  ;;  %v11233_v25 = vld [vmem:[#allocation7 + $0x1cc] sm:$0xf] }
 0x109   :  { %3480 = vmatpush.bf16.msrb.mxu1 %v8929_v49  ;;  %v1526_v27 = vadd.f32 %v1525_v6, %v1507_v3  ;;  %v1509_v24 = vpop.f32.mrf.mxu1  ;;  %v9180_v3 = vld [vmem:[#allocation7 + $0x500] sm:$0xf]  ;;  %v8964_v6 = vld [vmem:[#allocation7 + $0x348] sm:$0xf] }
 0x10a   :  { %v1544_v14 = vpop.f32.mrf.mxu3  ;;  %3395 = vmatmul.bf16.gmra.mxu0 %v13397_v19  ;;  %v1510_v16 = vadd.f32 %v1509_v24, %v1491_v9  ;;  %3421 = vmatpush.bf16.msra.mxu2 %v9245_v46  ;;  %v8965_v24 = vor.u32 %v11285_v7, %v8964_v6  ;;  %v11324_v9 = vld [vmem:[#allocation7 + $0x49c] sm:$0xf0]  ;;  %v8900_v51 = vld [vmem:[#allocation7 + $0x2c8] sm:$0xf] }
 0x10b   :  { %3462 = vmatpush.bf16.msrb.mxu0 %v8641_v54  ;;  %v1545_v26 = vadd.f32 %v1544_v14, %v1526_v27  ;;  %v9212_v54 = vld [vmem:[#allocation7 + $0x540] sm:$0xf]  ;;  %v11253_v59 = vld [vmem:[#allocation7 + $0x264] sm:$0xf0] }
 0x10c   :  { %v9213_v63 = vor.u32 %v11348_v44, %v9212_v54 }
 0x10d   :  { %3481 = vmatpush.bf16.msrb.mxu1 %v8897_v28  ;;  %v1785_v42 = vmax.f32 %v1545_v26, 0.0  ;;  %v11293_v28 = vld [vmem:[#allocation7 + $0x3a4] sm:$0xf0] }
 0x10e   :  { %v8997_v50 = vor.u32 %v11293_v28, %v8996_v57  ;;  %3422 = vmatpush.bf16.msra.mxu2 %v9213_v63  ;;  %v8932_v26 = vld [vmem:[#allocation7 + $0x308] sm:$0xf] }
 0x10f   :  { %3463 = vmatpush.bf16.msrb.mxu0 %v8609_v4  ;;  %v1809_v49 = vadd.f32 %v13402_v34, %v1785_v42  ;;  %v1492_v55 = vpop.f32.mrf.mxu0  ;;  %v11340_v4 = vld [vmem:[#allocation7 + $0x51c] sm:$0xf0]  ;;  %v11189_v28 = vld [vmem:[#allocation7 + $0x64] sm:$0xf0] }
 0x110   :  { %v1528_v45 = vpop.f32.mrf.mxu2  ;;  %v1493_v20 = vadd.f32 %v1492_v55, %v1474_v47  ;;  %v9181_v10 = vor.u32 %v11340_v4, %v9180_v3  ;;  %v9116_v42 = vld [vmem:[#allocation7 + $0x480] sm:$0xf]  ;;  %v8612_v47 = vld [vmem:[#allocation7 + $0x88] sm:$0xf]  ;;  %v11360_v3 = vld [vmem:[#allocation7 + $0x5c4] sm:$0xf] }
 0x111   :  { %3482 = vmatpush.bf16.msrb.mxu1 %v8865_v11  ;;  %v13410_v15 = vpack.c.bf16 %v1809_v49, %v1805_v21  ;;  %v1511_v61 = vpop.f32.mrf.mxu1  ;;  %v1529_v2 = vadd.f32 %v1528_v45, %v1510_v16  ;;  %v9117_v43 = vor.u32 %v11324_v9, %v9116_v42  ;;  %v13423_v49 = vld [vmem:[%s14425_s10 + $0x8] sm:$0x77]  ;;  %v9084_v16 = vld [vmem:[#allocation7 + $0x440] sm:$0xf]  ;;  %v11197_v55 = vld [vmem:[#allocation7 + $0xa4] sm:$0xf0] }
 0x112   :  { %v1547_v37 = vpop.f32.mrf.mxu3  ;;  %v1512_v12 = vadd.f32 %v1511_v61, %v1493_v20  ;;  %3423 = vmatpush.bf16.msra.mxu2 %v9181_v10  ;;  %v354_v44 = vperm.slane %v13423_v49, 0  ;;  %v8580_v61 = vld [vmem:[#allocation7 + $0x48] sm:$0xf]  ;;  %v8613_v57 = vor.u32 %v11197_v55, %v8612_v47  ;;  %v11308_v20 = vld [vmem:[#allocation7 + $0x41c] sm:$0xf0] }
 0x113   :  { %3464 = vmatpush.bf16.msrb.mxu0 %v8577_v29  ;;  %3409 = vmatmul.bf16.vlgmr.msra.gmra.mxu1 %v13410_v15  ;;  %v1548_v11 = vadd.f32 %v1547_v37, %v1529_v2  ;;  %v11277_v29 = vld [vmem:[#allocation7 + $0x324] sm:$0xf0]  ;;  %v9052_v2 = vld [vmem:[#allocation7 + $0x400] sm:$0xf]  ;;  %v9278_v4 = vld [vmem:[#allocation7 + $0x5e0] sm:$0xf0] }
 0x114   :  { %v8933_v41 = vor.u32 %v11277_v29, %v8932_v26  ;;  %v13437_v13 = vperm.slane %v354_v44, 0  ;;  %v9281_v7 = vor.u32 %v11360_v3, %v9278_v4  ;;  %v8774_v26 = vld [vmem:[#allocation7 + $0x1e8] sm:$0xf0]  ;;  %v9249_v29 = vor.u32 %v11352_v22, %v9246_v53  ;;  %v9214_v42 = vld [vmem:[#allocation7 + $0x560] sm:$0xf0] }
 0x115   :  { %3483 = vmatpush.bf16.msrb.mxu1 %v8833_v40  ;;  %v1789_v33 = vmax.f32 %v1548_v11, 0.0  ;;  %v8644_v40 = vld [vmem:[#allocation7 + $0xc8] sm:$0xf]  ;;  %v11225_v9 = vld [vmem:[#allocation7 + $0x18c] sm:$0xf] }
 0x116   :  { %3424 = vmatpush.bf16.msra.mxu2 %v9149_v30  ;;  %v8998_v47 = vld [vmem:[#allocation7 + $0x3a8] sm:$0xf0]  ;;  %v11428_v55 = vld [vmem:[#allocation7 + $0x7dc] sm:$0xf0]  ;;  %v11328_v3 = vld [vmem:[#allocation7 + $0x4c4] sm:$0xf] }
 0x117   :  { %3465 = vmatpush.bf16.msrb.mxu0 %v8545_v32  ;;  %v13413_v5 = vpop.f32.mrf.mxu0  ;;  %v1813_v46 = vadd.f32 %v13399_v56, %v1789_v33  ;;  %v8901_v56 = vor.u32 %v11269_v62, %v8900_v51  ;;  %v11209_v4 = vld [vmem:[#allocation7 + $0x10c] sm:$0xf] }
 0x118   :  { %v1530_v27 = vpop.f32.mrf.mxu2  ;;  %v11273_v22 = vld [vmem:[#allocation7 + $0x30c] sm:$0xf] }
 0x119   :  { %3484 = vmatpush.bf16.msrb.mxu1 %v8801_v17  ;;  %v1531_v14 = vadd.f32 %v1530_v27, %v1512_v12  ;;  %v13415_v35 = vpop.f32.mrf.mxu1  ;;  %v8645_v17 = vor.u32 %v11205_v36, %v8644_v40  ;;  %v8581_v12 = vor.u32 %v11189_v28, %v8580_v61  ;;  %v8548_v27 = vld [vmem:[#allocation7 + $0x8] sm:$0xf]  ;;  %v9030_v40 = vld [vmem:[#allocation7 + $0x3e8] sm:$0xf0]  ;;  %v9182_v61 = vld [vmem:[#allocation7 + $0x520] sm:$0xf0] }
 0x11a   :  { %v1549_v31 = vpop.f32.mrf.mxu3  ;;  %3466 = vmatmul.bf16.vlgmr.msrb.gmra.mxu0 %v13384_v23  ;;  %3425 = vmatpush.bf16.msra.mxu2 %v9117_v43  ;;  %v8742_v36 = vld [vmem:[#allocation7 + $0x1a8] sm:$0xf0] }
 0x11b   :  { %3534 = vmatpush.bf16.msra.mxu0 %v8773_v52  ;;  %v1550_v39 = vadd.f32 %v1549_v31, %v1531_v14  ;;  %v11181_v14 = vld [vmem:[#allocation7 + $0x24] sm:$0xf0]  ;;  %v8934_v53 = vld [vmem:[#allocation7 + $0x328] sm:$0xf0] }
 0x11c   :  { %v8549_v30 = vor.u32 %v11181_v14, %v8548_v27  ;;  %v9150_v27 = vld [vmem:[#allocation7 + $0x4e0] sm:$0xf0] }
 0x11d   :  { %3553 = vmatpush.bf16.msra.mxu1 %v9029_v60  ;;  %v1793_v1 = vmax.f32 %v1550_v39, 0.0  ;;  %v11261_v60 = vld [vmem:[#allocation7 + $0x2a4] sm:$0xf0]  ;;  %v11297_v39 = vld [vmem:[#allocation7 + $0x3cc] sm:$0xf] }
 0x11e   :  { %v8869_v63 = vor.u32 %v11261_v60, %v8868_v58  ;;  %v9033_v43 = vor.u32 %v11297_v39, %v9030_v40  ;;  %v11336_v58 = vld [vmem:[#allocation7 + $0x504] sm:$0xf]  ;;  %v11217_v60 = vld [vmem:[#allocation7 + $0x14c] sm:$0xf] }
 0x11f   :  { %3535 = vmatpush.bf16.msra.mxu0 %v8741_v0  ;;  %v1817_v21 = vadd.f32 %v13402_v34, %v1793_v1  ;;  %v13431_v48 = vpop.f32.mrf.mxu0  ;;  %v11316_v34 = vld [vmem:[#allocation7 + $0x45c] sm:$0xf0]  ;;  %v8836_v0 = vld [vmem:[#allocation7 + $0x248] sm:$0xf]  ;;  %v1562_v1 = vadd.f32 %v13413_v5, %v13437_v13  ;;  %v9185_v28 = vor.u32 %v11336_v58, %v9182_v61  ;;  %v11320_v39 = vld [vmem:[#allocation7 + $0x484] sm:$0xf] }
 0x120   :  { %v13425_v32 = vpop.f32.mrf.mxu2  ;;  %v9085_v54 = vor.u32 %v11316_v34, %v9084_v16  ;;  %v8837_v31 = vor.u32 %v11253_v59, %v8836_v0  ;;  %v8745_v16 = vor.u32 %v11225_v9, %v8742_v36  ;;  %v9532_v34 = vld [vmem:[#allocation7 + $0x7c0] sm:$0xf]  ;;  %v8937_v9 = vor.u32 %v11273_v22, %v8934_v53  ;;  %v9086_v58 = vld [vmem:[#allocation7 + $0x460] sm:$0xf0]  ;;  %v8550_v22 = vld [vmem:[#allocation7 + $0x28] sm:$0xf0] }
 0x121   :  { %3554 = vmatpush.bf16.msra.mxu1 %v8997_v50  ;;  %v13427_v45 = vpack.c.bf16 %v1817_v21, %v1813_v46  ;;  %v13433_v37 = vpop.f32.mrf.mxu1  ;;  %v9053_v50 = vor.u32 %v11308_v20, %v9052_v2  ;;  %v1581_v5 = vadd.f32 %v13415_v35, %v1562_v1  ;;  %v9533_v44 = vor.u32 %v11428_v55, %v9532_v34  ;;  %v8966_v2 = vld [vmem:[#allocation7 + $0x368] sm:$0xf0]  ;;  %v9500_v59 = vld [vmem:[#allocation7 + $0x780] sm:$0xf]  ;;  %v11312_v55 = vld [vmem:[#allocation7 + $0x444] sm:$0xf] }
 0x122   :  { %v13429_v52 = vpop.f32.mrf.mxu3  ;;  %3426 = vmatpush.bf16.msra.mxu2 %v9085_v54  ;;  %v8710_v54 = vld [vmem:[#allocation7 + $0x168] sm:$0xf0]  ;;  %v1564_v35 = vadd.f32 %v13431_v48, %v13437_v13  ;;  %v9153_v48 = vor.u32 %v11328_v3, %v9150_v27  ;;  %v11304_v3 = vld [vmem:[#allocation7 + $0x404] sm:$0xf] }
 0x123   :  { %3536 = vmatpush.bf16.msra.mxu0 %v8709_v38  ;;  %3414 = vmatmul.bf16.gmra.mxu1 %v13427_v45  ;;  %v8804_v38 = vld [vmem:[#allocation7 + $0x208] sm:$0xf]  ;;  %v1600_v20 = vadd.f32 %v13425_v32, %v1581_v5  ;;  %v8713_v0 = vor.u32 %v11217_v60, %v8710_v54  ;;  %v11201_v1 = vld [vmem:[#allocation7 + $0xcc] sm:$0xf]  ;;  %v11404_v5 = vld [vmem:[#allocation7 + $0x71c] sm:$0xf0] }
 0x124   :  { %3439 = vmatpush.bf16.msra.mxu3 %v9533_v44 }
 0x125   :  { %3555 = vmatpush.bf16.msra.mxu1 %v8965_v24  ;;  %v11245_v24 = vld [vmem:[#allocation7 + $0x224] sm:$0xf0] }
 0x126   :  { %3427 = vmatpush.bf16.msra.mxu2 %v9053_v50  ;;  %v8805_v33 = vor.u32 %v11245_v24, %v8804_v38  ;;  %v11420_v50 = vld [vmem:[#allocation7 + $0x79c] sm:$0xf0]  ;;  %v1583_v38 = vadd.f32 %v13433_v37, %v1564_v35  ;;  %v11257_v35 = vld [vmem:[#allocation7 + $0x28c] sm:$0xf] }
 0x127   :  { %3537 = vmatpush.bf16.msra.mxu0 %v8677_v8  ;;  %v13443_v11 = vpop.f32.mrf.mxu0  ;;  %v8777_v8 = vor.u32 %v11233_v25, %v8774_v26  ;;  %v1619_v25 = vadd.f32 %v13429_v52, %v1600_v20  ;;  %v11265_v52 = vld [vmem:[#allocation7 + $0x2cc] sm:$0xf] }
 0x128   :  { %v13439_v6 = vpop.f32.mrf.mxu2 }
 0x129   :  { %3556 = vmatpush.bf16.msra.mxu1 %v8933_v41  ;;  %v13445_v18 = vpop.f32.mrf.mxu1  ;;  %v11344_v41 = vld [vmem:[#allocation7 + $0x544] sm:$0xf]  ;;  %v1602_v40 = vadd.f32 %v13439_v6, %v1583_v38  ;;  %v11193_v6 = vld [vmem:[#allocation7 + $0x8c] sm:$0xf] }
 0x12a   :  { %v13441_v10 = vpop.f32.mrf.mxu3  ;;  %3496 = vmatpush.bf16.msrb.mxu2 %v9281_v7  ;;  %3471 = vmatmul.bf16.gmra.mxu0 %v13397_v19  ;;  %v9217_v51 = vor.u32 %v11344_v41, %v9214_v42  ;;  %v8678_v7 = vld [vmem:[#allocation7 + $0x128] sm:$0xf0]  ;;  %v9118_v41 = vld [vmem:[#allocation7 + $0x4a0] sm:$0xf0] }
 0x12b   :  { %3538 = vmatpush.bf16.msra.mxu0 %v8645_v17  ;;  %v11289_v17 = vld [vmem:[#allocation7 + $0x38c] sm:$0xf]  ;;  %v9121_v36 = vor.u32 %v11320_v39, %v9118_v41  ;;  %v1621_v60 = vadd.f32 %v13441_v10, %v1602_v40  ;;  %v11396_v10 = vld [vmem:[#allocation7 + $0x6dc] sm:$0xf0] }
 0x12c   :  { %v11388_v41 = vld [vmem:[#allocation7 + $0x69c] sm:$0xf0] }
 0x12d   :  { %3557 = vmatpush.bf16.msra.mxu1 %v8901_v56 }
 0x12e   :  { %3497 = vmatpush.bf16.msrb.mxu2 %v9249_v29  ;;  %v8681_v29 = vor.u32 %v11209_v4, %v8678_v7  ;;  %v13479_v4 = vld [vmem:[#allocation4 + $0x10] sm:$0xff]  ;;  %v11185_v7 = vld [vmem:[#allocation7 + $0x4c] sm:$0xf] }
 0x12f   :  { %3539 = vmatpush.bf16.msra.mxu0 %v8613_v57  ;;  %v13454_v21 = vpop.f32.mrf.mxu0  ;;  %v9001_v57 = vor.u32 %v11289_v17, %v8998_v47  ;;  %v9436_v47 = vld [vmem:[#allocation7 + $0x700] sm:$0xf] }
 0x130   :  { %v13450_v62 = vpop.f32.mrf.mxu2  ;;  %v9437_v34 = vor.u32 %v11404_v5, %v9436_v47  ;;  %v1569_v39 = vadd.f32 %v13454_v21, %v13437_v13  ;;  %v8806_v47 = vld [vmem:[#allocation7 + $0x228] sm:$0xf0] }
 0x131   :  { %3558 = vmatpush.bf16.msra.mxu1 %v8869_v63  ;;  %v13457_v56 = vpop.f32.mrf.mxu1  ;;  %v11281_v63 = vld [vmem:[#allocation7 + $0x34c] sm:$0xf] }
 0x132   :  { %v13452_v46 = vpop.f32.mrf.mxu3  ;;  %3498 = vmatpush.bf16.msrb.mxu2 %v9217_v51  ;;  %v8902_v51 = vld [vmem:[#allocation7 + $0x2e8] sm:$0xf0] }
 0x133   :  { %3540 = vmatpush.bf16.msra.mxu0 %v8581_v12  ;;  %3485 = vmatmul.bf16.vlgmr.msrb.gmra.mxu1 %v13410_v15  ;;  %v9501_v12 = vor.u32 %v11420_v50, %v9500_v59  ;;  %v8905_v61 = vor.u32 %v11265_v52, %v8902_v51  ;;  %v9404_v50 = vld [vmem:[#allocation7 + $0x6c0] sm:$0xf]  ;;  %v8780_v52 = vld [vmem:[#allocation7 + $0x1d0] sm:$0xf] }
 0x134   :  { %v9405_v27 = vor.u32 %v11396_v10, %v9404_v50  ;;  %v11238_v51 = vld [vmem:[#allocation7 + $0x1ec] sm:$0xf0]  ;;  %v9220_v10 = vld [vmem:[#allocation7 + $0x548] sm:$0xf] }
 0x135   :  { %3559 = vmatpush.bf16.msra.mxu1 %v8837_v31  ;;  %v8969_v31 = vor.u32 %v11281_v63, %v8966_v2  ;;  %3440 = vmatpush.bf16.msra.mxu3 %v9501_v12  ;;  %v8870_v63 = vld [vmem:[#allocation7 + $0x2a8] sm:$0xf0] }
 0x136   :  { %3499 = vmatpush.bf16.msrb.mxu2 %v9185_v28  ;;  %v8582_v12 = vld [vmem:[#allocation7 + $0x68] sm:$0xf0]  ;;  %v8873_v53 = vor.u32 %v11257_v35, %v8870_v63 }
 0x137   :  { %3541 = vmatpush.bf16.msra.mxu0 %v8549_v30  ;;  %v1637_v32 = vpop.f32.mrf.mxu0  ;;  %v9468_v30 = vld [vmem:[#allocation7 + $0x740] sm:$0xf] }
 0x138   :  { %v13463_v14 = vpop.f32.mrf.mxu2  ;;  %v1638_v42 = vadd.f32 %v1637_v32, %v1619_v25  ;;  %v13482_v32 = vld [vmem:[#allocation4 + $0x30] sm:$0xff] }
 0x139   :  { %3560 = vmatpush.bf16.msra.mxu1 %v8805_v33  ;;  %v1656_v26 = vpop.f32.mrf.mxu1  ;;  %v11412_v33 = vld [vmem:[#allocation7 + $0x75c] sm:$0xf0] }
 0x13a   :  { %v13466_v24 = vpop.f32.mrf.mxu3  ;;  %3500 = vmatpush.bf16.msrb.mxu2 %v9153_v48  ;;  %v9469_v37 = vor.u32 %v11412_v33, %v9468_v30  ;;  %3542 = vmatmul.bf16.vlgmr.msra.gmra.mxu0 %v13384_v23  ;;  %v1657_v54 = vadd.f32 %v1656_v26, %v1638_v42  ;;  %v11249_v26 = vld [vmem:[#allocation7 + $0x24c] sm:$0xf]  ;;  %v9284_v30 = vld [vmem:[#allocation7 + $0x5c8] sm:$0xf] }
 0x13b   :  { %3610 = vmatpush.bf16.msrb.mxu0 %v8777_v8  ;;  %v8646_v8 = vld [vmem:[#allocation7 + $0xe8] sm:$0xf0] }
 0x13c   :  { %3441 = vmatpush.bf16.msra.mxu3 %v9469_v37  ;;  %v8649_v17 = vor.u32 %v11201_v1, %v8646_v8  ;;  %v1782_v48 = vmax.f32 %v1657_v54, 0.0  ;;  %v8585_v1 = vor.u32 %v11185_v7, %v8582_v12  ;;  %v11365_v8 = vld [vmem:[#allocation7 + $0x5e4] sm:$0xf0]  ;;  %v9372_v37 = vld [vmem:[#allocation7 + $0x680] sm:$0xf] }
 0x13d   :  { %3629 = vmatpush.bf16.msrb.mxu1 %v9033_v43  ;;  %v1567_v43 = vadd.f32 %v13443_v11, %v13437_v13  ;;  %v9285_v5 = vor.u32 %v11365_v8, %v9284_v30  ;;  %v11357_v54 = vld [vmem:[#allocation7 + $0x5a4] sm:$0xf0]  ;;  %v9308_v7 = vld [vmem:[#allocation7 + $0x600] sm:$0xf]  ;;  %v9004_v30 = vld [vmem:[#allocation7 + $0x390] sm:$0xf] }
 0x13e   :  { %3501 = vmatpush.bf16.msrb.mxu2 %v9121_v36  ;;  %v1806_v42 = vadd.f32 %v13479_v4, %v1782_v48  ;;  %v11372_v12 = vld [vmem:[#allocation7 + $0x61c] sm:$0xf0]  ;;  %v11341_v8 = vld [vmem:[#allocation7 + $0x524] sm:$0xf0] }
 0x13f   :  { %3611 = vmatpush.bf16.msrb.mxu0 %v8745_v16  ;;  %v8614_v16 = vld [vmem:[#allocation7 + $0xa8] sm:$0xf0]  ;;  %v1639_v11 = vpop.f32.mrf.mxu0  ;;  %v1586_v2 = vadd.f32 %v13445_v18, %v1567_v43 }
 0x140   :  { %v13474_v44 = vpop.f32.mrf.mxu2  ;;  %3442 = vmatpush.bf16.msra.mxu3 %v9437_v34  ;;  %v1640_v20 = vadd.f32 %v1639_v11, %v1621_v60  ;;  %v8617_v59 = vor.u32 %v11193_v6, %v8614_v16  ;;  %v11177_v18 = vld [vmem:[#allocation7 + $0xc] sm:$0xf]  ;;  %v9252_v16 = vld [vmem:[#allocation7 + $0x588] sm:$0xf]  ;;  %v8781_v11 = vor.u32 %v11238_v51, %v8780_v52 }
 0x141   :  { %3630 = vmatpush.bf16.msrb.mxu1 %v9001_v57  ;;  %v9089_v57 = vor.u32 %v11312_v55, %v9086_v58  ;;  %v1605_v33 = vadd.f32 %v13450_v62, %v1586_v2  ;;  %v9373_v62 = vor.u32 %v11388_v41, %v9372_v37  ;;  %v8553_v21 = vor.u32 %v11177_v18, %v8550_v22  ;;  %v11241_v6 = vld [vmem:[#allocation7 + $0x20c] sm:$0xf]  ;;  %v8716_v22 = vld [vmem:[#allocation7 + $0x150] sm:$0xf]  ;;  %v9534_v37 = vld [vmem:[#allocation7 + $0x7e0] sm:$0xf0] }
 0x142   :  { %v13476_v28 = vpop.f32.mrf.mxu3  ;;  %v1588_v55 = vadd.f32 %v13457_v56, %v1569_v39  ;;  %v8809_v56 = vor.u32 %v11241_v6, %v8806_v47  ;;  %v9253_v50 = vor.u32 %v11357_v54, %v9252_v16  ;;  %v11286_v6 = vld [vmem:[#allocation7 + $0x36c] sm:$0xf0]  ;;  %v11333_v16 = vld [vmem:[#allocation7 + $0x4e4] sm:$0xf0] }
 0x143   :  { %3612 = vmatpush.bf16.msrb.mxu0 %v8713_v0  ;;  %v1658_v0 = vpop.f32.mrf.mxu1  ;;  %3490 = vmatmul.bf16.gmra.mxu1 %v13427_v45  ;;  %v1624_v34 = vadd.f32 %v13452_v46, %v1605_v33  ;;  %v8748_v46 = vld [vmem:[#allocation7 + $0x190] sm:$0xf] }
 0x144   :  { %3502 = vmatpush.bf16.msrb.mxu2 %v9089_v57  ;;  %v1659_v38 = vadd.f32 %v1658_v0, %v1640_v20  ;;  %3443 = vmatpush.bf16.msra.mxu3 %v9405_v27  ;;  %v11380_v57 = vld [vmem:[#allocation7 + $0x65c] sm:$0xf0]  ;;  %v1607_v63 = vadd.f32 %v13463_v14, %v1588_v55  ;;  %v11230_v20 = vld [vmem:[#allocation7 + $0x1ac] sm:$0xf0]  ;;  %v355_v14 = vperm.slane %v13423_v49, 4 }
 0x145   :  { %3631 = vmatpush.bf16.msrb.mxu1 %v8969_v31  ;;  %v9054_v31 = vld [vmem:[#allocation7 + $0x420] sm:$0xf0]  ;;  %v9036_v0 = vld [vmem:[#allocation7 + $0x3d0] sm:$0xf]  ;;  %v8749_v27 = vor.u32 %v11230_v20, %v8748_v46  ;;  %v9188_v49 = vld [vmem:[#allocation7 + $0x508] sm:$0xf] }
 0x146   :  { %v9057_v25 = vor.u32 %v11304_v3, %v9054_v31  ;;  %v1786_v40 = vmax.f32 %v1659_v38, 0.0  ;;  %v11349_v3 = vld [vmem:[#allocation7 + $0x564] sm:$0xf0]  ;;  %v9309_v31 = vor.u32 %v11372_v12, %v9308_v7  ;;  %v1626_v48 = vadd.f32 %v13466_v24, %v1607_v63  ;;  %v11294_v33 = vld [vmem:[#allocation7 + $0x3ac] sm:$0xf0] }
 0x147   :  { %3613 = vmatpush.bf16.msrb.mxu0 %v8681_v29  ;;  %v8838_v29 = vld [vmem:[#allocation7 + $0x268] sm:$0xf0]  ;;  %v1642_v13 = vpop.f32.mrf.mxu0  ;;  %v9221_v39 = vor.u32 %v11349_v3, %v9220_v10  ;;  %v11424_v24 = vld [vmem:[#allocation7 + $0x7c4] sm:$0xf]  ;;  %v13506_v41 = vperm.slane %v355_v14, 0  ;;  %v9189_v47 = vor.u32 %v11341_v8, %v9188_v49  ;;  %v11984_v49 = vmov 0  }
 0x148   :  { %3503 = vmatpush.bf16.msrb.mxu2 %v9057_v25  ;;  %v13489_v36 = vpop.f32.mrf.mxu2  ;;  %3444 = vmatpush.bf16.msra.mxu3 %v9373_v62  ;;  %v1643_v2 = vadd.f32 %v1642_v13, %v1624_v34  ;;  %v9537_v52 = vor.u32 %v11424_v24, %v9534_v37  ;;  %v11214_v13 = vld [vmem:[#allocation7 + $0x12c] sm:$0xf0]  ;;  %v11416_v55 = vld [vmem:[#allocation7 + $0x784] sm:$0xf]  ;;  %v9124_v10 = vld [vmem:[#allocation7 + $0x488] sm:$0xf] }
 0x149   :  { %3632 = vmatpush.bf16.msrb.mxu1 %v8937_v9  ;;  %v1810_v9 = vadd.f32 %v13482_v32, %v1786_v40  ;;  %v1676_v54 = vadd.f32 %v13474_v44, %v13506_v41  ;;  %v11206_v46 = vld [vmem:[#allocation7 + $0xec] sm:$0xf0]  ;;  %v11325_v7 = vld [vmem:[#allocation7 + $0x4a4] sm:$0xf0]  ;;  %v9470_v12 = vld [vmem:[#allocation7 + $0x760] sm:$0xf0]  ;;  %11797 = vset.pattern.permute.xlu0 %v11984_v49 }
 0x14a   :  { %v13491_v43 = vpop.f32.mrf.mxu3  ;;  %3547 = vmatmul.bf16.gmra.mxu0 %v13397_v19  ;;  %v8588_v24 = vld [vmem:[#allocation7 + $0x50] sm:$0xf]  ;;  %11798 = vset.pattern.permute.xlu1 %v11984_v49 }
 0x14b   :  { %3614 = vmatpush.bf16.msrb.mxu0 %v8649_v17  ;;  %v8841_v17 = vor.u32 %v11249_v26, %v8838_v29  ;;  %v13495_v58 = vpack.c.bf16 %v1810_v9, %v1806_v42  ;;  %v1661_v60 = vpop.f32.mrf.mxu1  ;;  %v8684_v9 = vld [vmem:[#allocation7 + $0x110] sm:$0xf]  ;;  %v1695_v14 = vadd.f32 %v13476_v28, %v1676_v54  ;;  %v9092_v28 = vld [vmem:[#allocation7 + $0x448] sm:$0xf]  ;;  %v9406_v54 = vld [vmem:[#allocation7 + $0x6e0] sm:$0xf0] }
 0x14c   :  { %v1662_v38 = vadd.f32 %v1661_v60, %v1643_v2  ;;  %v9502_v60 = vld [vmem:[#allocation7 + $0x7a0] sm:$0xf0]  ;;  %v8652_v2 = vld [vmem:[#allocation7 + $0xd0] sm:$0xf] }
 0x14d   :  { %3633 = vmatpush.bf16.msrb.mxu1 %v8905_v61  ;;  %v9340_v61 = vld [vmem:[#allocation7 + $0x640] sm:$0xf]  ;;  %3428 = vmatmul.bf16.vlgmr.msra.gmra.mxu2 %v13495_v58  ;;  %v11190_v37 = vld [vmem:[#allocation7 + $0x6c] sm:$0xf0] }
 0x14e   :  { %v9341_v35 = vor.u32 %v11380_v57, %v9340_v61  ;;  %3572 = vmatpush.bf16.msra.mxu2 %v9285_v5  ;;  %v1790_v51 = vmax.f32 %v1662_v38, 0.0  ;;  %v9156_v5 = vld [vmem:[#allocation7 + $0x4c8] sm:$0xf]  ;;  %v8685_v61 = vor.u32 %v11214_v13, %v8684_v9  ;;  %v9505_v57 = vor.u32 %v11416_v55, %v9502_v60  ;;  %v11392_v60 = vld [vmem:[#allocation7 + $0x6c4] sm:$0xf] }
 0x14f   :  { %3615 = vmatpush.bf16.msrb.mxu0 %v8617_v59  ;;  %v11302_v59 = vld [vmem:[#allocation7 + $0x3ec] sm:$0xf0]  ;;  %v1644_v29 = vpop.f32.mrf.mxu0  ;;  %v9157_v44 = vor.u32 %v11333_v16, %v9156_v5  ;;  %v1678_v38 = vadd.f32 %v13489_v36, %v13506_v41  ;;  %v3991_v36 = vld [vmem:[%s14417_s2 + $0x8] sm:$0xff]  ;;  %v9060_v5 = vld [vmem:[#allocation7 + $0x408] sm:$0xf] }
 0x150   :  { %3445 = vmatpush.bf16.msra.mxu3 %v9341_v35  ;;  %v13502_v18 = vpop.f32.mrf.mxu2  ;;  %v9037_v25 = vor.u32 %v11302_v59, %v9036_v0  ;;  %v1645_v40 = vadd.f32 %v1644_v29, %v1626_v48  ;;  %v8940_v59 = vld [vmem:[#allocation7 + $0x310] sm:$0xf]  ;;  %4001 = vperm.xlu0 %11797, %v3991_v36   ;;  %v11309_v55 = vld [vmem:[#allocation7 + $0x424] sm:$0xf0]  ;;  %v11376_v36 = vld [vmem:[#allocation7 + $0x644] sm:$0xf] }
 0x151   :  { %3634 = vmatpush.bf16.msrb.mxu1 %v8873_v53  ;;  %v11222_v53 = vld [vmem:[#allocation7 + $0x16c] sm:$0xf0]  ;;  %v1697_v9 = vadd.f32 %v13491_v43, %v1678_v38 }
 0x152   :  { %v13504_v26 = vpop.f32.mrf.mxu3  ;;  %3573 = vmatpush.bf16.msra.mxu2 %v9253_v50  ;;  %v8717_v42 = vor.u32 %v11222_v53, %v8716_v22  ;;  %v11278_v50 = vld [vmem:[#allocation7 + $0x32c] sm:$0xf0] }
 0x153   :  { %3616 = vmatpush.bf16.msrb.mxu0 %v8585_v1  ;;  %v1663_v1 = vpop.f32.mrf.mxu1  ;;  %3561 = vmatmul.bf16.vlgmr.msra.gmra.mxu1 %v13410_v15  ;;  %v11198_v22 = vld [vmem:[#allocation7 + $0xac] sm:$0xf0] }
 0x154   :  { %3446 = vmatpush.bf16.msra.mxu3 %v9309_v31  ;;  %v1664_v62 = vadd.f32 %v1663_v1, %v1645_v40  ;;  %v8620_v31 = vld [vmem:[#allocation7 + $0x90] sm:$0xf]  ;;  %v11400_v40 = vld [vmem:[#allocation7 + $0x704] sm:$0xf] }
 0x155   :  { %3635 = vmatpush.bf16.msrb.mxu1 %v8841_v17  ;;  %v8972_v17 = vld [vmem:[#allocation7 + $0x350] sm:$0xf]  ;;  %v9438_v1 = vld [vmem:[#allocation7 + $0x720] sm:$0xf0]  ;;  %v8621_v8 = vor.u32 %v11198_v22, %v8620_v31  ;;  %v9286_v31 = vld [vmem:[#allocation7 + $0x5e8] sm:$0xf0] }
 0x156   :  { %3574 = vmatpush.bf16.msra.mxu2 %v9221_v39  ;;  %v1794_v34 = vmax.f32 %v1664_v62, 0.0  ;;  %v8973_v0 = vor.u32 %v11286_v6, %v8972_v17  ;;  %v8908_v53 = vld [vmem:[#allocation7 + $0x2d0] sm:$0xf]  ;;  %v11317_v39 = vld [vmem:[#allocation7 + $0x464] sm:$0xf0] }
 0x157   :  { %3617 = vmatpush.bf16.msrb.mxu0 %v8553_v21  ;;  %v9005_v21 = vor.u32 %v11294_v33, %v9004_v30  ;;  %v8941_v30 = vor.u32 %v11278_v50, %v8940_v59  ;;  %v9125_v33 = vor.u32 %v11325_v7, %v9124_v10  ;;  %v8876_v17 = vld [vmem:[#allocation7 + $0x290] sm:$0xf]  ;;  %v9061_v50 = vor.u32 %v11309_v55, %v9060_v5  ;;  %v11384_v7 = vld [vmem:[#allocation7 + $0x684] sm:$0xf] }
 0x158   :  { %3515 = vmatpush.bf16.msrb.mxu3 %v9537_v52  ;;  %v1818_v35 = vadd.f32 %v13482_v32, %v1794_v34  ;;  %v13513_v63 = vpop.f32.mrf.mxu2  ;;  %v11408_v32 = vld [vmem:[#allocation7 + $0x744] sm:$0xf]  ;;  %v11262_v6 = vld [vmem:[#allocation7 + $0x2ac] sm:$0xf0]  ;;  %v8589_v34 = vor.u32 %v11190_v37, %v8588_v24  ;;  %v13535_v24 = vld [vmem:[#allocation4 + $0x18] sm:$0xff] }
 0x159   :  { %3636 = vmatpush.bf16.msrb.mxu1 %v8809_v56  ;;  %v1713_v56 = vpop.f32.mrf.mxu0  ;;  %v9473_v48 = vor.u32 %v11408_v32, %v9470_v12  ;;  %v8844_v59 = vld [vmem:[#allocation7 + $0x250] sm:$0xf]  ;;  %v9374_v32 = vld [vmem:[#allocation7 + $0x6a0] sm:$0xf0] }
 0x15a   :  { %v13515_v20 = vpop.f32.mrf.mxu3  ;;  %3575 = vmatpush.bf16.msra.mxu2 %v9189_v47  ;;  %3618 = vmatmul.bf16.vlgmr.msrb.gmra.mxu0 %v13384_v23  ;;  %v1714_v29 = vadd.f32 %v1713_v56, %v1695_v14  ;;  %v9093_v47 = vor.u32 %v11317_v39, %v9092_v28  ;;  %v8782_v56 = vld [vmem:[#allocation7 + $0x1f0] sm:$0xf0]  ;;  %v8812_v28 = vld [vmem:[#allocation7 + $0x210] sm:$0xf] }
 0x15b   :  { %3686 = vmatpush.bf16.msra.mxu0 %v8781_v11  ;;  %v1814_v11 = vadd.f32 %v13479_v4, %v1790_v51  ;;  %v1732_v4 = vpop.f32.mrf.mxu1  ;;  %v11246_v39 = vld [vmem:[#allocation7 + $0x22c] sm:$0xf0] }
 0x15c   :  { %3516 = vmatpush.bf16.msrb.mxu3 %v9505_v57  ;;  %v1733_v51 = vadd.f32 %v1732_v4, %v1714_v29  ;;  %v8556_v57 = vld [vmem:[#allocation7 + $0x10] sm:$0xf]  ;;  %v8813_v5 = vor.u32 %v11246_v39, %v8812_v28 }
 0x15d   :  { %3705 = vmatpush.bf16.msra.mxu1 %v9037_v25  ;;  %v13517_v3 = vpack.c.bf16 %v1818_v35, %v1814_v11  ;;  %v11270_v25 = vld [vmem:[#allocation7 + $0x2ec] sm:$0xf0]  ;;  %v9409_v35 = vor.u32 %v11392_v60, %v9406_v54  ;;  %v3993_v60 = vld [vmem:[%s14417_s2 + $0x18] sm:$0xff]  ;;  %v11368_v54 = vld [vmem:[#allocation7 + $0x604] sm:$0xf] }
 0x15e   :  { %3576 = vmatpush.bf16.msra.mxu2 %v9157_v44  ;;  %v11182_v11 = vld [vmem:[#allocation7 + $0x2c] sm:$0xf0]  ;;  %v1681_v44 = vadd.f32 %v13502_v18, %v13506_v41  ;;  %4011 = vperm.xlu1 %11798, %v3993_v60   ;;  %v11413_v60 = vld [vmem:[#allocation7 + $0x764] sm:$0xf0] }
 0x15f   :  { %3687 = vmatpush.bf16.msra.mxu0 %v8749_v27  ;;  %v8653_v27 = vor.u32 %v11206_v46, %v8652_v2  ;;  %3433 = vmatmul.bf16.gmra.mxu2 %v13517_v3  ;;  %v3990_v2 = vld [vmem:[%s14417_s2] sm:$0xff]  ;;  %v8557_v10 = vor.u32 %v11182_v11, %v8556_v57  ;;  %v9222_v57 = vld [vmem:[#allocation7 + $0x568] sm:$0xf0] }
 0x160   :  { %3517 = vmatpush.bf16.msrb.mxu3 %v9473_v48  ;;  %v1751_v52 = vpop.f32.mrf.mxu2  ;;  %v11234_v46 = vld [vmem:[#allocation7 + $0x1d4] sm:$0xf]  ;;  %v11254_v4 = vld [vmem:[#allocation7 + $0x26c] sm:$0xf0]  ;;  %3996 = vperm.xlu0 %11797, %v3990_v2   ;;  %v9377_v48 = vor.u32 %v11384_v7, %v9374_v32 }
 0x161   :  { %3706 = vmatpush.bf16.msra.mxu1 %v9005_v21  ;;  %v1715_v13 = vpop.f32.mrf.mxu0  ;;  %v8909_v21 = vor.u32 %v11270_v25, %v8908_v53  ;;  %v8785_v22 = vor.u32 %v11234_v46, %v8782_v56  ;;  %v8845_v18 = vor.u32 %v11254_v4, %v8844_v59  ;;  %v11210_v46 = vld [vmem:[#allocation7 + $0x114] sm:$0xf] }
 0x162   :  { %v1770_v62 = vpop.f32.mrf.mxu3  ;;  %3577 = vmatpush.bf16.msra.mxu2 %v9125_v33  ;;  %v1716_v43 = vadd.f32 %v1715_v13, %v1697_v9  ;;  %v8750_v33 = vld [vmem:[#allocation7 + $0x1b0] sm:$0xf0]  ;;  %v9254_v9 = vld [vmem:[#allocation7 + $0x5a8] sm:$0xf0] }
 0x163   :  { %3688 = vmatpush.bf16.msra.mxu0 %v8717_v42  ;;  %v9441_v42 = vor.u32 %v11400_v40, %v9438_v1  ;;  %v1734_v16 = vpop.f32.mrf.mxu1  ;;  %3566 = vmatmul.bf16.gmra.mxu1 %v13427_v45  ;;  %v9342_v40 = vld [vmem:[#allocation7 + $0x660] sm:$0xf0]  ;;  %v1700_v1 = vadd.f32 %v13504_v26, %v1681_v44  ;;  %v1683_v26 = vadd.f32 %v13513_v63, %v13506_v41  ;;  %v11345_v63 = vld [vmem:[#allocation7 + $0x54c] sm:$0xf]  ;;  %v8686_v4 = vld [vmem:[#allocation7 + $0x130] sm:$0xf0] }
 0x164   :  { %v1735_v14 = vadd.f32 %v1734_v16, %v1716_v43  ;;  %v11298_v16 = vld [vmem:[#allocation7 + $0x3d4] sm:$0xf] }
 0x165   :  { %3707 = vmatpush.bf16.msra.mxu1 %v8973_v0  ;;  %3518 = vmatpush.bf16.msrb.mxu3 %v9441_v42  ;;  %v8877_v0 = vor.u32 %v11262_v6, %v8876_v17  ;;  %v11353_v42 = vld [vmem:[#allocation7 + $0x58c] sm:$0xf]  ;;  %v8718_v17 = vld [vmem:[#allocation7 + $0x170] sm:$0xf0] }
 0x166   :  { %3578 = vmatpush.bf16.msra.mxu2 %v9093_v47  ;;  %v9257_v55 = vor.u32 %v11353_v42, %v9254_v9  ;;  %v11290_v7 = vld [vmem:[#allocation7 + $0x394] sm:$0xf]  ;;  %v9158_v42 = vld [vmem:[#allocation7 + $0x4e8] sm:$0xf0] }
 0x167   :  { %3689 = vmatpush.bf16.msra.mxu0 %v8685_v61  ;;  %v1752_v61 = vadd.f32 %v1751_v52, %v1733_v51  ;;  %v9345_v52 = vor.u32 %v11376_v36, %v9342_v40  ;;  %v13537_v51 = vld [vmem:[#allocation4 + $0x38] sm:$0xff]  ;;  %v9006_v32 = vld [vmem:[#allocation7 + $0x3b0] sm:$0xf0] }
 0x168   :  { %v1753_v38 = vpop.f32.mrf.mxu2  ;;  %v9508_v36 = vld [vmem:[#allocation7 + $0x788] sm:$0xf] }
 0x169   :  { %3708 = vmatpush.bf16.msra.mxu1 %v8941_v30  ;;  %3519 = vmatpush.bf16.msrb.mxu3 %v9409_v35  ;;  %v1771_v12 = vadd.f32 %v1770_v62, %v1752_v61  ;;  %v1754_v53 = vadd.f32 %v1753_v38, %v1735_v14  ;;  %v1718_v29 = vpop.f32.mrf.mxu0  ;;  %v11226_v30 = vld [vmem:[#allocation7 + $0x194] sm:$0xf]  ;;  %v9310_v61 = vld [vmem:[#allocation7 + $0x620] sm:$0xf0]  ;;  %v9540_v14 = vld [vmem:[#allocation7 + $0x7c8] sm:$0xf] }
 0x16a   :  { %v1772_v25 = vpop.f32.mrf.mxu3  ;;  %3579 = vmatpush.bf16.msra.mxu2 %v9061_v50  ;;  %v8753_v13 = vor.u32 %v11226_v30, %v8750_v33  ;;  %v1719_v47 = vadd.f32 %v1718_v29, %v1700_v1  ;;  %3623 = vmatmul.bf16.gmra.mxu0 %v13397_v19  ;;  %v9313_v11 = vor.u32 %v11368_v54, %v9310_v61  ;;  %v9190_v38 = vld [vmem:[#allocation7 + $0x528] sm:$0xf0]  ;;  %v8654_v30 = vld [vmem:[#allocation7 + $0xf0] sm:$0xf0]  ;;  %v11421_v40 = vld [vmem:[#allocation7 + $0x7a4] sm:$0xf0] }
 0x16b   :  { %3690 = vmatpush.bf16.msra.mxu0 %v8653_v27  ;;  %v11361_v27 = vld [vmem:[#allocation7 + $0x5cc] sm:$0xf]  ;;  %v1773_v37 = vadd.f32 %v1772_v25, %v1754_v53  ;;  %v1737_v62 = vpop.f32.mrf.mxu1  ;;  %v8689_v53 = vor.u32 %v11210_v46, %v8686_v4  ;;  %v11202_v25 = vld [vmem:[#allocation7 + $0xd4] sm:$0xf]  ;;  %v9009_v29 = vor.u32 %v11290_v7, %v9006_v32  ;;  %v9509_v9 = vor.u32 %v11421_v40, %v9508_v36  ;;  %v9444_v32 = vld [vmem:[#allocation7 + $0x708] sm:$0xf] }
 0x16c   :  { %v9289_v49 = vor.u32 %v11361_v27, %v9286_v31  ;;  %v1738_v50 = vadd.f32 %v1737_v62, %v1719_v47  ;;  %v11429_v27 = vld [vmem:[#allocation7 + $0x7e4] sm:$0xf0]  ;;  %v11282_v33 = vld [vmem:[#allocation7 + $0x354] sm:$0xf]  ;;  %v8657_v62 = vor.u32 %v11202_v25, %v8654_v30  ;;  %v9094_v7 = vld [vmem:[#allocation7 + $0x468] sm:$0xf0] }
 0x16d   :  { %3709 = vmatpush.bf16.msra.mxu1 %v8909_v21  ;;  %3520 = vmatpush.bf16.msrb.mxu3 %v9377_v48  ;;  %v11218_v21 = vld [vmem:[#allocation7 + $0x154] sm:$0xf]  ;;  %v1787_v6 = vmax.f32 %v1773_v37, 0.0  ;;  %v11329_v37 = vld [vmem:[#allocation7 + $0x4cc] sm:$0xf] }
 0x16e   :  { %v8721_v2 = vor.u32 %v11218_v21, %v8718_v17  ;;  %v11194_v17 = vld [vmem:[#allocation7 + $0x94] sm:$0xf]  ;;  %v9412_v30 = vld [vmem:[#allocation7 + $0x6c8] sm:$0xf] }
 0x16f   :  { %3691 = vmatpush.bf16.msra.mxu0 %v8621_v8  ;;  %v1783_v8 = vmax.f32 %v1771_v12, 0.0  ;;  %3504 = vmatmul.bf16.vlgmr.msrb.gmra.mxu2 %v13495_v58  ;;  %v1811_v41 = vadd.f32 %v13537_v51, %v1787_v6  ;;  %v9225_v12 = vor.u32 %v11345_v63, %v9222_v57  ;;  %v11274_v47 = vld [vmem:[#allocation7 + $0x314] sm:$0xf] }
 0x170   :  { %3648 = vmatpush.bf16.msrb.mxu2 %v9289_v49  ;;  %v1756_v35 = vpop.f32.mrf.mxu2  ;;  %v3992_v49 = vld [vmem:[%s14417_s2 + $0x10] sm:$0xff]  ;;  %v13571_v36 = vld [vmem:[%s14426_s11] sm:$0xff] }
 0x171   :  { %3710 = vmatpush.bf16.msra.mxu1 %v8877_v0  ;;  %3521 = vmatpush.bf16.msrb.mxu3 %v9345_v52  ;;  %v1807_v43 = vadd.f32 %v13535_v24, %v1783_v8  ;;  %v1702_v0 = vadd.f32 %v13515_v20, %v1683_v26  ;;  %v1757_v31 = vadd.f32 %v1756_v35, %v1738_v50  ;;  %v11337_v20 = vld [vmem:[#allocation7 + $0x50c] sm:$0xf]  ;;  %v8622_v26 = vld [vmem:[#allocation7 + $0xb0] sm:$0xf0] }
 0x172   :  { %v1775_v44 = vpop.f32.mrf.mxu3  ;;  %v9193_v39 = vor.u32 %v11337_v20, %v9190_v38  ;;  %4006 = vperm.xlu1 %11798, %v3992_v49   ;;  %v8625_v57 = vor.u32 %v11194_v17, %v8622_v26  ;;  %v11186_v35 = vld [vmem:[#allocation7 + $0x54] sm:$0xf]  ;;  %v9292_v17 = vld [vmem:[#allocation7 + $0x5d0] sm:$0xf] }
 0x173   :  { %3692 = vmatpush.bf16.msra.mxu0 %v8589_v34  ;;  %v9038_v34 = vld [vmem:[#allocation7 + $0x3f0] sm:$0xf0]  ;;  %v13549_v59 = vpack.c.bf16 %v1811_v41, %v1807_v43  ;;  %3637 = vmatmul.bf16.vlgmr.msrb.gmra.mxu1 %v13410_v15  ;;  %v1739_v28 = vpop.f32.mrf.mxu1  ;;  %v1776_v1 = vadd.f32 %v1775_v44, %v1757_v31  ;;  %v11321_v43 = vld [vmem:[#allocation7 + $0x48c] sm:$0xf]  ;;  %v11366_v26 = vld [vmem:[#allocation7 + $0x5ec] sm:$0xf0] }
 0x174   :  { %v9041_v56 = vor.u32 %v11298_v16, %v9038_v34  ;;  %3649 = vmatpush.bf16.msrb.mxu2 %v9257_v55  ;;  %v8942_v16 = vld [vmem:[#allocation7 + $0x330] sm:$0xf0]  ;;  %v9161_v34 = vor.u32 %v11329_v37, %v9158_v42  ;;  %v9476_v55 = vld [vmem:[#allocation7 + $0x748] sm:$0xf]  ;;  %v9126_v41 = vld [vmem:[#allocation7 + $0x4a8] sm:$0xf0] }
 0x175   :  { %3711 = vmatpush.bf16.msra.mxu1 %v8845_v18  ;;  %3522 = vmatpush.bf16.msrb.mxu3 %v9313_v11  ;;  %v8974_v18 = vld [vmem:[#allocation7 + $0x370] sm:$0xf0]  ;;  %v1791_v54 = vmax.f32 %v1776_v1, 0.0  ;;  %v9477_v63 = vor.u32 %v11413_v60, %v9476_v55  ;;  %v8945_v46 = vor.u32 %v11274_v47, %v8942_v16  ;;  %v9129_v50 = vor.u32 %v11321_v43, %v9126_v41  ;;  %v11313_v44 = vld [vmem:[#allocation7 + $0x44c] sm:$0xf] }
 0x176   :  { %3447 = vmatmul.bf16.vlgmr.msra.gmra.mxu3 %v13549_v59  ;;  %v8977_v6 = vor.u32 %v11282_v33, %v8974_v18  ;;  %v8558_v31 = vld [vmem:[#allocation7 + $0x30] sm:$0xf0]  ;;  %v11397_v33 = vld [vmem:[#allocation7 + $0x6e4] sm:$0xf0]  ;;  %v11305_v18 = vld [vmem:[#allocation7 + $0x40c] sm:$0xf] }
 0x177   :  { %3693 = vmatpush.bf16.msra.mxu0 %v8557_v10  ;;  %v1720_v10 = vpop.f32.mrf.mxu0  ;;  %v8756_v1 = vld [vmem:[#allocation7 + $0x198] sm:$0xf]  ;;  %v11250_v37 = vld [vmem:[#allocation7 + $0x254] sm:$0xf]  ;;  %v13574_v47 = vperm.slane %v13571_v36, 0 }
 0x178   :  { %v1721_v48 = vadd.f32 %v1720_v10, %v1702_v0  ;;  %3650 = vmatpush.bf16.msrb.mxu2 %v9225_v12  ;;  %v1758_v52 = vpop.f32.mrf.mxu2  ;;  %v8910_v0 = vld [vmem:[#allocation7 + $0x2f0] sm:$0xf0]  ;;  %v1815_v10 = vadd.f32 %v13535_v24, %v1791_v54  ;;  %v11405_v12 = vld [vmem:[#allocation7 + $0x724] sm:$0xf0]  ;;  %v8724_v16 = vld [vmem:[#allocation7 + $0x158] sm:$0xf] }
 0x179   :  { %3712 = vmatpush.bf16.msra.mxu1 %v8813_v5  ;;  %v8878_v24 = vld [vmem:[#allocation7 + $0x2b0] sm:$0xf0]  ;;  %v9348_v43 = vld [vmem:[#allocation7 + $0x648] sm:$0xf] }
 0x17a   :  { %v1740_v8 = vadd.f32 %v1739_v28, %v1721_v48  ;;  %v1777_v5 = vpop.f32.mrf.mxu3  ;;  %3694 = vmatmul.bf16.vlgmr.msra.gmra.mxu0 %v13384_v23  ;;  %v9445_v48 = vor.u32 %v11405_v12, %v9444_v32  ;;  %v9062_v28 = vld [vmem:[#allocation7 + $0x428] sm:$0xf0]  ;;  %v8846_v42 = vld [vmem:[#allocation7 + $0x270] sm:$0xf0]  ;;  %v11381_v41 = vld [vmem:[#allocation7 + $0x664] sm:$0xf0] }
 0x17b   :  { %3762 = vmatpush.bf16.msrb.mxu0 %v8785_v22  ;;  %v9541_v22 = vor.u32 %v11429_v27, %v9540_v14  ;;  %v11178_v27 = vld [vmem:[#allocation7 + $0x14] sm:$0xf]  ;;  %v11215_v32 = vld [vmem:[#allocation7 + $0x134] sm:$0xf0]  ;;  %v9228_v12 = vld [vmem:[#allocation7 + $0x550] sm:$0xf] }
 0x17c   :  { %3651 = vmatpush.bf16.msrb.mxu2 %v9193_v39  ;;  %v9413_v39 = vor.u32 %v11397_v33, %v9412_v30  ;;  %v8561_v49 = vor.u32 %v11178_v27, %v8558_v31  ;;  %v11242_v55 = vld [vmem:[#allocation7 + $0x214] sm:$0xf]  ;;  %v9542_v33 = vld [vmem:[#allocation7 + $0x7e8] sm:$0xf0] }
 0x17d   :  { %3781 = vmatpush.bf16.msrb.mxu1 %v9041_v56  ;;  %3591 = vmatpush.bf16.msra.mxu3 %v9541_v22  ;;  %v11266_v56 = vld [vmem:[#allocation7 + $0x2d4] sm:$0xf]  ;;  %v8788_v22 = vld [vmem:[#allocation7 + $0x1d8] sm:$0xf] }
 0x17e   :  { %v8913_v25 = vor.u32 %v11266_v56, %v8910_v0  ;;  %v8814_v54 = vld [vmem:[#allocation7 + $0x230] sm:$0xf0]  ;;  %v11303_v56 = vld [vmem:[#allocation7 + $0x3f4] sm:$0xf0] }
 0x17f   :  { %3763 = vmatpush.bf16.msrb.mxu0 %v8753_v13  ;;  %v1759_v13 = vadd.f32 %v1758_v52, %v1740_v8  ;;  %v13556_v21 = vpop.f32.mrf.mxu0  ;;  %3509 = vmatmul.bf16.gmra.mxu2 %v13517_v3  ;;  %v9380_v52 = vld [vmem:[#allocation7 + $0x688] sm:$0xf] }
 0x180   :  { %3652 = vmatpush.bf16.msrb.mxu2 %v9161_v34  ;;  %v8849_v34 = vor.u32 %v11250_v37, %v8846_v42  ;;  %v8628_v42 = vld [vmem:[#allocation7 + $0x98] sm:$0xf] }
 0x181   :  { %3782 = vmatpush.bf16.msrb.mxu1 %v9009_v29  ;;  %3592 = vmatpush.bf16.msra.mxu3 %v9509_v9  ;;  %v1778_v61 = vadd.f32 %v1777_v5, %v1759_v13  ;;  %v11258_v29 = vld [vmem:[#allocation7 + $0x294] sm:$0xf]  ;;  %v9065_v9 = vor.u32 %v11305_v18, %v9062_v28  ;;  %v11231_v13 = vld [vmem:[#allocation7 + $0x1b4] sm:$0xf0]  ;;  %v9196_v28 = vld [vmem:[#allocation7 + $0x510] sm:$0xf] }
 0x182   :  { %v8881_v8 = vor.u32 %v11258_v29, %v8878_v24  ;;  %v8757_v60 = vor.u32 %v11231_v13, %v8756_v1  ;;  %v11295_v29 = vld [vmem:[#allocation7 + $0x3b4] sm:$0xf0] }
 0x183   :  { %3764 = vmatpush.bf16.msrb.mxu0 %v8721_v2  ;;  %v1795_v11 = vmax.f32 %v1778_v61, 0.0  ;;  %v8590_v2 = vld [vmem:[#allocation7 + $0x70] sm:$0xf0]  ;;  %3642 = vmatmul.bf16.gmra.mxu1 %v13427_v45  ;;  %v9293_v61 = vor.u32 %v11366_v26, %v9292_v17  ;;  %v11207_v18 = vld [vmem:[#allocation7 + $0xf4] sm:$0xf0] }
 0x184   :  { %v8593_v14 = vor.u32 %v11186_v35, %v8590_v2  ;;  %3653 = vmatpush.bf16.msrb.mxu2 %v9129_v50  ;;  %v9349_v35 = vor.u32 %v11381_v41, %v9348_v43  ;;  %v8817_v2 = vor.u32 %v11242_v55, %v8814_v54  ;;  %v8692_v50 = vld [vmem:[#allocation7 + $0x118] sm:$0xf]  ;;  %v9164_v26 = vld [vmem:[#allocation7 + $0x4d0] sm:$0xf] }
 0x185   :  { %3783 = vmatpush.bf16.msrb.mxu1 %v8977_v6  ;;  %3593 = vmatpush.bf16.msra.mxu3 %v9477_v63  ;;  %v1819_v4 = vadd.f32 %v13537_v51, %v1795_v11  ;;  %v9097_v51 = vor.u32 %v11313_v44, %v9094_v7  ;;  %v11223_v63 = vld [vmem:[#allocation7 + $0x174] sm:$0xf0]  ;;  %v11358_v11 = vld [vmem:[#allocation7 + $0x5ac] sm:$0xf0]  ;;  %v3392_v7 = vadd.f32 %v13556_v21, %v13574_v47  ;;  %v11425_v21 = vld [vmem:[#allocation7 + $0x7cc] sm:$0xf] }
 0x186   :  { %v8725_v0 = vor.u32 %v11223_v63, %v8724_v16  ;;  %v8693_v24 = vor.u32 %v11215_v32, %v8692_v50  ;;  %v8980_v1 = vld [vmem:[#allocation7 + $0x358] sm:$0xf]  ;;  %v11401_v32 = vld [vmem:[#allocation7 + $0x70c] sm:$0xf] }
 0x187   :  { %3765 = vmatpush.bf16.msrb.mxu0 %v8689_v53  ;;  %v13562_v20 = vpack.c.bf16 %v1819_v4, %v1815_v10  ;;  %v13564_v38 = vpop.f32.mrf.mxu0  ;;  %v11239_v53 = vld [vmem:[#allocation7 + $0x1f4] sm:$0xf0]  ;;  %v9316_v10 = vld [vmem:[#allocation7 + $0x608] sm:$0xf] }
 0x188   :  { %v8789_v40 = vor.u32 %v11239_v53, %v8788_v22  ;;  %3654 = vmatpush.bf16.msrb.mxu2 %v9097_v51  ;;  %v11373_v4 = vld [vmem:[#allocation7 + $0x624] sm:$0xf0]  ;;  %v8660_v51 = vld [vmem:[#allocation7 + $0xd8] sm:$0xf]  ;;  %v3394_v13 = vadd.f32 %v13564_v38, %v13574_v47 }
 0x189   :  { %3784 = vmatpush.bf16.msrb.mxu1 %v8945_v46  ;;  %3594 = vmatpush.bf16.msra.mxu3 %v9445_v48  ;;  %v9044_v46 = vld [vmem:[#allocation7 + $0x3d8] sm:$0xf]  ;;  %v9317_v48 = vor.u32 %v11373_v4, %v9316_v10  ;;  %v8661_v37 = vor.u32 %v11207_v18, %v8660_v51 }
 0x18a   :  { %3452 = vmatmul.bf16.gmra.mxu3 %v13562_v20  ;;  %3699 = vmatmul.bf16.gmra.mxu0 %v13397_v19  ;;  %v9045_v31 = vor.u32 %v11303_v56, %v9044_v46  ;;  %v11199_v17 = vld [vmem:[#allocation7 + $0xb4] sm:$0xf0]  ;;  %v9478_v46 = vld [vmem:[#allocation7 + $0x768] sm:$0xf0] }
 0x18b   :  { %3766 = vmatpush.bf16.msrb.mxu0 %v8657_v62  ;;  %v11389_v62 = vld [vmem:[#allocation7 + $0x6a4] sm:$0xf0]  ;;  %v11279_v43 = vld [vmem:[#allocation7 + $0x334] sm:$0xf0]  ;;  %v8629_v41 = vor.u32 %v11199_v17, %v8628_v42  ;;  %v11227_v42 = vld [vmem:[#allocation7 + $0x19c] sm:$0xf] }
 0x18c   :  { %v9381_v6 = vor.u32 %v11389_v62, %v9380_v52  ;;  %3655 = vmatpush.bf16.msrb.mxu2 %v9065_v9  ;;  %v11417_v52 = vld [vmem:[#allocation7 + $0x78c] sm:$0xf]  ;;  %v8596_v63 = vld [vmem:[#allocation7 + $0x58] sm:$0xf] }
 0x18d   :  { %3785 = vmatpush.bf16.msrb.mxu1 %v8913_v25  ;;  %3595 = vmatpush.bf16.msra.mxu3 %v9413_v39  ;;  %v9012_v25 = vld [vmem:[#allocation7 + $0x398] sm:$0xf]  ;;  %v11342_v39 = vld [vmem:[#allocation7 + $0x52c] sm:$0xf0]  ;;  %v9510_v62 = vld [vmem:[#allocation7 + $0x7a8] sm:$0xf0] }
 0x18e   :  { %v9197_v9 = vor.u32 %v11342_v39, %v9196_v28  ;;  %v9513_v16 = vor.u32 %v11417_v52, %v9510_v62  ;;  %v8916_v50 = vld [vmem:[#allocation7 + $0x2d8] sm:$0xf] }
 0x18f   :  { %3767 = vmatpush.bf16.msrb.mxu0 %v8625_v57  ;;  %v13576_v5 = vpop.f32.mrf.mxu0  ;;  %v9260_v57 = vld [vmem:[#allocation7 + $0x590] sm:$0xf]  ;;  %3580 = vmatmul.bf16.vlgmr.msra.gmra.mxu2 %v13495_v58  ;;  %v8564_v4 = vld [vmem:[#allocation7 + $0x18] sm:$0xf] }
 0x190   :  { %3724 = vmatpush.bf16.msra.mxu2 %v9293_v61  ;;  %v9261_v44 = vor.u32 %v11358_v11, %v9260_v57  ;;  %v3410_v27 = vpop.f32.mrf.mxu1  ;;  %v8948_v61 = vld [vmem:[#allocation7 + $0x318] sm:$0xf]  ;;  %v11409_v11 = vld [vmem:[#allocation7 + $0x74c] sm:$0xf] }
 0x191   :  { %3786 = vmatpush.bf16.msrb.mxu1 %v8881_v8  ;;  %3596 = vmatpush.bf16.msra.mxu3 %v9381_v6  ;;  %v13582_v22 = vadd.f32 %v3410_v27, %v3392_v7  ;;  %v11287_v8 = vld [vmem:[#allocation7 + $0x374] sm:$0xf0]  ;;  %v11334_v6 = vld [vmem:[#allocation7 + $0x4ec] sm:$0xf0]  ;;  %v8949_v56 = vor.u32 %v11279_v43, %v8948_v61  ;;  %v11385_v61 = vld [vmem:[#allocation7 + $0x68c] sm:$0xf] }
 0x192   :  { %v8981_v55 = vor.u32 %v11287_v8, %v8980_v1  ;;  %v11191_v57 = vld [vmem:[#allocation7 + $0x74] sm:$0xf0]  ;;  %v9165_v38 = vor.u32 %v11334_v6, %v9164_v26  ;;  %v9068_v8 = vld [vmem:[#allocation7 + $0x410] sm:$0xf]  ;;  %v11362_v6 = vld [vmem:[#allocation7 + $0x5d4] sm:$0xf] }
 0x193   :  { %3768 = vmatpush.bf16.msrb.mxu0 %v8593_v14  ;;  %v11350_v14 = vld [vmem:[#allocation7 + $0x56c] sm:$0xf0]  ;;  %3713 = vmatmul.bf16.vlgmr.msra.gmra.mxu1 %v13410_v15  ;;  %v8597_v10 = vor.u32 %v11191_v57, %v8596_v63  ;;  %v11183_v27 = vld [vmem:[#allocation7 + $0x34] sm:$0xf0]  ;;  %v9382_v43 = vld [vmem:[#allocation7 + $0x6a8] sm:$0xf0] }
 0x194   :  { %3725 = vmatpush.bf16.msra.mxu2 %v9261_v44  ;;  %v9229_v30 = vor.u32 %v11350_v14, %v9228_v12  ;;  %v11271_v44 = vld [vmem:[#allocation7 + $0x2f4] sm:$0xf0]  ;;  %v9446_v12 = vld [vmem:[#allocation7 + $0x728] sm:$0xf0]  ;;  %v3397_v14 = vadd.f32 %v13576_v5, %v13574_v47  ;;  %v8565_v39 = vor.u32 %v11183_v27, %v8564_v4  ;;  %v11219_v63 = vld [vmem:[#allocation7 + $0x15c] sm:$0xf] }
 0x195   :  { %3787 = vmatpush.bf16.msrb.mxu1 %v8849_v34  ;;  %3597 = vmatpush.bf16.msra.mxu3 %v9349_v35  ;;  %v9132_v35 = vld [vmem:[#allocation7 + $0x490] sm:$0xf]  ;;  %v8917_v51 = vor.u32 %v11271_v44, %v8916_v50  ;;  %v8884_v18 = vld [vmem:[#allocation7 + $0x298] sm:$0xf]  ;;  %v8726_v57 = vld [vmem:[#allocation7 + $0x178] sm:$0xf0] }
 0x196   :  { %v11263_v28 = vld [vmem:[#allocation7 + $0x2b4] sm:$0xf0]  ;;  %v13611_v50 = vperm.slane %v13571_v36, 1  ;;  %v8729_v44 = vor.u32 %v11219_v63, %v8726_v57  ;;  %v9350_v4 = vld [vmem:[#allocation7 + $0x668] sm:$0xf0] }
 0x197   :  { %3769 = vmatpush.bf16.msrb.mxu0 %v8561_v49  ;;  %v13584_v53 = vpop.f32.mrf.mxu0  ;;  %v9545_v49 = vor.u32 %v11425_v21, %v9542_v33  ;;  %v8885_v52 = vor.u32 %v11263_v28, %v8884_v18  ;;  %v11255_v17 = vld [vmem:[#allocation7 + $0x274] sm:$0xf0]  ;;  %v9318_v18 = vld [vmem:[#allocation7 + $0x628] sm:$0xf0]  ;;  %v11422_v63 = vld [vmem:[#allocation7 + $0x7ac] sm:$0xf0] }
 0x198   :  { %3726 = vmatpush.bf16.msra.mxu2 %v9229_v30  ;;  %v3412_v34 = vpop.f32.mrf.mxu1  ;;  %v9449_v30 = vor.u32 %v11401_v32, %v9446_v12  ;;  %v8694_v32 = vld [vmem:[#allocation7 + $0x138] sm:$0xf0] }
 0x199   :  { %3788 = vmatpush.bf16.msrb.mxu1 %v8817_v2  ;;  %3598 = vmatpush.bf16.msra.mxu3 %v9317_v48  ;;  %v11326_v2 = vld [vmem:[#allocation7 + $0x4ac] sm:$0xf0] }
 0x19a   :  { %3523 = vmatmul.bf16.vlgmr.msrb.gmra.mxu3 %v13549_v59  ;;  %3770 = vmatmul.bf16.vlgmr.msrb.gmra.mxu0 %v13384_v23  ;;  %v9133_v7 = vor.u32 %v11326_v2, %v9132_v35  ;;  %v11318_v48 = vld [vmem:[#allocation7 + $0x46c] sm:$0xf0]  ;;  %v8820_v2 = vld [vmem:[#allocation7 + $0x218] sm:$0xf] }
 0x19b   :  { %3838 = vmatpush.bf16.msra.mxu0 %v8789_v40  ;;  %v9013_v40 = vor.u32 %v11295_v29, %v9012_v25  ;;  %v11235_v29 = vld [vmem:[#allocation7 + $0x1dc] sm:$0xf] }
 0x19c   :  { %3727 = vmatpush.bf16.msra.mxu2 %v9197_v9  ;;  %v8758_v9 = vld [vmem:[#allocation7 + $0x1b8] sm:$0xf0] }
 0x19d   :  { %3857 = vmatpush.bf16.msra.mxu1 %v9045_v31  ;;  %3667 = vmatpush.bf16.msrb.mxu3 %v9545_v49  ;;  %v9100_v31 = vld [vmem:[#allocation7 + $0x450] sm:$0xf]  ;;  %v11393_v49 = vld [vmem:[#allocation7 + $0x6cc] sm:$0xf] }
 0x19e   :  { %v9101_v5 = vor.u32 %v11318_v48, %v9100_v31  ;;  %v9046_v31 = vld [vmem:[#allocation7 + $0x3f8] sm:$0xf0]  ;;  %v11346_v48 = vld [vmem:[#allocation7 + $0x554] sm:$0xf] }
 0x19f   :  { %3839 = vmatpush.bf16.msra.mxu0 %v8757_v60  ;;  %v13590_v60 = vadd.f32 %v3412_v34, %v3394_v13  ;;  %v13592_v54 = vpop.f32.mrf.mxu0  ;;  %3585 = vmatmul.bf16.gmra.mxu2 %v13517_v3  ;;  %v8852_v13 = vld [vmem:[#allocation7 + $0x258] sm:$0xf]  ;;  %v3399_v34 = vadd.f32 %v13584_v53, %v13574_v47  ;;  %v9262_v47 = vld [vmem:[#allocation7 + $0x5b0] sm:$0xf0]  ;;  %v9385_v53 = vor.u32 %v11385_v61, %v9382_v43  ;;  %v8982_v43 = vld [vmem:[#allocation7 + $0x378] sm:$0xf0] }
 0x1a0   :  { %3728 = vmatpush.bf16.msra.mxu2 %v9165_v38  ;;  %v3415_v25 = vpop.f32.mrf.mxu1  ;;  %v8853_v38 = vor.u32 %v11255_v17, %v8852_v13  ;;  %v11430_v13 = vld [vmem:[#allocation7 + $0x7ec] sm:$0xf0] }
 0x1a1   :  { %3858 = vmatpush.bf16.msra.mxu1 %v9013_v40  ;;  %3668 = vmatpush.bf16.msrb.mxu3 %v9513_v16  ;;  %v13598_v21 = vadd.f32 %v3415_v25, %v3397_v14  ;;  %v9414_v40 = vld [vmem:[#allocation7 + $0x6e8] sm:$0xf0]  ;;  %v9294_v16 = vld [vmem:[#allocation7 + $0x5f0] sm:$0xf0]  ;;  %v11299_v14 = vld [vmem:[#allocation7 + $0x3dc] sm:$0xf] }
 0x1a2   :  { %v9417_v62 = vor.u32 %v11393_v49, %v9414_v40  ;;  %v9230_v25 = vld [vmem:[#allocation7 + $0x570] sm:$0xf0] }
 0x1a3   :  { %3840 = vmatpush.bf16.msra.mxu0 %v8725_v0  ;;  %v9481_v0 = vor.u32 %v11409_v11, %v9478_v46  ;;  %3718 = vmatmul.bf16.gmra.mxu1 %v13427_v45  ;;  %v11247_v46 = vld [vmem:[#allocation7 + $0x234] sm:$0xf0] }
 0x1a4   :  { %3729 = vmatpush.bf16.msra.mxu2 %v9133_v7  ;;  %v11211_v7 = vld [vmem:[#allocation7 + $0x11c] sm:$0xf]  ;;  %v8821_v12 = vor.u32 %v11247_v46, %v8820_v2  ;;  %v11330_v2 = vld [vmem:[#allocation7 + $0x4d4] sm:$0xf] }
 0x1a5   :  { %3859 = vmatpush.bf16.msra.mxu1 %v8981_v55  ;;  %3669 = vmatpush.bf16.msrb.mxu3 %v9481_v0  ;;  %v8761_v55 = vor.u32 %v11227_v42, %v8758_v9  ;;  %v11354_v0 = vld [vmem:[#allocation7 + $0x594] sm:$0xf]  ;;  %v9233_v42 = vor.u32 %v11346_v48, %v9230_v25 }
 0x1a6   :  { %v9265_v27 = vor.u32 %v11354_v0, %v9262_v47  ;;  %v11338_v9 = vld [vmem:[#allocation7 + $0x514] sm:$0xf]  ;;  %v11187_v47 = vld [vmem:[#allocation7 + $0x5c] sm:$0xf] }
 0x1a7   :  { %3841 = vmatpush.bf16.msra.mxu0 %v8693_v24  ;;  %v8790_v24 = vld [vmem:[#allocation7 + $0x1f8] sm:$0xf0]  ;;  %v13600_v33 = vpop.f32.mrf.mxu0  ;;  %v9166_v46 = vld [vmem:[#allocation7 + $0x4f0] sm:$0xf0] }
 0x1a8   :  { %v8793_v1 = vor.u32 %v11235_v29, %v8790_v24  ;;  %3730 = vmatpush.bf16.msra.mxu2 %v9101_v5  ;;  %v3468_v24 = vadd.f32 %v13592_v54, %v13611_v50  ;;  %v8662_v5 = vld [vmem:[#allocation7 + $0xf8] sm:$0xf0]  ;;  %v3470_v57 = vadd.f32 %v13600_v33, %v13611_v50  ;;  %v9484_v33 = vld [vmem:[#allocation7 + $0x750] sm:$0xf]  ;;  %v9134_v48 = vld [vmem:[#allocation7 + $0x4b0] sm:$0xf0] }
 0x1a9   :  { %3860 = vmatpush.bf16.msra.mxu1 %v8949_v56  ;;  %3670 = vmatpush.bf16.msrb.mxu3 %v9449_v30  ;;  %v9297_v56 = vor.u32 %v11362_v6, %v9294_v16  ;;  %v11369_v30 = vld [vmem:[#allocation7 + $0x60c] sm:$0xf]  ;;  %v11195_v6 = vld [vmem:[#allocation7 + $0x9c] sm:$0xf] }
 0x1aa   :  { %3528 = vmatmul.bf16.gmra.mxu3 %v13562_v20  ;;  %3775 = vmatmul.bf16.gmra.mxu0 %v13397_v19  ;;  %v9321_v54 = vor.u32 %v11369_v30, %v9318_v18  ;;  %v8630_v16 = vld [vmem:[#allocation7 + $0xb8] sm:$0xf0]  ;;  %v11462_v30 = vld [vmem:[#allocation6 + $0xec] sm:$0xf0] }
 0x1ab   :  { %3842 = vmatpush.bf16.msra.mxu0 %v8661_v37  ;;  %v11310_v37 = vld [vmem:[#allocation7 + $0x42c] sm:$0xf0] }
 0x1ac   :  { %v9069_v26 = vor.u32 %v11310_v37, %v9068_v8  ;;  %v11291_v8 = vld [vmem:[#allocation7 + $0x39c] sm:$0xf] }
 0x1ad   :  { %3861 = vmatpush.bf16.msra.mxu1 %v8917_v51  ;;  %3671 = vmatpush.bf16.msrb.mxu3 %v9417_v62  ;;  %v8697_v51 = vor.u32 %v11211_v7, %v8694_v32  ;;  %v9014_v37 = vld [vmem:[#allocation7 + $0x3b8] sm:$0xf0]  ;;  %v9548_v62 = vld [vmem:[#allocation7 + $0x7d0] sm:$0xf] }
 0x1ae   :  { %3731 = vmatpush.bf16.msra.mxu2 %v9069_v26  ;;  %v9549_v26 = vor.u32 %v11430_v13, %v9548_v62  ;;  %v11275_v7 = vld [vmem:[#allocation7 + $0x31c] sm:$0xf] }
 0x1af   :  { %3843 = vmatpush.bf16.msra.mxu0 %v8629_v41  ;;  %v3417_v41 = vpop.f32.mrf.mxu1  ;;  %v13608_v35 = vpop.f32.mrf.mxu0  ;;  %3656 = vmatmul.bf16.vlgmr.msrb.gmra.mxu2 %v13495_v58  ;;  %v8950_v32 = vld [vmem:[#allocation7 + $0x338] sm:$0xf0] }
 0x1b0   :  { %v13606_v11 = vadd.f32 %v3417_v41, %v3399_v34  ;;  %v9017_v34 = vor.u32 %v11291_v8, %v9014_v37  ;;  %v9516_v41 = vld [vmem:[#allocation7 + $0x790] sm:$0xf]  ;;  %v8953_v18 = vor.u32 %v11275_v7, %v8950_v32  ;;  %v3473_v37 = vadd.f32 %v13608_v35, %v13611_v50  ;;  %v9300_v7 = vld [vmem:[#allocation7 + $0x5d8] sm:$0xf] }
 0x1b1   :  { %3862 = vmatpush.bf16.msra.mxu1 %v8885_v52  ;;  %3672 = vmatpush.bf16.msrb.mxu3 %v9385_v53  ;;  %v9198_v52 = vld [vmem:[#allocation7 + $0x530] sm:$0xf0]  ;;  %v8598_v53 = vld [vmem:[#allocation7 + $0x78] sm:$0xf0]  ;;  %v11406_v8 = vld [vmem:[#allocation7 + $0x72c] sm:$0xf0] }
 0x1b2   :  { %3800 = vmatpush.bf16.msrb.mxu2 %v9297_v56  ;;  %v9201_v61 = vor.u32 %v11338_v9, %v9198_v52  ;;  %v9517_v56 = vor.u32 %v11422_v63, %v9516_v41  ;;  %v11314_v9 = vld [vmem:[#allocation7 + $0x454] sm:$0xf]  ;;  %v11398_v41 = vld [vmem:[#allocation7 + $0x6ec] sm:$0xf0] }
 0x1b3   :  { %3844 = vmatpush.bf16.msra.mxu0 %v8597_v10  ;;  %v11377_v10 = vld [vmem:[#allocation7 + $0x64c] sm:$0xf]  ;;  %3789 = vmatmul.bf16.vlgmr.msrb.gmra.mxu1 %v13410_v15  ;;  %v9102_v52 = vld [vmem:[#allocation7 + $0x470] sm:$0xf0] }
 0x1b4   :  { %v9353_v29 = vor.u32 %v11377_v10, %v9350_v4  ;;  %v9105_v35 = vor.u32 %v11314_v9, %v9102_v52  ;;  %v11306_v63 = vld [vmem:[#allocation7 + $0x414] sm:$0xf]  ;;  %v11446_v9 = vld [vmem:[#allocation6 + $0x6c] sm:$0xf0] }
 0x1b5   :  { %3863 = vmatpush.bf16.msra.mxu1 %v8853_v38  ;;  %v8633_v38 = vor.u32 %v11195_v6, %v8630_v16  ;;  %v11458_v6 = vld [vmem:[#allocation6 + $0xcc] sm:$0xf0] }
 0x1b6   :  { %3801 = vmatpush.bf16.msrb.mxu2 %v9265_v27  ;;  %3673 = vmatpush.bf16.msrb.mxu3 %v9353_v29  ;;  %v8601_v27 = vor.u32 %v11187_v47, %v8598_v53  ;;  %v11179_v29 = vld [vmem:[#allocation7 + $0x1c] sm:$0xf] }
 0x1b7   :  { %3845 = vmatpush.bf16.msra.mxu0 %v8565_v39  ;;  %v3486_v28 = vpop.f32.mrf.mxu1  ;;  %v11203_v39 = vld [vmem:[#allocation7 + $0xdc] sm:$0xf]  ;;  %v13619_v40 = vpop.f32.mrf.mxu0 }
 0x1b8   :  { %v13617_v49 = vadd.f32 %v3486_v28, %v3468_v24  ;;  %v8665_v17 = vor.u32 %v11203_v39, %v8662_v5  ;;  %v8566_v24 = vld [vmem:[#allocation7 + $0x38] sm:$0xf0]  ;;  %v3475_v32 = vadd.f32 %v13619_v40, %v13611_v50 }
 0x1b9   :  { %3864 = vmatpush.bf16.msra.mxu1 %v8821_v12  ;;  %v9169_v12 = vor.u32 %v11330_v2, %v9166_v46  ;;  %v11267_v28 = vld [vmem:[#allocation7 + $0x2dc] sm:$0xf]  ;;  %v9644_v2 = vld [vmem:[#allocation6 + $0xa0] sm:$0xf]  ;;  %v11454_v46 = vld [vmem:[#allocation6 + $0xac] sm:$0xf0] }
 0x1ba   :  { %3599 = vmatmul.bf16.vlgmr.msra.gmra.mxu3 %v13549_v59  ;;  %3802 = vmatpush.bf16.msrb.mxu2 %v9233_v42  ;;  %v8918_v39 = vld [vmem:[#allocation7 + $0x2f8] sm:$0xf0]  ;;  %v8569_v42 = vor.u32 %v11179_v29, %v8566_v24  ;;  %v9628_v24 = vld [vmem:[#allocation6 + $0x80] sm:$0xf] }
 0x1bb   :  { %3914 = vmatpush.bf16.msrb.mxu0 %v8793_v1  ;;  %v9049_v1 = vor.u32 %v11299_v14, %v9046_v31  ;;  %3674 = vmatpush.bf16.msrb.mxu3 %v9321_v54  ;;  %v11414_v14 = vld [vmem:[#allocation7 + $0x76c] sm:$0xf0]  ;;  %v11322_v31 = vld [vmem:[#allocation7 + $0x494] sm:$0xf]  ;;  %v8921_v16 = vor.u32 %v11267_v28, %v8918_v39  ;;  %v11251_v47 = vld [vmem:[#allocation7 + $0x25c] sm:$0xf] }
 0x1bc   :  { %v9485_v25 = vor.u32 %v11414_v14, %v9484_v33  ;;  %3846 = vmatmul.bf16.vlgmr.msra.gmra.mxu0 %v13384_v23  ;;  %v9137_v5 = vor.u32 %v11322_v31, %v9134_v48  ;;  %v8854_v53 = vld [vmem:[#allocation7 + $0x278] sm:$0xf0]  ;;  %v9388_v33 = vld [vmem:[#allocation7 + $0x690] sm:$0xf]  ;;  %v9645_v31 = vor.u32 %v11454_v46, %v9644_v2  ;;  %v13642_v48 = vperm.slane %v13571_v36, 2 }
 0x1bd   :  { %3933 = vmatpush.bf16.msrb.mxu1 %v9049_v1  ;;  %v9452_v1 = vld [vmem:[#allocation7 + $0x710] sm:$0xf]  ;;  %v11243_v50 = vld [vmem:[#allocation7 + $0x21c] sm:$0xf]  ;;  %v9268_v28 = vld [vmem:[#allocation7 + $0x598] sm:$0xf] }
 0x1be   :  { %3803 = vmatpush.bf16.msrb.mxu2 %v9201_v61  ;;  %v8886_v61 = vld [vmem:[#allocation7 + $0x2b8] sm:$0xf0]  ;;  %v11390_v14 = vld [vmem:[#allocation7 + $0x6ac] sm:$0xf0] }
 0x1bf   :  { %3915 = vmatpush.bf16.msrb.mxu0 %v8761_v55  ;;  %v11283_v55 = vld [vmem:[#allocation7 + $0x35c] sm:$0xf]  ;;  %3743 = vmatpush.bf16.msra.mxu3 %v9549_v26  ;;  %v3488_v0 = vpop.f32.mrf.mxu1  ;;  %v13627_v10 = vpop.f32.mrf.mxu0  ;;  %v9660_v26 = vld [vmem:[#allocation6 + $0xc0] sm:$0xf]  ;;  %v9389_v39 = vor.u32 %v11390_v14, %v9388_v33 }
 0x1c0   :  { %v8985_v4 = vor.u32 %v11283_v55, %v8982_v43  ;;  %3661 = vmatmul.bf16.gmra.mxu2 %v13517_v3  ;;  %v9453_v55 = vor.u32 %v11406_v8, %v9452_v1  ;;  %v9420_v43 = vld [vmem:[#allocation7 + $0x6d0] sm:$0xf]  ;;  %v8822_v40 = vld [vmem:[#allocation7 + $0x238] sm:$0xf0] }
 0x1c1   :  { %3934 = vmatpush.bf16.msrb.mxu1 %v9017_v34  ;;  %v11259_v34 = vld [vmem:[#allocation7 + $0x29c] sm:$0xf]  ;;  %v9356_v1 = vld [vmem:[#allocation7 + $0x650] sm:$0xf]  ;;  %v8825_v52 = vor.u32 %v11243_v50, %v8822_v40  ;;  %v11418_v40 = vld [vmem:[#allocation7 + $0x794] sm:$0xf] }
 0x1c2   :  { %3804 = vmatpush.bf16.msrb.mxu2 %v9169_v12  ;;  %v11367_v12 = vld [vmem:[#allocation7 + $0x5f4] sm:$0xf0]  ;;  %v11382_v8 = vld [vmem:[#allocation7 + $0x66c] sm:$0xf0] }
 0x1c3   :  { %3916 = vmatpush.bf16.msrb.mxu0 %v8729_v44  ;;  %v13625_v44 = vadd.f32 %v3488_v0, %v3470_v57  ;;  %3744 = vmatpush.bf16.msra.mxu3 %v9517_v56  ;;  %v9070_v57 = vld [vmem:[#allocation7 + $0x430] sm:$0xf0]  ;;  %v8889_v56 = vor.u32 %v11259_v34, %v8886_v61  ;;  %v9421_v0 = vor.u32 %v11398_v41, %v9420_v43  ;;  %v11351_v61 = vld [vmem:[#allocation7 + $0x574] sm:$0xf0]  ;;  %v11374_v43 = vld [vmem:[#allocation7 + $0x62c] sm:$0xf0] }
 0x1c4   :  { %3794 = vmatmul.bf16.gmra.mxu1 %v13427_v45  ;;  %v3544_v34 = vadd.f32 %v13627_v10, %v13642_v48  ;;  %v9596_v46 = vld [vmem:[#allocation6 + $0x40] sm:$0xf]  ;;  %v11490_v10 = vld [vmem:[#allocation6 + $0x1cc] sm:$0xf0] }
 0x1c5   :  { %3935 = vmatpush.bf16.msrb.mxu1 %v8985_v4  ;;  %v9073_v4 = vor.u32 %v11306_v63, %v9070_v57 }
 0x1c6   :  { %3805 = vmatpush.bf16.msrb.mxu2 %v9137_v5  ;;  %v11359_v5 = vld [vmem:[#allocation7 + $0x5b4] sm:$0xf0] }
 0x1c7   :  { %3917 = vmatpush.bf16.msrb.mxu0 %v8697_v51  ;;  %v9676_v51 = vld [vmem:[#allocation6 + $0xe0] sm:$0xf]  ;;  %3745 = vmatpush.bf16.msra.mxu3 %v9485_v25  ;;  %v3491_v54 = vpop.f32.mrf.mxu1 }
 0x1c8   :  { %v9677_v62 = vor.u32 %v11462_v30, %v9676_v51  ;;  %v13633_v13 = vadd.f32 %v3491_v54, %v3473_v37  ;;  %v11450_v51 = vld [vmem:[#allocation6 + $0x8c] sm:$0xf0]  ;;  %v8857_v30 = vor.u32 %v11251_v47, %v8854_v53  ;;  %v9804_v54 = vld [vmem:[#allocation6 + $0x1e0] sm:$0xf] }
 0x1c9   :  { %3936 = vmatpush.bf16.msrb.mxu1 %v8953_v18  ;;  %v9301_v18 = vor.u32 %v11367_v12, %v9300_v7  ;;  %v9629_v37 = vor.u32 %v11450_v51, %v9628_v24  ;;  %v9788_v47 = vld [vmem:[#allocation6 + $0x1c0] sm:$0xf]  ;;  %v11426_v7 = vld [vmem:[#allocation7 + $0x7d4] sm:$0xf]  ;;  %v11343_v12 = vld [vmem:[#allocation7 + $0x534] sm:$0xf0] }
 0x1ca   :  { %3604 = vmatmul.bf16.gmra.mxu3 %v13562_v20  ;;  %3806 = vmatpush.bf16.msrb.mxu2 %v9105_v35  ;;  %v9324_v35 = vld [vmem:[#allocation7 + $0x610] sm:$0xf]  ;;  %v9789_v24 = vor.u32 %v11490_v10, %v9788_v47  ;;  %v11586_v47 = vld [vmem:[#allocation6 + $0x4cc] sm:$0xf0] }
 0x1cb   :  { %3918 = vmatpush.bf16.msrb.mxu0 %v8665_v17  ;;  %v13635_v17 = vpop.f32.mrf.mxu0  ;;  %3746 = vmatpush.bf16.msra.mxu3 %v9453_v55  ;;  %v9772_v51 = vld [vmem:[#allocation6 + $0x1a0] sm:$0xf] }
 0x1cc   :  { %3851 = vmatmul.bf16.gmra.mxu0 %v13397_v19 }
 0x1cd   :  { %3937 = vmatpush.bf16.msrb.mxu1 %v8921_v16  ;;  %v9357_v16 = vor.u32 %v11382_v8, %v9356_v1  ;;  %v11335_v1 = vld [vmem:[#allocation7 + $0x4f4] sm:$0xf0] }
 0x1ce   :  { %3807 = vmatpush.bf16.msrb.mxu2 %v9073_v4  ;;  %v9325_v4 = vor.u32 %v11374_v43, %v9324_v35  ;;  %v11410_v35 = vld [vmem:[#allocation7 + $0x754] sm:$0xf] }
 0x1cf   :  { %3919 = vmatpush.bf16.msrb.mxu0 %v8633_v38  ;;  %v9661_v38 = vor.u32 %v11458_v6, %v9660_v26  ;;  %3747 = vmatpush.bf16.msra.mxu3 %v9421_v0  ;;  %v9269_v26 = vor.u32 %v11359_v5, %v9268_v28  ;;  %v9236_v6 = vld [vmem:[#allocation7 + $0x558] sm:$0xf]  ;;  %v3546_v28 = vadd.f32 %v13635_v17, %v13642_v48  ;;  %v11590_v17 = vld [vmem:[#allocation6 + $0x4ec] sm:$0xf0]  ;;  %v9486_v43 = vld [vmem:[#allocation7 + $0x770] sm:$0xf0] }
 0x1d0   :  { %3732 = vmatmul.bf16.vlgmr.msra.gmra.mxu2 %v13495_v58  ;;  %v3429_v55 = vpop.f32.mrf.mxu2  ;;  %v9237_v53 = vor.u32 %v11351_v61, %v9236_v6  ;;  %v9172_v5 = vld [vmem:[#allocation7 + $0x4d8] sm:$0xf]  ;;  %v10188_v6 = vld [vmem:[#allocation6 + $0x4e0] sm:$0xf] }
 0x1d1   :  { %3938 = vmatpush.bf16.msrb.mxu1 %v8889_v56  ;;  %v13653_v41 = vadd.f32 %v3429_v55, %v13582_v22  ;;  %v11442_v56 = vld [vmem:[#allocation6 + $0x4c] sm:$0xf0]  ;;  %v9204_v22 = vld [vmem:[#allocation7 + $0x518] sm:$0xf]  ;;  %v9173_v61 = vor.u32 %v11335_v1, %v9172_v5 }
 0x1d2   :  { %3876 = vmatpush.bf16.msra.mxu2 %v9301_v18  ;;  %v9597_v14 = vor.u32 %v11442_v56, %v9596_v46  ;;  %v9205_v50 = vor.u32 %v11343_v12, %v9204_v22  ;;  %v9518_v18 = vld [vmem:[#allocation7 + $0x7b0] sm:$0xf0]  ;;  %v11482_v55 = vld [vmem:[#allocation6 + $0x18c] sm:$0xf0]  ;;  %v10189_v56 = vor.u32 %v11590_v17, %v10188_v6  ;;  %v9076_v1 = vld [vmem:[#allocation7 + $0x418] sm:$0xf] }
 0x1d3   :  { %3920 = vmatpush.bf16.msrb.mxu0 %v8601_v27  ;;  %v3493_v27 = vpop.f32.mrf.mxu1  ;;  %v13646_v29 = vpop.f32.mrf.mxu0  ;;  %3748 = vmatpush.bf16.msra.mxu3 %v9389_v39  ;;  %v9521_v8 = vor.u32 %v11418_v40, %v9518_v18  ;;  %v10156_v40 = vld [vmem:[#allocation6 + $0x4a0] sm:$0xf]  ;;  %v11578_v6 = vld [vmem:[#allocation6 + $0x48c] sm:$0xf0] }
 0x1d4   :  { %v13644_v25 = vadd.f32 %v3493_v27, %v3475_v32  ;;  %v9550_v32 = vld [vmem:[#allocation7 + $0x7f0] sm:$0xf0]  ;;  %3865 = vmatmul.bf16.vlgmr.msra.gmra.mxu1 %v13410_v15  ;;  %v9580_v27 = vld [vmem:[#allocation6 + $0x20] sm:$0xf]  ;;  %v3549_v22 = vadd.f32 %v13646_v29, %v13642_v48  ;;  %v11582_v29 = vld [vmem:[#allocation6 + $0x4ac] sm:$0xf0] }
 0x1d5   :  { %3939 = vmatpush.bf16.msrb.mxu1 %v8857_v30  ;;  %v9553_v33 = vor.u32 %v11426_v7, %v9550_v32  ;;  %v11486_v30 = vld [vmem:[#allocation6 + $0x1ac] sm:$0xf0]  ;;  %v9108_v32 = vld [vmem:[#allocation7 + $0x458] sm:$0xf] }
 0x1d6   :  { %3877 = vmatpush.bf16.msra.mxu2 %v9269_v26 }
 0x1d7   :  { %3921 = vmatpush.bf16.msrb.mxu0 %v8569_v42  ;;  %v9612_v42 = vld [vmem:[#allocation6 + $0x60] sm:$0xf]  ;;  %3749 = vmatpush.bf16.msra.mxu3 %v9357_v16  ;;  %v9773_v16 = vor.u32 %v11486_v30, %v9772_v51 }
 0x1d8   :  { %v9613_v57 = vor.u32 %v11446_v9, %v9612_v42  ;;  %v3431_v39 = vpop.f32.mrf.mxu2 }
 0x1d9   :  { %3940 = vmatpush.bf16.msrb.mxu1 %v8825_v52  ;;  %v9564_v52 = vld [vmem:[#allocation6] sm:$0xf] }
 0x1da   :  { %3675 = vmatmul.bf16.vlgmr.msrb.gmra.mxu3 %v13549_v59  ;;  %3878 = vmatpush.bf16.msra.mxu2 %v9237_v53  ;;  %v9740_v53 = vld [vmem:[#allocation6 + $0x160] sm:$0xf] }
 0x1db   :  { %5479 = vmatpush.bf16.msra.mxu0 %v9677_v62  ;;  %v11494_v62 = vld [vmem:[#allocation6 + $0x1ec] sm:$0xf0]  ;;  %v3562_v63 = vpop.f32.mrf.mxu1  ;;  %v13657_v2 = vpop.f32.mrf.mxu0  ;;  %3750 = vmatpush.bf16.msra.mxu3 %v9325_v4 }
 0x1dc   :  { %v9805_v0 = vor.u32 %v11494_v62, %v9804_v54  ;;  %v11434_v54 = vld [vmem:[#allocation6 + $0xc] sm:$0xf0]  ;;  %3922 = vmatmul.bf16.vlgmr.msrb.gmra.mxu0 %v13384_v23 }
 0x1dd   :  { %v9565_v46 = vor.u32 %v11434_v54, %v9564_v52  ;;  %v11478_v4 = vld [vmem:[#allocation6 + $0x16c] sm:$0xf0]  ;;  %v10157_v52 = vor.u32 %v11582_v29, %v10156_v40  ;;  %v10140_v54 = vld [vmem:[#allocation6 + $0x480] sm:$0xf] }
 0x1de   :  { %5493 = vmatpush.bf16.msra.mxu1 %v9805_v0  ;;  %3879 = vmatpush.bf16.msra.mxu2 %v9205_v50  ;;  %v10172_v0 = vld [vmem:[#allocation6 + $0x4c0] sm:$0xf]  ;;  %v9741_v18 = vor.u32 %v11478_v4, %v9740_v53  ;;  %v10141_v53 = vor.u32 %v11578_v6, %v10140_v54 }
 0x1df   :  { %5480 = vmatpush.bf16.msra.mxu0 %v9661_v38  ;;  %v13655_v38 = vadd.f32 %v3562_v63, %v3544_v34  ;;  %3819 = vmatpush.bf16.msrb.mxu3 %v9553_v33  ;;  %v9756_v34 = vld [vmem:[#allocation6 + $0x180] sm:$0xf]  ;;  %v11327_v63 = vld [vmem:[#allocation7 + $0x4b4] sm:$0xf0]  ;;  %v10173_v50 = vor.u32 %v11586_v47, %v10172_v0  ;;  %v13689_v47 = vperm.slane %v13571_v36, 3 }
 0x1e0   :  { %3737 = vmatmul.bf16.gmra.mxu2 %v13517_v3  ;;  %v9757_v10 = vor.u32 %v11482_v55, %v9756_v34  ;;  %v11319_v33 = vld [vmem:[#allocation7 + $0x474] sm:$0xf0]  ;;  %v11470_v34 = vld [vmem:[#allocation6 + $0x12c] sm:$0xf0]  ;;  %v10124_v4 = vld [vmem:[#allocation6 + $0x460] sm:$0xf] }
 0x1e1   :  { %v9109_v5 = vor.u32 %v11319_v33, %v9108_v32  ;;  %v9692_v32 = vld [vmem:[#allocation6 + $0x100] sm:$0xf]  ;;  %v9270_v33 = vld [vmem:[#allocation7 + $0x5b8] sm:$0xf0] }
 0x1e2   :  { %5494 = vmatpush.bf16.msra.mxu1 %v9789_v24  ;;  %3880 = vmatpush.bf16.msra.mxu2 %v9173_v61  ;;  %v3434_v12 = vpop.f32.mrf.mxu2  ;;  %v11363_v61 = vld [vmem:[#allocation7 + $0x5dc] sm:$0xf]  ;;  %v10316_v29 = vld [vmem:[#allocation6 + $0x5e0] sm:$0xf] }
 0x1e3   :  { %5481 = vmatpush.bf16.msra.mxu0 %v9645_v31  ;;  %v11438_v31 = vld [vmem:[#allocation6 + $0x2c] sm:$0xf0]  ;;  %v3564_v42 = vpop.f32.mrf.mxu1  ;;  %v13668_v26 = vpop.f32.mrf.mxu0  ;;  %3820 = vmatpush.bf16.msrb.mxu3 %v9521_v8  ;;  %v13675_v23 = vadd.f32 %v3434_v12, %v13598_v21  ;;  %v11311_v21 = vld [vmem:[#allocation7 + $0x434] sm:$0xf0]  ;;  %v11394_v8 = vld [vmem:[#allocation7 + $0x6d4] sm:$0xf] }
 0x1e4   :  { %v9581_v9 = vor.u32 %v11438_v31, %v9580_v27  ;;  %v13666_v62 = vadd.f32 %v3564_v42, %v3546_v28  ;;  %v9454_v27 = vld [vmem:[#allocation7 + $0x730] sm:$0xf0]  ;;  %v9724_v28 = vld [vmem:[#allocation6 + $0x140] sm:$0xf]  ;;  %3870 = vmatmul.bf16.gmra.mxu1 %v13427_v45  ;;  %v9077_v55 = vor.u32 %v11311_v21, %v9076_v1  ;;  %v11355_v12 = vld [vmem:[#allocation7 + $0x59c] sm:$0xf] }
 0x1e5   :  { %v9422_v42 = vld [vmem:[#allocation7 + $0x6f0] sm:$0xf0]  ;;  %v9238_v21 = vld [vmem:[#allocation7 + $0x578] sm:$0xf0] }
 0x1e6   :  { %5495 = vmatpush.bf16.msra.mxu1 %v9773_v16  ;;  %v9708_v16 = vld [vmem:[#allocation6 + $0x120] sm:$0xf] }
 0x1e7   :  { %5482 = vmatpush.bf16.msra.mxu0 %v9629_v37  ;;  %v13664_v37 = vadd.f32 %v3431_v39, %v13590_v60  ;;  %v9140_v60 = vld [vmem:[#allocation7 + $0x498] sm:$0xf]  ;;  %v11474_v39 = vld [vmem:[#allocation6 + $0x14c] sm:$0xf0] }
 0x1e8   :  { %v9141_v7 = vor.u32 %v11327_v63, %v9140_v60  ;;  %v9725_v17 = vor.u32 %v11474_v39, %v9724_v28  ;;  %v9302_v60 = vld [vmem:[#allocation7 + $0x5f8] sm:$0xf0]  ;;  %v11386_v63 = vld [vmem:[#allocation7 + $0x694] sm:$0xf]  ;;  %v9273_v28 = vor.u32 %v11355_v12, %v9270_v33  ;;  %v10284_v33 = vld [vmem:[#allocation6 + $0x5a0] sm:$0xf] }
 0x1e9   :  { %v11347_v39 = vld [vmem:[#allocation7 + $0x55c] sm:$0xf] }
 0x1ea   :  { %5496 = vmatpush.bf16.msra.mxu1 %v9757_v10  ;;  %3881 = vmatpush.bf16.msra.mxu2 %v9141_v7 }
 0x1eb   :  { %5483 = vmatpush.bf16.msra.mxu0 %v9613_v57  ;;  %v9489_v57 = vor.u32 %v11410_v35, %v9486_v43  ;;  %v3567_v31 = vpop.f32.mrf.mxu1  ;;  %v13679_v30 = vpop.f32.mrf.mxu0  ;;  %3680 = vmatmul.bf16.gmra.mxu3 %v13562_v20  ;;  %v3551_v35 = vadd.f32 %v13657_v2, %v13642_v48  ;;  %v11574_v48 = vld [vmem:[#allocation6 + $0x46c] sm:$0xf0]  ;;  %v9709_v2 = vor.u32 %v11470_v34, %v9708_v16  ;;  %v10092_v16 = vld [vmem:[#allocation6 + $0x420] sm:$0xf] }
 0x1ec   :  { %v13677_v51 = vadd.f32 %v3567_v31, %v3549_v22  ;;  %v3436_v43 = vpop.f32.mrf.mxu2  ;;  %v9305_v22 = vor.u32 %v11363_v61, %v9302_v60  ;;  %v10125_v31 = vor.u32 %v11574_v48, %v10124_v4  ;;  %3927 = vmatmul.bf16.gmra.mxu0 %v13397_v19  ;;  %v11566_v34 = vld [vmem:[#allocation6 + $0x42c] sm:$0xf0]  ;;  %v4062_v60 = vld [vmem:[%s14419_s4] sm:$0xff] }
 0x1ed   :  { %3821 = vmatpush.bf16.msrb.mxu3 %v9489_v57  ;;  %v9390_v57 = vld [vmem:[#allocation7 + $0x6b0] sm:$0xf0]  ;;  %v11618_v61 = vld [vmem:[#allocation6 + $0x5cc] sm:$0xf0]  ;;  %v10076_v48 = vld [vmem:[#allocation6 + $0x400] sm:$0xf] }
 0x1ee   :  { %5497 = vmatpush.bf16.msra.mxu1 %v9741_v18  ;;  %3882 = vmatpush.bf16.msra.mxu2 %v9109_v5  ;;  %v9393_v0 = vor.u32 %v11386_v63, %v9390_v57  ;;  %v11622_v18 = vld [vmem:[#allocation6 + $0x5ec] sm:$0xf0]  ;;  %v3620_v5 = vadd.f32 %v13668_v26, %v13689_v47  ;;  %v11339_v63 = vld [vmem:[#allocation7 + $0x51c] sm:$0xf] }
 0x1ef   :  { %5484 = vmatpush.bf16.msra.mxu0 %v9597_v14  ;;  %v11402_v14 = vld [vmem:[#allocation7 + $0x714] sm:$0xf]  ;;  %v9206_v57 = vld [vmem:[#allocation7 + $0x538] sm:$0xf0] }
 0x1f0   :  { %v9457_v24 = vor.u32 %v11402_v14, %v9454_v27  ;;  %v11378_v14 = vld [vmem:[#allocation7 + $0x654] sm:$0xf]  ;;  %3808 = vmatmul.bf16.vlgmr.msrb.gmra.mxu2 %v13495_v58 }
 0x1f1   :  { %v9358_v27 = vld [vmem:[#allocation7 + $0x670] sm:$0xf0] }
 0x1f2   :  { %3822 = vmatpush.bf16.msrb.mxu3 %v9457_v24  ;;  %5498 = vmatpush.bf16.msra.mxu1 %v9725_v17  ;;  %v9361_v36 = vor.u32 %v11378_v14, %v9358_v27  ;;  %v10108_v24 = vld [vmem:[#allocation6 + $0x440] sm:$0xf]  ;;  %v10317_v17 = vor.u32 %v11622_v18, %v10316_v29  ;;  %v11614_v14 = vld [vmem:[#allocation6 + $0x5ac] sm:$0xf0]  ;;  %v9209_v27 = vor.u32 %v11339_v63, %v9206_v57  ;;  %v11423_v29 = vld [vmem:[#allocation7 + $0x7b4] sm:$0xf0] }
 0x1f3   :  { %5485 = vmatpush.bf16.msra.mxu0 %v9581_v9  ;;  %v9425_v9 = vor.u32 %v11394_v8, %v9422_v42  ;;  %v13693_v7 = vpop.f32.mrf.mxu0  ;;  %3883 = vmatpush.bf16.msra.mxu2 %v9077_v55  ;;  %v11370_v8 = vld [vmem:[#allocation7 + $0x614] sm:$0xf]  ;;  %v10300_v55 = vld [vmem:[#allocation6 + $0x5c0] sm:$0xf]  ;;  %v11606_v57 = vld [vmem:[#allocation6 + $0x56c] sm:$0xf0] }
 0x1f4   :  { %v3505_v1 = vpop.f32.mrf.mxu2  ;;  %v9326_v42 = vld [vmem:[#allocation7 + $0x630] sm:$0xf0]  ;;  %3941 = vmatmul.bf16.vlgmr.msrb.gmra.mxu1 %v13410_v15  ;;  %v10301_v4 = vor.u32 %v11618_v61, %v10300_v55  ;;  %v3622_v15 = vadd.f32 %v13679_v30, %v13689_v47  ;;  %v9790_v55 = vld [vmem:[#allocation6 + $0x1d0] sm:$0xf0]  ;;  %v9492_v61 = vld [vmem:[#allocation7 + $0x758] sm:$0xf] }
 0x1f5   :  { %v9329_v54 = vor.u32 %v11370_v8, %v9326_v42  ;;  %v10285_v8 = vor.u32 %v11614_v14, %v10284_v33  ;;  %v10252_v63 = vld [vmem:[#allocation6 + $0x560] sm:$0xf]  ;;  %v11484_v14 = vld [vmem:[#allocation6 + $0x1a4] sm:$0xf] }
 0x1f6   :  { %3823 = vmatpush.bf16.msrb.mxu3 %v9425_v9  ;;  %5499 = vmatpush.bf16.msra.mxu1 %v9709_v2  ;;  %v13700_v9 = vadd.f32 %v3505_v1, %v13617_v49  ;;  %v4046_v49 = vld [vmem:[%s14415_s0] sm:$0xff]  ;;  %v11562_v2 = vld [vmem:[#allocation6 + $0x40c] sm:$0xf0] }
 0x1f7   :  { %5486 = vmatpush.bf16.msra.mxu0 %v9565_v46  ;;  %v13686_v46 = vadd.f32 %v3436_v43, %v13606_v11  ;;  %v11466_v11 = vld [vmem:[#allocation6 + $0x10c] sm:$0xf0]  ;;  %3952 = vmatpush.bf16.msrb.mxu2 %v9305_v22  ;;  %v9241_v43 = vor.u32 %v11347_v39, %v9238_v21  ;;  %v4070_v22 = vadd.f32 %v4062_v60, %v4046_v49  ;;  %v11492_v39 = vld [vmem:[#allocation6 + $0x1e4] sm:$0xf]  ;;  %v11415_v49 = vld [vmem:[#allocation7 + $0x774] sm:$0xf0] }
 0x1f8   :  { %v9693_v40 = vor.u32 %v11466_v11, %v9692_v32  ;;  %v10077_v30 = vor.u32 %v11562_v2, %v10076_v48 }
 0x1f9   :  { %v3448_v11 = vpop.f32.mrf.mxu3 }
 0x1fa   :  { %3824 = vmatpush.bf16.msrb.mxu3 %v9393_v0  ;;  %5500 = vmatpush.bf16.msra.mxu1 %v9693_v40  ;;  %v11431_v0 = vld [vmem:[#allocation7 + $0x7f4] sm:$0xf0] }
 0x1fb   :  { %5535 = vmatpush.bf16.msrb.mxu0 %v10189_v56  ;;  %v3569_v56 = vpop.f32.mrf.mxu1  ;;  %v13704_v26 = vpop.f32.mrf.mxu0  ;;  %3953 = vmatpush.bf16.msrb.mxu2 %v9273_v28  ;;  %v9524_v40 = vld [vmem:[#allocation7 + $0x798] sm:$0xf] }
 0x1fc   :  { %v13691_v10 = vadd.f32 %v3569_v56, %v3551_v35  ;;  %v4054_v35 = vld [vmem:[%s14415_s0 + $0x40] sm:$0xff]  ;;  %3751 = vmatmul.bf16.vlgmr.msra.gmra.mxu3 %v13549_v59  ;;  %v9556_v56 = vld [vmem:[#allocation7 + $0x7d8] sm:$0xf]  ;;  %v9525_v1 = vor.u32 %v11423_v29, %v9524_v40 }
 0x1fd   :  { %v9557_v32 = vor.u32 %v11431_v0, %v9556_v56  ;;  %v4078_v12 = vadd.f32 %v4062_v60, %v4054_v35  ;;  %v11315_v0 = vld [vmem:[#allocation7 + $0x45c] sm:$0xf] }
 0x1fe   :  { %3825 = vmatpush.bf16.msrb.mxu3 %v9361_v36  ;;  %5549 = vmatpush.bf16.msrb.mxu1 %v10317_v17  ;;  %v11331_v36 = vld [vmem:[#allocation7 + $0x4dc] sm:$0xf]  ;;  %v11488_v17 = vld [vmem:[#allocation6 + $0x1c4] sm:$0xf] }
 0x1ff   :  { %5536 = vmatpush.bf16.msrb.mxu0 %v10173_v50  ;;  %v11570_v50 = vld [vmem:[#allocation6 + $0x44c] sm:$0xf0]  ;;  %3954 = vmatpush.bf16.msrb.mxu2 %v9241_v43  ;;  %v13729_v42 = vpack.c.bf16 %v4078_v12, %v4070_v22  ;;  %v9493_v43 = vor.u32 %v11415_v49, %v9492_v61  ;;  %v9793_v2 = vor.u32 %v11488_v17, %v9790_v55  ;;  %v11407_v22 = vld [vmem:[#allocation7 + $0x734] sm:$0xf0]  ;;  %v10220_v17 = vld [vmem:[#allocation6 + $0x520] sm:$0xf] }
 0x200   :  { %v10109_v19 = vor.u32 %v11570_v50, %v10108_v24  ;;  %v3507_v24 = vpop.f32.mrf.mxu2  ;;  %v9174_v50 = vld [vmem:[#allocation7 + $0x4f8] sm:$0xf0]  ;;  %3813 = vmatmul.bf16.gmra.mxu2 %v13517_v3  ;;  %v9932_v61 = vld [vmem:[#allocation6 + $0x2e0] sm:$0xf]  ;;  %v11526_v49 = vld [vmem:[#allocation6 + $0x2ec] sm:$0xf0] }
 0x201   :  { %v13723_v18 = vadd.f32 %v3507_v24, %v13625_v44  ;;  %5487 = vmatmul.bf16.vlgmr.msra.gmra.mxu0 %v13729_v42  ;;  %v3450_v60 = vpop.f32.mrf.mxu3  ;;  %v10236_v24 = vld [vmem:[#allocation6 + $0x540] sm:$0xf] }
 0x202   :  { %3826 = vmatpush.bf16.msrb.mxu3 %v9329_v54  ;;  %5550 = vmatpush.bf16.msrb.mxu1 %v10301_v4  ;;  %v11610_v54 = vld [vmem:[#allocation6 + $0x58c] sm:$0xf0]  ;;  %v13736_v4 = vadd.f32 %v3450_v60, %v13664_v37 }
 0x203   :  { %5537 = vmatpush.bf16.msrb.mxu0 %v10157_v52  ;;  %v3638_v52 = vpop.f32.mrf.mxu1  ;;  %3955 = vmatpush.bf16.msrb.mxu2 %v9209_v27  ;;  %v9774_v27 = vld [vmem:[#allocation6 + $0x1b0] sm:$0xf0]  ;;  %v11602_v37 = vld [vmem:[#allocation6 + $0x54c] sm:$0xf0] }
 0x204   :  { %v13702_v6 = vadd.f32 %v3638_v52, %v3620_v5  ;;  %v9806_v5 = vld [vmem:[#allocation6 + $0x1f0] sm:$0xf0]  ;;  %v10268_v52 = vld [vmem:[#allocation6 + $0x580] sm:$0xf]  ;;  %3946 = vmatmul.bf16.gmra.mxu1 %v13427_v45 }
 0x205   :  { %v9809_v44 = vor.u32 %v11492_v39, %v9806_v5  ;;  %v10269_v35 = vor.u32 %v11610_v54, %v10268_v52  ;;  %v4058_v39 = vld [vmem:[%s14415_s0 + $0x60] sm:$0xff]  ;;  %v9777_v5 = vor.u32 %v11484_v14, %v9774_v27  ;;  %v9758_v54 = vld [vmem:[#allocation6 + $0x190] sm:$0xf0]  ;;  %v9933_v14 = vor.u32 %v11526_v49, %v9932_v61 }
 0x206   :  { %3895 = vmatpush.bf16.msra.mxu3 %v9557_v32  ;;  %5551 = vmatpush.bf16.msrb.mxu1 %v10285_v8  ;;  %v9110_v32 = vld [vmem:[#allocation7 + $0x478] sm:$0xf0]  ;;  %v11399_v8 = vld [vmem:[#allocation7 + $0x6f4] sm:$0xf0]  ;;  %v11480_v52 = vld [vmem:[#allocation6 + $0x184] sm:$0xf] }
 0x207   :  { %5538 = vmatpush.bf16.msrb.mxu0 %v10141_v53  ;;  %v10093_v53 = vor.u32 %v11566_v34, %v10092_v16  ;;  %v11323_v16 = vld [vmem:[#allocation7 + $0x49c] sm:$0xf]  ;;  %v9113_v29 = vor.u32 %v11315_v0, %v9110_v32 }
 0x208   :  { %v9142_v34 = vld [vmem:[#allocation7 + $0x4b8] sm:$0xf0]  ;;  %v3510_v48 = vpop.f32.mrf.mxu2 }
 0x209   :  { %v9145_v56 = vor.u32 %v11323_v16, %v9142_v34  ;;  %v13739_v12 = vadd.f32 %v3510_v48, %v13633_v13  ;;  %v4050_v13 = vld [vmem:[%s14415_s0 + $0x20] sm:$0xff]  ;;  %v11598_v34 = vld [vmem:[#allocation6 + $0x52c] sm:$0xf0]  ;;  %v4047_v32 = vld [vmem:[%s14415_s0 + $0x8] sm:$0xff] }
 0x20a   :  { %3896 = vmatpush.bf16.msra.mxu3 %v9525_v1  ;;  %5552 = vmatpush.bf16.msrb.mxu1 %v10269_v35  ;;  %v4066_v1 = vld [vmem:[%s14419_s4 + $0x20] sm:$0xff] }
 0x20b   :  { %5539 = vmatpush.bf16.msrb.mxu0 %v10125_v31  ;;  %v13720_v31 = vadd.f32 %v3448_v11, %v13653_v41  ;;  %v3640_v28 = vpop.f32.mrf.mxu1  ;;  %v13727_v41 = vpop.f32.mrf.mxu0  ;;  %v9460_v11 = vld [vmem:[#allocation7 + $0x718] sm:$0xf]  ;;  %v4074_v35 = vadd.f32 %v4066_v1, %v4050_v13  ;;  %v11476_v48 = vld [vmem:[#allocation6 + $0x164] sm:$0xf] }
 0x20c   :  { %v13725_v21 = vadd.f32 %v3640_v28, %v3622_v15  ;;  %v9078_v28 = vld [vmem:[#allocation7 + $0x438] sm:$0xf0]  ;;  %3756 = vmatmul.bf16.gmra.mxu3 %v13562_v20  ;;  %v9364_v13 = vld [vmem:[#allocation7 + $0x658] sm:$0xf] }
 0x20d   :  { %v3453_v16 = vpop.f32.mrf.mxu3 }
 0x20e   :  { %3897 = vmatpush.bf16.msra.mxu3 %v9493_v43  ;;  %v4082_v43 = vadd.f32 %v4066_v1, %v4058_v39  ;;  %v13757_v60 = vadd.f32 %v3453_v16, %v13675_v23  ;;  %v10221_v23 = vor.u32 %v11598_v34, %v10220_v17  ;;  %v11383_v39 = vld [vmem:[#allocation7 + $0x674] sm:$0xf0]  ;;  %v9726_v1 = vld [vmem:[#allocation6 + $0x150] sm:$0xf0]  ;;  %v9900_v34 = vld [vmem:[#allocation6 + $0x2a0] sm:$0xf] }
 0x20f   :  { %5540 = vmatpush.bf16.msrb.mxu0 %v10109_v19  ;;  %v9177_v19 = vor.u32 %v11331_v36, %v9174_v50  ;;  %v9461_v36 = vor.u32 %v11407_v22, %v9460_v11  ;;  %v11307_v50 = vld [vmem:[#allocation7 + $0x41c] sm:$0xf]  ;;  %v10204_v22 = vld [vmem:[#allocation6 + $0x500] sm:$0xf]  ;;  %v9934_v16 = vld [vmem:[#allocation6 + $0x2f0] sm:$0xf0] }
 0x210   :  { %v9081_v55 = vor.u32 %v11307_v50, %v9078_v28  ;;  %v3512_v45 = vpop.f32.mrf.mxu2  ;;  %v13780_v50 = vld [vmem:[%s14426_s11] sm:$0xff]  ;;  %3884 = vmatmul.bf16.vlgmr.msra.gmra.mxu2 %v13495_v58 }
 0x211   :  { %3956 = vmatpush.bf16.msrb.mxu2 %v9177_v19  ;;  %v13760_v0 = vadd.f32 %v3512_v45, %v13644_v25  ;;  %v4063_v25 = vld [vmem:[%s14419_s4 + $0x8] sm:$0xff] }
 0x212   :  { %3898 = vmatpush.bf16.msra.mxu3 %v9461_v36  ;;  %v11594_v36 = vld [vmem:[#allocation6 + $0x50c] sm:$0xf0]  ;;  %v9332_v45 = vld [vmem:[#allocation7 + $0x618] sm:$0xf] }
 0x213   :  { %5541 = vmatpush.bf16.msrb.mxu0 %v10093_v53  ;;  %v3625_v53 = vadd.f32 %v13693_v7, %v13689_v47  ;;  %v3643_v33 = vpop.f32.mrf.mxu1  ;;  %v10253_v7 = vor.u32 %v11606_v57, %v10252_v63  ;;  %v13743_v40 = vpop.f32.mrf.mxu0  ;;  %v9761_v63 = vor.u32 %v11480_v52, %v9758_v54  ;;  %v9396_v57 = vld [vmem:[#allocation7 + $0x698] sm:$0xf]  ;;  %v9365_v52 = vor.u32 %v11383_v39, %v9364_v13  ;;  %v9694_v13 = vld [vmem:[#allocation6 + $0x110] sm:$0xf0] }
 0x214   :  { %v10205_v54 = vor.u32 %v11594_v36, %v10204_v22 }
 0x215   :  { %v13741_v15 = vadd.f32 %v3643_v33, %v3625_v53  ;;  %3957 = vmatpush.bf16.msrb.mxu2 %v9145_v56  ;;  %5553 = vmatpush.bf16.msrb.mxu1 %v10253_v7  ;;  %v11391_v56 = vld [vmem:[#allocation7 + $0x6b4] sm:$0xf0]  ;;  %v9916_v7 = vld [vmem:[#allocation6 + $0x2c0] sm:$0xf]  ;;  %v3455_v17 = vpop.f32.mrf.mxu3 }
 0x216   :  { %v9397_v11 = vor.u32 %v11391_v56, %v9396_v57  ;;  %v4055_v33 = vld [vmem:[%s14415_s0 + $0x48] sm:$0xff]  ;;  %v13790_v49 = vadd.f32 %v3455_v17, %v13686_v46  ;;  %v11520_v46 = vld [vmem:[#allocation6 + $0x2c4] sm:$0xf]  ;;  %v11510_v17 = vld [vmem:[#allocation6 + $0x26c] sm:$0xf0] }
 0x217   :  { %5542 = vmatpush.bf16.msrb.mxu0 %v10077_v30  ;;  %v9428_v30 = vld [vmem:[#allocation7 + $0x6d8] sm:$0xf] }
 0x218   :  { %v9429_v19 = vor.u32 %v11399_v8, %v9428_v30  ;;  %v4071_v30 = vadd.f32 %v4063_v25, %v4047_v32  ;;  %v4079_v8 = vadd.f32 %v4063_v25, %v4055_v33  ;;  %v9710_v32 = vld [vmem:[#allocation6 + $0x130] sm:$0xf0] }
 0x219   :  { %3958 = vmatpush.bf16.msrb.mxu2 %v9113_v29  ;;  %v13783_v29 = vperm.slane %v13780_v50, 4  ;;  %v9918_v25 = vld [vmem:[#allocation6 + $0x2d0] sm:$0xf0] }
 0x21a   :  { %3899 = vmatpush.bf16.msra.mxu3 %v9429_v19  ;;  %v11524_v19 = vld [vmem:[#allocation6 + $0x2e4] sm:$0xf] }
 0x21b   :  { %5605 = vmatpush.bf16.msra.mxu0 %v9809_v44  ;;  %v10237_v44 = vor.u32 %v11602_v37, %v10236_v24  ;;  %v13762_v53 = vpop.f32.mrf.mxu1  ;;  %v13773_v27 = vpop.f32.mrf.mxu0  ;;  %v11522_v24 = vld [vmem:[#allocation6 + $0x2cc] sm:$0xf0]  ;;  %v13775_v37 = vpack.c.bf16 %v4082_v43, %v4074_v35  ;;  %v3696_v61 = vadd.f32 %v13727_v41, %v13783_v29  ;;  %v9937_v41 = vor.u32 %v11524_v19, %v9934_v16  ;;  %v9902_v19 = vld [vmem:[#allocation6 + $0x2b0] sm:$0xf0] }
 0x21c   :  { %v3581_v35 = vpop.f32.mrf.mxu2  ;;  %3827 = vmatmul.bf16.vlgmr.msrb.gmra.mxu3 %v13549_v59 }
 0x21d   :  { %5554 = vmatpush.bf16.msrb.mxu1 %v10237_v44  ;;  %3959 = vmatpush.bf16.msrb.mxu2 %v9081_v55  ;;  %v9917_v44 = vor.u32 %v11522_v24, %v9916_v7  ;;  %v11518_v55 = vld [vmem:[#allocation6 + $0x2ac] sm:$0xf0]  ;;  %v13793_v57 = vadd.f32 %v3581_v35, %v13655_v38  ;;  %v11427_v7 = vld [vmem:[#allocation7 + $0x7dc] sm:$0xf] }
 0x21e   :  { %3900 = vmatpush.bf16.msra.mxu3 %v9397_v11  ;;  %5543 = vmatmul.bf16.vlgmr.msrb.gmra.mxu0 %v13775_v37  ;;  %v9901_v22 = vor.u32 %v11518_v55, %v9900_v34  ;;  %v11514_v38 = vld [vmem:[#allocation6 + $0x28c] sm:$0xf0]  ;;  %v9558_v24 = vld [vmem:[#allocation7 + $0x7f8] sm:$0xf0] }
 0x21f   :  { %5606 = vmatpush.bf16.msra.mxu0 %v9793_v2  ;;  %v9742_v2 = vld [vmem:[#allocation6 + $0x170] sm:$0xf0]  ;;  %v9561_v39 = vor.u32 %v11427_v7, %v9558_v24  ;;  %v9526_v35 = vld [vmem:[#allocation7 + $0x7b8] sm:$0xf0] }
 0x220   :  { %v9745_v28 = vor.u32 %v11476_v48, %v9742_v2  ;;  %v13795_v48 = vpack.c.bf16 %v4079_v8, %v4071_v30  ;;  %v11468_v2 = vld [vmem:[#allocation6 + $0x124] sm:$0xf]  ;;  %v10318_v30 = vld [vmem:[#allocation6 + $0x5f0] sm:$0xf0]  ;;  %v11411_v24 = vld [vmem:[#allocation7 + $0x75c] sm:$0xf]  ;;  %3889 = vmatmul.bf16.gmra.mxu2 %v13517_v3 }
 0x221   :  { %5555 = vmatpush.bf16.msrb.mxu1 %v10221_v23  ;;  %5507 = vmatpush.bf16.msra.mxu2 %v9933_v14  ;;  %v9884_v14 = vld [vmem:[#allocation6 + $0x280] sm:$0xf]  ;;  %v9713_v36 = vor.u32 %v11468_v2, %v9710_v32  ;;  %v11516_v8 = vld [vmem:[#allocation6 + $0x2a4] sm:$0xf]  ;;  %v10302_v2 = vld [vmem:[#allocation6 + $0x5d0] sm:$0xf0] }
 0x222   :  { %3901 = vmatpush.bf16.msra.mxu3 %v9365_v52  ;;  %5501 = vmatmul.bf16.vlgmr.msra.gmra.mxu1 %v13795_v48  ;;  %v9885_v52 = vor.u32 %v11514_v38, %v9884_v14  ;;  %v11512_v32 = vld [vmem:[#allocation6 + $0x284] sm:$0xf]  ;;  %v9886_v14 = vld [vmem:[#allocation6 + $0x290] sm:$0xf0]  ;;  %v9852_v38 = vld [vmem:[#allocation6 + $0x240] sm:$0xf] }
 0x223   :  { %5607 = vmatpush.bf16.msra.mxu0 %v9777_v5  ;;  %v11472_v5 = vld [vmem:[#allocation6 + $0x144] sm:$0xf]  ;;  %v3714_v56 = vpop.f32.mrf.mxu1  ;;  %v13799_v33 = vpop.f32.mrf.mxu0 }
 0x224   :  { %v9729_v43 = vor.u32 %v11472_v5, %v9726_v1  ;;  %v13797_v23 = vadd.f32 %v3714_v56, %v3696_v61  ;;  %14432 = vst [vmem:[#allocation13_spill] sm:$0xff] %v13799_v33  ;;  %v9921_v5 = vor.u32 %v11520_v46, %v9918_v25  ;;  %v11620_v1 = vld [vmem:[#allocation6 + $0x5e4] sm:$0xf]  ;;  %v3583_v34 = vpop.f32.mrf.mxu2  ;;  %v11419_v61 = vld [vmem:[#allocation7 + $0x79c] sm:$0xf] }
 0x225   :  { %5556 = vmatpush.bf16.msrb.mxu1 %v10205_v54  ;;  %5508 = vmatpush.bf16.msra.mxu2 %v9917_v44  ;;  %v3524_v54 = vpop.f32.mrf.mxu3  ;;  %v9868_v44 = vld [vmem:[#allocation6 + $0x260] sm:$0xf]  ;;  %v11616_v56 = vld [vmem:[#allocation6 + $0x5c4] sm:$0xf] }
 0x226   :  { %v13804_v16 = vadd.f32 %v3524_v54, %v13700_v9  ;;  %v9869_v46 = vor.u32 %v11510_v17, %v9868_v44  ;;  %v4051_v9 = vld [vmem:[%s14415_s0 + $0x28] sm:$0xff]  ;;  %v10305_v7 = vor.u32 %v11616_v56, %v10302_v2  ;;  %v9870_v44 = vld [vmem:[#allocation6 + $0x270] sm:$0xf0]  ;;  %v9836_v17 = vld [vmem:[#allocation6 + $0x220] sm:$0xf] }
 0x227   :  { %5608 = vmatpush.bf16.msra.mxu0 %v9761_v63  ;;  %v11375_v63 = vld [vmem:[#allocation7 + $0x634] sm:$0xf0]  ;;  %v9462_v56 = vld [vmem:[#allocation7 + $0x738] sm:$0xf0] }
 0x228   :  { %v9333_v11 = vor.u32 %v11375_v63, %v9332_v45  ;;  %v10321_v63 = vor.u32 %v11620_v1, %v10318_v30  ;;  %v9889_v1 = vor.u32 %v11512_v32, %v9886_v14  ;;  %v11612_v30 = vld [vmem:[#allocation6 + $0x5a4] sm:$0xf] }
 0x229   :  { %5619 = vmatpush.bf16.msra.mxu1 %v9937_v41  ;;  %5509 = vmatpush.bf16.msra.mxu2 %v9901_v22  ;;  %v9905_v41 = vor.u32 %v11516_v8, %v9902_v19  ;;  %v4067_v22 = vld [vmem:[%s14419_s4 + $0x28] sm:$0xff]  ;;  %v10286_v8 = vld [vmem:[#allocation6 + $0x5b0] sm:$0xf0] }
 0x22a   :  { %3902 = vmatpush.bf16.msra.mxu3 %v9333_v11  ;;  %v9529_v11 = vor.u32 %v11419_v61, %v9526_v35 }
 0x22b   :  { %5609 = vmatpush.bf16.msra.mxu0 %v9745_v28  ;;  %v11464_v28 = vld [vmem:[#allocation6 + $0x104] sm:$0xf]  ;;  %v13809_v45 = vpop.f32.mrf.mxu1  ;;  %v13820_v25 = vpop.f32.mrf.mxu0 }
 0x22c   :  { %v9697_v55 = vor.u32 %v11464_v28, %v9694_v13  ;;  %14433 = vst [vmem:[#allocation14_spill] sm:$0xff] %v13809_v45  ;;  %v9494_v28 = vld [vmem:[#allocation7 + $0x778] sm:$0xf0]  ;;  %v4075_v13 = vadd.f32 %v4067_v22, %v4051_v9  ;;  %v3586_v35 = vpop.f32.mrf.mxu2  ;;  %3832 = vmatmul.bf16.gmra.mxu3 %v13562_v20 }
 0x22d   :  { %5620 = vmatpush.bf16.msra.mxu1 %v9921_v5  ;;  %5510 = vmatpush.bf16.msra.mxu2 %v9885_v52  ;;  %v9497_v5 = vor.u32 %v11411_v24, %v9494_v28  ;;  %v11508_v52 = vld [vmem:[#allocation6 + $0x264] sm:$0xf]  ;;  %v3526_v19 = vpop.f32.mrf.mxu3  ;;  %v13830_v2 = vadd.f32 %v3586_v35, %v13677_v51  ;;  %v11395_v24 = vld [vmem:[#allocation7 + $0x6dc] sm:$0xf] }
 0x22e   :  { %3971 = vmatpush.bf16.msrb.mxu3 %v9561_v39  ;;  %v13827_v61 = vadd.f32 %v3526_v19, %v13723_v18  ;;  %v11504_v18 = vld [vmem:[#allocation6 + $0x244] sm:$0xf]  ;;  %v9430_v28 = vld [vmem:[#allocation7 + $0x6f8] sm:$0xf0]  ;;  %v9838_v19 = vld [vmem:[#allocation6 + $0x230] sm:$0xf0] }
 0x22f   :  { %5610 = vmatpush.bf16.msra.mxu0 %v9729_v43  ;;  %v13807_v43 = vadd.f32 %v3583_v34, %v13666_v62  ;;  %v4059_v62 = vld [vmem:[%s14415_s0 + $0x68] sm:$0xff]  ;;  %v11502_v34 = vld [vmem:[#allocation6 + $0x22c] sm:$0xf0] }
 0x230   :  { %v4083_v39 = vadd.f32 %v4067_v22, %v4059_v62  ;;  %v9873_v62 = vor.u32 %v11508_v52, %v9870_v44  ;;  %v10270_v22 = vld [vmem:[#allocation6 + $0x590] sm:$0xf0]  ;;  %v9837_v14 = vor.u32 %v11502_v34, %v9836_v17  ;;  %v10444_v44 = vld [vmem:[#allocation6 + $0x6e0] sm:$0xf]  ;;  %v11654_v17 = vld [vmem:[#allocation6 + $0x6ec] sm:$0xf0]  ;;  %3960 = vmatmul.bf16.vlgmr.msrb.gmra.mxu2 %v13495_v58 }
 0x231   :  { %5621 = vmatpush.bf16.msra.mxu1 %v9905_v41  ;;  %5511 = vmatpush.bf16.msra.mxu2 %v9869_v46  ;;  %v11387_v35 = vld [vmem:[#allocation7 + $0x69c] sm:$0xf] }
 0x232   :  { %3972 = vmatpush.bf16.msrb.mxu3 %v9529_v11  ;;  %v10289_v11 = vor.u32 %v11612_v30, %v10286_v8  ;;  %v13832_v41 = vpack.c.bf16 %v4083_v39, %v4075_v13  ;;  %v9433_v39 = vor.u32 %v11395_v24, %v9430_v28  ;;  %v10254_v30 = vld [vmem:[#allocation6 + $0x570] sm:$0xf0]  ;;  %v11500_v8 = vld [vmem:[#allocation6 + $0x224] sm:$0xf]  ;;  %v11650_v24 = vld [vmem:[#allocation6 + $0x6cc] sm:$0xf0] }
 0x233   :  { %5611 = vmatpush.bf16.msra.mxu0 %v9713_v36  ;;  %v11506_v36 = vld [vmem:[#allocation6 + $0x24c] sm:$0xf0]  ;;  %v3719_v32 = vpop.f32.mrf.mxu1  ;;  %v13836_v51 = vpop.f32.mrf.mxu0  ;;  %v11379_v28 = vld [vmem:[#allocation7 + $0x65c] sm:$0xf] }
 0x234   :  { %v9853_v54 = vor.u32 %v11506_v36, %v9852_v38  ;;  %v9854_v38 = vld [vmem:[#allocation6 + $0x250] sm:$0xf0]  ;;  %v9820_v36 = vld [vmem:[#allocation6 + $0x200] sm:$0xf]  ;;  %14434 = vst [vmem:[#allocation15_spill] sm:$0xff] %v13836_v51  ;;  %5557 = vmatmul.bf16.vlgmr.msrb.gmra.mxu1 %v13832_v41 }
 0x235   :  { %5622 = vmatpush.bf16.msra.mxu1 %v9889_v1  ;;  %v11604_v1 = vld [vmem:[#allocation6 + $0x564] sm:$0xf] }
 0x236   :  { %3973 = vmatpush.bf16.msrb.mxu3 %v9497_v5  ;;  %5512 = vmatpush.bf16.msra.mxu2 %v9853_v54  ;;  %v9857_v5 = vor.u32 %v11504_v18, %v9854_v38  ;;  %v3529_v54 = vpop.f32.mrf.mxu3  ;;  %v11496_v18 = vld [vmem:[#allocation6 + $0x204] sm:$0xf] }
 0x237   :  { %5612 = vmatpush.bf16.msra.mxu0 %v9697_v55  ;;  %v3701_v55 = vadd.f32 %v13773_v27, %v13783_v29  ;;  %v11608_v27 = vld [vmem:[#allocation6 + $0x584] sm:$0xf]  ;;  %v13841_v34 = vadd.f32 %v3529_v54, %v13739_v12  ;;  %v10445_v12 = vor.u32 %v11654_v17, %v10444_v44  ;;  %v10222_v54 = vld [vmem:[#allocation6 + $0x530] sm:$0xf0] }
 0x238   :  { %v10273_v13 = vor.u32 %v11608_v27, %v10270_v22  ;;  %v9841_v22 = vor.u32 %v11500_v8, %v9838_v19  ;;  %v11652_v38 = vld [vmem:[#allocation6 + $0x6e4] sm:$0xf]  ;;  %v4056_v44 = vld [vmem:[%s14415_s0 + $0x50] sm:$0xff] }
 0x239   :  { %v13834_v9 = vadd.f32 %v3719_v32, %v3701_v55  ;;  %5623 = vmatpush.bf16.msra.mxu1 %v9873_v62  ;;  %v3588_v55 = vpop.f32.mrf.mxu2  ;;  %v10238_v62 = vld [vmem:[#allocation6 + $0x550] sm:$0xf0] }
 0x23a   :  { %5613 = vmatmul.bf16.vlgmr.msra.gmra.mxu0 %v13795_v48  ;;  %5513 = vmatpush.bf16.msra.mxu2 %v9837_v14  ;;  %v9822_v14 = vld [vmem:[#allocation6 + $0x210] sm:$0xf0] }
 0x23b   :  { %5661 = vmatpush.bf16.msrb.mxu0 %v10321_v63  ;;  %v11403_v63 = vld [vmem:[#allocation7 + $0x71c] sm:$0xf]  ;;  %v13846_v32 = vpop.f32.mrf.mxu1  ;;  %v13855_v8 = vpop.f32.mrf.mxu0  ;;  %v4064_v17 = vld [vmem:[%s14419_s4 + $0x10] sm:$0xff] }
 0x23c   :  { %v9465_v46 = vor.u32 %v11403_v63, %v9462_v56  ;;  %v9398_v63 = vld [vmem:[#allocation7 + $0x6b8] sm:$0xf0]  ;;  %v13844_v56 = vadd.f32 %v3588_v55, %v13691_v10  ;;  %14435 = vst [vmem:[#allocation16_spill] sm:$0xff] %v13846_v32  ;;  %3903 = vmatmul.bf16.vlgmr.msra.gmra.mxu3 %v13549_v59  ;;  %v11534_v32 = vld [vmem:[#allocation6 + $0x32c] sm:$0xf0] }
 0x23d   :  { %v9401_v27 = vor.u32 %v11387_v35, %v9398_v63  ;;  %5624 = vmatpush.bf16.msra.mxu1 %v9857_v5  ;;  %v9366_v10 = vld [vmem:[#allocation7 + $0x678] sm:$0xf0]  ;;  %v10412_v35 = vld [vmem:[#allocation6 + $0x6a0] sm:$0xf]  ;;  %v11646_v63 = vld [vmem:[#allocation6 + $0x6ac] sm:$0xf0] }
 0x23e   :  { %3974 = vmatpush.bf16.msrb.mxu3 %v9465_v46  ;;  %v11600_v46 = vld [vmem:[#allocation6 + $0x544] sm:$0xf]  ;;  %v3531_v55 = vpop.f32.mrf.mxu3 }
 0x23f   :  { %5662 = vmatpush.bf16.msrb.mxu0 %v10305_v7  ;;  %v11498_v7 = vld [vmem:[#allocation6 + $0x20c] sm:$0xf0]  ;;  %v10241_v5 = vor.u32 %v11600_v46, %v10238_v62  ;;  %v4080_v46 = vadd.f32 %v4064_v17, %v4056_v44  ;;  %v13864_v62 = vadd.f32 %v3531_v55, %v13760_v0  ;;  %v10413_v44 = vor.u32 %v11646_v63, %v10412_v35  ;;  %v9924_v35 = vld [vmem:[#allocation6 + $0x2c8] sm:$0xf]  ;;  %v11523_v63 = vld [vmem:[#allocation6 + $0x2d4] sm:$0xf0] }
 0x240   :  { %v9821_v52 = vor.u32 %v11498_v7, %v9820_v36  ;;  %v10446_v36 = vld [vmem:[#allocation6 + $0x6f0] sm:$0xf0]  ;;  %v10428_v7 = vld [vmem:[#allocation6 + $0x6c0] sm:$0xf]  ;;  %3965 = vmatmul.bf16.gmra.mxu2 %v13517_v3 }
 0x241   :  { %5625 = vmatpush.bf16.msra.mxu1 %v9841_v22  ;;  %v10429_v19 = vor.u32 %v11650_v24, %v10428_v7  ;;  %v10449_v58 = vor.u32 %v11652_v38, %v10446_v36  ;;  %v11648_v22 = vld [vmem:[#allocation6 + $0x6c4] sm:$0xf]  ;;  %v10206_v24 = vld [vmem:[#allocation6 + $0x510] sm:$0xf0] }
 0x242   :  { %3975 = vmatpush.bf16.msrb.mxu3 %v9433_v39  ;;  %5514 = vmatpush.bf16.msra.mxu2 %v9821_v52  ;;  %v13852_v39 = vperm.slane %v13780_v50, 5  ;;  %v9825_v52 = vor.u32 %v11496_v18, %v9822_v14  ;;  %v10430_v18 = vld [vmem:[#allocation6 + $0x6d0] sm:$0xf0]  ;;  %v11371_v14 = vld [vmem:[#allocation7 + $0x61c] sm:$0xf] }
 0x243   :  { %5663 = vmatpush.bf16.msrb.mxu0 %v10289_v11  ;;  %v10257_v11 = vor.u32 %v11604_v1, %v10254_v30  ;;  %v11596_v1 = vld [vmem:[#allocation6 + $0x524] sm:$0xf]  ;;  %v9369_v30 = vor.u32 %v11379_v28, %v9366_v10  ;;  %v9334_v10 = vld [vmem:[#allocation7 + $0x638] sm:$0xf0]  ;;  %v3790_v0 = vpop.f32.mrf.mxu1  ;;  %v10366_v3 = vld [vmem:[#allocation6 + $0x650] sm:$0xf0] }
 0x244   :  { %14436 = vst [vmem:[#allocation17_spill] sm:$0xff] %v13852_v39  ;;  %v10225_v38 = vor.u32 %v11596_v1, %v10222_v54  ;;  %v11592_v36 = vld [vmem:[#allocation6 + $0x504] sm:$0xf]  ;;  %v9337_v55 = vor.u32 %v11371_v14, %v9334_v10  ;;  %v11558_v1 = vld [vmem:[#allocation6 + $0x3ec] sm:$0xf0] }
 0x245   :  { %5626 = vmatpush.bf16.msra.mxu1 %v9825_v52  ;;  %v11644_v54 = vld [vmem:[#allocation6 + $0x6a4] sm:$0xf]  ;;  %v10209_v52 = vor.u32 %v11592_v36, %v10206_v24  ;;  %v10380_v14 = vld [vmem:[#allocation6 + $0x660] sm:$0xf]  ;;  %v11554_v10 = vld [vmem:[#allocation6 + $0x3cc] sm:$0xf0] }
 0x246   :  { %3976 = vmatpush.bf16.msrb.mxu3 %v9401_v27  ;;  %5563 = vmatpush.bf16.msrb.mxu2 %v10445_v12  ;;  %v3657_v27 = vpop.f32.mrf.mxu2  ;;  %v3772_v12 = vadd.f32 %v13820_v25, %v13852_v39  ;;  %v10433_v25 = vor.u32 %v11648_v22, %v10430_v18  ;;  %v11638_v18 = vld [vmem:[#allocation6 + $0x66c] sm:$0xf0]  ;;  %v11640_v24 = vld [vmem:[#allocation6 + $0x684] sm:$0xf] }
 0x247   :  { %5664 = vmatpush.bf16.msrb.mxu0 %v10273_v13  ;;  %v4048_v13 = vld [vmem:[%s14415_s0 + $0x10] sm:$0xff]  ;;  %v13869_v7 = vadd.f32 %v3657_v27, %v13702_v6 }
 0x248   :  { %v13873_v51 = vadd.f32 %v3790_v0, %v3772_v12  ;;  %v11642_v6 = vld [vmem:[#allocation6 + $0x68c] sm:$0xf0]  ;;  %v10044_v12 = vld [vmem:[#allocation6 + $0x3c0] sm:$0xf]  ;;  %v13877_v0 = vpop.f32.mrf.mxu0 }
 0x249   :  { %5675 = vmatpush.bf16.msrb.mxu1 %v10449_v58  ;;  %v3600_v58 = vpop.f32.mrf.mxu3  ;;  %14437 = vst [vmem:[#allocation18_spill] sm:$0xff] %v13877_v0 }
 0x24a   :  { %3977 = vmatpush.bf16.msrb.mxu3 %v9369_v30  ;;  %5564 = vmatpush.bf16.msrb.mxu2 %v10429_v19  ;;  %v11527_v30 = vld [vmem:[#allocation6 + $0x2f4] sm:$0xf0] }
 0x24b   :  { %5665 = vmatpush.bf16.msrb.mxu0 %v10257_v11  ;;  %v4072_v11 = vadd.f32 %v4064_v17, %v4048_v13  ;;  %v9940_v13 = vld [vmem:[#allocation6 + $0x2e8] sm:$0xf]  ;;  %v10396_v17 = vld [vmem:[#allocation6 + $0x680] sm:$0xf] }
 0x24c   :  { %v9941_v19 = vor.u32 %v11527_v30, %v9940_v13  ;;  %v10397_v27 = vor.u32 %v11642_v6, %v10396_v17  ;;  %v10398_v13 = vld [vmem:[#allocation6 + $0x690] sm:$0xf0]  ;;  %v10045_v30 = vor.u32 %v11554_v10, %v10044_v12  ;;  %v13885_v17 = vpop.f32.mrf.mxu1  ;;  %v11519_v6 = vld [vmem:[#allocation6 + $0x2b4] sm:$0xf0]  ;;  %v11630_v12 = vld [vmem:[#allocation6 + $0x62c] sm:$0xf0]  ;;  %3908 = vmatmul.bf16.gmra.mxu3 %v13562_v20 }
 0x24d   :  { %v13871_v28 = vpack.c.bf16 %v4080_v46, %v4072_v11  ;;  %v10414_v11 = vld [vmem:[#allocation6 + $0x6b0] sm:$0xf0]  ;;  %5676 = vmatpush.bf16.msrb.mxu1 %v10433_v25  ;;  %14438 = vst [vmem:[#allocation19_spill] sm:$0xff] %v13885_v17  ;;  %v9908_v25 = vld [vmem:[#allocation6 + $0x2a8] sm:$0xf] }
 0x24e   :  { %5565 = vmatpush.bf16.msrb.mxu2 %v10413_v44  ;;  %3978 = vmatpush.bf16.msrb.mxu3 %v9337_v55  ;;  %v10417_v22 = vor.u32 %v11644_v54, %v10414_v11  ;;  %v3659_v36 = vpop.f32.mrf.mxu2  ;;  %v9925_v55 = vor.u32 %v11523_v63, %v9924_v35  ;;  %v11634_v54 = vld [vmem:[#allocation6 + $0x64c] sm:$0xf0]  ;;  %v10028_v11 = vld [vmem:[#allocation6 + $0x3a0] sm:$0xf]  ;;  %v9892_v35 = vld [vmem:[#allocation6 + $0x288] sm:$0xf] }
 0x24f   :  { %5666 = vmatpush.bf16.msrb.mxu0 %v10241_v5  ;;  %v10060_v5 = vld [vmem:[#allocation6 + $0x3e0] sm:$0xf]  ;;  %5627 = vmatmul.bf16.vlgmr.msra.gmra.mxu1 %v13871_v28  ;;  %v13883_v44 = vadd.f32 %v3659_v36, %v13725_v21  ;;  %v11515_v63 = vld [vmem:[#allocation6 + $0x294] sm:$0xf0]  ;;  %v11546_v36 = vld [vmem:[#allocation6 + $0x38c] sm:$0xf0] }
 0x250   :  { %v10061_v46 = vor.u32 %v11558_v1, %v10060_v5  ;;  %v10381_v5 = vor.u32 %v11638_v18, %v10380_v14  ;;  %v10364_v1 = vld [vmem:[#allocation6 + $0x640] sm:$0xf]  ;;  %5515 = vmatmul.bf16.vlgmr.msra.gmra.mxu2 %v13871_v28 }
 0x251   :  { %5677 = vmatpush.bf16.msrb.mxu1 %v10417_v22  ;;  %v10348_v14 = vld [vmem:[#allocation6 + $0x620] sm:$0xf]  ;;  %v3602_v22 = vpop.f32.mrf.mxu3 }
 0x252   :  { %5521 = vmatpush.bf16.msra.mxu3 %v10061_v46  ;;  %5566 = vmatpush.bf16.msrb.mxu2 %v10397_v27  ;;  %v11550_v46 = vld [vmem:[#allocation6 + $0x3ac] sm:$0xf0]  ;;  %v10365_v27 = vor.u32 %v11634_v54, %v10364_v1  ;;  %v10012_v10 = vld [vmem:[#allocation6 + $0x380] sm:$0xf]  ;;  %v9876_v54 = vld [vmem:[#allocation6 + $0x268] sm:$0xf] }
 0x253   :  { %5667 = vmatpush.bf16.msrb.mxu0 %v10225_v38  ;;  %v13880_v38 = vadd.f32 %v3600_v58, %v13793_v57  ;;  %v10401_v57 = vor.u32 %v11640_v24, %v10398_v13  ;;  %v11636_v58 = vld [vmem:[#allocation6 + $0x664] sm:$0xf]  ;;  %v10029_v21 = vor.u32 %v11550_v46, %v10028_v11  ;;  %v13890_v24 = vadd.f32 %v3602_v22, %v13807_v43  ;;  %v11511_v11 = vld [vmem:[#allocation6 + $0x274] sm:$0xf0]  ;;  %v10332_v46 = vld [vmem:[#allocation6 + $0x600] sm:$0xf] }
 0x254   :  { %v3795_v1 = vpop.f32.mrf.mxu1  ;;  %v10349_v43 = vor.u32 %v11630_v12, %v10348_v14  ;;  %v11542_v22 = vld [vmem:[#allocation6 + $0x36c] sm:$0xf0]  ;;  %v11624_v14 = vld [vmem:[#allocation6 + $0x604] sm:$0xf]  ;;  %v10334_v12 = vld [vmem:[#allocation6 + $0x610] sm:$0xf0] }
 0x255   :  { %5678 = vmatpush.bf16.msrb.mxu1 %v10401_v57  ;;  %v9893_v57 = vor.u32 %v11515_v63, %v9892_v35  ;;  %v11507_v35 = vld [vmem:[#allocation6 + $0x254] sm:$0xf0]  ;;  %v9877_v63 = vor.u32 %v11511_v11, %v9876_v54  ;;  %v4060_v54 = vld [vmem:[%s14415_s0 + $0x70] sm:$0xff] }
 0x256   :  { %5522 = vmatpush.bf16.msra.mxu3 %v10045_v30  ;;  %5567 = vmatpush.bf16.msrb.mxu2 %v10381_v5  ;;  %v3662_v13 = vpop.f32.mrf.mxu2  ;;  %v11632_v30 = vld [vmem:[#allocation6 + $0x644] sm:$0xf]  ;;  %v13897_v5 = vpop.f32.mrf.mxu0  ;;  %v4068_v11 = vld [vmem:[%s14419_s4 + $0x30] sm:$0xff] }
 0x257   :  { %5668 = vmatpush.bf16.msrb.mxu0 %v10209_v52  ;;  %v10382_v52 = vld [vmem:[#allocation6 + $0x670] sm:$0xf0]  ;;  %14439 = vst [vmem:[#allocation20_spill] sm:$0xff] %v13897_v5  ;;  %v4084_v17 = vadd.f32 %v4068_v11, %v4060_v54 }
 0x258   :  { %v10385_v18 = vor.u32 %v11636_v58, %v10382_v52  ;;  %v10369_v52 = vor.u32 %v11632_v30, %v10366_v3  ;;  %v10062_v3 = vld [vmem:[#allocation6 + $0x3f0] sm:$0xf0] }
 0x259   :  { %v10046_v5 = vld [vmem:[#allocation6 + $0x3d0] sm:$0xf0] }
 0x25a   :  { %5669 = vmatmul.bf16.vlgmr.msrb.gmra.mxu0 %v13832_v41  ;;  %5523 = vmatpush.bf16.msra.mxu3 %v10029_v21  ;;  %v11626_v21 = vld [vmem:[#allocation6 + $0x60c] sm:$0xf0] }
 0x25b   :  { %5731 = vmatpush.bf16.msra.mxu0 %v9941_v19  ;;  %v9909_v19 = vor.u32 %v11519_v6, %v9908_v25  ;;  %v3777_v25 = vadd.f32 %v13855_v8, %v13852_v39  ;;  %v13895_v6 = vadd.f32 %v3662_v13, %v13741_v15  ;;  %5568 = vmatpush.bf16.msrb.mxu2 %v10365_v27  ;;  %v9996_v8 = vld [vmem:[#allocation6 + $0x360] sm:$0xf]  ;;  %v11628_v15 = vld [vmem:[#allocation6 + $0x624] sm:$0xf] }
 0x25c   :  { %5679 = vmatpush.bf16.msrb.mxu1 %v10385_v18  ;;  %v10333_v27 = vor.u32 %v11626_v21, %v10332_v46  ;;  %v11556_v13 = vld [vmem:[#allocation6 + $0x3e4] sm:$0xf]  ;;  %v3605_v18 = vpop.f32.mrf.mxu3  ;;  %v10068_v46 = vld [vmem:[#allocation6 + $0x3e8] sm:$0xf]  ;;  %v9964_v39 = vld [vmem:[#allocation6 + $0x320] sm:$0xf]  ;;  %3979 = vmatmul.bf16.vlgmr.msrb.gmra.mxu3 %v13549_v59 }
 0x25d   :  { %v13899_v58 = vadd.f32 %v3795_v1, %v3777_v25  ;;  %v11538_v25 = vld [vmem:[#allocation6 + $0x34c] sm:$0xf0]  ;;  %v13903_v1 = vadd.f32 %v3605_v18, %v13830_v2  ;;  %v13916_v2 = vpop.f32.mrf.mxu1  ;;  %v10337_v18 = vor.u32 %v11624_v14, %v10334_v12  ;;  %v11499_v14 = vld [vmem:[#allocation6 + $0x214] sm:$0xf0]  ;;  %v11548_v12 = vld [vmem:[#allocation6 + $0x3a4] sm:$0xf] }
 0x25e   :  { %14440 = vst [vmem:[#allocation21_spill] sm:$0xff] %v13916_v2 }
 0x25f   :  { %5732 = vmatpush.bf16.msra.mxu0 %v9925_v55  ;;  %v10013_v55 = vor.u32 %v11546_v36, %v10012_v10  ;;  %v10350_v10 = vld [vmem:[#allocation6 + $0x630] sm:$0xf0]  ;;  %v9860_v36 = vld [vmem:[#allocation6 + $0x248] sm:$0xf]  ;;  %5569 = vmatpush.bf16.msrb.mxu2 %v10349_v43 }
 0x260   :  { %5680 = vmatpush.bf16.msrb.mxu1 %v10369_v52  ;;  %v10353_v30 = vor.u32 %v11628_v15, %v10350_v10  ;;  %v11559_v52 = vld [vmem:[#allocation6 + $0x3f4] sm:$0xf0]  ;;  %v9861_v21 = vor.u32 %v11507_v35, %v9860_v36  ;;  %v9844_v15 = vld [vmem:[#allocation6 + $0x228] sm:$0xf] }
 0x261   :  { %5524 = vmatpush.bf16.msra.mxu3 %v10013_v55  ;;  %v9980_v55 = vld [vmem:[#allocation6 + $0x340] sm:$0xf]  ;;  %v11503_v10 = vld [vmem:[#allocation6 + $0x234] sm:$0xf0]  ;;  %v10052_v36 = vld [vmem:[#allocation6 + $0x3c8] sm:$0xf] }
 0x262   :  { %v9981_v43 = vor.u32 %v11538_v25, %v9980_v55  ;;  %v13918_v55 = vpop.f32.mrf.mxu0  ;;  %v10069_v25 = vor.u32 %v11559_v52, %v10068_v46  ;;  %v11555_v35 = vld [vmem:[#allocation6 + $0x3d4] sm:$0xf0] }
 0x263   :  { %5733 = vmatpush.bf16.msra.mxu0 %v9909_v19  ;;  %v9997_v19 = vor.u32 %v11542_v22, %v9996_v8  ;;  %v13905_v8 = vpop.f32.mrf.mxu2  ;;  %5570 = vmatpush.bf16.msrb.mxu2 %v10333_v27  ;;  %v10065_v22 = vor.u32 %v11556_v13, %v10062_v3  ;;  %14441 = vst [vmem:[#allocation22_spill] sm:$0xff] %v13918_v55  ;;  %v9828_v27 = vld [vmem:[#allocation6 + $0x208] sm:$0xf]  ;;  %v10030_v3 = vld [vmem:[#allocation6 + $0x3b0] sm:$0xf0] }
 0x264   :  { %5681 = vmatpush.bf16.msrb.mxu1 %v10353_v30  ;;  %v9845_v13 = vor.u32 %v11503_v10, %v9844_v15  ;;  %v10053_v52 = vor.u32 %v11555_v35, %v10052_v36  ;;  %v10014_v36 = vld [vmem:[#allocation6 + $0x390] sm:$0xf0]  ;;  %v10436_v35 = vld [vmem:[#allocation6 + $0x6c8] sm:$0xf] }
 0x265   :  { %5525 = vmatpush.bf16.msra.mxu3 %v9997_v19  ;;  %v11552_v19 = vld [vmem:[#allocation6 + $0x3c4] sm:$0xf] }
 0x266   :  { %v10049_v30 = vor.u32 %v11552_v19, %v10046_v5  ;;  %v11655_v5 = vld [vmem:[#allocation6 + $0x6f4] sm:$0xf0]  ;;  %v13932_v19 = vpop.f32.mrf.mxu1 }
 0x267   :  { %5734 = vmatpush.bf16.msra.mxu0 %v9893_v57  ;;  %v4052_v57 = vld [vmem:[%s14415_s0 + $0x30] sm:$0xff]  ;;  %5633 = vmatpush.bf16.msra.mxu2 %v10065_v22  ;;  %14442 = vst [vmem:[#allocation23_spill] sm:$0xff] %v13932_v19 }
 0x268   :  { %v4076_v0 = vadd.f32 %v4068_v11, %v4052_v57  ;;  %5682 = vmatpush.bf16.msrb.mxu1 %v10337_v18  ;;  %v3607_v57 = vpop.f32.mrf.mxu3  ;;  %v13923_v11 = vld [vmem:[#allocation6 + $0x700] sm:$0x33]  ;;  %v9829_v18 = vor.u32 %v11499_v14, %v9828_v27 }
 0x269   :  { %5526 = vmatpush.bf16.msra.mxu3 %v9981_v43  ;;  %v13926_v43 = vadd.f32 %v3607_v57, %v13844_v56  ;;  %v5006_v15 = vunpack.c.l.b16 %v13923_v11  ;;  %v11544_v57 = vld [vmem:[#allocation6 + $0x384] sm:$0xf] }
 0x26a   :  { %v13921_v54 = vpack.c.bf16 %v4084_v17, %v4076_v0  ;;  %v10036_v0 = vld [vmem:[#allocation6 + $0x3a8] sm:$0xf]  ;;  %v11551_v17 = vld [vmem:[#allocation6 + $0x3b4] sm:$0xf0]  ;;  %v13937_v27 = vpop.f32.mrf.mxu0  ;;  %v10017_v14 = vor.u32 %v11544_v57, %v10014_v36  ;;  %v9982_v57 = vld [vmem:[#allocation6 + $0x350] sm:$0xf0] }
 0x26b   :  { %5735 = vmatpush.bf16.msra.mxu0 %v9877_v63  ;;  %v9965_v63 = vor.u32 %v11534_v32, %v9964_v39  ;;  %v9948_v32 = vld [vmem:[#allocation6 + $0x300] sm:$0xf]  ;;  %v11530_v39 = vld [vmem:[#allocation6 + $0x30c] sm:$0xf0]  ;;  %v3733_v46 = vpop.f32.mrf.mxu2  ;;  %5634 = vmatpush.bf16.msra.mxu2 %v10049_v30  ;;  %v5234_v56 = vpack.c.b16 %v5006_v15, %v5006_v15  ;;  %v11547_v30 = vld [vmem:[#allocation6 + $0x394] sm:$0xf0] }
 0x26c   :  { %5745 = vmatpush.bf16.msra.mxu1 %v10069_v25  ;;  %v9949_v22 = vor.u32 %v11530_v39, %v9948_v32  ;;  %v13930_v10 = vadd.f32 %v3733_v46, %v13797_v23  ;;  %v10033_v25 = vor.u32 %v11548_v12, %v10030_v3  ;;  %v10037_v23 = vor.u32 %v11551_v17, %v10036_v0  ;;  %v11651_v32 = vld [vmem:[#allocation6 + $0x6d4] sm:$0xf0]  ;;  %v10020_v39 = vld [vmem:[#allocation6 + $0x388] sm:$0xf]  ;;  %v11540_v46 = vld [vmem:[#allocation6 + $0x364] sm:$0xf] }
 0x26d   :  { %5527 = vmatpush.bf16.msra.mxu3 %v9965_v63  ;;  %5683 = vmatmul.bf16.vlgmr.msrb.gmra.mxu1 %v13921_v54  ;;  %14443 = vst [vmem:[#allocation24_spill] sm:$0xff] %v13937_v27  ;;  %v10437_v3 = vor.u32 %v11651_v32, %v10436_v35  ;;  %v11647_v15 = vld [vmem:[#allocation6 + $0x6b4] sm:$0xf0]  ;;  %v10004_v0 = vld [vmem:[#allocation6 + $0x368] sm:$0xf] }
 0x26e   :  { %v11543_v17 = vld [vmem:[#allocation6 + $0x374] sm:$0xf0]  ;;  %v10404_v36 = vld [vmem:[#allocation6 + $0x688] sm:$0xf]  ;;  %5571 = vmatmul.bf16.vlgmr.msrb.gmra.mxu2 %v13921_v54  ;;  %3984 = vmatmul.bf16.gmra.mxu3 %v13562_v20 }
 0x26f   :  { %5736 = vmatpush.bf16.msra.mxu0 %v9861_v21  ;;  %v10452_v21 = vld [vmem:[#allocation6 + $0x6e8] sm:$0xf]  ;;  %5635 = vmatpush.bf16.msra.mxu2 %v10033_v25  ;;  %v11539_v32 = vld [vmem:[#allocation6 + $0x354] sm:$0xf0] }
 0x270   :  { %v10453_v63 = vor.u32 %v11655_v5, %v10452_v21  ;;  %5746 = vmatpush.bf16.msra.mxu1 %v10053_v52  ;;  %v3676_v12 = vpop.f32.mrf.mxu3  ;;  %v9998_v52 = vld [vmem:[#allocation6 + $0x370] sm:$0xf0]  ;;  %v10021_v5 = vor.u32 %v11547_v30, %v10020_v39  ;;  %v9988_v35 = vld [vmem:[#allocation6 + $0x348] sm:$0xf] }
 0x271   :  { %5528 = vmatpush.bf16.msra.mxu3 %v9949_v22  ;;  %v13940_v59 = vadd.f32 %v3676_v12, %v13869_v7  ;;  %v10420_v22 = vld [vmem:[#allocation6 + $0x6a8] sm:$0xf]  ;;  %v10001_v25 = vor.u32 %v11540_v46, %v9998_v52  ;;  %v10005_v7 = vor.u32 %v11543_v17, %v10004_v0  ;;  %v11532_v12 = vld [vmem:[#allocation6 + $0x324] sm:$0xf]  ;;  %v11639_v0 = vld [vmem:[#allocation6 + $0x674] sm:$0xf0]  ;;  %v5007_v17 = vunpack.c.h.b16 %v13923_v11 }
 0x272   :  { %v13948_v46 = vld [vmem:[#allocation6 + $0x708] sm:$0x33] }
 0x273   :  { %5737 = vmatpush.bf16.msra.mxu0 %v9845_v13  ;;  %v5468_v13 = vsel %vm5466_vm0, %v5234_v56, 0  ;;  %v13942_v21 = vpop.f32.mrf.mxu2  ;;  %5636 = vmatpush.bf16.msra.mxu2 %v10017_v14  ;;  %v10421_v56 = vor.u32 %v11647_v15, %v10420_v22  ;;  %v9966_v14 = vld [vmem:[#allocation6 + $0x330] sm:$0xf0]  ;;  %v9989_v22 = vor.u32 %v11539_v32, %v9988_v35  ;;  %v10388_v15 = vld [vmem:[#allocation6 + $0x668] sm:$0xf] }
 0x274   :  { %5747 = vmatpush.bf16.msra.mxu1 %v10037_v23  ;;  %14444 = vst [vmem:[#allocation25_spill] sm:$0xff] %v13942_v21  ;;  %v11643_v23 = vld [vmem:[#allocation6 + $0x694] sm:$0xf0]  ;;  %v10389_v11 = vor.u32 %v11639_v0, %v10388_v15  ;;  %v11528_v35 = vld [vmem:[#allocation6 + $0x304] sm:$0xf] }
 0x275   :  { %5584 = vmatpush.bf16.msrb.mxu3 %v5468_v13  ;;  %v10405_v30 = vor.u32 %v11643_v23, %v10404_v36  ;;  %v9969_v36 = vor.u32 %v11532_v12, %v9966_v14  ;;  %v4057_v23 = vld [vmem:[%s14415_s0 + $0x58] sm:$0xff]  ;;  %v9950_v32 = vld [vmem:[#allocation6 + $0x310] sm:$0xf0]  ;;  %v5235_v14 = vpack.c.b16 %v5007_v17, %v5007_v17  ;;  %v9684_v15 = vld [vmem:[#allocation6 + $0xe8] sm:$0xf] }
 0x276   :  { %v11635_v12 = vld [vmem:[#allocation6 + $0x654] sm:$0xf0]  ;;  %v9953_v19 = vor.u32 %v11528_v35, %v9950_v32 }
 0x277   :  { %5738 = vmatpush.bf16.msra.mxu0 %v9829_v18  ;;  %v13945_v18 = vpop.f32.mrf.mxu1  ;;  %5637 = vmatpush.bf16.msra.mxu2 %v10001_v25  ;;  %v11463_v0 = vld [vmem:[#allocation6 + $0xf4] sm:$0xf0]  ;;  %v5471_v17 = vsel %vm5466_vm0, %v5235_v14, 0  ;;  %v11557_v14 = vld [vmem:[#allocation6 + $0x3ec] sm:$0xf] }
 0x278   :  { %14445 = vst [vmem:[#allocation26_spill] sm:$0xff] %v13945_v18  ;;  %5748 = vmatpush.bf16.msra.mxu1 %v10021_v5  ;;  %v3678_v39 = vpop.f32.mrf.mxu3  ;;  %v9685_v32 = vor.u32 %v11463_v0, %v9684_v15  ;;  %v9678_v0 = vld [vmem:[#allocation6 + $0xf0] sm:$0xf0] }
 0x279   :  { %v13953_v52 = vadd.f32 %v3678_v39, %v13883_v44  ;;  %v4049_v44 = vld [vmem:[%s14415_s0 + $0x18] sm:$0xff]  ;;  %v10372_v39 = vld [vmem:[#allocation6 + $0x648] sm:$0xf] }
 0x27a   :  { %5739 = vmatmul.bf16.vlgmr.msra.gmra.mxu0 %v13871_v28 }
 0x27b   :  { %5787 = vmatpush.bf16.msrb.mxu0 %v10453_v63  ;;  %v11536_v63 = vld [vmem:[#allocation6 + $0x344] sm:$0xf]  ;;  %v3738_v5 = vpop.f32.mrf.mxu2 }
 0x27c   :  { %v9985_v13 = vor.u32 %v11536_v63, %v9982_v57  ;;  %5749 = vmatpush.bf16.msra.mxu1 %v10005_v7  ;;  %v13957_v25 = vadd.f32 %v3738_v5, %v13834_v9  ;;  %v11535_v63 = vld [vmem:[#allocation6 + $0x334] sm:$0xf0]  ;;  %v5008_v7 = vunpack.c.l.b16 %v13948_v46  ;;  %v9956_v5 = vld [vmem:[#allocation6 + $0x308] sm:$0xf] }
 0x27d   :  { %v4065_v9 = vld [vmem:[%s14419_s4 + $0x18] sm:$0xff] }
 0x27e   :  { %5638 = vmatpush.bf16.msra.mxu2 %v9985_v13  ;;  %v4073_v27 = vadd.f32 %v4065_v9, %v4049_v44  ;;  %v5236_v18 = vpack.c.b16 %v5008_v7, %v5008_v7  ;;  %v11631_v44 = vld [vmem:[#allocation6 + $0x634] sm:$0xf0]  ;;  %v9686_v7 = vld [vmem:[#allocation6 + $0xf8] sm:$0xf0] }
 0x27f   :  { %5788 = vmatpush.bf16.msrb.mxu0 %v10437_v3  ;;  %v13950_v3 = vpop.f32.mrf.mxu0  ;;  %v13959_v57 = vpop.f32.mrf.mxu1 }
 0x280   :  { %14446 = vst [vmem:[#allocation27_spill] sm:$0xff] %v13950_v3  ;;  %5750 = vmatpush.bf16.msra.mxu1 %v9989_v22  ;;  %v4081_v3 = vadd.f32 %v4065_v9, %v4057_v23  ;;  %v3681_v55 = vpop.f32.mrf.mxu3  ;;  %v5474_v35 = vsel %vm5466_vm0, %v5236_v18, 0  ;;  %v10070_v18 = vld [vmem:[#allocation6 + $0x3f8] sm:$0xf0] }
 0x281   :  { %14447 = vst [vmem:[#allocation28_spill] sm:$0xff] %v13959_v57  ;;  %v11531_v57 = vld [vmem:[#allocation6 + $0x314] sm:$0xf0]  ;;  %v13973_v22 = vadd.f32 %v3681_v55, %v13895_v6  ;;  %v13984_v6 = vperm.slane %v13780_v50, 7  ;;  %v11460_v50 = vld [vmem:[#allocation6 + $0xe4] sm:$0xf] }
 0x282   :  { %5639 = vmatpush.bf16.msra.mxu2 %v9969_v36  ;;  %v13978_v23 = vpack.c.bf16 %v4081_v3, %v4073_v27  ;;  %v11461_v36 = vld [vmem:[#allocation6 + $0xec] sm:$0xf]  ;;  %v10340_v3 = vld [vmem:[#allocation6 + $0x608] sm:$0xf]  ;;  %v9681_v2 = vor.u32 %v11460_v50, %v9678_v0  ;;  %v9638_v50 = vld [vmem:[#allocation6 + $0x98] sm:$0xf0] }
 0x283   :  { %5789 = vmatpush.bf16.msrb.mxu0 %v10421_v56  ;;  %v9972_v56 = vld [vmem:[#allocation6 + $0x328] sm:$0xf]  ;;  %v13975_v20 = vpop.f32.mrf.mxu2  ;;  %14450 = vst [vmem:[#allocation31_spill] sm:$0xff] %v13984_v6  ;;  %v9689_v27 = vor.u32 %v11461_v36, %v9686_v7  ;;  %v10073_v36 = vor.u32 %v11557_v14, %v10070_v18  ;;  %v11453_v7 = vld [vmem:[#allocation6 + $0xac] sm:$0xf]  ;;  %v4053_v18 = vld [vmem:[%s14415_s0 + $0x38] sm:$0xff] }
 0x284   :  { %v9973_v13 = vor.u32 %v11535_v63, %v9972_v56  ;;  %14448 = vst [vmem:[#allocation29_spill] sm:$0xff] %v13975_v20  ;;  %v9957_v56 = vor.u32 %v11531_v57, %v9956_v5  ;;  %v10356_v63 = vld [vmem:[#allocation6 + $0x628] sm:$0xf]  ;;  %v9662_v20 = vld [vmem:[#allocation6 + $0xd0] sm:$0xf0]  ;;  %5529 = vmatmul.bf16.vlgmr.msra.gmra.mxu3 %v13978_v23 }
 0x285   :  { %v10357_v55 = vor.u32 %v11631_v44, %v10356_v63  ;;  %v9668_v57 = vld [vmem:[#allocation6 + $0xc8] sm:$0xf]  ;;  %v10038_v0 = vld [vmem:[#allocation6 + $0x3b8] sm:$0xf0]  ;;  %5591 = vmatpush.bf16.msra.mxu3 %v9681_v2 }
 0x286   :  { %5751 = vmatpush.bf16.msra.mxu1 %v9973_v13  ;;  %5640 = vmatpush.bf16.msra.mxu2 %v9953_v19  ;;  %v11459_v13 = vld [vmem:[#allocation6 + $0xd4] sm:$0xf0]  ;;  %v9670_v19 = vld [vmem:[#allocation6 + $0xd8] sm:$0xf0] }
 0x287   :  { %5790 = vmatpush.bf16.msrb.mxu0 %v10405_v30  ;;  %v10373_v30 = vor.u32 %v11635_v12, %v10372_v39  ;;  %v3923_v9 = vpop.f32.mrf.mxu0  ;;  %v11627_v39 = vld [vmem:[#allocation6 + $0x614] sm:$0xf0]  ;;  %v11457_v12 = vld [vmem:[#allocation6 + $0xcc] sm:$0xf]  ;;  %v9669_v5 = vor.u32 %v11459_v13, %v9668_v57  ;;  %v9654_v57 = vld [vmem:[#allocation6 + $0xb8] sm:$0xf0] }
 0x288   :  { %v10341_v15 = vor.u32 %v11627_v39, %v10340_v3  ;;  %v9673_v44 = vor.u32 %v11457_v12, %v9670_v19  ;;  %v10054_v13 = vld [vmem:[#allocation6 + $0x3d8] sm:$0xf0]  ;;  %v11456_v39 = vld [vmem:[#allocation6 + $0xc4] sm:$0xf]  ;;  %v11451_v12 = vld [vmem:[#allocation6 + $0x94] sm:$0xf0] }
 0x289   :  { %5641 = vmatmul.bf16.vlgmr.msra.gmra.mxu2 %v13978_v23  ;;  %v11449_v19 = vld [vmem:[#allocation6 + $0x8c] sm:$0xf] }
 0x28a   :  { %5696 = vmatpush.bf16.msrb.mxu2 %v5471_v17  ;;  %5752 = vmatpush.bf16.msra.mxu1 %v9957_v56  ;;  %v9652_v56 = vld [vmem:[#allocation6 + $0xa8] sm:$0xf]  ;;  %v11455_v17 = vld [vmem:[#allocation6 + $0xb4] sm:$0xf0]  ;;  %v9641_v2 = vor.u32 %v11449_v19, %v9638_v50 }
 0x28b   :  { %5791 = vmatpush.bf16.msrb.mxu0 %v10389_v11  ;;  %v13980_v11 = vpop.f32.mrf.mxu1  ;;  %v3809_v63 = vpop.f32.mrf.mxu2  ;;  %v9653_v3 = vor.u32 %v11455_v17, %v9652_v56  ;;  %v9665_v56 = vor.u32 %v11456_v39, %v9662_v20  ;;  %v11445_v20 = vld [vmem:[#allocation6 + $0x6c] sm:$0xf]  ;;  %v9622_v39 = vld [vmem:[#allocation6 + $0x78] sm:$0xf0] }
 0x28c   :  { %14449 = vst [vmem:[#allocation30_spill] sm:$0xff] %v13980_v11  ;;  %v9625_v19 = vor.u32 %v11445_v20, %v9622_v39 }
 0x28d   :  { %5753 = vmatmul.bf16.vlgmr.msra.gmra.mxu1 %v13978_v23  ;;  %5592 = vmatpush.bf16.msra.mxu3 %v9665_v56  ;;  %v10006_v56 = vld [vmem:[#allocation6 + $0x378] sm:$0xf0] }
 0x28e   :  { %5808 = vmatpush.bf16.msrb.mxu1 %v5474_v35  ;;  %5703 = vmatpush.bf16.msra.mxu2 %v9685_v32  ;;  %v3924_v35 = vadd.f32 %v3923_v9, %v13984_v6  ;;  %v13992_v32 = vadd.f32 %v3809_v63, %v13873_v51  ;;  %v9657_v51 = vor.u32 %v11453_v7, %v9654_v57  ;;  %v11452_v63 = vld [vmem:[#allocation6 + $0xa4] sm:$0xf]  ;;  %v9620_v7 = vld [vmem:[#allocation6 + $0x68] sm:$0xf] }
 0x28f   :  { %5792 = vmatpush.bf16.msrb.mxu0 %v10373_v30  ;;  %v13988_v30 = vpop.f32.mrf.mxu3  ;;  %v13996_v14 = vpop.f32.mrf.mxu0 }
 0x290   :  { %14451 = vst [vmem:[#allocation32_spill] sm:$0xff] %v13996_v14 }
 0x292   :  { %5815 = vmatpush.bf16.msra.mxu1 %v9689_v27  ;;  %5704 = vmatpush.bf16.msra.mxu2 %v9669_v5  ;;  %v9636_v27 = vld [vmem:[#allocation6 + $0x88] sm:$0xf]  ;;  %v4061_v5 = vld [vmem:[%s14415_s0 + $0x78] sm:$0xff] }
 0x293   :  { %5793 = vmatpush.bf16.msrb.mxu0 %v10357_v55  ;;  %v11553_v55 = vld [vmem:[#allocation6 + $0x3cc] sm:$0xf]  ;;  %v3942_v11 = vpop.f32.mrf.mxu1  ;;  %v9637_v17 = vor.u32 %v11451_v12, %v9636_v27  ;;  %v14012_v14 = vpop.f32.mrf.mxu2  ;;  %v10022_v12 = vld [vmem:[#allocation6 + $0x398] sm:$0xf0] }
 0x294   :  { %v13994_v33 = vadd.f32 %v3942_v11, %v3924_v35  ;;  %v10057_v9 = vor.u32 %v11553_v55, %v10054_v13  ;;  %v4069_v11 = vld [vmem:[%s14419_s4 + $0x38] sm:$0xff]  ;;  %14452 = vst [vmem:[#allocation33_spill] sm:$0xff] %v14012_v14  ;;  %v11545_v27 = vld [vmem:[#allocation6 + $0x38c] sm:$0xf]  ;;  %v11440_v14 = vld [vmem:[#allocation6 + $0x44] sm:$0xf] }
 0x295   :  { %v11447_v35 = vld [vmem:[#allocation6 + $0x74] sm:$0xf0]  ;;  %v4077_v57 = vadd.f32 %v4069_v11, %v4053_v18  ;;  %v4085_v55 = vadd.f32 %v4069_v11, %v4061_v5  ;;  %v11448_v5 = vld [vmem:[#allocation6 + $0x84] sm:$0xf]  ;;  %v10025_v50 = vor.u32 %v11545_v27, %v10022_v12  ;;  %v11437_v27 = vld [vmem:[#allocation6 + $0x2c] sm:$0xf] }
 0x296   :  { %5816 = vmatpush.bf16.msra.mxu1 %v9673_v44  ;;  %5705 = vmatpush.bf16.msra.mxu2 %v9653_v3  ;;  %v9621_v18 = vor.u32 %v11447_v35, %v9620_v7  ;;  %v11443_v11 = vld [vmem:[#allocation6 + $0x54] sm:$0xf0]  ;;  %v11444_v7 = vld [vmem:[#allocation6 + $0x64] sm:$0xf] }
 0x297   :  { %5794 = vmatpush.bf16.msrb.mxu0 %v10341_v15  ;;  %v11549_v15 = vld [vmem:[#allocation6 + $0x3ac] sm:$0xf]  ;;  %v3752_v44 = vpop.f32.mrf.mxu3 }
 0x298   :  { %v14010_v13 = vadd.f32 %v3752_v44, %v13930_v10  ;;  %v10041_v3 = vor.u32 %v11549_v15, %v10038_v0  ;;  %v14016_v10 = vpack.c.bf16 %v4085_v55, %v4077_v57  ;;  %v11441_v15 = vld [vmem:[#allocation6 + $0x4c] sm:$0xf]  ;;  %v9606_v0 = vld [vmem:[#allocation6 + $0x58] sm:$0xf0]  ;;  %v9614_v57 = vld [vmem:[#allocation6 + $0x70] sm:$0xf0] }
 0x299   :  { %v11541_v44 = vld [vmem:[#allocation6 + $0x36c] sm:$0xf]  ;;  %v9588_v55 = vld [vmem:[#allocation6 + $0x28] sm:$0xf]  ;;  %v9609_v20 = vor.u32 %v11441_v15, %v9606_v0  ;;  %v11435_v0 = vld [vmem:[#allocation6 + $0x14] sm:$0xf0] }
 0x29a   :  { %5795 = vmatmul.bf16.vlgmr.msrb.gmra.mxu0 %v13921_v54  ;;  %5817 = vmatpush.bf16.msra.mxu1 %v9657_v51  ;;  %v9630_v51 = vld [vmem:[#allocation6 + $0x90] sm:$0xf0]  ;;  %v10009_v39 = vor.u32 %v11541_v44, %v10006_v56  ;;  %v9572_v15 = vld [vmem:[#allocation6 + $0x8] sm:$0xf] }
 0x29b   :  { %5857 = vmatpush.bf16.msra.mxu0 %v10073_v36  ;;  %v9646_v36 = vld [vmem:[#allocation6 + $0xb0] sm:$0xf0]  ;;  %v14014_v21 = vpop.f32.mrf.mxu1  ;;  %5706 = vmatpush.bf16.msra.mxu2 %v9637_v17  ;;  %v3928_v17 = vpop.f32.mrf.mxu0 }
 0x29c   :  { %14453 = vst [vmem:[#allocation34_spill] sm:$0xff] %v14014_v21  ;;  %v9649_v45 = vor.u32 %v11452_v63, %v9646_v36  ;;  %10459 = vmatmul.msk.bf16.vlgmr.msrb.gmra.mxu2 %vm5462_vm1, %v14016_v10  ;;  %v9633_v63 = vor.u32 %v11448_v5, %v9630_v51  ;;  %v11537_v5 = vld [vmem:[#allocation6 + $0x34c] sm:$0xf]  ;;  %v9990_v51 = vld [vmem:[#allocation6 + $0x358] sm:$0xf0]  ;;  %10458 = vmatmul.msk.bf16.vlgmr.msrb.gmra.mxu3 %vm5462_vm1, %v14016_v10 }
 0x29d   :  { %10460 = vmatmul.msk.bf16.vlgmr.msrb.gmra.mxu1 %vm5462_vm1, %v14016_v10  ;;  %v9993_v56 = vor.u32 %v11537_v5, %v9990_v51  ;;  %v9582_v5 = vld [vmem:[#allocation6 + $0x30] sm:$0xf0] }
 0x29e   :  { %5818 = vmatpush.bf16.msra.mxu1 %v9641_v2  ;;  %5593 = vmatpush.bf16.msra.mxu3 %v9649_v45  ;;  %v11439_v2 = vld [vmem:[#allocation6 + $0x34] sm:$0xf0]  ;;  %v3929_v45 = vadd.f32 %v3928_v17, %v13984_v6  ;;  %v10196_v17 = vld [vmem:[#allocation6 + $0x4e8] sm:$0xf] }
 0x29f   :  { %5858 = vmatpush.bf16.msra.mxu0 %v10057_v9  ;;  %v9604_v9 = vld [vmem:[#allocation6 + $0x48] sm:$0xf]  ;;  %5707 = vmatpush.bf16.msra.mxu2 %v9621_v18  ;;  %v14020_v35 = vpop.f32.mrf.mxu3  ;;  %v9590_v18 = vld [vmem:[#allocation6 + $0x38] sm:$0xf0]  ;;  %v9589_v21 = vor.u32 %v11439_v2, %v9588_v55  ;;  %v9573_v55 = vor.u32 %v11435_v0, %v9572_v15  ;;  %v11589_v2 = vld [vmem:[#allocation6 + $0x4ec] sm:$0xf] }
 0x2a0   :  { %v9605_v36 = vor.u32 %v11443_v11, %v9604_v9  ;;  %v9617_v11 = vor.u32 %v11444_v7, %v9614_v57  ;;  %v9593_v44 = vor.u32 %v11437_v27, %v9590_v18  ;;  %v9974_v7 = vld [vmem:[#allocation6 + $0x338] sm:$0xf0]  ;;  %v11436_v18 = vld [vmem:[#allocation6 + $0x24] sm:$0xf]  ;;  %v11529_v0 = vld [vmem:[#allocation6 + $0x30c] sm:$0xf] }
 0x2a2   :  { %5819 = vmatpush.bf16.msra.mxu1 %v9625_v19  ;;  %5594 = vmatpush.bf16.msra.mxu3 %v9633_v63  ;;  %v9574_v63 = vld [vmem:[#allocation6 + $0x18] sm:$0xf0] }
 0x2a3   :  { %5859 = vmatpush.bf16.msra.mxu0 %v10041_v3  ;;  %v3814_v3 = vpop.f32.mrf.mxu2  ;;  %v3947_v9 = vpop.f32.mrf.mxu1  ;;  %5708 = vmatpush.bf16.msra.mxu2 %v9605_v36  ;;  %v11533_v36 = vld [vmem:[#allocation6 + $0x32c] sm:$0xf] }
 0x2a4   :  { %v14026_v12 = vadd.f32 %v3814_v3, %v13899_v58  ;;  %v14028_v19 = vadd.f32 %v3947_v9, %v3929_v45  ;;  %v11433_v58 = vld [vmem:[#allocation6 + $0xc] sm:$0xf]  ;;  %v11591_v3 = vld [vmem:[#allocation6 + $0x4f4] sm:$0xf0]  ;;  %v10198_v45 = vld [vmem:[#allocation6 + $0x4f8] sm:$0xf0] }
 0x2a5   :  { %v10197_v27 = vor.u32 %v11591_v3, %v10196_v17  ;;  %v9577_v6 = vor.u32 %v11433_v58, %v9574_v63  ;;  %v10201_v15 = vor.u32 %v11589_v2, %v10198_v45  ;;  %v9585_v17 = vor.u32 %v11436_v18, %v9582_v5  ;;  %v11585_v3 = vld [vmem:[#allocation6 + $0x4cc] sm:$0xf]  ;;  %v11588_v63 = vld [vmem:[#allocation6 + $0x4e4] sm:$0xf]  ;;  %v10164_v2 = vld [vmem:[#allocation6 + $0x4a8] sm:$0xf] }
 0x2a6   :  { %5820 = vmatpush.bf16.msra.mxu1 %v9609_v20  ;;  %5595 = vmatpush.bf16.msra.mxu3 %v9617_v11  ;;  %v5009_v20 = vunpack.c.h.b16 %v13948_v46  ;;  %v9977_v11 = vor.u32 %v11533_v36, %v9974_v7  ;;  %v9958_v46 = vld [vmem:[#allocation6 + $0x318] sm:$0xf0]  ;;  %v10190_v36 = vld [vmem:[#allocation6 + $0x4f0] sm:$0xf0]  ;;  %v11583_v45 = vld [vmem:[#allocation6 + $0x4b4] sm:$0xf0] }
 0x2a7   :  { %5860 = vmatpush.bf16.msra.mxu0 %v10025_v50  ;;  %v9598_v50 = vld [vmem:[#allocation6 + $0x50] sm:$0xf0]  ;;  %5709 = vmatpush.bf16.msra.mxu2 %v9589_v21  ;;  %v10180_v21 = vld [vmem:[#allocation6 + $0x4c8] sm:$0xf]  ;;  %v9961_v58 = vor.u32 %v11529_v0, %v9958_v46  ;;  %v11579_v0 = vld [vmem:[#allocation6 + $0x494] sm:$0xf0] }
 0x2a8   :  { %v9601_v57 = vor.u32 %v11440_v14, %v9598_v50  ;;  %v11587_v14 = vld [vmem:[#allocation6 + $0x4d4] sm:$0xf0]  ;;  %v14038_v50 = vpop.permute.xlu0 %4001 }
 0x2a9   :  { %v4022_v46 = vmul.f32 %v14038_v50, %v13736_v4 }
 0x2aa   :  { %5821 = vmatpush.bf16.msra.mxu1 %v9593_v44  ;;  %5596 = vmatpush.bf16.msra.mxu3 %v9601_v57  ;;  %v10182_v44 = vld [vmem:[#allocation6 + $0x4d8] sm:$0xf0] }
 0x2ab   :  { %5861 = vmatpush.bf16.msra.mxu0 %v10009_v39  ;;  %v3757_v39 = vpop.f32.mrf.mxu3  ;;  %v14036_v9 = vpop.f32.mrf.mxu2  ;;  %5710 = vmatpush.bf16.msra.mxu2 %v9573_v55  ;;  %v10185_v7 = vor.u32 %v11585_v3, %v10182_v44  ;;  %v10150_v3 = vld [vmem:[#allocation6 + $0x498] sm:$0xf0] }
 0x2ac   :  { %v14034_v51 = vadd.f32 %v3757_v39, %v13957_v25  ;;  %v10181_v25 = vor.u32 %v11587_v14, %v10180_v21  ;;  %v11432_v39 = vld [vmem:[#allocation6 + $0x4] sm:$0xf]  ;;  %v10174_v14 = vld [vmem:[#allocation6 + $0x4d0] sm:$0xf0] }
 0x2ad   :  { %v11584_v21 = vld [vmem:[#allocation6 + $0x4c4] sm:$0xf] }
 0x2ae   :  { %14454 = vst [vmem:[#allocation35_spill] sm:$0xff] %v14034_v51  ;;  %v9566_v51 = vld [vmem:[#allocation6 + $0x10] sm:$0xf0]  ;;  %5822 = vmatpush.bf16.msra.mxu1 %v9577_v6  ;;  %5711 = vmatmul.bf16.vlgmr.msra.gmra.mxu2 %v13729_v42  ;;  %v10193_v6 = vor.u32 %v11588_v63, %v10190_v36  ;;  %v10132_v36 = vld [vmem:[#allocation6 + $0x468] sm:$0xf] }
 0x2af   :  { %5862 = vmatpush.bf16.msra.mxu0 %v9993_v56  ;;  %v5237_v56 = vpack.c.b16 %v5009_v20, %v5009_v20  ;;  %5759 = vmatpush.bf16.msrb.mxu2 %v10197_v27  ;;  %v9569_v57 = vor.u32 %v11432_v39, %v9566_v51  ;;  %v11581_v20 = vld [vmem:[#allocation6 + $0x4ac] sm:$0xf]  ;;  %v10166_v27 = vld [vmem:[#allocation6 + $0x4b8] sm:$0xf0]  ;;  %v10148_v51 = vld [vmem:[#allocation6 + $0x488] sm:$0xf] }
 0x2b0   :  { %5597 = vmatpush.bf16.msra.mxu3 %v9585_v17  ;;  %v11577_v17 = vld [vmem:[#allocation6 + $0x48c] sm:$0xf]  ;;  %v14049_v44 = vpop.permute.xlu0 %3996  ;;  %v11580_v39 = vld [vmem:[#allocation6 + $0x4a4] sm:$0xf] }
 0x2b1   :  { %v5477_v55 = vsel %vm5466_vm0, %v5237_v56, 0  ;;  %5823 = vmatmul.bf16.vlgmr.msra.gmra.mxu1 %v13729_v42  ;;  %v10177_v56 = vor.u32 %v11584_v21, %v10174_v14  ;;  %v10153_v63 = vor.u32 %v11577_v17, %v10150_v3  ;;  %v4014_v4 = vmul.f32 %v14049_v44, %v13720_v31  ;;  %v14060_v21 = vpop.permute.xlu1 %4011  ;;  %v10116_v31 = vld [vmem:[#allocation6 + $0x448] sm:$0xf]  ;;  %v11571_v14 = vld [vmem:[#allocation6 + $0x454] sm:$0xf0] }
 0x2b2   :  { %5871 = vmatpush.bf16.msrb.mxu1 %v10201_v15  ;;  %v10169_v15 = vor.u32 %v11581_v20, %v10166_v27  ;;  %v10126_v17 = vld [vmem:[#allocation6 + $0x470] sm:$0xf0] }
 0x2b3   :  { %5863 = vmatpush.bf16.msra.mxu0 %v9977_v11  ;;  %v14042_v18 = vpop.f32.mrf.mxu3  ;;  %5760 = vmatpush.bf16.msrb.mxu2 %v10181_v25  ;;  %v14045_v5 = vpop.f32.mrf.mxu2  ;;  %v10165_v11 = vor.u32 %v11583_v45, %v10164_v2  ;;  %v10149_v25 = vor.u32 %v11579_v0, %v10148_v51  ;;  %v11573_v2 = vld [vmem:[#allocation6 + $0x46c] sm:$0xf]  ;;  %v10134_v45 = vld [vmem:[#allocation6 + $0x478] sm:$0xf0] }
 0x2b4   :  { %5598 = vmatpush.bf16.msra.mxu3 %v9569_v57  ;;  %v10118_v51 = vld [vmem:[#allocation6 + $0x458] sm:$0xf0] }
 0x2b6   :  { %5872 = vmatpush.bf16.msrb.mxu1 %v10185_v7  ;;  %v11575_v7 = vld [vmem:[#allocation6 + $0x474] sm:$0xf0] }
 0x2b7   :  { %5864 = vmatpush.bf16.msra.mxu0 %v9961_v58  ;;  %5761 = vmatpush.bf16.msrb.mxu2 %v10165_v11  ;;  %v10158_v58 = vld [vmem:[#allocation6 + $0x4b0] sm:$0xf0]  ;;  %v10133_v27 = vor.u32 %v11575_v7, %v10132_v36 }
 0x2b8   :  { %5647 = vmatpush.bf16.msrb.mxu3 %v10193_v6  ;;  %v11576_v6 = vld [vmem:[#allocation6 + $0x484] sm:$0xf]  ;;  %v10142_v11 = vld [vmem:[#allocation6 + $0x490] sm:$0xf0] }
 0x2b9   :  { %5599 = vmatmul.bf16.vlgmr.msra.gmra.mxu3 %v13729_v42  ;;  %v10137_v42 = vor.u32 %v11573_v2, %v10134_v45  ;;  %v10145_v0 = vor.u32 %v11576_v6, %v10142_v11  ;;  %v11568_v2 = vld [vmem:[#allocation6 + $0x444] sm:$0xf]  ;;  %v10110_v45 = vld [vmem:[#allocation6 + $0x450] sm:$0xf0]  ;;  %v11561_v6 = vld [vmem:[#allocation6 + $0x40c] sm:$0xf]  ;;  %v4038_v11 = vmul.f32 %v14060_v21, %v13790_v49 }
 0x2ba   :  { %5865 = vmatmul.bf16.vlgmr.msra.gmra.mxu0 %v13978_v23  ;;  %5873 = vmatpush.bf16.msrb.mxu1 %v10169_v15  ;;  %v10161_v23 = vor.u32 %v11580_v39, %v10158_v58  ;;  %v11569_v15 = vld [vmem:[#allocation6 + $0x44c] sm:$0xf]  ;;  %v10102_v58 = vld [vmem:[#allocation6 + $0x438] sm:$0xf0] }
 0x2bb   :  { %5920 = vmatpush.bf16.msrb.mxu0 %v5477_v55  ;;  %v3828_v57 = vpop.f32.mrf.mxu3  ;;  %5762 = vmatpush.bf16.msrb.mxu2 %v10149_v25  ;;  %v14058_v20 = vpop.f32.mrf.mxu2  ;;  %v10121_v3 = vor.u32 %v11569_v15, %v10118_v51  ;;  %v11567_v25 = vld [vmem:[#allocation6 + $0x434] sm:$0xf0]  ;;  %v11565_v39 = vld [vmem:[#allocation6 + $0x42c] sm:$0xf]  ;;  %v10113_v51 = vor.u32 %v11568_v2, %v10110_v45  ;;  %v11560_v2 = vld [vmem:[#allocation6 + $0x404] sm:$0xf] }
 0x2bc   :  { %5648 = vmatpush.bf16.msrb.mxu3 %v10177_v56  ;;  %v14056_v55 = vadd.f32 %v3828_v57, %v13992_v32  ;;  %v11572_v32 = vld [vmem:[#allocation6 + $0x464] sm:$0xf]  ;;  %v10100_v56 = vld [vmem:[#allocation6 + $0x428] sm:$0xf]  ;;  %v10105_v57 = vor.u32 %v11565_v39, %v10102_v58  ;;  %v14068_v15 = vpop.permute.xlu1 %4006  ;;  %v10078_v45 = vld [vmem:[#allocation6 + $0x410] sm:$0xf0] }
 0x2bd   :  { %v4030_v49 = vmul.f32 %v14068_v15, %v13757_v60 }
 0x2be   :  { %5874 = vmatpush.bf16.msrb.mxu1 %v10153_v63  ;;  %v10129_v63 = vor.u32 %v11572_v32, %v10126_v17  ;;  %v10094_v32 = vld [vmem:[#allocation6 + $0x430] sm:$0xf0] }
 0x2bf   :  { %6172 = vmatpush.xpose.msra.mxu0 %v4022_v46  ;;  %5763 = vmatpush.bf16.msrb.mxu2 %v10133_v27  ;;  %v10117_v46 = vor.u32 %v11571_v14, %v10116_v31  ;;  %v11563_v27 = vld [vmem:[#allocation6 + $0x414] sm:$0xf0]  ;;  %v11493_v31 = vld [vmem:[#allocation6 + $0x1ec] sm:$0xf]  ;;  %v9814_v14 = vld [vmem:[#allocation6 + $0x1f8] sm:$0xf0] }
 0x2c0   :  { %5649 = vmatpush.bf16.msrb.mxu3 %v10161_v23  ;;  %v10084_v23 = vld [vmem:[#allocation6 + $0x408] sm:$0xf] }
 0x2c2   :  { %5875 = vmatpush.bf16.msrb.mxu1 %v10137_v42  ;;  %v10086_v42 = vld [vmem:[#allocation6 + $0x418] sm:$0xf0] }
 0x2c3   :  { %6173 = vmatpush.xpose.msra.mxu0 %v4014_v4  ;;  %v14062_v36 = vpop.f32.mrf.mxu3  ;;  %5764 = vmatpush.bf16.msrb.mxu2 %v10117_v46  ;;  %v14064_v7 = vpop.f32.mrf.mxu2  ;;  %v10101_v4 = vor.u32 %v11567_v25, %v10100_v56  ;;  %v11564_v46 = vld [vmem:[#allocation6 + $0x424] sm:$0xf]  ;;  %v10089_v17 = vor.u32 %v11561_v6, %v10086_v42  ;;  %v11489_v56 = vld [vmem:[#allocation6 + $0x1cc] sm:$0xf]  ;;  %v9798_v25 = vld [vmem:[#allocation6 + $0x1d8] sm:$0xf0]  ;;  %v4039_v42 = vmul.f32 %v14060_v21, %v13864_v62 }
 0x2c4   :  { %5650 = vmatpush.bf16.msrb.mxu3 %v10145_v0  ;;  %v10085_v0 = vor.u32 %v11563_v27, %v10084_v23  ;;  %v10097_v58 = vor.u32 %v11564_v46, %v10094_v32  ;;  %v9801_v60 = vor.u32 %v11489_v56, %v9798_v25  ;;  %v11495_v23 = vld [vmem:[#allocation6 + $0x1f4] sm:$0xf0]  ;;  %v11485_v27 = vld [vmem:[#allocation6 + $0x1ac] sm:$0xf]  ;;  %v9782_v6 = vld [vmem:[#allocation6 + $0x1b8] sm:$0xf0] }
 0x2c5   :  { %v9766_v46 = vld [vmem:[#allocation6 + $0x198] sm:$0xf0]  ;;  %v9780_v56 = vld [vmem:[#allocation6 + $0x1a8] sm:$0xf]  ;;  %v11487_v25 = vld [vmem:[#allocation6 + $0x1b4] sm:$0xf0] }
 0x2c6   :  { %5876 = vmatpush.bf16.msrb.mxu1 %v10121_v3  ;;  %v9817_v3 = vor.u32 %v11493_v31, %v9814_v14  ;;  %v9785_v31 = vor.u32 %v11485_v27, %v9782_v6  ;;  %v9796_v14 = vld [vmem:[#allocation6 + $0x1c8] sm:$0xf] }
 0x2c7   :  { %5765 = vmatpush.bf16.msrb.mxu2 %v10101_v4 }
 0x2c8   :  { %5651 = vmatpush.bf16.msrb.mxu3 %v10129_v63 }
 0x2ca   :  { %10461 = vmatmul.msk.bf16.vlgmr.msrb.gmra.mxu0 %vm5462_vm1, %v14016_v10  ;;  %5877 = vmatpush.bf16.msrb.mxu1 %v10105_v57  ;;  %v4023_v10 = vmul.f32 %v14038_v50, %v13827_v61  ;;  %v9812_v57 = vld [vmem:[#allocation6 + $0x1e8] sm:$0xf]  ;;  %v4015_v61 = vmul.f32 %v14049_v44, %v13804_v16 }
 0x2cb   :  { %6252 = vmatpush.xpose.msrb.mxu0 %v4038_v11  ;;  %v3833_v39 = vpop.f32.mrf.mxu3  ;;  %5766 = vmatpush.bf16.msrb.mxu2 %v10085_v0  ;;  %v14079_v4 = vpop.f32.mrf.mxu2  ;;  %v10081_v11 = vor.u32 %v11560_v2, %v10078_v45  ;;  %v11481_v0 = vld [vmem:[#allocation6 + $0x18c] sm:$0xf]  ;;  %v9764_v45 = vld [vmem:[#allocation6 + $0x188] sm:$0xf] }
 0x2cc   :  { %5652 = vmatpush.bf16.msrb.mxu3 %v10113_v51  ;;  %v14077_v63 = vadd.f32 %v3833_v39, %v14026_v12  ;;  %v9813_v12 = vor.u32 %v11495_v23, %v9812_v57  ;;  %v11491_v51 = vld [vmem:[#allocation6 + $0x1d4] sm:$0xf0]  ;;  %v11477_v39 = vld [vmem:[#allocation6 + $0x16c] sm:$0xf] }
 0x2cd   :  { %v9797_v16 = vor.u32 %v11491_v51, %v9796_v14  ;;  %v11473_v57 = vld [vmem:[#allocation6 + $0x14c] sm:$0xf]  ;;  %v9732_v14 = vld [vmem:[#allocation6 + $0x148] sm:$0xf]  ;;  %v11475_v51 = vld [vmem:[#allocation6 + $0x154] sm:$0xf0] }
 0x2ce   :  { %5878 = vmatpush.bf16.msrb.mxu1 %v10089_v17  ;;  %5767 = vmatmul.bf16.vlgmr.msrb.gmra.mxu2 %v13775_v37 }
 0x2cf   :  { %6253 = vmatpush.xpose.msrb.mxu0 %v4030_v49  ;;  %5829 = vmatpush.bf16.msra.mxu2 %v9817_v3  ;;  %v4031_v3 = vmul.f32 %v14068_v15, %v13841_v34  ;;  %v9769_v49 = vor.u32 %v11481_v0, %v9766_v46  ;;  %v9734_v34 = vld [vmem:[#allocation6 + $0x158] sm:$0xf0]  ;;  %v11465_v0 = vld [vmem:[#allocation6 + $0x10c] sm:$0xf] }
 0x2d0   :  { %5653 = vmatpush.bf16.msrb.mxu3 %v10097_v58  ;;  %v9750_v58 = vld [vmem:[#allocation6 + $0x178] sm:$0xf0]  ;;  %v9737_v6 = vor.u32 %v11473_v57, %v9734_v34  ;;  %v9700_v34 = vld [vmem:[#allocation6 + $0x108] sm:$0xf] }
 0x2d1   :  { %5879 = vmatmul.bf16.vlgmr.msrb.gmra.mxu1 %v13775_v37  ;;  %v9753_v2 = vor.u32 %v11477_v39, %v9750_v58  ;;  %v9702_v46 = vld [vmem:[#allocation6 + $0x118] sm:$0xf0]  ;;  %v9716_v58 = vld [vmem:[#allocation6 + $0x128] sm:$0xf] }
 0x2d2   :  { %6192 = vmatpush.xpose.msra.mxu1 %v4023_v10  ;;  %v9781_v10 = vor.u32 %v11487_v25, %v9780_v56  ;;  %v9733_v56 = vor.u32 %v11475_v51, %v9732_v14  ;;  %v9705_v39 = vor.u32 %v11465_v0, %v9702_v46  ;;  %v10308_v51 = vld [vmem:[#allocation6 + $0x5c8] sm:$0xf]  ;;  %v11619_v0 = vld [vmem:[#allocation6 + $0x5d4] sm:$0xf0]  ;;  %v11609_v46 = vld [vmem:[#allocation6 + $0x58c] sm:$0xf] }
 0x2d3   :  { %5830 = vmatpush.bf16.msra.mxu2 %v9801_v60  ;;  %v14087_v32 = vpop.f32.mrf.mxu3  ;;  %v3961_v17 = vpop.f32.mrf.mxu2  ;;  %v11483_v60 = vld [vmem:[#allocation6 + $0x194] sm:$0xf0] }
 0x2d4   :  { %5654 = vmatpush.bf16.msrb.mxu3 %v10081_v11  ;;  %v14092_v62 = vadd.f32 %v3961_v17, %v13994_v33  ;;  %v9765_v27 = vor.u32 %v11483_v60, %v9764_v45  ;;  %v11479_v11 = vld [vmem:[#allocation6 + $0x174] sm:$0xf0]  ;;  %v11617_v45 = vld [vmem:[#allocation6 + $0x5cc] sm:$0xf]  ;;  %v10310_v60 = vld [vmem:[#allocation6 + $0x5d8] sm:$0xf0] }
 0x2d6   :  { %6193 = vmatpush.xpose.msra.mxu1 %v4015_v61  ;;  %v11469_v61 = vld [vmem:[#allocation6 + $0x12c] sm:$0xf] }
 0x2d7   :  { %5831 = vmatpush.bf16.msra.mxu2 %v9785_v31  ;;  %5655 = vmatmul.bf16.vlgmr.msrb.gmra.mxu3 %v13775_v37  ;;  %v9748_v37 = vld [vmem:[#allocation6 + $0x168] sm:$0xf] }
 0x2d8   :  { %5717 = vmatpush.bf16.msra.mxu3 %v9813_v12  ;;  %v9718_v12 = vld [vmem:[#allocation6 + $0x138] sm:$0xf0] }
 0x2d9   :  { %v9721_v31 = vor.u32 %v11469_v61, %v9718_v12  ;;  %v11613_v12 = vld [vmem:[#allocation6 + $0x5ac] sm:$0xf] }
 0x2da   :  { %6272 = vmatpush.xpose.msrb.mxu1 %v4039_v42  ;;  %v9749_v42 = vor.u32 %v11479_v11, %v9748_v37  ;;  %v10324_v37 = vld [vmem:[#allocation6 + $0x5e8] sm:$0xf]  ;;  %v11623_v11 = vld [vmem:[#allocation6 + $0x5f4] sm:$0xf0] }
 0x2db   :  { %5832 = vmatpush.bf16.msra.mxu2 %v9769_v49  ;;  %v14095_v23 = vpop.f32.mrf.mxu3  ;;  %v14097_v33 = vpop.f32.mrf.mxu2 }
 0x2dc   :  { %5718 = vmatpush.bf16.msra.mxu3 %v9797_v16  ;;  %v11621_v16 = vld [vmem:[#allocation6 + $0x5ec] sm:$0xf] }
 0x2de   :  { %6273 = vmatpush.xpose.msrb.mxu1 %v4031_v3  ;;  %v10326_v3 = vld [vmem:[#allocation6 + $0x5f8] sm:$0xf0] }
 0x2df   :  { %5833 = vmatpush.bf16.msra.mxu2 %v9753_v2  ;;  %v10329_v2 = vor.u32 %v11621_v16, %v10326_v3  ;;  %v10278_v16 = vld [vmem:[#allocation6 + $0x598] sm:$0xf0]  ;;  %v10309_v3 = vor.u32 %v11619_v0, %v10308_v51 }
 0x2e0   :  { %5719 = vmatpush.bf16.msra.mxu3 %v9781_v10  ;;  %v11471_v10 = vld [vmem:[#allocation6 + $0x134] sm:$0xf0] }
 0x2e1   :  { %v9717_v57 = vor.u32 %v11471_v10, %v9716_v58  ;;  %v11605_v10 = vld [vmem:[#allocation6 + $0x56c] sm:$0xf] }
 0x2e3   :  { %5834 = vmatpush.bf16.msra.mxu2 %v9737_v6  ;;  %v14099_v17 = vpop.f32.mrf.mxu3  ;;  %v3966_v49 = vpop.f32.mrf.mxu2  ;;  %v10313_v6 = vor.u32 %v11617_v45, %v10310_v60 }
 0x2e4   :  { %5720 = vmatpush.bf16.msra.mxu3 %v9765_v27  ;;  %v14102_v25 = vadd.f32 %v3966_v49, %v14028_v19  ;;  %v11467_v27 = vld [vmem:[#allocation6 + $0x114] sm:$0xf0]  ;;  %v10294_v19 = vld [vmem:[#allocation6 + $0x5b8] sm:$0xf0]  ;;  %v10281_v49 = vor.u32 %v11609_v46, %v10278_v16  ;;  %v10244_v46 = vld [vmem:[#allocation6 + $0x548] sm:$0xf] }
 0x2e5   :  { %v10297_v14 = vor.u32 %v11613_v12, %v10294_v19  ;;  %v10260_v12 = vld [vmem:[#allocation6 + $0x568] sm:$0xf]  ;;  %v11607_v19 = vld [vmem:[#allocation6 + $0x574] sm:$0xf0] }
 0x2e6   :  { %v11603_v16 = vld [vmem:[#allocation6 + $0x554] sm:$0xf0] }
 0x2e7   :  { %5835 = vmatpush.bf16.msra.mxu2 %v9721_v31  ;;  %v10325_v31 = vor.u32 %v11623_v11, %v10324_v37 }
 0x2e8   :  { %5721 = vmatpush.bf16.msra.mxu3 %v9749_v42  ;;  %v9701_v42 = vor.u32 %v11467_v27, %v9700_v34  ;;  %v11611_v34 = vld [vmem:[#allocation6 + $0x594] sm:$0xf0]  ;;  %v11601_v27 = vld [vmem:[#allocation6 + $0x54c] sm:$0xf] }
 0x2eb   :  { %5836 = vmatpush.bf16.msra.mxu2 %v9705_v39  ;;  %v14104_v61 = vpop.f32.mrf.mxu3  ;;  %v11615_v39 = vld [vmem:[#allocation6 + $0x5b4] sm:$0xf0] }
 0x2ec   :  { %5722 = vmatpush.bf16.msra.mxu3 %v9733_v56  ;;  %v10292_v56 = vld [vmem:[#allocation6 + $0x5a8] sm:$0xf] }
 0x2ed   :  { %v10293_v45 = vor.u32 %v11615_v39, %v10292_v56  ;;  %v10245_v56 = vor.u32 %v11603_v16, %v10244_v46  ;;  %v14113_v39 = vpop.f32.mrf.mxu0  ;;  %v11521_v46 = vld [vmem:[#allocation6 + $0x2cc] sm:$0xf]  ;;  %v9926_v16 = vld [vmem:[#allocation6 + $0x2d8] sm:$0xf0] }
 0x2ee   :  { %5837 = vmatmul.bf16.vlgmr.msra.gmra.mxu2 %v13795_v48 }
 0x2ef   :  { %5885 = vmatpush.bf16.msrb.mxu2 %v10329_v2  ;;  %v10262_v2 = vld [vmem:[#allocation6 + $0x578] sm:$0xf0] }
 0x2f0   :  { %5723 = vmatpush.bf16.msra.mxu3 %v9717_v57  ;;  %v10265_v60 = vor.u32 %v11605_v10, %v10262_v2  ;;  %v10276_v57 = vld [vmem:[#allocation6 + $0x588] sm:$0xf] }
 0x2f1   :  { %v10277_v37 = vor.u32 %v11611_v34, %v10276_v57  ;;  %v10228_v2 = vld [vmem:[#allocation6 + $0x528] sm:$0xf]  ;;  %v14119_v34 = vpop.f32.mrf.mxu1 }
 0x2f2   :  { %14456 = vst [vmem:[#allocation37_spill] sm:$0xff] %v14119_v34 }
 0x2f3   :  { %5886 = vmatpush.bf16.msrb.mxu2 %v10313_v6  ;;  %v14107_v58 = vpop.f32.mrf.mxu3  ;;  %v10246_v6 = vld [vmem:[#allocation6 + $0x558] sm:$0xf0] }
 0x2f4   :  { %5724 = vmatpush.bf16.msra.mxu3 %v9701_v42  ;;  %v10249_v11 = vor.u32 %v11601_v27, %v10246_v6  ;;  %v10212_v27 = vld [vmem:[#allocation6 + $0x508] sm:$0xf]  ;;  %v11595_v6 = vld [vmem:[#allocation6 + $0x514] sm:$0xf0] }
 0x2f7   :  { %5887 = vmatpush.bf16.msrb.mxu2 %v10297_v14  ;;  %5725 = vmatmul.bf16.vlgmr.msra.gmra.mxu3 %v13795_v48  ;;  %v10230_v14 = vld [vmem:[#allocation6 + $0x538] sm:$0xf0]  ;;  %v10261_v48 = vor.u32 %v11607_v19, %v10260_v12  ;;  %v4016_v12 = vmul.f32 %v14049_v44, %v13880_v38  ;;  %v10213_v19 = vor.u32 %v11595_v6, %v10212_v27  ;;  %v11513_v6 = vld [vmem:[#allocation6 + $0x28c] sm:$0xf] }
 0x2f8   :  { %5773 = vmatpush.bf16.msrb.mxu3 %v10325_v31  ;;  %v11597_v31 = vld [vmem:[#allocation6 + $0x52c] sm:$0xf] }
 0x2f9   :  { %v10233_v0 = vor.u32 %v11597_v31, %v10230_v14  ;;  %v5488_v14 = vpop.f32.mrf.mxu0 }
 0x2fb   :  { %5888 = vmatpush.bf16.msrb.mxu2 %v10281_v49  ;;  %v3980_v42 = vpop.f32.mrf.mxu3  ;;  %v10214_v49 = vld [vmem:[#allocation6 + $0x518] sm:$0xf0] }
 0x2fc   :  { %5774 = vmatpush.bf16.msrb.mxu3 %v10309_v3  ;;  %v14111_v51 = vadd.f32 %v3980_v42, %v14092_v62  ;;  %v11593_v3 = vld [vmem:[#allocation6 + $0x50c] sm:$0xf]  ;;  %v4024_v62 = vmul.f32 %v14038_v50, %v13890_v24  ;;  %v4040_v24 = vmul.f32 %v14060_v21, %v13926_v43  ;;  %v14126_v42 = vpop.f32.mrf.mxu2  ;;  %v4032_v43 = vmul.f32 %v14068_v15, %v13903_v1 }
 0x2fd   :  { %v10217_v10 = vor.u32 %v11593_v3, %v10214_v49  ;;  %14457 = vst [vmem:[#allocation38_spill] sm:$0xff] %v14126_v42  ;;  %v5502_v49 = vpop.f32.mrf.mxu1  ;;  %v10422_v42 = vld [vmem:[#allocation6 + $0x6b8] sm:$0xf0] }
 0x2fe   :  { %14455 = vst [vmem:[#allocation36_spill] sm:$0xff] %v14111_v51  ;;  %v10438_v51 = vld [vmem:[#allocation6 + $0x6d8] sm:$0xf0] }
 0x2ff   :  { %5889 = vmatpush.bf16.msrb.mxu2 %v10265_v60 }
 0x300   :  { %5775 = vmatpush.bf16.msrb.mxu3 %v10293_v45  ;;  %v11599_v45 = vld [vmem:[#allocation6 + $0x534] sm:$0xf0] }
 0x301   :  { %v10229_v57 = vor.u32 %v11599_v45, %v10228_v2  ;;  %v11517_v2 = vld [vmem:[#allocation6 + $0x2ac] sm:$0xf]  ;;  %v9910_v45 = vld [vmem:[#allocation6 + $0x2b8] sm:$0xf0] }
 0x303   :  { %5890 = vmatpush.bf16.msrb.mxu2 %v10249_v11  ;;  %v14115_v60 = vpop.f32.mrf.mxu3  ;;  %v9942_v11 = vld [vmem:[#allocation6 + $0x2f8] sm:$0xf0] }
 0x304   :  { %5776 = vmatpush.bf16.msrb.mxu3 %v10277_v37  ;;  %v11525_v37 = vld [vmem:[#allocation6 + $0x2ec] sm:$0xf] }
 0x305   :  { %v9945_v31 = vor.u32 %v11525_v37, %v9942_v11  ;;  %v9894_v37 = vld [vmem:[#allocation6 + $0x298] sm:$0xf0]  ;;  %v5490_v11 = vpop.f32.mrf.mxu0 }
 0x306   :  { %v9897_v1 = vor.u32 %v11513_v6, %v9894_v37  ;;  %v11985_v6 = vmov 8.0  }
 0x307   :  { %5891 = vmatpush.bf16.msrb.mxu2 %v10233_v0  ;;  %v14131_v0 = vld [vmem:[%s14425_s10] sm:$0x77]  ;;  %11799 = vrcp.f32 %v11985_v6  ;;  %v11649_v6 = vld [vmem:[#allocation6 + $0x6cc] sm:$0xf] }
 0x308   :  { %5777 = vmatpush.bf16.msrb.mxu3 %v10261_v48  ;;  %v4320_v38 = vperm.slane %v14131_v0, 1 }
 0x30b   :  { %5892 = vmatpush.bf16.msrb.mxu2 %v10217_v10  ;;  %v3985_v48 = vpop.f32.mrf.mxu3  ;;  %v4328_v10 = vperm.slane %v4320_v38, 1 }
 0x30c   :  { %5778 = vmatpush.bf16.msrb.mxu3 %v10245_v56  ;;  %v14135_v3 = vadd.f32 %v3985_v48, %v14102_v25  ;;  %v9929_v56 = vor.u32 %v11521_v46, %v9926_v16  ;;  %v11505_v46 = vld [vmem:[#allocation6 + $0x24c] sm:$0xf]  ;;  %v9862_v16 = vld [vmem:[#allocation6 + $0x258] sm:$0xf0] }
 0x30d   :  { %v5489_v27 = vadd.f32 %v5488_v14, %v4328_v10  ;;  %v5544_v14 = vpop.f32.mrf.mxu0 }
 0x30e   :  { %5893 = vmatmul.bf16.vlgmr.msrb.gmra.mxu2 %v13832_v41  ;;  %14458 = vst [vmem:[#allocation39_spill] sm:$0xff] %v14135_v3 }
 0x30f   :  { %6212 = vmatpush.xpose.msra.mxu2 %v4024_v62  ;;  %v5516_v62 = vpop.f32.mrf.mxu2 }
 0x310   :  { %5779 = vmatpush.bf16.msrb.mxu3 %v10229_v57  ;;  %v9913_v57 = vor.u32 %v11517_v2, %v9910_v45  ;;  %v9865_v2 = vor.u32 %v11505_v46, %v9862_v16 }
 0x313   :  { %6213 = vmatpush.xpose.msra.mxu2 %v4016_v12  ;;  %v14140_v25 = vpop.f32.mrf.mxu3  ;;  %v5503_v12 = vadd.f32 %v5502_v49, %v5489_v27 }
 0x314   :  { %5780 = vmatpush.bf16.msrb.mxu3 %v10213_v19  ;;  %14459 = vst [vmem:[#allocation40_spill] sm:$0xff] %v14140_v25  ;;  %v11509_v19 = vld [vmem:[#allocation6 + $0x26c] sm:$0xf] }
 0x315   :  { %v5517_v38 = vadd.f32 %v5516_v62, %v5503_v12  ;;  %v11501_v25 = vld [vmem:[#allocation6 + $0x22c] sm:$0xf]  ;;  %v5546_v16 = vpop.f32.mrf.mxu0 }
 0x316   :  { %v11497_v62 = vld [vmem:[#allocation6 + $0x20c] sm:$0xf] }
 0x317   :  { %6292 = vmatpush.xpose.msrb.mxu2 %v4040_v24  ;;  %5781 = vmatmul.bf16.vlgmr.msrb.gmra.mxu3 %v13832_v41  ;;  %v9878_v24 = vld [vmem:[#allocation6 + $0x278] sm:$0xf0]  ;;  %v5491_v41 = vadd.f32 %v5490_v11, %v4328_v10  ;;  %v11653_v12 = vld [vmem:[#allocation6 + $0x6ec] sm:$0xf] }
 0x318   :  { %5843 = vmatpush.bf16.msra.mxu3 %v9945_v31  ;;  %v5504_v31 = vpop.f32.mrf.mxu1  ;;  %v9881_v48 = vor.u32 %v11509_v19, %v9878_v24  ;;  %v9830_v10 = vld [vmem:[#allocation6 + $0x218] sm:$0xf0]  ;;  %v11800_v24 = vpop.eup %11799 }
 0x319   :  { %v5505_v45 = vadd.f32 %v5504_v31, %v5491_v41  ;;  %v10454_v19 = vld [vmem:[#allocation6 + $0x6f8] sm:$0xf0]  ;;  %v9833_v46 = vor.u32 %v11497_v62, %v9830_v10  ;;  %v11641_v10 = vld [vmem:[#allocation6 + $0x68c] sm:$0xf]  ;;  %vm5980_vm2 = vweird.f32 %v11800_v24 }
 0x31a   :  { %v10457_v41 = vor.u32 %v11653_v12, %v10454_v19 }
 0x31b   :  { %6293 = vmatpush.xpose.msrb.mxu2 %v4032_v43  ;;  %v5518_v43 = vpop.f32.mrf.mxu2 }
 0x31c   :  { %5844 = vmatpush.bf16.msra.mxu3 %v9929_v56  ;;  %v5530_v56 = vpop.f32.mrf.mxu3  ;;  %v5519_v37 = vadd.f32 %v5518_v43, %v5505_v45 }
 0x31d   :  { %v5531_v3 = vadd.f32 %v5530_v56, %v5517_v38  ;;  %v5976_v56 = vmul.f32 8.0, %v11800_v24 }
 0x31f   :  { %v5977_v45 = vsub.f32 1.0, %v5976_v56 }
 0x320   :  { %5845 = vmatpush.bf16.msra.mxu3 %v9913_v57  ;;  %v9846_v57 = vld [vmem:[#allocation6 + $0x238] sm:$0xf0]  ;;  %v5558_v49 = vpop.f32.mrf.mxu1 }
 0x321   :  { %v9849_v27 = vor.u32 %v11501_v25, %v9846_v57  ;;  %v11645_v57 = vld [vmem:[#allocation6 + $0x6ac] sm:$0xf]  ;;  %v5978_v62 = vmul.f32 %v11800_v24, %v5977_v45 }
 0x324   :  { %5846 = vmatpush.bf16.msra.mxu3 %v9897_v1  ;;  %v5545_v1 = vadd.f32 %v5544_v14, %v5531_v3  ;;  %v5532_v11 = vpop.f32.mrf.mxu3  ;;  %v10441_v3 = vor.u32 %v11649_v6, %v10438_v51 }
 0x325   :  { %v5533_v38 = vadd.f32 %v5532_v11, %v5519_v37  ;;  %v10425_v37 = vor.u32 %v11645_v57, %v10422_v42  ;;  %v10406_v11 = vld [vmem:[#allocation6 + $0x698] sm:$0xf0] }
 0x326   :  { %v5559_v31 = vadd.f32 %v5558_v49, %v5545_v1  ;;  %v10409_v51 = vor.u32 %v11641_v10, %v10406_v11 }
 0x327   :  { %v5547_v43 = vadd.f32 %v5546_v16, %v5533_v38  ;;  %v11637_v38 = vld [vmem:[#allocation6 + $0x66c] sm:$0xf] }
 0x328   :  { %5847 = vmatpush.bf16.msra.mxu3 %v9881_v48  ;;  %v5572_v48 = vpop.f32.mrf.mxu2  ;;  %v5560_v14 = vpop.f32.mrf.mxu1 }
 0x329   :  { %v5573_v25 = vadd.f32 %v5572_v48, %v5559_v31  ;;  %v5561_v49 = vadd.f32 %v5560_v14, %v5547_v43  ;;  %v11633_v43 = vld [vmem:[#allocation6 + $0x64c] sm:$0xf] }
 0x32c   :  { %5848 = vmatpush.bf16.msra.mxu3 %v9865_v2  ;;  %v5586_v2 = vpop.f32.mrf.mxu3 }
 0x32d   :  { %v5587_v34 = vadd.f32 %v5586_v2, %v5573_v25 }
 0x330   :  { %5849 = vmatpush.bf16.msra.mxu3 %v9849_v27  ;;  %v5927_v27 = vrot.slane %v5587_v34, 4  ;;  %v5574_v1 = vpop.f32.mrf.mxu2 }
 0x331   :  { %v5575_v19 = vadd.f32 %v5574_v1, %v5561_v49 }
 0x332   :  { %v5928_v12 = vadd.f32 %v5927_v27, %v5587_v34  ;;  %v11629_v27 = vld [vmem:[#allocation6 + $0x62c] sm:$0xf] }
 0x334   :  { %5850 = vmatpush.bf16.msra.mxu3 %v9833_v46  ;;  %v5929_v48 = vrot.slane %v5928_v12, 2  ;;  %v5979_v46 = vadd.f32 %v11800_v24, %v5978_v62  ;;  %v5588_v31 = vpop.f32.mrf.mxu3 }
 0x336   :  { %v5930_v16 = vadd.f32 %v5929_v48, %v5928_v12  ;;  %v14143_v25 = vsel %vm5980_vm2, %v11800_v24, %v5979_v46  ;;  %v11625_v12 = vld [vmem:[#allocation6 + $0x60c] sm:$0xf]  ;;  %v3627_v48 = vadd.f32 %v13704_v26, %v13689_v47  ;;  %v4025_v47 = vmul.f32 %v14038_v50, %v13953_v52 }
 0x337   :  { %5851 = vmatmul.bf16.vlgmr.msra.gmra.mxu3 %v13871_v28  ;;  %v5589_v28 = vadd.f32 %v5588_v31, %v5575_v19  ;;  %v10342_v19 = vld [vmem:[#allocation6 + $0x618] sm:$0xf0] }
 0x338   :  { %5899 = vmatpush.bf16.msrb.mxu3 %v10457_v41  ;;  %v10390_v41 = vld [vmem:[#allocation6 + $0x678] sm:$0xf0]  ;;  %v5931_v56 = vrot.slane %v5930_v16, 1  ;;  %v3646_v31 = vadd.f32 %v13762_v53, %v3627_v48 }
 0x339   :  { %v5951_v6 = vrot.slane %v5589_v28, 4  ;;  %v10393_v42 = vor.u32 %v11637_v38, %v10390_v41  ;;  %v10345_v41 = vor.u32 %v11625_v12, %v10342_v19 }
 0x33a   :  { %v5932_v14 = vadd.f32 %v5931_v56, %v5930_v16  ;;  %v4321_v16 = vperm.slane %v14131_v0, 5  ;;  %v3665_v56 = vadd.f32 %v13905_v8, %v3646_v31 }
 0x33b   :  { %v5952_v2 = vadd.f32 %v5951_v6, %v5589_v28 }
 0x33c   :  { %5900 = vmatpush.bf16.msrb.mxu3 %v10441_v3  ;;  %v10374_v3 = vld [vmem:[#allocation6 + $0x658] sm:$0xf0]  ;;  %v5982_v45 = vmul.f32 %v14143_v25, %v5932_v14  ;;  %v5600_v26 = vpop.f32.mrf.mxu3 }
 0x33d   :  { %v5953_v57 = vrot.slane %v5952_v2, 2  ;;  %v10377_v49 = vor.u32 %v11633_v43, %v10374_v3  ;;  %v5614_v43 = vpop.f32.mrf.mxu0  ;;  %v3684_v3 = vadd.f32 %v13988_v30, %v3665_v56 }
 0x33e   :  { %v14146_v1 = vsub.f32 %v5587_v34, %v5982_v45  ;;  %v4329_v45 = vperm.slane %v4321_v16, 1 }
 0x33f   :  { %v5954_v62 = vadd.f32 %v5953_v57, %v5952_v2  ;;  %v5628_v2 = vpop.f32.mrf.mxu1  ;;  %v5642_v57 = vpop.f32.mrf.mxu2  ;;  %v4041_v52 = vmul.f32 %v14060_v21, %v3684_v3 }
 0x340   :  { %5901 = vmatpush.bf16.msrb.mxu3 %v10425_v37  ;;  %v10358_v37 = vld [vmem:[#allocation6 + $0x638] sm:$0xf0]  ;;  %v5998_v10 = vmul.f32 %v14146_v1, %v14146_v1 }
 0x341   :  { %v5955_v11 = vrot.slane %v5954_v62, 1  ;;  %v10361_v24 = vor.u32 %v11629_v27, %v10358_v37  ;;  %v5601_v27 = vadd.f32 %v5600_v26, %v4329_v45 }
 0x343   :  { %v5956_v46 = vadd.f32 %v5955_v11, %v5954_v62  ;;  %v5615_v19 = vadd.f32 %v5614_v43, %v5601_v27  ;;  %v3698_v43 = vadd.f32 %v13743_v40, %v13783_v29 }
 0x344   :  { %5902 = vmatpush.bf16.msrb.mxu3 %v10409_v51  ;;  %v6006_v51 = vrot.slane %v5998_v10, 4 }
 0x345   :  { %v5986_v34 = vmul.f32 %v14143_v25, %v5956_v46  ;;  %v5616_v12 = vpop.f32.mrf.mxu0 }
 0x346   :  { %v6007_v38 = vadd.f32 %v6006_v51, %v5998_v10  ;;  %v4033_v10 = vmul.f32 %v14068_v15, %v13973_v22 }
 0x347   :  { %v5630_v48 = vpop.f32.mrf.mxu1  ;;  %v5644_v31 = vpop.f32.mrf.mxu2 }
 0x348   :  { %5903 = vmatpush.bf16.msrb.mxu3 %v10393_v42  ;;  %v6008_v6 = vrot.slane %v6007_v38, 2  ;;  %v14156_v42 = vsub.f32 %v5589_v28, %v5986_v34  ;;  %v4017_v28 = vmul.f32 %v14049_v44, %v13940_v59  ;;  %v5602_v59 = vpop.f32.mrf.mxu3 }
 0x349   :  { %v5603_v46 = vadd.f32 %v5602_v59, %v4329_v45 }
 0x34a   :  { %v6009_v53 = vadd.f32 %v6008_v6, %v6007_v38  ;;  %v6002_v14 = vmul.f32 %v14156_v42, %v14156_v42  ;;  %v5629_v38 = vadd.f32 %v5628_v2, %v5615_v19  ;;  %v14462_v19 = vld [vmem:[#allocation13_spill] sm:$0xff] }
 0x34b   :  { %v5617_v56 = vadd.f32 %v5616_v12, %v5603_v46  ;;  %v3703_v59 = vadd.f32 %v14462_v19, %v13783_v29  ;;  %v4018_v29 = vmul.f32 %v14049_v44, %v14010_v13 }
 0x34c   :  { %5904 = vmatpush.bf16.msrb.mxu3 %v10377_v49  ;;  %v6010_v0 = vrot.slane %v6009_v53, 1  ;;  %v6030_v8 = vrot.slane %v6002_v14, 4 }
 0x34d   :  { %v5670_v6 = vpop.f32.mrf.mxu0 }
 0x34e   :  { %v6011_v49 = vadd.f32 %v6010_v0, %v6009_v53  ;;  %v6031_v30 = vadd.f32 %v6030_v8, %v6002_v14  ;;  %v14460_v0 = vld [vmem:[#allocation14_spill] sm:$0xff]  ;;  %v5631_v8 = vadd.f32 %v5630_v48, %v5617_v56  ;;  %v14463_v56 = vld [vmem:[#allocation16_spill] sm:$0xff] }
 0x34f   :  { %v5684_v3 = vpop.f32.mrf.mxu1  ;;  %v3717_v45 = vadd.f32 %v14460_v0, %v3698_v43  ;;  %v5698_v2 = vpop.f32.mrf.mxu2 }
 0x350   :  { %5905 = vmatpush.bf16.msrb.mxu3 %v10361_v24  ;;  %v6054_v37 = vmul.f32 %v6011_v49, %v14143_v25  ;;  %v6032_v62 = vrot.slane %v6031_v30, 2  ;;  %v14461_v49 = vld [vmem:[#allocation25_spill] sm:$0xff]  ;;  %v5645_v40 = vadd.f32 %v5644_v31, %v5631_v8 }
 0x352   :  { %v6062_v11 = vadd.f32 1e-05, %v6054_v37  ;;  %v6033_v24 = vadd.f32 %v6032_v62, %v6031_v30  ;;  %v3736_v30 = vadd.f32 %v14461_v49, %v3717_v45 }
 0x354   :  { %5906 = vmatpush.bf16.msrb.mxu3 %v10345_v41  ;;  %11801 = vrsqrt.f32 %v6062_v11  ;;  %v3755_v62 = vadd.f32 %v14020_v35, %v3736_v30  ;;  %vm6076_vm4 = vweird.f32 %v6062_v11 }
 0x355   :  { %v5672_v48 = vpop.f32.mrf.mxu0 }
 0x356   :  { %v4026_v31 = vmul.f32 %v14038_v50, %v3755_v62  ;;  %v14465_v62 = vld [vmem:[#allocation35_spill] sm:$0xff] }
 0x357   :  { %5907 = vmatmul.bf16.vlgmr.msrb.gmra.mxu3 %v13921_v54  ;;  %v6034_v54 = vrot.slane %v6033_v24, 1  ;;  %v5686_v35 = vpop.f32.mrf.mxu1 }
 0x358   :  { %6232 = vmatpush.xpose.msra.mxu3 %v4025_v47  ;;  %v5643_v47 = vadd.f32 %v5642_v57, %v5629_v38 }
 0x359   :  { %v6035_v51 = vadd.f32 %v6034_v54, %v6033_v24 }
 0x35a   :  { %v11802_v41 = vpop.eup %11801  ;;  %v5656_v26 = vpop.f32.mrf.mxu3 }
 0x35b   :  { %v6058_v34 = vmul.f32 %v6035_v51, %v14143_v25  ;;  %v6071_v22 = vmul.f32 %v11802_v41, %v6062_v11  ;;  %v5657_v14 = vadd.f32 %v5656_v26, %v5643_v47  ;;  %vm6077_vm3 = vweird.f32 %v11802_v41  ;;  %v14464_v26 = vld [vmem:[#allocation29_spill] sm:$0xff] }
 0x35c   :  { %6233 = vmatpush.xpose.msra.mxu3 %v4017_v28  ;;  %vm6078_vm5 = vmor %vm6076_vm4, %vm6077_vm3 }
 0x35d   :  { %v6066_v16 = vadd.f32 1e-05, %v6058_v34  ;;  %v6072_v53 = vmul.f32 %v11802_v41, %v6071_v22 }
 0x35f   :  { %11803 = vrsqrt.f32 %v6066_v16  ;;  %v6073_v28 = vmul.f32 0.5, %v6072_v53  ;;  %vm6116_vm7 = vweird.f32 %v6066_v16 }
 0x360   :  { %6312 = vmatpush.xpose.msrb.mxu3 %v4041_v52  ;;  %v5671_v52 = vadd.f32 %v5670_v6, %v5657_v14  ;;  %v3722_v6 = vadd.f32 %v14463_v56, %v3703_v59  ;;  %v14202_v56 = vld [vmem:[%s14425_s10 + $0x8] sm:$0x77] }
 0x361   :  { %v6074_v27 = vsub.f32 1.5, %v6073_v28 }
 0x362   :  { %v5685_v37 = vadd.f32 %v5684_v3, %v5671_v52  ;;  %v5658_v54 = vpop.f32.mrf.mxu3  ;;  %v3741_v3 = vadd.f32 %v14464_v26, %v3722_v6  ;;  %v4322_v6 = vperm.slane %v14202_v56, 1 }
 0x363   :  { %v5659_v34 = vadd.f32 %v5658_v54, %v5645_v40  ;;  %v4034_v40 = vmul.f32 %v14068_v15, %v14465_v62 }
 0x364   :  { %6313 = vmatpush.xpose.msrb.mxu3 %v4033_v10  ;;  %v6075_v10 = vmul.f32 %v11802_v41, %v6074_v27  ;;  %v5699_v12 = vadd.f32 %v5698_v2, %v5685_v37 }
 0x365   :  { %v11804_v57 = vpop.eup %11803  ;;  %v5673_v43 = vadd.f32 %v5672_v48, %v5659_v34 }
 0x366   :  { %v6111_v24 = vmul.f32 %v11804_v57, %v6066_v16  ;;  %v6079_v51 = vsel %vm6078_vm5, %v11802_v41, %v6075_v10  ;;  %v5933_v38 = vrot.slane %v5699_v12, 4  ;;  %v5700_v41 = vpop.f32.mrf.mxu2  ;;  %vm6117_vm6 = vweird.f32 %v11804_v57 }
 0x367   :  { %v6150_v22 = vmul.f32 %v6079_v51, %v14146_v1  ;;  %v5687_v0 = vadd.f32 %v5686_v35, %v5673_v43  ;;  %v3760_v1 = vadd.f32 %v14042_v18, %v3741_v3  ;;  %vm6118_vm8 = vmor %vm6116_vm7, %vm6117_vm6  ;;  %v5740_v43 = vpop.f32.mrf.mxu0 }
 0x368   :  { %v6112_v46 = vmul.f32 %v11804_v57, %v6111_v24  ;;  %v5934_v47 = vadd.f32 %v5933_v38, %v5699_v12 }
 0x369   :  { %6174 = vmatmul.f32.vlgmr.msra.gmra.mxu0 %v6150_v22  ;;  %v5701_v2 = vadd.f32 %v5700_v41, %v5687_v0  ;;  %v4042_v30 = vmul.f32 %v14060_v21, %v3760_v1  ;;  %v5754_v41 = vpop.f32.mrf.mxu1 }
 0x36a   :  { %v6113_v11 = vmul.f32 0.5, %v6112_v46  ;;  %v5935_v14 = vrot.slane %v5934_v47, 2  ;;  %6374 = vmatpush.msra.mxu0 %v4026_v31 }
 0x36b   :  { %v5957_v49 = vrot.slane %v5701_v2, 4 }
 0x36c   :  { %v6114_v53 = vsub.f32 1.5, %v6113_v11  ;;  %v5936_v8 = vadd.f32 %v5935_v14, %v5934_v47  ;;  %6375 = vmatpush.msra.mxu0 %v4018_v29  ;;  %v4330_v47 = vperm.slane %v4322_v6, 1 }
 0x36d   :  { %v5958_v37 = vadd.f32 %v5957_v49, %v5701_v2 }
 0x36e   :  { %v6115_v45 = vmul.f32 %v11804_v57, %v6114_v53  ;;  %v5937_v52 = vrot.slane %v5936_v8, 1  ;;  %v5712_v38 = vpop.f32.mrf.mxu2 }
 0x36f   :  { %v5959_v16 = vrot.slane %v5958_v37, 2  ;;  %v5713_v0 = vadd.f32 %v5712_v38, %v4330_v47  ;;  %v14469_v38 = vld [vmem:[#allocation33_spill] sm:$0xff] }
 0x370   :  { %v6119_v28 = vsel %vm6118_vm8, %v11804_v57, %v6115_v45  ;;  %v5938_v27 = vadd.f32 %v5937_v52, %v5936_v8  ;;  %v5742_v52 = vpop.f32.mrf.mxu0 }
 0x371   :  { %v6154_v13 = vmul.f32 %v6119_v28, %v14156_v42  ;;  %v5960_v24 = vadd.f32 %v5959_v16, %v5958_v37  ;;  %v14467_v16 = vld [vmem:[#allocation15_spill] sm:$0xff] }
 0x372   :  { %v5983_v18 = vmul.f32 %v14143_v25, %v5938_v27 }
 0x373   :  { %6254 = vmatmul.f32.vlgmr.msrb.gmra.mxu0 %v6154_v13  ;;  %v5961_v42 = vrot.slane %v5960_v24, 1 }
 0x374   :  { %6457 = vmatpush.msrb.mxu0 %v4042_v30  ;;  %v14190_v10 = vsub.f32 %v5699_v12, %v5983_v18  ;;  %v14466_v18 = vld [vmem:[#allocation17_spill] sm:$0xff] }
 0x375   :  { %v5962_v59 = vadd.f32 %v5961_v42, %v5960_v24  ;;  %v3774_v24 = vadd.f32 %v14467_v16, %v14466_v18 }
 0x376   :  { %6458 = vmatpush.msrb.mxu0 %v4034_v40  ;;  %v5999_v57 = vmul.f32 %v14190_v10, %v14190_v10  ;;  %v5714_v1 = vpop.f32.mrf.mxu2  ;;  %v5756_v40 = vpop.f32.mrf.mxu1 }
 0x377   :  { %v5987_v48 = vmul.f32 %v14143_v25, %v5962_v59  ;;  %v5715_v30 = vadd.f32 %v5714_v1, %v4330_v47 }
 0x378   :  { %v6012_v19 = vrot.slane %v5999_v57, 4  ;;  %v5796_v6 = vpop.f32.mrf.mxu0 }
 0x379   :  { %v14195_v46 = vsub.f32 %v5701_v2, %v5987_v48 }
 0x37a   :  { %v6013_v54 = vadd.f32 %v6012_v19, %v5999_v57  ;;  %v5726_v29 = vpop.f32.mrf.mxu3 }
 0x37b   :  { %v6003_v12 = vmul.f32 %v14195_v46, %v14195_v46  ;;  %v5727_v2 = vadd.f32 %v5726_v29, %v5713_v0 }
 0x37c   :  { %v6014_v51 = vrot.slane %v6013_v54, 2 }
 0x37d   :  { %v6036_v35 = vrot.slane %v6003_v12, 4  ;;  %v5741_v27 = vadd.f32 %v5740_v43, %v5727_v2 }
 0x37e   :  { %v6015_v34 = vadd.f32 %v6014_v51, %v6013_v54  ;;  %v5768_v42 = vpop.f32.mrf.mxu2  ;;  %v14468_v54 = vld [vmem:[#allocation19_spill] sm:$0xff] }
 0x37f   :  { %v6037_v11 = vadd.f32 %v6036_v35, %v6003_v12  ;;  %v5755_v19 = vadd.f32 %v5754_v41, %v5741_v27  ;;  %v3793_v48 = vadd.f32 %v14468_v54, %v3774_v24  ;;  %v14470_v41 = vld [vmem:[#allocation18_spill] sm:$0xff] }
 0x380   :  { %v6016_v22 = vrot.slane %v6015_v34, 1 }
 0x381   :  { %v6038_v3 = vrot.slane %v6037_v11, 2  ;;  %v5769_v35 = vadd.f32 %v5768_v42, %v5755_v19 }
 0x382   :  { %v6017_v31 = vadd.f32 %v6016_v22, %v6015_v34  ;;  %v5728_v62 = vpop.f32.mrf.mxu3  ;;  %v3812_v34 = vadd.f32 %v14469_v38, %v3793_v48 }
 0x383   :  { %v6039_v14 = vadd.f32 %v6038_v3, %v6037_v11  ;;  %v5729_v59 = vadd.f32 %v5728_v62, %v5715_v30  ;;  %v5810_v3 = vpop.f32.mrf.mxu1  ;;  %v4019_v62 = vmul.f32 %v14049_v44, %v14056_v55 }
 0x384   :  { %v6055_v26 = vmul.f32 %v6017_v31, %v14143_v25  ;;  %v3831_v11 = vadd.f32 %v14062_v36, %v3812_v34 }
 0x385   :  { %v6040_v45 = vrot.slane %v6039_v14, 1  ;;  %v5743_v31 = vadd.f32 %v5742_v52, %v5729_v59 }
 0x386   :  { %v6063_v53 = vadd.f32 1e-05, %v6055_v26  ;;  %v4027_v36 = vmul.f32 %v14038_v50, %v3831_v11 }
 0x387   :  { %v6041_v8 = vadd.f32 %v6040_v45, %v6039_v14  ;;  %v3779_v14 = vadd.f32 %v14470_v41, %v14466_v18 }
 0x388   :  { %11805 = vrsqrt.f32 %v6063_v53  ;;  %vm6086_vm10 = vweird.f32 %v6063_v53 }
 0x389   :  { %v6059_v28 = vmul.f32 %v6041_v8, %v14143_v25  ;;  %v5757_v8 = vadd.f32 %v5756_v40, %v5743_v31 }
 0x38b   :  { %v6067_v13 = vadd.f32 1e-05, %v6059_v28  ;;  %v14471_v28 = vld [vmem:[#allocation21_spill] sm:$0xff] }
 0x38c   :  { %v3798_v52 = vadd.f32 %v14471_v28, %v3779_v14 }
 0x38d   :  { %11807 = vrsqrt.f32 %v6067_v13  ;;  %vm6126_vm13 = vweird.f32 %v6067_v13 }
 0x38e   :  { %v11806_v49 = vpop.eup %11805 }
 0x38f   :  { %v6081_v37 = vmul.f32 %v11806_v49, %v6063_v53  ;;  %vm6087_vm9 = vweird.f32 %v11806_v49  ;;  %v5770_v53 = vpop.f32.mrf.mxu2 }
 0x390   :  { %vm6088_vm11 = vmor %vm6086_vm10, %vm6087_vm9 }
 0x391   :  { %v6082_v57 = vmul.f32 %v11806_v49, %v6081_v37  ;;  %v3817_v37 = vadd.f32 %v14036_v9, %v3798_v52  ;;  %v5812_v9 = vpop.f32.mrf.mxu1 }
 0x393   :  { %v6083_v51 = vmul.f32 0.5, %v6082_v57  ;;  %v11808_v22 = vpop.eup %11807  ;;  %v3836_v40 = vadd.f32 %v14087_v32, %v3817_v37  ;;  %v5798_v57 = vpop.f32.mrf.mxu0  ;;  %v4035_v32 = vmul.f32 %v14068_v15, %v14077_v63 }
 0x394   :  { %v6121_v43 = vmul.f32 %v11808_v22, %v6067_v13  ;;  %vm6127_vm12 = vweird.f32 %v11808_v22 }
 0x395   :  { %v6084_v12 = vsub.f32 1.5, %v6083_v51  ;;  %vm6128_vm14 = vmor %vm6126_vm13, %vm6127_vm12  ;;  %v4043_v51 = vmul.f32 %v14060_v21, %v3836_v40 }
 0x396   :  { %v6122_v1 = vmul.f32 %v11808_v22, %v6121_v43 }
 0x397   :  { %v6085_v47 = vmul.f32 %v11806_v49, %v6084_v12 }
 0x398   :  { %v6123_v30 = vmul.f32 0.5, %v6122_v1  ;;  %v4323_v1 = vperm.slane %v14202_v56, 5 }
 0x399   :  { %v6089_v0 = vsel %vm6088_vm11, %v11806_v49, %v6085_v47  ;;  %v5771_v49 = vadd.f32 %v5770_v53, %v5757_v8  ;;  %v5824_v41 = vpop.f32.mrf.mxu1  ;;  %vm6334_vm11 = vcmask 130048  }
 0x39a   :  { %v5782_v26 = vpop.f32.mrf.mxu3  ;;  %v6151_v45 = vmul.f32 %v6089_v0, %v14190_v10  ;;  %v6124_v18 = vsub.f32 1.5, %v6123_v30 }
 0x39b   :  { %v5783_v29 = vadd.f32 %v5782_v26, %v5769_v35 }
 0x39c   :  { %6194 = vmatmul.f32.vlgmr.msra.gmra.mxu1 %v6151_v45  ;;  %v6125_v16 = vmul.f32 %v11808_v22, %v6124_v18 }
 0x39d   :  { %v5797_v2 = vadd.f32 %v5796_v6, %v5783_v29  ;;  %6394 = vmatpush.msra.mxu1 %v4027_v36  ;;  %v4331_v36 = vperm.slane %v4323_v1, 1 }
 0x39e   :  { %v6129_v59 = vsel %vm6128_vm14, %v11808_v22, %v6125_v16 }
 0x39f   :  { %v5811_v27 = vadd.f32 %v5810_v3, %v5797_v2  ;;  %6395 = vmatpush.msra.mxu1 %v4019_v62  ;;  %v6155_v54 = vmul.f32 %v6129_v59, %v14195_v46  ;;  %v5838_v2 = vpop.f32.mrf.mxu2  ;;  %v5825_v62 = vadd.f32 %v5824_v41, %v4331_v36 }
 0x3a1   :  { %v5939_v10 = vrot.slane %v5811_v27, 4  ;;  %v5826_v18 = vpop.f32.mrf.mxu1 }
 0x3a2   :  { %v5784_v24 = vpop.f32.mrf.mxu3  ;;  %v5827_v59 = vadd.f32 %v5826_v18, %v4331_v36 }
 0x3a3   :  { %v5940_v42 = vadd.f32 %v5939_v10, %v5811_v27  ;;  %v5785_v19 = vadd.f32 %v5784_v24, %v5771_v49  ;;  %v5866_v49 = vpop.f32.mrf.mxu0  ;;  %v5839_v24 = vadd.f32 %v5838_v2, %v5825_v62  ;;  %v14476_v62 = vld [vmem:[#allocation27_spill] sm:$0xff] }
 0x3a4   :  { %6274 = vmatmul.f32.vlgmr.msrb.gmra.mxu1 %v6155_v54 }
 0x3a5   :  { %v5941_v55 = vrot.slane %v5940_v42, 2  ;;  %v5799_v48 = vadd.f32 %v5798_v57, %v5785_v19  ;;  %6477 = vmatpush.msrb.mxu1 %v4043_v51 }
 0x3a7   :  { %v5942_v38 = vadd.f32 %v5941_v55, %v5940_v42  ;;  %v5813_v34 = vadd.f32 %v5812_v9, %v5799_v48  ;;  %6478 = vmatpush.msrb.mxu1 %v4035_v32  ;;  %v5840_v57 = vpop.f32.mrf.mxu2  ;;  %v11844_v55 = vld [vmem:[%s14426_s11] sm:$0xff] }
 0x3a8   :  { %v2092_v48 = vperm.slane %v11844_v55, 6 }
 0x3a9   :  { %v5943_v13 = vrot.slane %v5942_v38, 1  ;;  %v5963_v12 = vrot.slane %v5813_v34, 4 }
 0x3aa   :  { %v3855_v18 = vadd.f32 %v14476_v62, %v2092_v48 }
 0x3ab   :  { %v5944_v6 = vadd.f32 %v5943_v13, %v5942_v38  ;;  %v5964_v35 = vadd.f32 %v5963_v12, %v5813_v34  ;;  %v5880_v38 = vpop.f32.mrf.mxu1  ;;  %v5868_v32 = vpop.f32.mrf.mxu0  ;;  %v5841_v13 = vadd.f32 %v5840_v57, %v5827_v59 }
 0x3ad   :  { %v5984_v22 = vmul.f32 %v14143_v25, %v5944_v6  ;;  %v5965_v31 = vrot.slane %v5964_v35, 2  ;;  %v14472_v6 = vld [vmem:[#allocation22_spill] sm:$0xff] }
 0x3af   :  { %v14226_v46 = vsub.f32 %v5811_v27, %v5984_v22  ;;  %v5966_v11 = vadd.f32 %v5965_v31, %v5964_v35  ;;  %v3850_v35 = vadd.f32 %v14472_v6, %v2092_v48 }
 0x3b1   :  { %v6000_v47 = vmul.f32 %v14226_v46, %v14226_v46  ;;  %v5967_v43 = vrot.slane %v5966_v11, 1 }
 0x3b3   :  { %v6018_v26 = vrot.slane %v6000_v47, 4  ;;  %v5968_v3 = vadd.f32 %v5967_v43, %v5966_v11  ;;  %v14473_v11 = vld [vmem:[#allocation20_spill] sm:$0xff]  ;;  %v14474_v43 = vld [vmem:[#allocation26_spill] sm:$0xff] }
 0x3b5   :  { %v6019_v29 = vadd.f32 %v6018_v26, %v6000_v47  ;;  %v5988_v63 = vmul.f32 %v14143_v25, %v5968_v3  ;;  %v3848_v47 = vadd.f32 %v14473_v11, %v2092_v48  ;;  %v3869_v26 = vadd.f32 %v14474_v43, %v3850_v35 }
 0x3b7   :  { %v6020_v14 = vrot.slane %v6019_v29, 2  ;;  %v14231_v0 = vsub.f32 %v5813_v34, %v5988_v63  ;;  %v14475_v63 = vld [vmem:[#allocation23_spill] sm:$0xff] }
 0x3b8   :  { %v3867_v41 = vadd.f32 %v14475_v63, %v3848_v47 }
 0x3b9   :  { %v6021_v45 = vadd.f32 %v6020_v14, %v6019_v29  ;;  %v6004_v8 = vmul.f32 %v14231_v0, %v14231_v0  ;;  %v5894_v29 = vpop.f32.mrf.mxu2 }
 0x3ba   :  { %v5852_v16 = vpop.f32.mrf.mxu3 }
 0x3bb   :  { %v6022_v28 = vrot.slane %v6021_v45, 1  ;;  %v6042_v52 = vrot.slane %v6004_v8, 4  ;;  %v5853_v9 = vadd.f32 %v5852_v16, %v5839_v24  ;;  %v5922_v16 = vpop.f32.mrf.mxu0  ;;  %v14477_v24 = vld [vmem:[#allocation24_spill] sm:$0xff] }
 0x3bc   :  { %v3853_v57 = vadd.f32 %v14477_v24, %v2092_v48 }
 0x3bd   :  { %v6023_v30 = vadd.f32 %v6022_v28, %v6021_v45  ;;  %v6043_v53 = vadd.f32 %v6042_v52, %v6004_v8  ;;  %v5867_v12 = vadd.f32 %v5866_v49, %v5853_v9  ;;  %v3888_v45 = vadd.f32 %v14058_v20, %v3869_v26  ;;  %v14479_v9 = vld [vmem:[#allocation28_spill] sm:$0xff] }
 0x3be   :  { %v3886_v28 = vadd.f32 %v14045_v5, %v3867_v41  ;;  %v3872_v55 = vadd.f32 %v14479_v9, %v3853_v57 }
 0x3bf   :  { %v6056_v27 = vmul.f32 %v6023_v30, %v14143_v25  ;;  %v6044_v37 = vrot.slane %v6043_v53, 2  ;;  %v5881_v14 = vadd.f32 %v5880_v38, %v5867_v12  ;;  %v3907_v52 = vadd.f32 %v14099_v17, %v3888_v45 }
 0x3c0   :  { %v3905_v49 = vadd.f32 %v14095_v23, %v3886_v28 }
 0x3c1   :  { %v6064_v10 = vadd.f32 1e-05, %v6056_v27  ;;  %v6045_v40 = vadd.f32 %v6044_v37, %v6043_v53  ;;  %v5895_v53 = vadd.f32 %v5894_v29, %v5881_v14  ;;  %v5882_v37 = vpop.f32.mrf.mxu1  ;;  %v5896_v48 = vpop.f32.mrf.mxu2 }
 0x3c2   :  { %v5854_v31 = vpop.f32.mrf.mxu3 }
 0x3c3   :  { %11809 = vrsqrt.f32 %v6064_v10  ;;  %v6046_v56 = vrot.slane %v6045_v40, 1  ;;  %v5855_v1 = vadd.f32 %v5854_v31, %v5841_v13  ;;  %vm6096_vm0 = vweird.f32 %v6064_v10  ;;  %v5924_v29 = vpop.f32.mrf.mxu0 }
 0x3c4   :  { %v3891_v13 = vadd.f32 %v14064_v7, %v3872_v55  ;;  %v14480_v55 = vld [vmem:[#allocation31_spill] sm:$0xff] }
 0x3c5   :  { %v6047_v42 = vadd.f32 %v6046_v56, %v6045_v40  ;;  %v5869_v27 = vadd.f32 %v5868_v32, %v5855_v1 }
 0x3c6   :  { %v3910_v31 = vadd.f32 %v14104_v61, %v3891_v13 }
 0x3c7   :  { %v6060_v19 = vmul.f32 %v6047_v42, %v14143_v25  ;;  %v14478_v42 = vld [vmem:[#allocation30_spill] sm:$0xff]  ;;  %v5883_v38 = vadd.f32 %v5882_v37, %v5869_v27 }
 0x3c9   :  { %v11810_v54 = vpop.eup %11809  ;;  %v6068_v51 = vadd.f32 1e-05, %v6060_v19  ;;  %v4028_v19 = vmul.f32 %v14038_v50, %v3907_v52  ;;  %v5897_v35 = vadd.f32 %v5896_v48, %v5883_v38  ;;  %v14481_v38 = vld [vmem:[#allocation32_spill] sm:$0xff] }
 0x3ca   :  { %v6091_v34 = vmul.f32 %v11810_v54, %v6064_v10  ;;  %vm6097_vm15 = vweird.f32 %v11810_v54  ;;  %v3874_v10 = vadd.f32 %v14478_v42, %v3855_v18 }
 0x3cb   :  { %11811 = vrsqrt.f32 %v6068_v51  ;;  %vm6098_vm1 = vmor %vm6096_vm0, %vm6097_vm15  ;;  %vm6136_vm3 = vweird.f32 %v6068_v51 }
 0x3cc   :  { %v6092_v22 = vmul.f32 %v11810_v54, %v6091_v34  ;;  %v3893_v23 = vadd.f32 %v14079_v4, %v3874_v10 }
 0x3ce   :  { %v6093_v3 = vmul.f32 0.5, %v6092_v22  ;;  %v3912_v12 = vadd.f32 %v14107_v58, %v3893_v23  ;;  %v4036_v58 = vmul.f32 %v14068_v15, %v3910_v31  ;;  %v3931_v31 = vadd.f32 %v14113_v39, %v14480_v55 }
 0x3d0   :  { %v6094_v8 = vsub.f32 1.5, %v6093_v3  ;;  %v4044_v3 = vmul.f32 %v14060_v21, %v3912_v12 }
 0x3d1   :  { %v11812_v2 = vpop.eup %11811 }
 0x3d2   :  { %v6095_v36 = vmul.f32 %v11810_v54, %v6094_v8  ;;  %v6131_v30 = vmul.f32 %v11812_v2, %v6068_v51  ;;  %vm6137_vm2 = vweird.f32 %v11812_v2 }
 0x3d3   :  { %vm6138_vm4 = vmor %vm6136_vm3, %vm6137_vm2 }
 0x3d4   :  { %v6099_v40 = vsel %vm6098_vm1, %v11810_v54, %v6095_v36  ;;  %v6132_v20 = vmul.f32 %v11812_v2, %v6131_v30  ;;  %v4020_v54 = vmul.f32 %v14049_v44, %v3905_v49 }
 0x3d5   :  { %v6152_v5 = vmul.f32 %v6099_v40, %v14226_v46 }
 0x3d6   :  { %v6133_v59 = vmul.f32 0.5, %v6132_v20 }
 0x3d7   :  { %6214 = vmatmul.f32.vlgmr.msra.gmra.mxu2 %v6152_v5 }
 0x3d8   :  { %v6134_v32 = vsub.f32 1.5, %v6133_v59  ;;  %6414 = vmatpush.msra.mxu2 %v4028_v19 }
 0x3da   :  { %v5908_v56 = vpop.f32.mrf.mxu3  ;;  %v6135_v6 = vmul.f32 %v11812_v2, %v6134_v32  ;;  %6415 = vmatpush.msra.mxu2 %v4020_v54  ;;  %v14482_v54 = vld [vmem:[#allocation34_spill] sm:$0xff] }
 0x3db   :  { %v5909_v17 = vadd.f32 %v5908_v56, %v5895_v53 }
 0x3dc   :  { %v6139_v4 = vsel %vm6138_vm4, %v11812_v2, %v6135_v6 }
 0x3dd   :  { %v5923_v34 = vadd.f32 %v5922_v16, %v5909_v17  ;;  %v6156_v47 = vmul.f32 %v6139_v4, %v14231_v0 }
 0x3df   :  { %v5945_v46 = vrot.slane %v5923_v34, 4  ;;  %6294 = vmatmul.f32.vlgmr.msrb.gmra.mxu2 %v6156_v47 }
 0x3e0   :  { %6497 = vmatpush.msrb.mxu2 %v4044_v3 }
 0x3e1   :  { %v5946_v22 = vadd.f32 %v5945_v46, %v5923_v34 }
 0x3e2   :  { %v5910_v11 = vpop.f32.mrf.mxu3  ;;  %6498 = vmatpush.msrb.mxu2 %v4036_v58 }
 0x3e3   :  { %v5947_v43 = vrot.slane %v5946_v22, 2  ;;  %v5911_v26 = vadd.f32 %v5910_v11, %v5897_v35 }
 0x3e5   :  { %v5948_v7 = vadd.f32 %v5947_v43, %v5946_v22  ;;  %v5925_v63 = vadd.f32 %v5924_v29, %v5911_v26  ;;  %v14483_v43 = vld [vmem:[#allocation37_spill] sm:$0xff]  ;;  %v14484_v29 = vld [vmem:[#allocation38_spill] sm:$0xff] }
 0x3e6   :  { %v3950_v26 = vadd.f32 %v14483_v43, %v3931_v31  ;;  %v11718_v31 = vld [vmem:[#allocation9 + $0x1ec] sm:$0xf0] }
 0x3e7   :  { %v5949_v51 = vrot.slane %v5948_v7, 1  ;;  %v5969_v41 = vrot.slane %v5925_v63, 4  ;;  %v11782_v43 = vld [vmem:[#allocation9 + $0x3ec] sm:$0xf0] }
 0x3e9   :  { %v5950_v14 = vadd.f32 %v5949_v51, %v5948_v7  ;;  %v5970_v61 = vadd.f32 %v5969_v41, %v5925_v63  ;;  %v3969_v7 = vadd.f32 %v14484_v29, %v3950_v26  ;;  %v14486_v51 = vld [vmem:[#allocation40_spill] sm:$0xff] }
 0x3eb   :  { %v5985_v1 = vmul.f32 %v14143_v25, %v5950_v14  ;;  %v5971_v45 = vrot.slane %v5970_v61, 2  ;;  %v3988_v41 = vadd.f32 %v14486_v51, %v3969_v7  ;;  %v11714_v51 = vld [vmem:[#allocation9 + $0x1cc] sm:$0xf0] }
 0x3ed   :  { %v5993_v0 = vsub.f32 %v5923_v34, %v5985_v1  ;;  %v5972_v8 = vadd.f32 %v5971_v45, %v5970_v61  ;;  %v3926_v34 = vadd.f32 %v14481_v38, %v14480_v55  ;;  %v14487_v1 = vld [vmem:[#allocation39_spill] sm:$0xff] }
 0x3ee   :  { %v4037_v45 = vmul.f32 %v14068_v15, %v14487_v1  ;;  %v11778_v1 = vld [vmem:[#allocation9 + $0x3cc] sm:$0xf0] }
 0x3ef   :  { %v6001_v2 = vmul.f32 %v5993_v0, %v5993_v0  ;;  %v5973_v28 = vrot.slane %v5972_v8, 1  ;;  %v3945_v32 = vadd.f32 %v14482_v54, %v3926_v34 }
 0x3f1   :  { %v6024_v52 = vrot.slane %v6001_v2, 4  ;;  %v5974_v36 = vadd.f32 %v5973_v28, %v5972_v8  ;;  %v3964_v46 = vadd.f32 %v14097_v33, %v3945_v32 }
 0x3f3   :  { %v6025_v30 = vadd.f32 %v6024_v52, %v6001_v2  ;;  %v5989_v53 = vmul.f32 %v14143_v25, %v5974_v36  ;;  %v3983_v6 = vadd.f32 %v14115_v60, %v3964_v46  ;;  %v6175_v2 = vpop.f32.mrf.mxu0 }
 0x3f5   :  { %v6026_v27 = vrot.slane %v6025_v30, 2  ;;  %v5997_v37 = vsub.f32 %v5925_v63, %v5989_v53  ;;  %v4029_v3 = vmul.f32 %v14038_v50, %v3983_v6  ;;  %v14485_v63 = vld [vmem:[#allocation36_spill] sm:$0xff]  ;;  %v4045_v50 = vmul.f32 %v14060_v21, %v3988_v41  ;;  %v6321_v21 = vld [vmem:[%s14418_s3 + $0x1] sm:$0x1]  ;;  %v10586_v6 = vld [vmem:[#allocation9 + $0xe0] sm:$0xf] }
 0x3f6   :  { %v4021_v60 = vmul.f32 %v14049_v44, %v14485_v63  ;;  %v6320_v44 = vld [vmem:[%s14418_s3] sm:$0x1]  ;;  %v10570_v63 = vld [vmem:[#allocation9 + $0xc0] sm:$0xf] }
 0x3f7   :  { %v6027_v62 = vadd.f32 %v6026_v27, %v6025_v30  ;;  %v6005_v18 = vmul.f32 %v5997_v37, %v5997_v37  ;;  %v6322_v8 = vmul.f32 10000.0, %v6320_v44 }
 0x3f9   :  { %v6028_v49 = vrot.slane %v6027_v62, 1  ;;  %v6048_v40 = vrot.slane %v6005_v18, 4  ;;  %v10462_v36 = vadd.f32 -10000.0, %v6322_v8  ;;  %v11678_v8 = vld [vmem:[#allocation9 + $0xac] sm:$0xf0] }
 0x3fb   :  { %v6029_v20 = vadd.f32 %v6028_v49, %v6027_v62  ;;  %v6049_v16 = vadd.f32 %v6048_v40, %v6005_v18  ;;  %v6328_v15 = vperm.slane %v10462_v36, 0  ;;  %v6255_v49 = vpop.f32.mrf.mxu0 }
 0x3fd   :  { %v6057_v56 = vmul.f32 %v6029_v20, %v14143_v25  ;;  %v6050_v24 = vrot.slane %v6049_v16, 2 }
 0x3ff   :  { %v6065_v57 = vadd.f32 1e-05, %v6057_v56  ;;  %v6051_v5 = vadd.f32 %v6050_v24, %v6049_v16 }
 0x401   :  { %11813 = vrsqrt.f32 %v6065_v57  ;;  %v6052_v17 = vrot.slane %v6051_v5, 1  ;;  %vm6106_vm6 = vweird.f32 %v6065_v57 }
 0x403   :  { %v6053_v42 = vadd.f32 %v6052_v17, %v6051_v5 }
 0x405   :  { %v6061_v10 = vmul.f32 %v6053_v42, %v14143_v25 }
 0x407   :  { %v11814_v19 = vpop.eup %11813  ;;  %v6069_v59 = vadd.f32 1e-05, %v6061_v10 }
 0x408   :  { %v6101_v9 = vmul.f32 %v11814_v19, %v6065_v57  ;;  %vm6107_vm5 = vweird.f32 %v11814_v19 }
 0x409   :  { %11815 = vrsqrt.f32 %v6069_v59  ;;  %vm6108_vm7 = vmor %vm6106_vm6, %vm6107_vm5  ;;  %vm6146_vm9 = vweird.f32 %v6069_v59 }
 0x40a   :  { %v6102_v23 = vmul.f32 %v11814_v19, %v6101_v9 }
 0x40c   :  { %v6103_v48 = vmul.f32 0.5, %v6102_v23 }
 0x40e   :  { %v6104_v13 = vsub.f32 1.5, %v6103_v48 }
 0x40f   :  { %v11816_v12 = vpop.eup %11815 }
 0x410   :  { %v6105_v35 = vmul.f32 %v11814_v19, %v6104_v13  ;;  %v6141_v22 = vmul.f32 %v11816_v12, %v6069_v59  ;;  %vm6147_vm8 = vweird.f32 %v11816_v12 }
 0x411   :  { %vm6148_vm10 = vmor %vm6146_vm9, %vm6147_vm8 }
 0x412   :  { %v6109_v4 = vsel %vm6108_vm7, %v11814_v19, %v6105_v35  ;;  %v6142_v11 = vmul.f32 %v11816_v12, %v6141_v22  ;;  %v11686_v35 = vld [vmem:[#allocation9 + $0xec] sm:$0xf0]  ;;  %v10714_v22 = vld [vmem:[#allocation9 + $0x1e0] sm:$0xf] }
 0x413   :  { %v6153_v47 = vmul.f32 %v6109_v4, %v5993_v0  ;;  %v10842_v4 = vld [vmem:[#allocation9 + $0x2e0] sm:$0xf]  ;;  %v10587_v29 = vor.u32 %v11686_v35, %v10586_v6  ;;  %v10715_v7 = vor.u32 %v11718_v31, %v10714_v22  ;;  %v11666_v35 = vld [vmem:[#allocation9 + $0x4c] sm:$0xf0] }
 0x414   :  { %v6143_v33 = vmul.f32 0.5, %v6142_v11  ;;  %v11750_v11 = vld [vmem:[#allocation9 + $0x2ec] sm:$0xf0]  ;;  %v10506_v6 = vld [vmem:[#allocation9 + $0x40] sm:$0xf] }
 0x415   :  { %6234 = vmatmul.f32.vlgmr.msra.gmra.mxu3 %v6153_v47  ;;  %v10970_v47 = vld [vmem:[#allocation9 + $0x3e0] sm:$0xf]  ;;  %v10843_v41 = vor.u32 %v11750_v11, %v10842_v4  ;;  %v11698_v31 = vld [vmem:[#allocation9 + $0x14c] sm:$0xf0] }
 0x416   :  { %v6144_v58 = vsub.f32 1.5, %v6143_v33  ;;  %6434 = vmatpush.msra.mxu3 %v4029_v3  ;;  %v10634_v22 = vld [vmem:[#allocation9 + $0x140] sm:$0xf] }
 0x418   :  { %v6145_v39 = vmul.f32 %v11816_v12, %v6144_v58  ;;  %6435 = vmatpush.msra.mxu3 %v4021_v60  ;;  %v11682_v60 = vld [vmem:[#allocation9 + $0xcc] sm:$0xf0]  ;;  %v10698_v58 = vld [vmem:[#allocation9 + $0x1c0] sm:$0xf] }
 0x419   :  { %v6195_v0 = vpop.f32.mrf.mxu1  ;;  %v10699_v44 = vor.u32 %v11714_v51, %v10698_v58  ;;  %v11694_v58 = vld [vmem:[#allocation9 + $0x12c] sm:$0xf0] }
 0x41a   :  { %v6149_v14 = vsel %vm6148_vm10, %v11816_v12, %v6145_v39  ;;  %v6196_v52 = vadd.f32 %v6195_v0, %v6175_v2  ;;  %v10971_v39 = vor.u32 %v11782_v43, %v10970_v47  ;;  %v10554_v0 = vld [vmem:[#allocation9 + $0xa0] sm:$0xf]  ;;  %v11730_v43 = vld [vmem:[#allocation9 + $0x24c] sm:$0xf0] }
 0x41b   :  { %v6157_v61 = vmul.f32 %v6149_v14, %v5997_v37  ;;  %v6323_v37 = vmul.f32 10000.0, %v6321_v21  ;;  %v10826_v14 = vld [vmem:[#allocation9 + $0x2c0] sm:$0xf] }
 0x41c   :  { %v10682_v2 = vld [vmem:[#allocation9 + $0x1a0] sm:$0xf] }
 0x41d   :  { %6314 = vmatmul.f32.vlgmr.msrb.gmra.mxu3 %v6157_v61  ;;  %v10463_v56 = vadd.f32 -10000.0, %v6323_v37  ;;  %v11746_v61 = vld [vmem:[#allocation9 + $0x2cc] sm:$0xf0]  ;;  %v10810_v21 = vld [vmem:[#allocation9 + $0x2a0] sm:$0xf] }
 0x41e   :  { %6517 = vmatpush.msrb.mxu3 %v4045_v50  ;;  %v10954_v50 = vld [vmem:[#allocation9 + $0x3c0] sm:$0xf] }
 0x41f   :  { %v6329_v42 = vperm.slane %v10463_v56, 0  ;;  %v10955_v36 = vor.u32 %v11778_v1, %v10954_v50  ;;  %v10762_v47 = vld [vmem:[#allocation9 + $0x240] sm:$0xf]  ;;  %v11758_v50 = vld [vmem:[#allocation9 + $0x32c] sm:$0xf0] }
 0x420   :  { %6518 = vmatpush.msrb.mxu3 %v4037_v45  ;;  %v10571_v45 = vor.u32 %v11682_v60, %v10570_v63  ;;  %v11662_v63 = vld [vmem:[#allocation9 + $0x2c] sm:$0xf0]  ;;  %v10618_v60 = vld [vmem:[#allocation9 + $0x120] sm:$0xf]  ;;  %v10763_v51 = vor.u32 %v11730_v43, %v10762_v47  ;;  %v10940_v47 = vld [vmem:[#allocation9 + $0x3b0] sm:$0xf0] }
 0x421   :  { %v6275_v62 = vpop.f32.mrf.mxu1  ;;  %v10474_v1 = vld [vmem:[#allocation9] sm:$0xf] }
 0x422   :  { %v6276_v20 = vadd.f32 %v6275_v62, %v6255_v49  ;;  %v10555_v62 = vor.u32 %v11678_v8, %v10554_v0  ;;  %v10538_v49 = vld [vmem:[#allocation9 + $0x80] sm:$0xf]  ;;  %v11658_v0 = vld [vmem:[#allocation9 + $0xc] sm:$0xf0] }
 0x423   :  { %v10602_v8 = vld [vmem:[#allocation9 + $0x100] sm:$0xf] }
 0x45a   :  { %v6215_v28 = vpop.f32.mrf.mxu2 }
 0x45b   :  { %v6216_v30 = vadd.f32 %v6215_v28, %v6196_v52  ;;  %v11710_v28 = vld [vmem:[#allocation9 + $0x1ac] sm:$0xf0]  ;;  %v10827_v52 = vor.u32 %v11746_v61, %v10826_v14  ;;  %v10874_v61 = vld [vmem:[#allocation9 + $0x320] sm:$0xf] }
 0x45c   :  { %v11726_v14 = vld [vmem:[#allocation9 + $0x22c] sm:$0xf0] }
 0x462   :  { %v6295_v40 = vpop.f32.mrf.mxu2 }
 0x463   :  { %v6296_v24 = vadd.f32 %v6295_v40, %v6276_v20  ;;  %v11674_v40 = vld [vmem:[#allocation9 + $0x8c] sm:$0xf0]  ;;  %v10666_v20 = vld [vmem:[#allocation9 + $0x180] sm:$0xf] }
 0x498   :  { %v6235_v53 = vpop.f32.mrf.mxu3 }
 0x499   :  { %v6236_v27 = vadd.f32 %v6235_v53, %v6216_v30  ;;  %v11742_v30 = vld [vmem:[#allocation9 + $0x2ac] sm:$0xf0]  ;;  %v10938_v53 = vld [vmem:[#allocation9 + $0x3a0] sm:$0xf] }
 0x49a   :  { %v10811_v56 = vor.u32 %v11742_v30, %v10810_v21  ;;  %v10875_v30 = vor.u32 %v11758_v50, %v10874_v61  ;;  %v10652_v61 = vld [vmem:[#allocation9 + $0x170] sm:$0xf0] }
 0x49b   :  { %v6318_v18 = vmul.f32 0.044194173, %v6236_v27  ;;  %v11774_v27 = vld [vmem:[#allocation9 + $0x3ac] sm:$0xf0] }
 0x49d   :  { %v6332_v16 = vadd.f32 %v6328_v15, %v6318_v18  ;;  %v10683_v18 = vor.u32 %v11710_v28, %v10682_v2  ;;  %v11690_v2 = vld [vmem:[#allocation9 + $0x10c] sm:$0xf0]  ;;  %v11684_v28 = vld [vmem:[#allocation9 + $0xe4] sm:$0xf] }
 0x49f   :  { %v6335_v57 = vsel %vm6334_vm11, %v6332_v16, -inf }
 0x4a0   :  { %v6315_v5 = vpop.f32.mrf.mxu3  ;;  %6336 = vmax.xlane.f32.xlu2 %v6335_v57  ;;  %v10794_v57 = vld [vmem:[#allocation9 + $0x280] sm:$0xf] }
 0x4a1   :  { %v6316_v17 = vadd.f32 %v6315_v5, %v6296_v24  ;;  %v10939_v24 = vor.u32 %v11774_v27, %v10938_v53  ;;  %v11738_v5 = vld [vmem:[#allocation9 + $0x28c] sm:$0xf0]  ;;  %v10716_v53 = vld [vmem:[#allocation9 + $0x1f0] sm:$0xf0]  ;;  %v10730_v27 = vld [vmem:[#allocation9 + $0x200] sm:$0xf] }
 0x4a3   :  { %v6319_v10 = vmul.f32 0.044194173, %v6316_v17  ;;  %v10922_v17 = vld [vmem:[#allocation9 + $0x380] sm:$0xf] }
 0x4a5   :  { %v6333_v19 = vadd.f32 %v6329_v42, %v6319_v10  ;;  %v11770_v42 = vld [vmem:[#allocation9 + $0x38c] sm:$0xf0]  ;;  %v10539_v10 = vor.u32 %v11674_v40, %v10538_v49  ;;  %v10475_v49 = vor.u32 %v11658_v0, %v10474_v1  ;;  %v10603_v40 = vor.u32 %v11690_v2, %v10602_v8  ;;  %v11768_v0 = vld [vmem:[#allocation9 + $0x384] sm:$0xf]  ;;  %v10924_v2 = vld [vmem:[#allocation9 + $0x390] sm:$0xf0] }
 0x4a7   :  { %v6338_v59 = vsel %vm6334_vm11, %v6333_v19, -inf }
 0x4a8   :  { %6339 = vmax.xlane.f32.xlu2 %v6338_v59  ;;  %v10522_v59 = vld [vmem:[#allocation9 + $0x60] sm:$0xf] }
 0x513   :  { %v6337_v9 = vpop.xlane.xlu2 %6336 }
 0x514   :  { %v6341_v55 = vsub.f32 %v6332_v16, %v6337_v9  ;;  %v11706_v16 = vld [vmem:[#allocation9 + $0x18c] sm:$0xf0] }
 0x515   :  { %v11670_v9 = vld [vmem:[#allocation9 + $0x6c] sm:$0xf0] }
 0x516   :  { %v6343_v38 = vmul.f32 1.442695, %v6341_v55  ;;  %v10650_v55 = vld [vmem:[#allocation9 + $0x160] sm:$0xf] }
 0x518   :  { %11817 = vpow2.f32 %v6343_v38  ;;  %v11702_v38 = vld [vmem:[#allocation9 + $0x16c] sm:$0xf0] }
 0x51b   :  { %v6340_v34 = vpop.xlane.xlu2 %6339 }
 0x51c   :  { %v6342_v23 = vsub.f32 %v6333_v19, %v6340_v34  ;;  %v10667_v19 = vor.u32 %v11706_v16, %v10666_v20  ;;  %v10795_v34 = vor.u32 %v11738_v5, %v10794_v57  ;;  %v10844_v20 = vld [vmem:[#allocation9 + $0x2f0] sm:$0xf0]  ;;  %v11780_v16 = vld [vmem:[#allocation9 + $0x3e4] sm:$0xf] }
 0x51d   :  { %v11680_v5 = vld [vmem:[#allocation9 + $0xc4] sm:$0xf] }
 0x51e   :  { %v11818_v54 = vpop.eup %11817  ;;  %v6345_v32 = vmul.f32 1.442695, %v6342_v23  ;;  %v10923_v23 = vor.u32 %v11770_v42, %v10922_v17  ;;  %v10572_v17 = vld [vmem:[#allocation9 + $0xd0] sm:$0xf0]  ;;  %v11712_v42 = vld [vmem:[#allocation9 + $0x1c4] sm:$0xf] }
 0x51f   :  { %v6347_v48 = vsel %vm6334_vm11, %v11818_v54, 0.0 }
 0x520   :  { %11819 = vpow2.f32 %v6345_v32  ;;  %6348 = vadd.xlane.f32.xlu0 %v6347_v48  ;;  %v11734_v32 = vld [vmem:[#allocation9 + $0x26c] sm:$0xf0]  ;;  %v10906_v48 = vld [vmem:[#allocation9 + $0x360] sm:$0xf] }
 0x526   :  { %v11820_v46 = vpop.eup %11819 }
 0x527   :  { %v6350_v13 = vsel %vm6334_vm11, %v11820_v46, 0.0 }
 0x528   :  { %6351 = vadd.xlane.f32.xlu1 %v6350_v13  ;;  %v10523_v13 = vor.u32 %v11670_v9, %v10522_v59 }
 0x593   :  { %v6349_v12 = vpop.xlane.xlu0 %6348 }
 0x594   :  { %11821 = vrcp.f32 %v6349_v12  ;;  %v10651_v12 = vor.u32 %v11702_v38, %v10650_v55  ;;  %v11744_v38 = vld [vmem:[#allocation9 + $0x2c4] sm:$0xf] }
 0x59a   :  { %v11822_v26 = vpop.eup %11821 }
 0x59b   :  { %v6355_v3 = vmul.f32 %v11822_v26, %v11818_v54  ;;  %v6352_v33 = vpop.xlane.xlu1 %6351  ;;  %v10778_v54 = vld [vmem:[#allocation9 + $0x260] sm:$0xf] }
 0x59c   :  { %11823 = vrcp.f32 %v6352_v33  ;;  %v10779_v4 = vor.u32 %v11734_v32, %v10778_v54  ;;  %v10890_v26 = vld [vmem:[#allocation9 + $0x340] sm:$0xf]  ;;  %v10507_v33 = vor.u32 %v11666_v35, %v10506_v6  ;;  %v10956_v54 = vld [vmem:[#allocation9 + $0x3d0] sm:$0xf0]  ;;  %v10575_v32 = vor.u32 %v11680_v5, %v10572_v17  ;;  %v11728_v17 = vld [vmem:[#allocation9 + $0x244] sm:$0xf] }
 0x59d   :  { %10464 = vmatmul.msk.f32.vlgmr.msra.gmra.mxu0 %vm6334_vm11, %v6355_v3  ;;  %10465 = vmatmul.msk.f32.vlgmr.msra.gmra.mxu1 %vm6334_vm11, %v6355_v3  ;;  %v10684_v6 = vld [vmem:[#allocation9 + $0x1b0] sm:$0xf0] }
 0x59e   :  { %10466 = vmatmul.msk.f32.vlgmr.msra.gmra.mxu2 %vm6334_vm11, %v6355_v3  ;;  %10467 = vmatmul.msk.f32.vlgmr.msra.gmra.mxu3 %vm6334_vm11, %v6355_v3  ;;  %v11762_v3 = vld [vmem:[#allocation9 + $0x34c] sm:$0xf0] }
 0x59f   :  { %7307 = vmatpush.bf16.msra.mxu0 %v10587_v29  ;;  %7321 = vmatpush.bf16.msra.mxu1 %v10715_v7  ;;  %v10635_v29 = vor.u32 %v11698_v31, %v10634_v22  ;;  %v10490_v7 = vld [vmem:[#allocation9 + $0x20] sm:$0xf]  ;;  %v11740_v31 = vld [vmem:[#allocation9 + $0x2a4] sm:$0xf] }
 0x5a0   :  { %7335 = vmatpush.bf16.msra.mxu2 %v10843_v41  ;;  %7349 = vmatpush.bf16.msra.mxu3 %v10971_v39  ;;  %v10891_v41 = vor.u32 %v11762_v3, %v10890_v26  ;;  %v10746_v39 = vld [vmem:[#allocation9 + $0x220] sm:$0xf]  ;;  %v11672_v3 = vld [vmem:[#allocation9 + $0x84] sm:$0xf] }
 0x5a1   :  { %v10747_v21 = vor.u32 %v11726_v14, %v10746_v39  ;;  %v10524_v39 = vld [vmem:[#allocation9 + $0x70] sm:$0xf0]  ;;  %v11700_v14 = vld [vmem:[#allocation9 + $0x164] sm:$0xf] }
 0x5a2   :  { %v11824_v15 = vpop.eup %11823  ;;  %v10655_v1 = vor.u32 %v11700_v14, %v10652_v61  ;;  %v10578_v61 = vld [vmem:[#allocation9 + $0xc8] sm:$0xf] }
 0x5a3   :  { %v6356_v37 = vmul.f32 %v11824_v15, %v11820_v46  ;;  %7308 = vmatpush.bf16.msra.mxu0 %v10571_v45  ;;  %7322 = vmatpush.bf16.msra.mxu1 %v10699_v44  ;;  %v11766_v46 = vld [vmem:[#allocation9 + $0x36c] sm:$0xf0]  ;;  %v10491_v45 = vor.u32 %v11662_v63, %v10490_v7  ;;  %v10619_v44 = vor.u32 %v11694_v58, %v10618_v60  ;;  %v10668_v7 = vld [vmem:[#allocation9 + $0x190] sm:$0xf0] }
 0x5a4   :  { %7336 = vmatpush.bf16.msra.mxu2 %v10827_v52  ;;  %7350 = vmatpush.bf16.msra.mxu3 %v10955_v36  ;;  %v10907_v11 = vor.u32 %v11766_v46, %v10906_v48  ;;  %v10588_v52 = vld [vmem:[#allocation9 + $0xf0] sm:$0xf0]  ;;  %v11716_v36 = vld [vmem:[#allocation9 + $0x1e4] sm:$0xf]  ;;  %v11722_v15 = vld [vmem:[#allocation9 + $0x20c] sm:$0xf0] }
 0x5a5   :  { %10468 = vmatmul.msk.f32.vlgmr.msrb.gmra.mxu0 %vm6334_vm11, %v6356_v37  ;;  %10469 = vmatmul.msk.f32.vlgmr.msrb.gmra.mxu1 %vm6334_vm11, %v6356_v37  ;;  %v10719_v57 = vor.u32 %v11716_v36, %v10716_v53  ;;  %v11676_v46 = vld [vmem:[#allocation9 + $0xa4] sm:$0xf]  ;;  %v10508_v36 = vld [vmem:[#allocation9 + $0x50] sm:$0xf0] }
 0x5a6   :  { %10470 = vmatmul.msk.f32.vlgmr.msrb.gmra.mxu2 %vm6334_vm11, %v6356_v37  ;;  %10471 = vmatmul.msk.f32.vlgmr.msrb.gmra.mxu3 %vm6334_vm11, %v6356_v37  ;;  %v10858_v37 = vld [vmem:[#allocation9 + $0x300] sm:$0xf]  ;;  %v10636_v53 = vld [vmem:[#allocation9 + $0x150] sm:$0xf0] }
 0x5a7   :  { %7309 = vmatpush.bf16.msra.mxu0 %v10555_v62  ;;  %7323 = vmatpush.bf16.msra.mxu1 %v10683_v18  ;;  %v11754_v62 = vld [vmem:[#allocation9 + $0x30c] sm:$0xf0]  ;;  %v11748_v18 = vld [vmem:[#allocation9 + $0x2e4] sm:$0xf] }
 0x5a8   :  { %7337 = vmatpush.bf16.msra.mxu2 %v10811_v56  ;;  %7351 = vmatpush.bf16.msra.mxu3 %v10939_v24  ;;  %v10972_v56 = vld [vmem:[#allocation9 + $0x3f0] sm:$0xf0]  ;;  %v10591_v24 = vor.u32 %v11684_v28, %v10588_v52  ;;  %v10859_v59 = vor.u32 %v11754_v62, %v10858_v37  ;;  %v10847_v9 = vor.u32 %v11748_v18, %v10844_v20  ;;  %v11664_v52 = vld [vmem:[#allocation9 + $0x44] sm:$0xf] }
 0x5a9   :  { %v10975_v55 = vor.u32 %v11780_v16, %v10972_v56  ;;  %v10927_v28 = vor.u32 %v11768_v0, %v10924_v2  ;;  %v11764_v18 = vld [vmem:[#allocation9 + $0x364] sm:$0xf]  ;;  %v10492_v16 = vld [vmem:[#allocation9 + $0x30] sm:$0xf0]  ;;  %v11715_v0 = vld [vmem:[#allocation9 + $0x1d4] sm:$0xf0] }
 0x5aa   :  { %v11660_v20 = vld [vmem:[#allocation9 + $0x24] sm:$0xf]  ;;  %v11751_v2 = vld [vmem:[#allocation9 + $0x2f4] sm:$0xf0] }
 0x5ab   :  { %7310 = vmatpush.bf16.msra.mxu0 %v10539_v10  ;;  %7324 = vmatpush.bf16.msra.mxu1 %v10667_v19  ;;  %v10700_v10 = vld [vmem:[#allocation9 + $0x1d0] sm:$0xf0]  ;;  %v10731_v19 = vor.u32 %v11722_v15, %v10730_v27  ;;  %v11732_v27 = vld [vmem:[#allocation9 + $0x264] sm:$0xf] }
 0x5ac   :  { %7338 = vmatpush.bf16.msra.mxu2 %v10795_v34  ;;  %7352 = vmatpush.bf16.msra.mxu3 %v10923_v23  ;;  %v10828_v34 = vld [vmem:[#allocation9 + $0x2d0] sm:$0xf0]  ;;  %v11776_v23 = vld [vmem:[#allocation9 + $0x3c4] sm:$0xf]  ;;  %v10703_v48 = vor.u32 %v11712_v42, %v10700_v10 }
 0x5ad   :  { %v10831_v35 = vor.u32 %v11744_v38, %v10828_v34  ;;  %v10959_v22 = vor.u32 %v11776_v23, %v10956_v54  ;;  %v10780_v15 = vld [vmem:[#allocation9 + $0x270] sm:$0xf0]  ;;  %v11692_v56 = vld [vmem:[#allocation9 + $0x124] sm:$0xf] }
 0x5ae   :  { %v10783_v62 = vor.u32 %v11732_v27, %v10780_v15  ;;  %v10764_v42 = vld [vmem:[#allocation9 + $0x250] sm:$0xf0]  ;;  %v11760_v10 = vld [vmem:[#allocation9 + $0x344] sm:$0xf]  ;;  %v10690_v27 = vld [vmem:[#allocation9 + $0x1a8] sm:$0xf] }
 0x5af   :  { %7311 = vmatpush.bf16.msra.mxu0 %v10523_v13  ;;  %7325 = vmatpush.bf16.msra.mxu1 %v10651_v12  ;;  %v10556_v13 = vld [vmem:[#allocation9 + $0xb0] sm:$0xf0]  ;;  %v11708_v12 = vld [vmem:[#allocation9 + $0x1a4] sm:$0xf]  ;;  %v11711_v15 = vld [vmem:[#allocation9 + $0x1b4] sm:$0xf0] }
 0x5b0   :  { %7339 = vmatpush.bf16.msra.mxu2 %v10779_v4  ;;  %7353 = vmatpush.bf16.msra.mxu3 %v10907_v11  ;;  %v10812_v4 = vld [vmem:[#allocation9 + $0x2b0] sm:$0xf0]  ;;  %v11772_v11 = vld [vmem:[#allocation9 + $0x3a4] sm:$0xf]  ;;  %v10559_v43 = vor.u32 %v11676_v46, %v10556_v13  ;;  %v10687_v26 = vor.u32 %v11708_v12, %v10684_v6 }
 0x5b1   :  { %v10815_v63 = vor.u32 %v11740_v31, %v10812_v4  ;;  %v10943_v60 = vor.u32 %v11772_v11, %v10940_v47  ;;  %v10476_v38 = vld [vmem:[#allocation9 + $0x10] sm:$0xf0]  ;;  %v11688_v34 = vld [vmem:[#allocation9 + $0x104] sm:$0xf] }
 0x5b2   :  { %v10604_v54 = vld [vmem:[#allocation9 + $0x110] sm:$0xf0]  ;;  %v11756_v13 = vld [vmem:[#allocation9 + $0x324] sm:$0xf] }
 0x5b3   :  { %7312 = vmatpush.bf16.msra.mxu0 %v10507_v33  ;;  %7326 = vmatpush.bf16.msra.mxu1 %v10635_v29  ;;  %v10540_v33 = vld [vmem:[#allocation9 + $0x90] sm:$0xf0]  ;;  %v11704_v29 = vld [vmem:[#allocation9 + $0x184] sm:$0xf] }
 0x5b4   :  { %7340 = vmatpush.bf16.msra.mxu2 %v10763_v51  ;;  %7354 = vmatpush.bf16.msra.mxu3 %v10891_v41  ;;  %v10543_v58 = vor.u32 %v11672_v3, %v10540_v33  ;;  %v10671_v51 = vor.u32 %v11704_v29, %v10668_v7  ;;  %v11668_v41 = vld [vmem:[#allocation9 + $0x64] sm:$0xf]  ;;  %v10748_v46 = vld [vmem:[#allocation9 + $0x230] sm:$0xf0]  ;;  %v10594_v33 = vld [vmem:[#allocation9 + $0xe8] sm:$0xf] }
 0x5b5   :  { %v10527_v50 = vor.u32 %v11668_v41, %v10524_v39  ;;  %v10876_v12 = vld [vmem:[#allocation9 + $0x330] sm:$0xf0]  ;;  %v11752_v11 = vld [vmem:[#allocation9 + $0x304] sm:$0xf]  ;;  %v11687_v29 = vld [vmem:[#allocation9 + $0xf4] sm:$0xf0] }
 0x5b6   :  { %v10732_v31 = vld [vmem:[#allocation9 + $0x210] sm:$0xf0]  ;;  %v10722_v7 = vld [vmem:[#allocation9 + $0x1e8] sm:$0xf]  ;;  %v10595_v39 = vor.u32 %v11687_v29, %v10594_v33  ;;  %v11667_v33 = vld [vmem:[#allocation9 + $0x54] sm:$0xf0] }
 0x5b7   :  { %7313 = vmatpush.bf16.msra.mxu0 %v10491_v45  ;;  %7327 = vmatpush.bf16.msra.mxu1 %v10619_v44  ;;  %v11736_v45 = vld [vmem:[#allocation9 + $0x284] sm:$0xf]  ;;  %v10796_v44 = vld [vmem:[#allocation9 + $0x290] sm:$0xf0]  ;;  %v10642_v29 = vld [vmem:[#allocation9 + $0x148] sm:$0xf] }
 0x5b8   :  { %7341 = vmatpush.bf16.msra.mxu2 %v10747_v21  ;;  %7355 = vmatpush.bf16.msra.mxu3 %v10875_v30  ;;  %v10799_v8 = vor.u32 %v11736_v45, %v10796_v44  ;;  %v11696_v21 = vld [vmem:[#allocation9 + $0x144] sm:$0xf]  ;;  %v10511_v30 = vor.u32 %v11664_v52, %v10508_v36  ;;  %v10860_v47 = vld [vmem:[#allocation9 + $0x310] sm:$0xf0]  ;;  %v11683_v45 = vld [vmem:[#allocation9 + $0xd4] sm:$0xf0] }
 0x5b9   :  { %v10639_v37 = vor.u32 %v11696_v21, %v10636_v53  ;;  %v10706_v44 = vld [vmem:[#allocation9 + $0x1c8] sm:$0xf]  ;;  %v10579_v52 = vor.u32 %v11683_v45, %v10578_v61  ;;  %v11783_v21 = vld [vmem:[#allocation9 + $0x3f4] sm:$0xf0] }
 0x5ba   :  { %v10707_v36 = vor.u32 %v11715_v0, %v10706_v44  ;;  %v11679_v53 = vld [vmem:[#allocation9 + $0xb4] sm:$0xf0]  ;;  %v10498_v45 = vld [vmem:[#allocation9 + $0x28] sm:$0xf] }
 0x5bb   :  { %7314 = vmatpush.bf16.msra.mxu0 %v10475_v49  ;;  %7328 = vmatpush.bf16.msra.mxu1 %v10603_v40  ;;  %v10908_v49 = vld [vmem:[#allocation9 + $0x370] sm:$0xf0]  ;;  %v11663_v44 = vld [vmem:[#allocation9 + $0x34] sm:$0xf0]  ;;  %v10626_v0 = vld [vmem:[#allocation9 + $0x128] sm:$0xf] }
 0x5bc   :  { %7342 = vmatpush.bf16.msra.mxu2 %v10731_v19  ;;  %7356 = vmatpush.bf16.msra.mxu3 %v10859_v59  ;;  %v10911_v40 = vor.u32 %v11764_v18, %v10908_v49  ;;  %v10767_v19 = vor.u32 %v11728_v17, %v10764_v42  ;;  %v10892_v59 = vld [vmem:[#allocation9 + $0x350] sm:$0xf0]  ;;  %v11779_v17 = vld [vmem:[#allocation9 + $0x3d4] sm:$0xf0]  ;;  %v10546_v42 = vld [vmem:[#allocation9 + $0x88] sm:$0xf] }
 0x5bf   :  { %7363 = vmatpush.bf16.msrb.mxu0 %v10591_v24  ;;  %7377 = vmatpush.bf16.msrb.mxu1 %v10719_v57  ;;  %v10495_v24 = vor.u32 %v11660_v20, %v10492_v16  ;;  %v10620_v57 = vld [vmem:[#allocation9 + $0x130] sm:$0xf0]  ;;  %v10834_v20 = vld [vmem:[#allocation9 + $0x2c8] sm:$0xf]  ;;  %v11747_v16 = vld [vmem:[#allocation9 + $0x2d4] sm:$0xf0] }
 0x5c0   :  { %7391 = vmatpush.bf16.msrb.mxu2 %v10847_v9  ;;  %7405 = vmatpush.bf16.msrb.mxu3 %v10975_v55  ;;  %v10623_v5 = vor.u32 %v11692_v56, %v10620_v57  ;;  %v10895_v9 = vor.u32 %v11760_v10, %v10892_v59  ;;  %v11656_v55 = vld [vmem:[#allocation9 + $0x4] sm:$0xf]  ;;  %v10691_v57 = vor.u32 %v11711_v15, %v10690_v27  ;;  %v11675_v10 = vld [vmem:[#allocation9 + $0x94] sm:$0xf0]  ;;  %v10482_v15 = vld [vmem:[#allocation9 + $0x8] sm:$0xf] }
 0x5c1   :  { %v10479_v23 = vor.u32 %v11656_v55, %v10476_v38  ;;  %v11707_v59 = vld [vmem:[#allocation9 + $0x194] sm:$0xf0]  ;;  %v10818_v38 = vld [vmem:[#allocation9 + $0x2a8] sm:$0xf] }
 0x5c3   :  { %7364 = vmatpush.bf16.msrb.mxu0 %v10575_v32  ;;  %7378 = vmatpush.bf16.msrb.mxu1 %v10703_v48  ;;  %v10607_v32 = vor.u32 %v11688_v34, %v10604_v54  ;;  %v11724_v48 = vld [vmem:[#allocation9 + $0x224] sm:$0xf]  ;;  %v10547_v34 = vor.u32 %v11675_v10, %v10546_v42  ;;  %v11743_v54 = vld [vmem:[#allocation9 + $0x2b4] sm:$0xf0]  ;;  %v10882_v10 = vld [vmem:[#allocation9 + $0x328] sm:$0xf] }
 0x5c4   :  { %7392 = vmatpush.bf16.msrb.mxu2 %v10831_v35  ;;  %7406 = vmatpush.bf16.msrb.mxu3 %v10959_v22  ;;  %v10751_v6 = vor.u32 %v11724_v48, %v10748_v46  ;;  %v10879_v35 = vor.u32 %v11756_v13, %v10876_v12  ;;  %v11720_v22 = vld [vmem:[#allocation9 + $0x204] sm:$0xf]  ;;  %v11775_v48 = vld [vmem:[#allocation9 + $0x3b4] sm:$0xf0]  ;;  %v10530_v46 = vld [vmem:[#allocation9 + $0x68] sm:$0xf] }
 0x5c5   :  { %v10735_v4 = vor.u32 %v11720_v22, %v10732_v31  ;;  %v11671_v13 = vld [vmem:[#allocation9 + $0x74] sm:$0xf0]  ;;  %v10658_v12 = vld [vmem:[#allocation9 + $0x168] sm:$0xf] }
 0x5c6   :  { %v10802_v31 = vld [vmem:[#allocation9 + $0x288] sm:$0xf]  ;;  %v11727_v42 = vld [vmem:[#allocation9 + $0x234] sm:$0xf0] }
 0x5c7   :  { %7365 = vmatpush.bf16.msrb.mxu0 %v10559_v43  ;;  %7379 = vmatpush.bf16.msrb.mxu1 %v10687_v26  ;;  %v10863_v43 = vor.u32 %v11752_v11, %v10860_v47  ;;  %v10930_v11 = vld [vmem:[#allocation9 + $0x388] sm:$0xf]  ;;  %v11771_v47 = vld [vmem:[#allocation9 + $0x394] sm:$0xf0] }
 0x5c8   :  { %7393 = vmatpush.bf16.msrb.mxu2 %v10815_v63  ;;  %7407 = vmatpush.bf16.msrb.mxu3 %v10943_v60  ;;  %v11719_v63 = vld [vmem:[#allocation9 + $0x1f4] sm:$0xf0] }
 0x5c9   :  { %v10723_v14 = vor.u32 %v11719_v63, %v10722_v7  ;;  %v11699_v7 = vld [vmem:[#allocation9 + $0x154] sm:$0xf0] }
 0x5ca   :  { %v10643_v61 = vor.u32 %v11699_v7, %v10642_v29  ;;  %v10564_v29 = vld [vmem:[#allocation9 + $0xb8] sm:$0xf0]  ;;  %v11709_v7 = vld [vmem:[#allocation9 + $0x1ac] sm:$0xf] }
 0x5cb   :  { %7366 = vmatpush.bf16.msrb.mxu0 %v10543_v58  ;;  %7380 = vmatpush.bf16.msrb.mxu1 %v10671_v51 }
 0x5cc   :  { %7394 = vmatpush.bf16.msrb.mxu2 %v10799_v8  ;;  %7408 = vmatpush.bf16.msrb.mxu3 %v10927_v28  ;;  %v10850_v8 = vld [vmem:[#allocation9 + $0x2e8] sm:$0xf] }
 0x5cd   :  { %v10978_v28 = vld [vmem:[#allocation9 + $0x3e8] sm:$0xf]  ;;  %v10851_v18 = vor.u32 %v11751_v2, %v10850_v8  ;;  %v11695_v8 = vld [vmem:[#allocation9 + $0x134] sm:$0xf0] }
 0x5ce   :  { %v10979_v49 = vor.u32 %v11783_v21, %v10978_v28  ;;  %v10898_v21 = vld [vmem:[#allocation9 + $0x348] sm:$0xf]  ;;  %v10627_v27 = vor.u32 %v11695_v8, %v10626_v0  ;;  %v10548_v0 = vld [vmem:[#allocation9 + $0x98] sm:$0xf0]  ;;  %v11705_v8 = vld [vmem:[#allocation9 + $0x18c] sm:$0xf] }
 0x5cf   :  { %7367 = vmatpush.bf16.msrb.mxu0 %v10527_v50  ;;  %7381 = vmatpush.bf16.msrb.mxu1 %v10655_v1 }
 0x5d0   :  { %7395 = vmatpush.bf16.msrb.mxu2 %v10783_v62  ;;  %7409 = vmatpush.bf16.msrb.mxu3 %v10911_v40 }
 0x5d3   :  { %7368 = vmatpush.bf16.msrb.mxu0 %v10511_v30  ;;  %7382 = vmatpush.bf16.msrb.mxu1 %v10639_v37  ;;  %v10562_v30 = vld [vmem:[#allocation9 + $0xa8] sm:$0xf] }
 0x5d4   :  { %7396 = vmatpush.bf16.msrb.mxu2 %v10767_v19  ;;  %7410 = vmatpush.bf16.msrb.mxu3 %v10895_v9  ;;  %v10563_v40 = vor.u32 %v11679_v53, %v10562_v30  ;;  %v10674_v19 = vld [vmem:[#allocation9 + $0x188] sm:$0xf]  ;;  %v10835_v9 = vor.u32 %v11747_v16, %v10834_v20  ;;  %v11763_v30 = vld [vmem:[#allocation9 + $0x354] sm:$0xf0]  ;;  %v10499_v53 = vor.u32 %v11663_v44, %v10498_v45  ;;  %v11673_v44 = vld [vmem:[#allocation9 + $0x8c] sm:$0xf] }
 0x5d5   :  { %v10899_v16 = vor.u32 %v11763_v30, %v10898_v21  ;;  %v10820_v21 = vld [vmem:[#allocation9 + $0x2b8] sm:$0xf0]  ;;  %v11773_v30 = vld [vmem:[#allocation9 + $0x3ac] sm:$0xf] }
 0x5d7   :  { %7369 = vmatpush.bf16.msrb.mxu0 %v10495_v24  ;;  %7383 = vmatpush.bf16.msrb.mxu1 %v10623_v5  ;;  %v10962_v5 = vld [vmem:[#allocation9 + $0x3c8] sm:$0xf] }
 0x5d8   :  { %7397 = vmatpush.bf16.msrb.mxu2 %v10751_v6  ;;  %7411 = vmatpush.bf16.msrb.mxu3 %v10879_v35  ;;  %v10963_v55 = vor.u32 %v11779_v17, %v10962_v5  ;;  %v11703_v6 = vld [vmem:[#allocation9 + $0x174] sm:$0xf0]  ;;  %v10819_v35 = vor.u32 %v11743_v54, %v10818_v38  ;;  %v10724_v5 = vld [vmem:[#allocation9 + $0x1f8] sm:$0xf0]  ;;  %v10754_v17 = vld [vmem:[#allocation9 + $0x228] sm:$0xf] }
 0x5d9   :  { %v11713_v54 = vld [vmem:[#allocation9 + $0x1cc] sm:$0xf] }
 0x5db   :  { %7370 = vmatpush.bf16.msrb.mxu0 %v10479_v23  ;;  %7384 = vmatpush.bf16.msrb.mxu1 %v10607_v32  ;;  %v10675_v23 = vor.u32 %v11707_v59, %v10674_v19  ;;  %v10946_v32 = vld [vmem:[#allocation9 + $0x3a8] sm:$0xf]  ;;  %v11759_v19 = vld [vmem:[#allocation9 + $0x334] sm:$0xf0] }
 0x5dc   :  { %7398 = vmatpush.bf16.msrb.mxu2 %v10735_v4  ;;  %7412 = vmatpush.bf16.msrb.mxu3 %v10863_v43  ;;  %v10947_v22 = vor.u32 %v11775_v48, %v10946_v32  ;;  %v11739_v4 = vld [vmem:[#allocation9 + $0x294] sm:$0xf0]  ;;  %v10531_v43 = vor.u32 %v11671_v13, %v10530_v46  ;;  %v10755_v32 = vor.u32 %v11727_v42, %v10754_v17  ;;  %v10708_v46 = vld [vmem:[#allocation9 + $0x1d8] sm:$0xf0]  ;;  %v10738_v13 = vld [vmem:[#allocation9 + $0x208] sm:$0xf] }
 0x5dd   :  { %v10803_v63 = vor.u32 %v11739_v4, %v10802_v31  ;;  %v10883_v48 = vor.u32 %v11759_v19, %v10882_v10  ;;  %v10852_v31 = vld [vmem:[#allocation9 + $0x2f8] sm:$0xf0]  ;;  %v11781_v4 = vld [vmem:[#allocation9 + $0x3ec] sm:$0xf] }
 0x5de   :  { %v10932_v17 = vld [vmem:[#allocation9 + $0x398] sm:$0xf0]  ;;  %v11665_v19 = vld [vmem:[#allocation9 + $0x4c] sm:$0xf] }
 0x61a   :  { %v6377_v26 = vpop.f32.mrf.mxu0  ;;  %v6397_v3 = vpop.f32.mrf.mxu1 }
 0x621   :  { %v6417_v60 = vpop.f32.mrf.mxu2  ;;  %v6437_v58 = vpop.f32.mrf.mxu3 }
 0x622   :  { %v6460_v51 = vpop.f32.mrf.mxu0  ;;  %v6480_v41 = vpop.f32.mrf.mxu1 }
 0x623   :  { %v14301_v50 = vpack.c.bf16 %v6460_v51, %v6377_v26  ;;  %v14303_v1 = vpack.c.bf16 %v6480_v41, %v6397_v3  ;;  %v10659_v26 = vor.u32 %v11703_v6, %v10658_v12  ;;  %v10514_v3 = vld [vmem:[#allocation9 + $0x48] sm:$0xf]  ;;  %v11735_v51 = vld [vmem:[#allocation9 + $0x274] sm:$0xf0] }
 0x624   :  { %v10914_v41 = vld [vmem:[#allocation9 + $0x368] sm:$0xf]  ;;  %v11723_v12 = vld [vmem:[#allocation9 + $0x214] sm:$0xf0] }
 0x625   :  { %7315 = vmatmul.bf16.vlgmr.msra.gmra.mxu0 %v14301_v50  ;;  %7329 = vmatmul.bf16.vlgmr.msra.gmra.mxu1 %v14303_v1  ;;  %v10866_v6 = vld [vmem:[#allocation9 + $0x308] sm:$0xf] }
 0x626   :  { %7419 = vmatpush.bf16.msra.mxu0 %v10595_v39  ;;  %7433 = vmatpush.bf16.msra.mxu1 %v10723_v14  ;;  %v11767_v39 = vld [vmem:[#allocation9 + $0x374] sm:$0xf0]  ;;  %v10515_v14 = vor.u32 %v11667_v33, %v10514_v3  ;;  %v10739_v3 = vor.u32 %v11723_v12, %v10738_v13  ;;  %v11661_v12 = vld [vmem:[#allocation9 + $0x2c] sm:$0xf] }
 0x627   :  { %v10915_v28 = vor.u32 %v11767_v39, %v10914_v41  ;;  %v10836_v41 = vld [vmem:[#allocation9 + $0x2d8] sm:$0xf0]  ;;  %v11777_v39 = vld [vmem:[#allocation9 + $0x3cc] sm:$0xf] }
 0x629   :  { %v6500_v37 = vpop.f32.mrf.mxu2  ;;  %v6520_v62 = vpop.f32.mrf.mxu3 }
 0x62a   :  { %v14307_v56 = vpack.c.bf16 %v6500_v37, %v6417_v60  ;;  %v14309_v24 = vpack.c.bf16 %v6520_v62, %v6437_v58  ;;  %7420 = vmatpush.bf16.msra.mxu0 %v10579_v52  ;;  %7434 = vmatpush.bf16.msra.mxu1 %v10707_v36  ;;  %v10931_v60 = vor.u32 %v11771_v47, %v10930_v11  ;;  %v10786_v58 = vld [vmem:[#allocation9 + $0x268] sm:$0xf]  ;;  %v11731_v36 = vld [vmem:[#allocation9 + $0x254] sm:$0xf0]  ;;  %v10980_v11 = vld [vmem:[#allocation9 + $0x3f8] sm:$0xf0] }
 0x62b   :  { %v10787_v2 = vor.u32 %v11735_v51, %v10786_v58  ;;  %v10770_v52 = vld [vmem:[#allocation9 + $0x248] sm:$0xf]  ;;  %v11659_v37 = vld [vmem:[#allocation9 + $0x14] sm:$0xf0]  ;;  %v10983_v58 = vor.u32 %v11781_v4, %v10980_v11  ;;  %v11745_v51 = vld [vmem:[#allocation9 + $0x2cc] sm:$0xf] }
 0x62c   :  { %7343 = vmatmul.bf16.vlgmr.msra.gmra.mxu2 %v14307_v56  ;;  %7357 = vmatmul.bf16.vlgmr.msra.gmra.mxu3 %v14309_v24  ;;  %v10610_v62 = vld [vmem:[#allocation9 + $0x108] sm:$0xf]  ;;  %v10771_v20 = vor.u32 %v11731_v36, %v10770_v52  ;;  %v10483_v59 = vor.u32 %v11659_v37, %v10482_v15  ;;  %v11741_v36 = vld [vmem:[#allocation9 + $0x2ac] sm:$0xf] }
 0x62d   :  { %7447 = vmatpush.bf16.msra.mxu2 %v10851_v18  ;;  %7461 = vmatpush.bf16.msra.mxu3 %v10979_v49  ;;  %v11691_v18 = vld [vmem:[#allocation9 + $0x114] sm:$0xf0]  ;;  %v11685_v49 = vld [vmem:[#allocation9 + $0xec] sm:$0xf] }
 0x62e   :  { %7421 = vmatpush.bf16.msra.mxu0 %v10563_v40  ;;  %7435 = vmatpush.bf16.msra.mxu1 %v10691_v57  ;;  %v10596_v40 = vld [vmem:[#allocation9 + $0xf8] sm:$0xf0]  ;;  %v11717_v57 = vld [vmem:[#allocation9 + $0x1ec] sm:$0xf] }
 0x62f   :  { %v10727_v38 = vor.u32 %v11717_v57, %v10724_v5  ;;  %v11669_v37 = vld [vmem:[#allocation9 + $0x6c] sm:$0xf]  ;;  %v10804_v57 = vld [vmem:[#allocation9 + $0x298] sm:$0xf0] }
 0x630   :  { %v11769_v5 = vld [vmem:[#allocation9 + $0x38c] sm:$0xf] }
 0x631   :  { %7448 = vmatpush.bf16.msra.mxu2 %v10835_v9  ;;  %7462 = vmatpush.bf16.msra.mxu3 %v10963_v55  ;;  %v10611_v9 = vor.u32 %v11691_v18, %v10610_v62  ;;  %v10599_v55 = vor.u32 %v11685_v49, %v10596_v40  ;;  %v10532_v62 = vld [vmem:[#allocation9 + $0x78] sm:$0xf0]  ;;  %v11701_v18 = vld [vmem:[#allocation9 + $0x16c] sm:$0xf]  ;;  %v10823_v40 = vor.u32 %v11741_v36, %v10820_v21 }
 0x632   :  { %7422 = vmatpush.bf16.msra.mxu0 %v10547_v34  ;;  %7436 = vmatpush.bf16.msra.mxu1 %v10675_v23  ;;  %v11681_v34 = vld [vmem:[#allocation9 + $0xcc] sm:$0xf]  ;;  %v10580_v23 = vld [vmem:[#allocation9 + $0xd8] sm:$0xf0]  ;;  %v10535_v42 = vor.u32 %v11669_v37, %v10532_v62 }
 0x633   :  { %v10583_v47 = vor.u32 %v11681_v34, %v10580_v23  ;;  %v10660_v49 = vld [vmem:[#allocation9 + $0x178] sm:$0xf0]  ;;  %v10935_v34 = vor.u32 %v11769_v5, %v10932_v17  ;;  %v11733_v23 = vld [vmem:[#allocation9 + $0x26c] sm:$0xf] }
 0x634   :  { %v10663_v10 = vor.u32 %v11701_v18, %v10660_v49  ;;  %v11729_v11 = vld [vmem:[#allocation9 + $0x24c] sm:$0xf]  ;;  %v10868_v36 = vld [vmem:[#allocation9 + $0x318] sm:$0xf0] }
 0x635   :  { %7449 = vmatpush.bf16.msra.mxu2 %v10819_v35  ;;  %7463 = vmatpush.bf16.msra.mxu3 %v10947_v22  ;;  %v11755_v35 = vld [vmem:[#allocation9 + $0x314] sm:$0xf0]  ;;  %v11749_v22 = vld [vmem:[#allocation9 + $0x2ec] sm:$0xf] }
 0x636   :  { %7371 = vmatmul.bf16.vlgmr.msrb.gmra.mxu0 %v14301_v50  ;;  %7385 = vmatmul.bf16.vlgmr.msrb.gmra.mxu1 %v14303_v1  ;;  %v10867_v33 = vor.u32 %v11755_v35, %v10866_v6  ;;  %v10500_v6 = vld [vmem:[#allocation9 + $0x38] sm:$0xf0]  ;;  %v11693_v35 = vld [vmem:[#allocation9 + $0x12c] sm:$0xf] }
 0x637   :  { %7423 = vmatpush.bf16.msra.mxu0 %v10531_v43  ;;  %7437 = vmatpush.bf16.msra.mxu1 %v10659_v26  ;;  %v10711_v43 = vor.u32 %v11713_v54, %v10708_v46  ;;  %v11677_v26 = vld [vmem:[#allocation9 + $0xac] sm:$0xf]  ;;  %v10788_v54 = vld [vmem:[#allocation9 + $0x278] sm:$0xf0] }
 0x639   :  { %7450 = vmatpush.bf16.msra.mxu2 %v10803_v63  ;;  %7464 = vmatpush.bf16.msra.mxu3 %v10931_v60  ;;  %v10692_v63 = vld [vmem:[#allocation9 + $0x1b8] sm:$0xf0]  ;;  %v10855_v60 = vor.u32 %v11749_v22, %v10852_v31  ;;  %v10791_v31 = vor.u32 %v11733_v23, %v10788_v54 }
 0x63a   :  { %v10695_v45 = vor.u32 %v11709_v7, %v10692_v63  ;;  %v10628_v22 = vld [vmem:[#allocation9 + $0x138] sm:$0xf0]  ;;  %v11689_v63 = vld [vmem:[#allocation9 + $0x10c] sm:$0xf] }
 0x63b   :  { %7424 = vmatpush.bf16.msra.mxu0 %v10515_v14  ;;  %7438 = vmatpush.bf16.msra.mxu1 %v10643_v61  ;;  %v10964_v14 = vld [vmem:[#allocation9 + $0x3d8] sm:$0xf0]  ;;  %v10567_v61 = vor.u32 %v11677_v26, %v10564_v29  ;;  %v11657_v29 = vld [vmem:[#allocation9 + $0xc] sm:$0xf] }
 0x63c   :  { %7399 = vmatmul.bf16.vlgmr.msrb.gmra.mxu2 %v14307_v56  ;;  %7413 = vmatmul.bf16.vlgmr.msrb.gmra.mxu3 %v14309_v24  ;;  %v10967_v52 = vor.u32 %v11777_v39, %v10964_v14  ;;  %v10900_v26 = vld [vmem:[#allocation9 + $0x358] sm:$0xf0]  ;;  %v11757_v14 = vld [vmem:[#allocation9 + $0x32c] sm:$0xf] }
 0x63d   :  { %7451 = vmatpush.bf16.msra.mxu2 %v10787_v2  ;;  %7465 = vmatpush.bf16.msra.mxu3 %v10915_v28  ;;  %v10676_v2 = vld [vmem:[#allocation9 + $0x198] sm:$0xf0]  ;;  %v10839_v28 = vor.u32 %v11745_v51, %v10836_v41  ;;  %v11725_v41 = vld [vmem:[#allocation9 + $0x22c] sm:$0xf] }
 0x63e   :  { %v10679_v15 = vor.u32 %v11705_v8, %v10676_v2  ;;  %v10484_v7 = vld [vmem:[#allocation9 + $0x18] sm:$0xf0]  ;;  %v11721_v2 = vld [vmem:[#allocation9 + $0x20c] sm:$0xf] }
 0x63f   :  { %7425 = vmatpush.bf16.msra.mxu0 %v10499_v53  ;;  %7439 = vmatpush.bf16.msra.mxu1 %v10627_v27  ;;  %v10948_v53 = vld [vmem:[#allocation9 + $0x3b8] sm:$0xf0]  ;;  %v10551_v27 = vor.u32 %v11673_v44, %v10548_v0 }
 0x640   :  { %v10756_v39 = vld [vmem:[#allocation9 + $0x238] sm:$0xf0] }
 0x641   :  { %7452 = vmatpush.bf16.msra.mxu2 %v10771_v20  ;;  %7466 = vmatpush.bf16.msra.mxu3 %v10899_v16  ;;  %v10951_v20 = vor.u32 %v11773_v30, %v10948_v53  ;;  %v11737_v16 = vld [vmem:[#allocation9 + $0x28c] sm:$0xf]  ;;  %v10759_v0 = vor.u32 %v11725_v41, %v10756_v39  ;;  %v11845_v53 = vld [vmem:[%s14425_s10] sm:$0x77] }
 0x643   :  { %7426 = vmatpush.bf16.msra.mxu0 %v10483_v59  ;;  %7440 = vmatpush.bf16.msra.mxu1 %v10611_v9  ;;  %v10516_v59 = vld [vmem:[#allocation9 + $0x58] sm:$0xf0]  ;;  %v11697_v9 = vld [vmem:[#allocation9 + $0x14c] sm:$0xf] }
 0x644   :  { %v10519_v46 = vor.u32 %v11665_v19, %v10516_v59 }
 0x645   :  { %7453 = vmatpush.bf16.msra.mxu2 %v10755_v32  ;;  %7467 = vmatpush.bf16.msra.mxu3 %v10883_v48  ;;  %v11765_v32 = vld [vmem:[#allocation9 + $0x36c] sm:$0xf]  ;;  %v10916_v48 = vld [vmem:[#allocation9 + $0x378] sm:$0xf0] }
 0x646   :  { %7427 = vmatmul.bf16.vlgmr.msra.gmra.mxu0 %v14301_v50  ;;  %7441 = vmatmul.bf16.vlgmr.msra.gmra.mxu1 %v14303_v1  ;;  %v10919_v4 = vor.u32 %v11765_v32, %v10916_v48 }
 0x647   :  { %7475 = vmatpush.bf16.msrb.mxu0 %v10599_v55  ;;  %7489 = vmatpush.bf16.msrb.mxu1 %v10727_v38  ;;  %v10644_v55 = vld [vmem:[#allocation9 + $0x158] sm:$0xf0]  ;;  %v10807_v38 = vor.u32 %v11737_v16, %v10804_v57 }
 0x648   :  { %v10647_v13 = vor.u32 %v11697_v9, %v10644_v55 }
 0x649   :  { %7454 = vmatpush.bf16.msra.mxu2 %v10739_v3  ;;  %7468 = vmatpush.bf16.msra.mxu3 %v10867_v33  ;;  %v10503_v3 = vor.u32 %v11661_v12, %v10500_v6  ;;  %v10631_v33 = vor.u32 %v11693_v35, %v10628_v22 }
 0x64b   :  { %7476 = vmatpush.bf16.msrb.mxu0 %v10583_v47  ;;  %7490 = vmatpush.bf16.msrb.mxu1 %v10711_v43  ;;  %v10772_v47 = vld [vmem:[#allocation9 + $0x258] sm:$0xf0]  ;;  %v11761_v43 = vld [vmem:[#allocation9 + $0x34c] sm:$0xf] }
 0x64c   :  { %7455 = vmatmul.bf16.vlgmr.msra.gmra.mxu2 %v14307_v56  ;;  %7469 = vmatmul.bf16.vlgmr.msra.gmra.mxu3 %v14309_v24  ;;  %v10903_v51 = vor.u32 %v11761_v43, %v10900_v26 }
 0x64d   :  { %7503 = vmatpush.bf16.msrb.mxu2 %v10855_v60  ;;  %7517 = vmatpush.bf16.msrb.mxu3 %v10983_v58  ;;  %v10612_v60 = vld [vmem:[#allocation9 + $0x118] sm:$0xf0]  ;;  %v10775_v58 = vor.u32 %v11729_v11, %v10772_v47 }
 0x64e   :  { %v10615_v44 = vor.u32 %v11689_v63, %v10612_v60 }
 0x64f   :  { %7477 = vmatpush.bf16.msrb.mxu0 %v10567_v61  ;;  %7491 = vmatpush.bf16.msrb.mxu1 %v10695_v45  ;;  %v10884_v61 = vld [vmem:[#allocation9 + $0x338] sm:$0xf0]  ;;  %v10487_v45 = vor.u32 %v11657_v29, %v10484_v7 }
 0x650   :  { %v10887_v8 = vor.u32 %v11757_v14, %v10884_v61  ;;  %v14334_v7 = vld [vmem:[%s14425_s10 + $0x8] sm:$0x77] }
 0x651   :  { %7504 = vmatpush.bf16.msrb.mxu2 %v10839_v28  ;;  %7518 = vmatpush.bf16.msrb.mxu3 %v10967_v52  ;;  %v10740_v28 = vld [vmem:[#allocation9 + $0x218] sm:$0xf0]  ;;  %v11753_v52 = vld [vmem:[#allocation9 + $0x30c] sm:$0xf]  ;;  %v6657_v63 = vperm.slane %v14334_v7, 2 }
 0x652   :  { %v10743_v21 = vor.u32 %v11721_v2, %v10740_v28  ;;  %v10871_v30 = vor.u32 %v11753_v52, %v10868_v36 }
 0x653   :  { %7478 = vmatpush.bf16.msrb.mxu0 %v10551_v27  ;;  %7492 = vmatpush.bf16.msrb.mxu1 %v10679_v15  ;;  %v6655_v27 = vperm.slane %v11845_v53, 2 }
 0x655   :  { %7505 = vmatpush.bf16.msrb.mxu2 %v10823_v40  ;;  %7519 = vmatpush.bf16.msrb.mxu3 %v10951_v20  ;;  %v6663_v62 = vperm.slane %v6655_v27, 2 }
 0x657   :  { %7479 = vmatpush.bf16.msrb.mxu0 %v10535_v42  ;;  %7493 = vmatpush.bf16.msrb.mxu1 %v10663_v10 }
 0x659   :  { %7506 = vmatpush.bf16.msrb.mxu2 %v10807_v38  ;;  %7520 = vmatpush.bf16.msrb.mxu3 %v10935_v34 }
 0x65b   :  { %7480 = vmatpush.bf16.msrb.mxu0 %v10519_v46  ;;  %7494 = vmatpush.bf16.msrb.mxu1 %v10647_v13 }
 0x65d   :  { %7507 = vmatpush.bf16.msrb.mxu2 %v10791_v31  ;;  %7521 = vmatpush.bf16.msrb.mxu3 %v10919_v4 }
 0x65f   :  { %7481 = vmatpush.bf16.msrb.mxu0 %v10503_v3  ;;  %7495 = vmatpush.bf16.msrb.mxu1 %v10631_v33 }
 0x661   :  { %7508 = vmatpush.bf16.msrb.mxu2 %v10775_v58  ;;  %7522 = vmatpush.bf16.msrb.mxu3 %v10903_v51 }
 0x663   :  { %7482 = vmatpush.bf16.msrb.mxu0 %v10487_v45  ;;  %7496 = vmatpush.bf16.msrb.mxu1 %v10615_v44  ;;  %v6665_v44 = vperm.slane %v6657_v63, 2 }
 0x665   :  { %7509 = vmatpush.bf16.msrb.mxu2 %v10759_v0  ;;  %7523 = vmatpush.bf16.msrb.mxu3 %v10887_v8 }
 0x666   :  { %7483 = vmatmul.bf16.vlgmr.msrb.gmra.mxu0 %v14301_v50  ;;  %7497 = vmatmul.bf16.vlgmr.msrb.gmra.mxu1 %v14303_v1 }
 0x669   :  { %7510 = vmatpush.bf16.msrb.mxu2 %v10743_v21  ;;  %7524 = vmatpush.bf16.msrb.mxu3 %v10871_v30 }
 0x66c   :  { %7511 = vmatmul.bf16.vlgmr.msrb.gmra.mxu2 %v14307_v56  ;;  %7525 = vmatmul.bf16.vlgmr.msrb.gmra.mxu3 %v14309_v24  ;;  %v6656_v56 = vperm.slane %v11845_v53, 6 }
 0x66e   :  { %v6664_v19 = vperm.slane %v6656_v56, 2 }
 0x6a2   :  { %v7316_v15 = vpop.f32.mrf.mxu0  ;;  %v7330_v37 = vpop.f32.mrf.mxu1 }
 0x6a3   :  { %v7317_v18 = vadd.f32 %v7316_v15, %v6663_v62 }
 0x6a5   :  { %v7331_v40 = vadd.f32 %v7330_v37, %v7317_v18 }
 0x6aa   :  { %v7318_v49 = vpop.f32.mrf.mxu0  ;;  %v7332_v50 = vpop.f32.mrf.mxu1 }
 0x6ab   :  { %v7319_v57 = vadd.f32 %v7318_v49, %v6663_v62 }
 0x6ad   :  { %v7333_v42 = vadd.f32 %v7332_v50, %v7319_v57 }
 0x6af   :  { %v7344_v20 = vpop.f32.mrf.mxu2  ;;  %v7358_v1 = vpop.f32.mrf.mxu3 }
 0x6b0   :  { %v7345_v16 = vadd.f32 %v7344_v20, %v7331_v40 }
 0x6b2   :  { %v7359_v5 = vadd.f32 %v7358_v1, %v7345_v16 }
 0x6b3   :  { %v7372_v17 = vpop.f32.mrf.mxu0  ;;  %v7386_v38 = vpop.f32.mrf.mxu1 }
 0x6b4   :  { %v7531_v24 = vrot.slane %v7359_v5, 4  ;;  %v7373_v54 = vadd.f32 %v7372_v17, %v6664_v19 }
 0x6b6   :  { %v7532_v10 = vadd.f32 %v7531_v24, %v7359_v5  ;;  %v7387_v6 = vadd.f32 %v7386_v38, %v7373_v54 }
 0x6b7   :  { %v7346_v59 = vpop.f32.mrf.mxu2  ;;  %v7360_v9 = vpop.f32.mrf.mxu3 }
 0x6b8   :  { %v7533_v55 = vrot.slane %v7532_v10, 2  ;;  %v7347_v34 = vadd.f32 %v7346_v59, %v7333_v42 }
 0x6ba   :  { %v7534_v23 = vadd.f32 %v7533_v55, %v7532_v10  ;;  %v7361_v32 = vadd.f32 %v7360_v9, %v7347_v34 }
 0x6bb   :  { %v7374_v48 = vpop.f32.mrf.mxu0  ;;  %v7388_v33 = vpop.f32.mrf.mxu1 }
 0x6bc   :  { %v7535_v46 = vrot.slane %v7534_v23, 1  ;;  %v7555_v13 = vrot.slane %v7361_v32, 4  ;;  %v7375_v3 = vadd.f32 %v7374_v48, %v6664_v19 }
 0x6be   :  { %v7536_v12 = vadd.f32 %v7535_v46, %v7534_v23  ;;  %v7556_v35 = vadd.f32 %v7555_v13, %v7361_v32  ;;  %v7389_v61 = vadd.f32 %v7388_v33, %v7375_v3 }
 0x6bf   :  { %v7400_v22 = vpop.f32.mrf.mxu2  ;;  %v7414_v31 = vpop.f32.mrf.mxu3 }
 0x6c0   :  { %v7579_v4 = vmul.f32 %v7536_v12, %v14143_v25  ;;  %v7557_v11 = vrot.slane %v7556_v35, 2  ;;  %v7401_v47 = vadd.f32 %v7400_v22, %v7387_v6 }
 0x6c2   :  { %v14329_v43 = vsub.f32 %v7359_v5, %v7579_v4  ;;  %v7558_v26 = vadd.f32 %v7557_v11, %v7556_v35  ;;  %v7415_v29 = vadd.f32 %v7414_v31, %v7401_v47 }
 0x6c3   :  { %v7428_v41 = vpop.f32.mrf.mxu0  ;;  %v7442_v49 = vpop.f32.mrf.mxu1 }
 0x6c4   :  { %v7595_v60 = vmul.f32 %v14329_v43, %v14329_v43  ;;  %v7559_v58 = vrot.slane %v7558_v26, 1  ;;  %v7537_v51 = vrot.slane %v7415_v29, 4  ;;  %v7429_v15 = vadd.f32 %v7428_v41, %v6665_v44 }
 0x6c6   :  { %v7603_v39 = vrot.slane %v7595_v60, 4  ;;  %v7560_v14 = vadd.f32 %v7559_v58, %v7558_v26  ;;  %v7538_v45 = vadd.f32 %v7537_v51, %v7415_v29  ;;  %v7443_v57 = vadd.f32 %v7442_v49, %v7429_v15 }
 0x6c7   :  { %v7402_v0 = vpop.f32.mrf.mxu2  ;;  %v7416_v8 = vpop.f32.mrf.mxu3 }
 0x6c8   :  { %v7604_v2 = vadd.f32 %v7603_v39, %v7595_v60  ;;  %v7583_v28 = vmul.f32 %v7560_v14, %v14143_v25  ;;  %v7539_v52 = vrot.slane %v7538_v45, 2  ;;  %v7403_v36 = vadd.f32 %v7402_v0, %v7389_v61 }
 0x6ca   :  { %v7605_v21 = vrot.slane %v7604_v2, 2  ;;  %v14340_v30 = vsub.f32 %v7361_v32, %v7583_v28  ;;  %v7540_v53 = vadd.f32 %v7539_v52, %v7538_v45  ;;  %v7417_v27 = vadd.f32 %v7416_v8, %v7403_v36 }
 0x6cb   :  { %v7430_v5 = vpop.f32.mrf.mxu0  ;;  %v7444_v22 = vpop.f32.mrf.mxu1 }
 0x6cc   :  { %v7606_v37 = vadd.f32 %v7605_v21, %v7604_v2  ;;  %v7599_v62 = vmul.f32 %v14340_v30, %v14340_v30  ;;  %v7541_v18 = vrot.slane %v7540_v53, 1  ;;  %v7561_v40 = vrot.slane %v7417_v27, 4 }
 0x6cd   :  { %v7431_v23 = vadd.f32 %v7430_v5, %v6665_v44 }
 0x6ce   :  { %v7607_v50 = vrot.slane %v7606_v37, 1  ;;  %v7627_v20 = vrot.slane %v7599_v62, 4  ;;  %v7542_v1 = vadd.f32 %v7541_v18, %v7540_v53  ;;  %v7562_v16 = vadd.f32 %v7561_v40, %v7417_v27 }
 0x6cf   :  { %v7456_v10 = vpop.f32.mrf.mxu2  ;;  %v7470_v19 = vpop.f32.mrf.mxu3  ;;  %v7445_v4 = vadd.f32 %v7444_v22, %v7431_v23 }
 0x6d0   :  { %v7608_v56 = vadd.f32 %v7607_v50, %v7606_v37  ;;  %v7628_v17 = vadd.f32 %v7627_v20, %v7599_v62  ;;  %v7580_v24 = vmul.f32 %v7542_v1, %v14143_v25  ;;  %v7563_v42 = vrot.slane %v7562_v16, 2 }
 0x6d1   :  { %v7457_v59 = vadd.f32 %v7456_v10, %v7443_v57  ;;  %v6658_v37 = vperm.slane %v14334_v7, 6 }
 0x6d2   :  { %v7651_v9 = vmul.f32 %v7608_v56, %v14143_v25  ;;  %v7629_v55 = vrot.slane %v7628_v17, 2  ;;  %v14346_v38 = vsub.f32 %v7415_v29, %v7580_v24  ;;  %v7564_v34 = vadd.f32 %v7563_v42, %v7562_v16 }
 0x6d3   :  { %v7471_v54 = vadd.f32 %v7470_v19, %v7457_v59  ;;  %v6666_v24 = vperm.slane %v6658_v37, 2 }
 0x6d4   :  { %v7659_v32 = vadd.f32 1e-05, %v7651_v9  ;;  %v7630_v48 = vadd.f32 %v7629_v55, %v7628_v17  ;;  %v7596_v46 = vmul.f32 %v14346_v38, %v14346_v38  ;;  %v7565_v13 = vrot.slane %v7564_v34, 1 }
 0x6d5   :  { %v7543_v12 = vrot.slane %v7471_v54, 4 }
 0x6d6   :  { %11825 = vrsqrt.f32 %v7659_v32  ;;  %v7631_v6 = vrot.slane %v7630_v48, 1  ;;  %v7609_v35 = vrot.slane %v7596_v46, 4  ;;  %v7566_v31 = vadd.f32 %v7565_v13, %v7564_v34 }
 0x6d7   :  { %v7544_v11 = vadd.f32 %v7543_v12, %v7471_v54  ;;  %v7458_v3 = vpop.f32.mrf.mxu2  ;;  %v7472_v51 = vpop.f32.mrf.mxu3  ;;  %vm7673_vm13 = vweird.f32 %v7659_v32 }
 0x6d8   :  { %v7632_v47 = vadd.f32 %v7631_v6, %v7630_v48  ;;  %v7610_v26 = vadd.f32 %v7609_v35, %v7596_v46  ;;  %v7584_v33 = vmul.f32 %v7566_v31, %v14143_v25  ;;  %v7459_v63 = vadd.f32 %v7458_v3, %v7445_v4 }
 0x6d9   :  { %v7545_v29 = vrot.slane %v7544_v11, 2 }
 0x6da   :  { %v7655_v60 = vmul.f32 %v7632_v47, %v14143_v25  ;;  %v7611_v58 = vrot.slane %v7610_v26, 2  ;;  %v14352_v41 = vsub.f32 %v7417_v27, %v7584_v33  ;;  %v7473_v14 = vadd.f32 %v7472_v51, %v7459_v63 }
 0x6db   :  { %v7546_v39 = vadd.f32 %v7545_v29, %v7544_v11 }
 0x6dc   :  { %v11826_v61 = vpop.eup %11825  ;;  %v14354_v45 = vadd.f32 1e-05, %v7655_v60  ;;  %v7612_v44 = vadd.f32 %v7611_v58, %v7610_v26  ;;  %v7600_v8 = vmul.f32 %v14352_v41, %v14352_v41  ;;  %v7567_v52 = vrot.slane %v7473_v14, 4 }
 0x6dd   :  { %v7668_v0 = vmul.f32 %v11826_v61, %v7659_v32  ;;  %v7547_v2 = vrot.slane %v7546_v39, 1  ;;  %vm7674_vm12 = vweird.f32 %v11826_v61 }
 0x6de   :  { %11827 = vrsqrt.f32 %v14354_v45  ;;  %v7613_v28 = vrot.slane %v7612_v44, 1  ;;  %v7633_v21 = vrot.slane %v7600_v8, 4  ;;  %v7568_v15 = vadd.f32 %v7567_v52, %v7473_v14  ;;  %vm7675_vm14 = vmor %vm7673_vm13, %vm7674_vm12 }
 0x6df   :  { %v7669_v36 = vmul.f32 %v11826_v61, %v7668_v0  ;;  %v7548_v53 = vadd.f32 %v7547_v2, %v7546_v39  ;;  %vm7713_vm0 = vweird.f32 %v14354_v45 }
 0x6e0   :  { %v7614_v27 = vadd.f32 %v7613_v28, %v7612_v44  ;;  %v7634_v18 = vadd.f32 %v7633_v21, %v7600_v8  ;;  %v7569_v20 = vrot.slane %v7568_v15, 2 }
 0x6e1   :  { %v7670_v62 = vmul.f32 0.5, %v7669_v36  ;;  %v7581_v49 = vmul.f32 %v7548_v53, %v14143_v25 }
 0x6e2   :  { %v7652_v50 = vmul.f32 %v7614_v27, %v14143_v25  ;;  %v7635_v16 = vrot.slane %v7634_v18, 2  ;;  %v7570_v17 = vadd.f32 %v7569_v20, %v7568_v15 }
 0x6e3   :  { %v7484_v40 = vpop.f32.mrf.mxu0  ;;  %v7671_v1 = vsub.f32 1.5, %v7670_v62  ;;  %v14362_v57 = vsub.f32 %v7471_v54, %v7581_v49  ;;  %v7498_v13 = vpop.f32.mrf.mxu1 }
 0x6e4   :  { %v11828_v5 = vpop.eup %11827  ;;  %v14364_v56 = vadd.f32 1e-05, %v7652_v50  ;;  %v7636_v10 = vadd.f32 %v7635_v16, %v7634_v18  ;;  %v7571_v59 = vrot.slane %v7570_v17, 1  ;;  %v7485_v46 = vadd.f32 %v7484_v40, %v6666_v24 }
 0x6e5   :  { %v7672_v42 = vmul.f32 %v11826_v61, %v7671_v1  ;;  %v7708_v7 = vmul.f32 %v11828_v5, %v14354_v45  ;;  %v7597_v19 = vmul.f32 %v14362_v57, %v14362_v57  ;;  %vm7714_vm15 = vweird.f32 %v11828_v5 }
 0x6e6   :  { %11829 = vrsqrt.f32 %v14364_v56  ;;  %v7637_v34 = vrot.slane %v7636_v10, 1  ;;  %v7572_v48 = vadd.f32 %v7571_v59, %v7570_v17  ;;  %v7499_v26 = vadd.f32 %v7498_v13, %v7485_v46  ;;  %vm7715_vm1 = vmor %vm7713_vm0, %vm7714_vm15 }
 0x6e7   :  { %v7676_v9 = vsel %vm7675_vm14, %v11826_v61, %v7672_v42  ;;  %v7709_v55 = vmul.f32 %v11828_v5, %v7708_v7  ;;  %v7615_v54 = vrot.slane %v7597_v19, 4  ;;  %vm7683_vm3 = vweird.f32 %v14364_v56 }
 0x6e8   :  { %v7747_v23 = vmul.f32 %v7676_v9, %v14329_v43  ;;  %v7638_v12 = vadd.f32 %v7637_v34, %v7636_v10  ;;  %v7585_v35 = vmul.f32 %v7572_v48, %v14143_v25 }
 0x6e9   :  { %v7710_v32 = vmul.f32 0.5, %v7709_v55  ;;  %v7616_v6 = vadd.f32 %v7615_v54, %v7597_v19 }
 0x6ea   :  { %7755 = vst [vmem:[%s14427_s12] sm:$0xff] %v7747_v23  ;;  %v7656_v31 = vmul.f32 %v7638_v12, %v14143_v25  ;;  %v14376_v47 = vsub.f32 %v7473_v14, %v7585_v35 }
 0x6eb   :  { %v7711_v22 = vsub.f32 1.5, %v7710_v32  ;;  %v7486_v4 = vpop.f32.mrf.mxu0  ;;  %v7617_v43 = vrot.slane %v7616_v6, 2  ;;  %v7500_v21 = vpop.f32.mrf.mxu1 }
 0x6ec   :  { %v11830_v11 = vpop.eup %11829  ;;  %v7664_v60 = vadd.f32 1e-05, %v7656_v31  ;;  %v7601_v51 = vmul.f32 %v14376_v47, %v14376_v47  ;;  %v7487_v14 = vadd.f32 %v7486_v4, %v6666_v24 }
 0x6ed   :  { %v7712_v29 = vmul.f32 %v11828_v5, %v7711_v22  ;;  %v7678_v63 = vmul.f32 %v11830_v11, %v14364_v56  ;;  %v7618_v58 = vadd.f32 %v7617_v43, %v7616_v6  ;;  %vm7684_vm2 = vweird.f32 %v11830_v11 }
 0x6ee   :  { %11831 = vrsqrt.f32 %v7664_v60  ;;  %v7639_v2 = vrot.slane %v7601_v51, 4  ;;  %v7501_v15 = vadd.f32 %v7500_v21, %v7487_v14  ;;  %vm7685_vm4 = vmor %vm7683_vm3, %vm7684_vm2  ;;  %vm7723_vm6 = vweird.f32 %v7664_v60 }
 0x6ef   :  { %v7512_v3 = vpop.f32.mrf.mxu2  ;;  %v7526_v33 = vpop.f32.mrf.mxu3  ;;  %v7716_v61 = vsel %vm7715_vm1, %v11828_v5, %v7712_v29  ;;  %v7679_v44 = vmul.f32 %v11830_v11, %v7678_v63  ;;  %v7619_v8 = vrot.slane %v7618_v58, 1 }
 0x6f0   :  { %v7513_v39 = vadd.f32 %v7512_v3, %v7499_v26  ;;  %v7751_v0 = vmul.f32 %v7716_v61, %v14340_v30  ;;  %v7640_v36 = vadd.f32 %v7639_v2, %v7601_v51 }
 0x6f1   :  { %v7680_v52 = vmul.f32 0.5, %v7679_v44  ;;  %v7620_v45 = vadd.f32 %v7619_v8, %v7618_v58 }
 0x6f2   :  { %v7527_v28 = vadd.f32 %v7526_v33, %v7513_v39  ;;  %7759 = vst [vmem:[%s14427_s12 + $0x20] sm:$0xff] %v7751_v0  ;;  %v7641_v62 = vrot.slane %v7640_v36, 2 }
 0x6f3   :  { %v7681_v27 = vsub.f32 1.5, %v7680_v52  ;;  %v7653_v37 = vmul.f32 %v7620_v45, %v14143_v25 }
 0x6f4   :  { %v7549_v53 = vrot.slane %v7527_v28, 4  ;;  %v11832_v49 = vpop.eup %11831  ;;  %v7642_v16 = vadd.f32 %v7641_v62, %v7640_v36 }
 0x6f5   :  { %v7682_v40 = vmul.f32 %v11830_v11, %v7681_v27  ;;  %v7718_v20 = vmul.f32 %v11832_v49, %v7664_v60  ;;  %v7661_v1 = vadd.f32 1e-05, %v7653_v37  ;;  %vm7724_vm5 = vweird.f32 %v11832_v49 }
 0x6f6   :  { %v7550_v18 = vadd.f32 %v7549_v53, %v7527_v28  ;;  %v7643_v19 = vrot.slane %v7642_v16, 1  ;;  %vm7725_vm7 = vmor %vm7723_vm6, %vm7724_vm5 }
 0x6f7   :  { %v7514_v30 = vpop.f32.mrf.mxu2  ;;  %v7528_v5 = vpop.f32.mrf.mxu3  ;;  %v7686_v17 = vsel %vm7685_vm4, %v11830_v11, %v7682_v40  ;;  %v7719_v10 = vmul.f32 %v11832_v49, %v7718_v20  ;;  %11833 = vrsqrt.f32 %v7661_v1  ;;  %vm7693_vm9 = vweird.f32 %v7661_v1 }
 0x6f8   :  { %v7515_v50 = vadd.f32 %v7514_v30, %v7501_v15  ;;  %v7551_v24 = vrot.slane %v7550_v18, 2  ;;  %v7748_v7 = vmul.f32 %v7686_v17, %v14346_v38  ;;  %v7644_v55 = vadd.f32 %v7643_v19, %v7642_v16 }
 0x6f9   :  { %v7720_v56 = vmul.f32 0.5, %v7719_v10 }
 0x6fa   :  { %v7529_v42 = vadd.f32 %v7528_v5, %v7515_v50  ;;  %v7552_v59 = vadd.f32 %v7551_v24, %v7550_v18  ;;  %7756 = vst [vmem:[%s14427_s12 + $0x8] sm:$0xff] %v7748_v7  ;;  %v7657_v48 = vmul.f32 %v7644_v55, %v14143_v25 }
 0x6fb   :  { %v7721_v54 = vsub.f32 1.5, %v7720_v56 }
 0x6fc   :  { %v7573_v9 = vrot.slane %v7529_v42, 4  ;;  %v7553_v34 = vrot.slane %v7552_v59, 1  ;;  %v7665_v6 = vadd.f32 1e-05, %v7657_v48 }
 0x6fd   :  { %v11834_v38 = vpop.eup %11833  ;;  %v7722_v32 = vmul.f32 %v11832_v49, %v7721_v54 }
 0x6fe   :  { %v7574_v23 = vadd.f32 %v7573_v9, %v7529_v42  ;;  %v7554_v46 = vadd.f32 %v7553_v34, %v7552_v59  ;;  %v7688_v12 = vmul.f32 %v11834_v38, %v7661_v1  ;;  %11835 = vrsqrt.f32 %v7665_v6 }
 0x6ff   :  { %v7726_v22 = vsel %vm7725_vm7, %v11832_v49, %v7722_v32  ;;  %vm7694_vm8 = vweird.f32 %v11834_v38  ;;  %vm7733_vm12 = vweird.f32 %v7665_v6 }
 0x700   :  { %v7575_v13 = vrot.slane %v7574_v23, 2  ;;  %v7582_v35 = vmul.f32 %v7554_v46, %v14143_v25  ;;  %v7752_v4 = vmul.f32 %v7726_v22, %v14352_v41  ;;  %v7689_v11 = vmul.f32 %v11834_v38, %v7688_v12  ;;  %vm7695_vm10 = vmor %vm7693_vm9, %vm7694_vm8 }
 0x702   :  { %v7576_v31 = vadd.f32 %v7575_v13, %v7574_v23  ;;  %v7590_v43 = vsub.f32 %v7527_v28, %v7582_v35  ;;  %7760 = vst [vmem:[%s14427_s12 + $0x28] sm:$0xff] %v7752_v4  ;;  %v7690_v3 = vmul.f32 0.5, %v7689_v11 }
 0x704   :  { %v7577_v26 = vrot.slane %v7576_v31, 1  ;;  %v7598_v33 = vmul.f32 %v7590_v43, %v7590_v43  ;;  %v7691_v63 = vsub.f32 1.5, %v7690_v3  ;;  %v11836_v51 = vpop.eup %11835 }
 0x705   :  { %v7728_v41 = vmul.f32 %v11836_v51, %v7665_v6  ;;  %vm7734_vm11 = vweird.f32 %v11836_v51 }
 0x706   :  { %v7578_v29 = vadd.f32 %v7577_v26, %v7576_v31  ;;  %v7621_v60 = vrot.slane %v7598_v33, 4  ;;  %v7692_v39 = vmul.f32 %v11834_v38, %v7691_v63  ;;  %vm7735_vm13 = vmor %vm7733_vm12, %vm7734_vm11 }
 0x707   :  { %v7729_v8 = vmul.f32 %v11836_v51, %v7728_v41 }
 0x708   :  { %v7586_v58 = vmul.f32 %v7578_v29, %v14143_v25  ;;  %v7622_v61 = vadd.f32 %v7621_v60, %v7598_v33  ;;  %v7696_v14 = vsel %vm7695_vm10, %v11834_v38, %v7692_v39 }
 0x709   :  { %v7749_v0 = vmul.f32 %v7696_v14, %v14362_v57  ;;  %v7730_v52 = vmul.f32 0.5, %v7729_v8 }
 0x70a   :  { %v7594_v44 = vsub.f32 %v7529_v42, %v7586_v58  ;;  %v7623_v2 = vrot.slane %v7622_v61, 2 }
 0x70b   :  { %7757 = vst [vmem:[%s14427_s12 + $0x10] sm:$0xff] %v7749_v0  ;;  %v7731_v21 = vsub.f32 1.5, %v7730_v52 }
 0x70c   :  { %v7602_v28 = vmul.f32 %v7594_v44, %v7594_v44  ;;  %v7624_v45 = vadd.f32 %v7623_v2, %v7622_v61 }
 0x70d   :  { %v7732_v15 = vmul.f32 %v11836_v51, %v7731_v21 }
 0x70e   :  { %v7645_v36 = vrot.slane %v7602_v28, 4  ;;  %v7625_v53 = vrot.slane %v7624_v45, 1 }
 0x70f   :  { %v7736_v57 = vsel %vm7735_vm13, %v11836_v51, %v7732_v15 }
 0x710   :  { %v7646_v27 = vadd.f32 %v7645_v36, %v7602_v28  ;;  %v7626_v37 = vadd.f32 %v7625_v53, %v7624_v45  ;;  %v7753_v49 = vmul.f32 %v7736_v57, %v14376_v47 }
 0x712   :  { %v7647_v62 = vrot.slane %v7646_v27, 2  ;;  %v7654_v18 = vmul.f32 %v7626_v37, %v14143_v25  ;;  %7761 = vst [vmem:[%s14427_s12 + $0x30] sm:$0xff] %v7753_v49 }
 0x714   :  { %v7648_v30 = vadd.f32 %v7647_v62, %v7646_v27  ;;  %v7662_v40 = vadd.f32 1e-05, %v7654_v18 }
 0x716   :  { %v7649_v50 = vrot.slane %v7648_v30, 1  ;;  %11837 = vrsqrt.f32 %v7662_v40  ;;  %vm7703_vm15 = vweird.f32 %v7662_v40 }
 0x718   :  { %v7650_v20 = vadd.f32 %v7649_v50, %v7648_v30 }
 0x71a   :  { %v7658_v1 = vmul.f32 %v7650_v20, %v14143_v25 }
 0x71c   :  { %v7666_v16 = vadd.f32 1e-05, %v7658_v1  ;;  %v11838_v5 = vpop.eup %11837 }
 0x71d   :  { %v7698_v17 = vmul.f32 %v11838_v5, %v7662_v40  ;;  %vm7704_vm14 = vweird.f32 %v11838_v5 }
 0x71e   :  { %11839 = vrsqrt.f32 %v7666_v16  ;;  %vm7705_vm0 = vmor %vm7703_vm15, %vm7704_vm14  ;;  %vm7743_vm2 = vweird.f32 %v7666_v16 }
 0x71f   :  { %v7699_v24 = vmul.f32 %v11838_v5, %v7698_v17 }
 0x721   :  { %v7700_v42 = vmul.f32 0.5, %v7699_v24 }
 0x723   :  { %v7701_v10 = vsub.f32 1.5, %v7700_v42 }
 0x724   :  { %v11840_v7 = vpop.eup %11839 }
 0x725   :  { %v7738_v47 = vmul.f32 %v11840_v7, %v7666_v16  ;;  %v7702_v19 = vmul.f32 %v11838_v5, %v7701_v10  ;;  %vm7744_vm1 = vweird.f32 %v11840_v7 }
 0x726   :  { %vm7745_vm3 = vmor %vm7743_vm2, %vm7744_vm1 }
 0x727   :  { %v7739_v59 = vmul.f32 %v11840_v7, %v7738_v47  ;;  %v7706_v9 = vsel %vm7705_vm0, %v11838_v5, %v7702_v19 }
 0x728   :  { %v7750_v55 = vmul.f32 %v7706_v9, %v7590_v43 }
 0x729   :  { %v7740_v56 = vmul.f32 0.5, %v7739_v59 }
 0x72a   :  { %7758 = vst [vmem:[%s14427_s12 + $0x18] sm:$0xff] %v7750_v55 }
 0x72b   :  { %v7741_v34 = vsub.f32 1.5, %v7740_v56 }
 0x72d   :  { %v7742_v25 = vmul.f32 %v11840_v7, %v7741_v34 }
 0x72f   :  { %v7746_v23 = vsel %vm7745_vm3, %v11840_v7, %v7742_v25 }
 0x730   :  { %v7754_v54 = vmul.f32 %v7746_v23, %v7594_v44 }
 0x732   :  { %7762 = vst [vmem:[%s14427_s12 + $0x38] sm:$0xff] %v7754_v54 }
 0x733   :  { %7767 = vsyncpa [#allocation3], 1 }
 0x734   :  { %7768 = vsyncpa [#allocation5], 1 }
 0x735   :  { %7769 = vsyncpa [#allocation8], 1 }

</bundles_post_ra>
